<compile_context>
chip_gen: v7x
topology: tpu7x:2x2x1
jax: 0.10.0
libtpu: 0.0.40
codegen_flags: <defaults>
</compile_context>

<pallas_src>
import math

import jax
import jax.numpy as jnp
from jax.experimental import pallas as pl
from jax.experimental.pallas import tpu as pltpu

VMEM_LIMIT = 32 * 1024 * 1024

# Module-spec constants (the PyTorch class hard-codes 16*3*13*13 = 48*13*13).
CONV1_OUT = 18
CONV2_OUT = 48
NUM_CLASSES = 10
FC_SPATIAL = 13
K = 5  # conv kernel size for both convs


def _round_up(x, m):
    return (x + m - 1) // m * m


# ----------------------------------------------------------------------------
# Pallas kernels
# ----------------------------------------------------------------------------
def _conv_relu_pool_kernel(p_ref, w_ref, b_ref, o_ref):
    """One image: im2col-conv as a single big matmul + fused bias/ReLU/2x2-pool.

    p_ref : [1, 4*Npp, Kd]  patch rows; 4 contiguous slabs, one per pool
                            offset (dh,dw), each slab ordered (hp, wp).
    w_ref : [Kd, C]         flattened conv weights (lane-dense padded)
    b_ref : [1, C]
    o_ref : [1, Npp, C]     pooled output rows, ordered (hp, wp)
    """
    npp = o_ref.shape[1]
    y = jnp.dot(p_ref[0], w_ref[...], preferred_element_type=jnp.float32)
    # 2x2 max-pool == elementwise max over the 4 contiguous slabs.
    m = jnp.maximum(jnp.maximum(y[0:npp], y[npp:2 * npp]),
                    jnp.maximum(y[2 * npp:3 * npp], y[3 * npp:4 * npp]))
    # Bias + ReLU once, after the max (exact: shared bias, monotone ReLU).
    o_ref[0] = jnp.maximum(m + b_ref[...], 0.0)


def _mlp3_kernel(x_ref, w1_ref, b1_ref, w2_ref, b2_ref, w3_ref, b3_ref, o_ref):
    """Fused fc1(ReLU) -> fc2(ReLU) -> fc3; all intermediates stay in VMEM."""
    h = jnp.dot(x_ref[...], w1_ref[...], preferred_element_type=jnp.float32) + b1_ref[...]
    h = jnp.maximum(h, 0.0)
    h = jnp.dot(h, w2_ref[...], preferred_element_type=jnp.float32) + b2_ref[...]
    h = jnp.maximum(h, 0.0)
    o_ref[...] = jnp.dot(h, w3_ref[...], preferred_element_type=jnp.float32) + b3_ref[...]


# ----------------------------------------------------------------------------
# Host-side im2col (pool-friendly row order, single patch-tensor write)
# ----------------------------------------------------------------------------
def _pooled_patches(x_nhwc, k, kdp, npp):
    """x: [B,H,W,Cin] -> [B, 4*npp, kdp].

    Four contiguous slabs (pool offsets (0,0),(0,1),(1,0),(1,1)); each slab
    holds the Hp*Wp patch rows in (hp, wp) order (row-padded to npp, feature
    dim (kh,kw,cin) zero-padded to kdp).  Built directly from the small raw
    input, so only one blown-up patch tensor is ever written to HBM.
    """
    B, H, W, Cin = x_nhwc.shape
    Ho, Wo = H - k + 1, W - k + 1
    Hp, Wp = Ho // 2, Wo // 2
    kd = Cin * k * k
    slabs = []
    for dh in range(2):
        for dw in range(2):
            cols = [x_nhwc[:, kh + dh:kh + dh + 2 * Hp:2,
                           kw + dw:kw + dw + 2 * Wp:2, :]
                    for kh in range(k) for kw in range(k)]
            slabs.append(jnp.concatenate(cols, axis=-1).reshape(B, Hp * Wp, kd))
    p = jnp.stack(slabs, axis=1)                                   # [B,4,Np,kd]
    p = jnp.pad(p, ((0, 0), (0, 0), (0, npp - Hp * Wp), (0, kdp - kd)))
    return p.reshape(B, 4 * npp, kdp)


# ----------------------------------------------------------------------------
# pallas_call wrappers
# ----------------------------------------------------------------------------
def conv_relu_pool(patches, wk, bk, npp):
    """patches: [B, 4*npp, kdp]; wk: [kdp, cp]; bk: [1, cp] -> [B, npp, cp]."""
    B, m4, kdp = patches.shape
    cp = wk.shape[1]
    return pl.pallas_call(
        _conv_relu_pool_kernel,
        out_shape=jax.ShapeDtypeStruct((B, npp, cp), jnp.float32),
        grid=(B,),
        in_specs=[pl.BlockSpec((1, m4, kdp), lambda b: (b, 0, 0)),
                  pl.BlockSpec((kdp, cp), lambda b: (0, 0)),
                  pl.BlockSpec((1, cp), lambda b: (0, 0))],
        out_specs=pl.BlockSpec((1, npp, cp), lambda b: (b, 0, 0)),
        compiler_params=pltpu.CompilerParams(
            dimension_semantics=("parallel",),
            vmem_limit_bytes=VMEM_LIMIT),
    )(patches, wk, bk)


def mlp3(x, w1, b1, w2, b2, w3, b3):
    """Fused 3-layer MLP. x: [M, K1] (K1 already 128-padded); weights padded."""
    M, K1 = x.shape
    tm = _round_up(M, 8) if M < 128 else 128
    Mp = _round_up(M, tm)
    if Mp > M:
        x = jnp.pad(x, ((0, Mp - M), (0, 0)))
    H0, H1, N = w1.shape[1], w2.shape[1], w3.shape[1]

    out = pl.pallas_call(
        _mlp3_kernel,
        out_shape=jax.ShapeDtypeStruct((Mp, N), jnp.float32),
        grid=(Mp // tm,),
        in_specs=[pl.BlockSpec((tm, K1), lambda i: (i, 0)),
                  pl.BlockSpec((K1, H0), lambda i: (0, 0)),
                  pl.BlockSpec((1, H0), lambda i: (0, 0)),
                  pl.BlockSpec((H0, H1), lambda i: (0, 0)),
                  pl.BlockSpec((1, H1), lambda i: (0, 0)),
                  pl.BlockSpec((H1, N), lambda i: (0, 0)),
                  pl.BlockSpec((1, N), lambda i: (0, 0))],
        out_specs=pl.BlockSpec((tm, N), lambda i: (i, 0)),
        compiler_params=pltpu.CompilerParams(
            dimension_semantics=("parallel",),
            vmem_limit_bytes=VMEM_LIMIT),
    )(x, w1, b1, w2, b2, w3, b3)
    return out[:M]


# ----------------------------------------------------------------------------
# One-time parameter preparation (pad lane-dense, fold layout permutations)
# ----------------------------------------------------------------------------
def prepare_params(p):
    def conv_prep(w, b):
        Cout, Cin, k, _ = w.shape
        kd = Cin * k * k
        kdp, cp = _round_up(kd, 128), _round_up(Cout, 128)
        wk = jnp.transpose(w, (2, 3, 1, 0)).reshape(kd, Cout)   # (kh,kw,ci) x co
        wk = jnp.pad(wk, ((0, kdp - kd), (0, cp - Cout)))
        bk = jnp.pad(b, (0, cp - Cout)).reshape(1, cp)
        return wk, bk

    def fc_prep(w, b):                                          # w: [n_out, n_in] torch layout
        n_out, n_in = w.shape
        kp, npad = _round_up(n_in, 128), _round_up(n_out, 128)
        wt = jnp.pad(w.T, ((0, kp - n_in), (0, npad - n_out)))
        bb = jnp.pad(b, (0, npad - n_out)).reshape(1, npad)
        return wt, bb

    pp = {}
    pp["c1_w"], pp["c1_b"] = conv_prep(p["conv1_w"], p["conv1_b"])
    pp["c2_w"], pp["c2_b"] = conv_prep(p["conv2_w"], p["conv2_b"])

    # fc1: torch flattens NCHW (c,h,w); our activations are NHWC (h,w,c).
    # Fold the permutation into the weight once (free at init).
    H0 = p["fc1_w"].shape[0]
    w1 = (p["fc1_w"].reshape(H0, CONV2_OUT, FC_SPATIAL, FC_SPATIAL)
          .transpose(0, 2, 3, 1).reshape(H0, CONV2_OUT * FC_SPATIAL * FC_SPATIAL))
    pp["f1_w"], pp["f1_b"] = fc_prep(w1, p["fc1_b"])
    pp["f2_w"], pp["f2_b"] = fc_prep(p["fc2_w"], p["fc2_b"])
    pp["f3_w"], pp["f3_b"] = fc_prep(p["fc3_w"], p["fc3_b"])
    return pp


# ----------------------------------------------------------------------------
# Forward pass (Pallas-backed)
# ----------------------------------------------------------------------------
@jax.jit
def forward_pallas(pp, x):
    # x: [B, 3, 64, 64] NCHW (PyTorch layout) -> NHWC once.
    B = x.shape[0]
    x = jnp.transpose(x, (0, 2, 3, 1))                              # [B,64,64,3]

    # conv1 + bias + ReLU + 2x2 pool  (one grid step per image)
    hp1 = (x.shape[1] - K + 1) // 2                                 # 30
    np1, npp1 = hp1 * hp1, _round_up(hp1 * hp1, 8)                  # 900, 904
    p1 = _pooled_patches(x, K, pp["c1_w"].shape[0], npp1)           # [B,3616,128]
    y1 = conv_relu_pool(p1, pp["c1_w"], pp["c1_b"], npp1)           # [B,904,128]
    a1 = y1[:, :np1, :CONV1_OUT].reshape(B, hp1, hp1, CONV1_OUT)    # [B,30,30,18]

    # conv2 + bias + ReLU + 2x2 pool
    hp2 = (hp1 - K + 1) // 2                                        # 13
    np2, npp2 = hp2 * hp2, _round_up(hp2 * hp2, 8)                  # 169, 176
    p2 = _pooled_patches(a1, K, pp["c2_w"].shape[0], npp2)          # [B,704,512]
    y2 = conv_relu_pool(p2, pp["c2_w"], pp["c2_b"], npp2)           # [B,176,128]
    h = y2[:, :np2, :CONV2_OUT].reshape(B, np2 * CONV2_OUT)         # [B,8112] (h,w,c)

    k1p = pp["f1_w"].shape[0]
    h = jnp.pad(h, ((0, 0), (0, k1p - h.shape[1])))                 # [B, 8192]
    out = mlp3(h, pp["f1_w"], pp["f1_b"], pp["f2_w"], pp["f2_b"],
               pp["f3_w"], pp["f3_b"])                              # [B, 128]
    return out[:, :NUM_CLASSES]


# ----------------------------------------------------------------------------
# Parameter init (deterministic, PyTorch-style uniform(-1/sqrt(fan_in), ..))
# ----------------------------------------------------------------------------
def _uniform(key, shape, fan_in):
    bound = 1.0 / math.sqrt(fan_in)
    return jax.random.uniform(key, shape, jnp.float32, -bound, bound)


def init_params(key, input_dim=CONV2_OUT * FC_SPATIAL * FC_SPATIAL,
                hidden_dims=(120, 84), output_dim=NUM_CLASSES):
    ks = jax.random.split(key, 10)
    p = {}
    p["conv1_w"] = _uniform(ks[0], (CONV1_OUT, 3, 5, 5), 3 * 5 * 5)
    p["conv1_b"] = _uniform(ks[1], (CONV1_OUT,), 3 * 5 * 5)
    p["conv2_w"] = _uniform(ks[2], (CONV2_OUT, CONV1_OUT, 5, 5), CONV1_OUT * 5 * 5)
    p["conv2_b"] = _uniform(ks[3], (CONV2_OUT,), CONV1_OUT * 5 * 5)
    p["fc1_w"] = _uniform(ks[4], (hidden_dims[0], input_dim), input_dim)
    p["fc1_b"] = _uniform(ks[5], (hidden_dims[0],), input_dim)
    p["fc2_w"] = _uniform(ks[6], (hidden_dims[1], hidden_dims[0]), hidden_dims[0])
    p["fc2_b"] = _uniform(ks[7], (hidden_dims[1],), hidden_dims[0])
    p["fc3_w"] = _uniform(ks[8], (output_dim, hidden_dims[1]), hidden_dims[1])
    p["fc3_b"] = _uniform(ks[9], (output_dim,), hidden_dims[1])
    return p


# ----------------------------------------------------------------------------
# Pure-JAX reference (faithful to the PyTorch module, for correctness check)
# ----------------------------------------------------------------------------
def forward_ref(p, x):
    hi = jax.lax.Precision.HIGHEST

    def conv(x, w, b):
        y = jax.lax.conv_general_dilated(
            x, w, window_strides=(1, 1), padding="VALID",
            dimension_numbers=("NCHW", "OIHW", "NCHW"), precision=hi)
        return y + b.reshape(1, -1, 1, 1)

    def pool(x):
        B, C, H, W = x.shape
        return x.reshape(B, C, H // 2, 2, W // 2, 2).max(axis=(3, 5))

    x = pool(jnp.maximum(conv(x, p["conv1_w"], p["conv1_b"]), 0.0))
    x = pool(jnp.maximum(conv(x, p["conv2_w"], p["conv2_b"]), 0.0))
    x = x.reshape(x.shape[0], -1)                                   # NCHW flatten == torch .view
    x = jnp.maximum(jnp.dot(x, p["fc1_w"].T, precision=hi) + p["fc1_b"], 0.0)
    x = jnp.maximum(jnp.dot(x, p["fc2_w"].T, precision=hi) + p["fc2_b"], 0.0)
    return jnp.dot(x, p["fc3_w"].T, precision=hi) + p["fc3_b"]


if __name__ == "__main__":
    key = jax.random.PRNGKey(0)
    k_param, k_x = jax.random.split(key)
    params = init_params(k_param)
    pp = prepare_params(params)

    # TinyImageNet-shaped input (forced by the hard-coded 16*3*13*13 flatten).
    x = jax.random.normal(k_x, (2, 3, 64, 64), jnp.float32)

    out = jax.block_until_ready(forward_pallas(pp, x))
    ref = jax.block_until_ready(forward_ref(params, x))

    assert out.shape == (2, NUM_CLASSES), out.shape
    err = float(jnp.max(jnp.abs(out - ref)))
    assert jnp.allclose(out, ref, atol=2e-3, rtol=2e-3), f"mismatch vs reference: {err}"
    print("KERNEL_OK")
</pallas_src>

<mosaic_0001>
module attributes {stable_mosaic.version = 11 : i64} {
  func.func @_conv_relu_pool_kernel(%arg0: i32, %arg1: memref<1x3616x128xf32, #tpu.memory_space<vmem>>, %arg2: memref<128x128xf32, #tpu.memory_space<vmem>>, %arg3: memref<1x128xf32, #tpu.memory_space<vmem>>, %arg4: memref<1x904x128xf32, #tpu.memory_space<vmem>>) attributes {dimension_semantics = [#tpu.dimension_semantics<parallel>], iteration_bounds = array<i64: 2>, scalar_prefetch = 0 : i64, scratch_operands = 0 : i64, tpu.core_type = #tpu.core_type<tc>, window_params = [{transform_indices = @transform_0, window_bounds = array<i64: 1, 3616, 128>}, {pipeline_mode = #tpu.pipeline_mode<synchronous>, transform_indices = @transform_1, window_bounds = array<i64: 128, 128>}, {pipeline_mode = #tpu.pipeline_mode<synchronous>, transform_indices = @transform_2, window_bounds = array<i64: 1, 128>}, {transform_indices = @transform_3, window_bounds = array<i64: 1, 904, 128>}]} {
    %c0 = arith.constant 0 : index
    %c0_0 = arith.constant 0 : index
    %c0_1 = arith.constant 0 : index
    %0 = vector.load %arg1[%c0, %c0_0, %c0_1] : memref<1x3616x128xf32, #tpu.memory_space<vmem>>, vector<1x3616x128xf32>
    %1 = vector.shape_cast %0 : vector<1x3616x128xf32> to vector<3616x128xf32>
    %c0_2 = arith.constant 0 : index
    %c0_3 = arith.constant 0 : index
    %2 = vector.load %arg2[%c0_2, %c0_3] : memref<128x128xf32, #tpu.memory_space<vmem>>, vector<128x128xf32>
    %cst = arith.constant dense<0.000000e+00> : vector<3616x128xf32>
    %3 = tpu.matmul %1, %2, %cst {dimension_numbers = #tpu.dot_dimension_numbers<[1], [0], [0], [1], [0, 0, 1, 1], [], []>} : vector<3616x128xf32>, vector<128x128xf32>, vector<3616x128xf32> -> vector<3616x128xf32>
    %4 = vector.extract_strided_slice %3 {offsets = [0, 0], sizes = [904, 128], strides = [1, 1]} : vector<3616x128xf32> to vector<904x128xf32>
    %5 = vector.extract_strided_slice %3 {offsets = [904, 0], sizes = [904, 128], strides = [1, 1]} : vector<3616x128xf32> to vector<904x128xf32>
    %6 = arith.maximumf %4, %5 : vector<904x128xf32>
    %7 = vector.extract_strided_slice %3 {offsets = [1808, 0], sizes = [904, 128], strides = [1, 1]} : vector<3616x128xf32> to vector<904x128xf32>
    %8 = vector.extract_strided_slice %3 {offsets = [2712, 0], sizes = [904, 128], strides = [1, 1]} : vector<3616x128xf32> to vector<904x128xf32>
    %9 = arith.maximumf %7, %8 : vector<904x128xf32>
    %10 = arith.maximumf %6, %9 : vector<904x128xf32>
    %c0_4 = arith.constant 0 : index
    %c0_5 = arith.constant 0 : index
    %11 = vector.load %arg3[%c0_4, %c0_5] : memref<1x128xf32, #tpu.memory_space<vmem>>, vector<1x128xf32>
    %12 = vector.broadcast %11 : vector<1x128xf32> to vector<904x128xf32>
    %13 = arith.addf %10, %12 : vector<904x128xf32>
    %cst_6 = arith.constant 0.000000e+00 : f32
    %14 = vector.broadcast %cst_6 : f32 to vector<904x128xf32>
    %15 = arith.maximumf %13, %14 : vector<904x128xf32>
    %c0_7 = arith.constant 0 : index
    %c0_8 = arith.constant 0 : index
    %c0_9 = arith.constant 0 : index
    %16 = vector.load %arg4[%c0_7, %c0_8, %c0_9] : memref<1x904x128xf32, #tpu.memory_space<vmem>>, vector<1x904x128xf32>
    %17 = vector.shape_cast %16 : vector<1x904x128xf32> to vector<904x128xf32>
    %18 = vector.shape_cast %15 : vector<904x128xf32> to vector<1x904x128xf32>
    tpu.vector_store %arg4[%c0_7, %c0_8, %c0_9], %18 {strides = array<i32>} : memref<1x904x128xf32, #tpu.memory_space<vmem>>, vector<1x904x128xf32>,
    return
  }
  func.func @transform_0(%arg0: i32) -> (i32, i32, i32) {
    %c0_i32 = arith.constant 0 : i32
    %c0_i32_0 = arith.constant 0 : i32
    %c0_i32_1 = arith.constant 0 : i32
    return %arg0, %c0_i32, %c0_i32_0 : i32, i32, i32
  }
  func.func @transform_1(%arg0: i32) -> (i32, i32) {
    %c0_i32 = arith.constant 0 : i32
    %c0_i32_0 = arith.constant 0 : i32
    %c0_i32_1 = arith.constant 0 : i32
    return %c0_i32, %c0_i32_0 : i32, i32
  }
  func.func @transform_2(%arg0: i32) -> (i32, i32) {
    %c0_i32 = arith.constant 0 : i32
    %c0_i32_0 = arith.constant 0 : i32
    %c0_i32_1 = arith.constant 0 : i32
    return %c0_i32, %c0_i32_0 : i32, i32
  }
  func.func @transform_3(%arg0: i32) -> (i32, i32, i32) {
    %c0_i32 = arith.constant 0 : i32
    %c0_i32_0 = arith.constant 0 : i32
    %c0_i32_1 = arith.constant 0 : i32
    return %arg0, %c0_i32, %c0_i32_0 : i32, i32, i32
  }
}

module attributes {stable_mosaic.version = 11 : i64} {
  func.func @_conv_relu_pool_kernel(%arg0: i32, %arg1: memref<1x704x512xf32, #tpu.memory_space<vmem>>, %arg2: memref<512x128xf32, #tpu.memory_space<vmem>>, %arg3: memref<1x128xf32, #tpu.memory_space<vmem>>, %arg4: memref<1x176x128xf32, #tpu.memory_space<vmem>>) attributes {dimension_semantics = [#tpu.dimension_semantics<parallel>], iteration_bounds = array<i64: 2>, scalar_prefetch = 0 : i64, scratch_operands = 0 : i64, tpu.core_type = #tpu.core_type<tc>, window_params = [{transform_indices = @transform_0, window_bounds = array<i64: 1, 704, 512>}, {pipeline_mode = #tpu.pipeline_mode<synchronous>, transform_indices = @transform_1, window_bounds = array<i64: 512, 128>}, {pipeline_mode = #tpu.pipeline_mode<synchronous>, transform_indices = @transform_2, window_bounds = array<i64: 1, 128>}, {transform_indices = @transform_3, window_bounds = array<i64: 1, 176, 128>}]} {
    %c0 = arith.constant 0 : index
    %c0_0 = arith.constant 0 : index
    %c0_1 = arith.constant 0 : index
    %0 = vector.load %arg1[%c0, %c0_0, %c0_1] : memref<1x704x512xf32, #tpu.memory_space<vmem>>, vector<1x704x512xf32>
    %1 = vector.shape_cast %0 : vector<1x704x512xf32> to vector<704x512xf32>
    %c0_2 = arith.constant 0 : index
    %c0_3 = arith.constant 0 : index
    %2 = vector.load %arg2[%c0_2, %c0_3] : memref<512x128xf32, #tpu.memory_space<vmem>>, vector<512x128xf32>
    %cst = arith.constant dense<0.000000e+00> : vector<704x128xf32>
    %3 = tpu.matmul %1, %2, %cst {dimension_numbers = #tpu.dot_dimension_numbers<[1], [0], [0], [1], [0, 0, 1, 1], [], []>} : vector<704x512xf32>, vector<512x128xf32>, vector<704x128xf32> -> vector<704x128xf32>
    %4 = vector.extract_strided_slice %3 {offsets = [0, 0], sizes = [176, 128], strides = [1, 1]} : vector<704x128xf32> to vector<176x128xf32>
    %5 = vector.extract_strided_slice %3 {offsets = [176, 0], sizes = [176, 128], strides = [1, 1]} : vector<704x128xf32> to vector<176x128xf32>
    %6 = arith.maximumf %4, %5 : vector<176x128xf32>
    %7 = vector.extract_strided_slice %3 {offsets = [352, 0], sizes = [176, 128], strides = [1, 1]} : vector<704x128xf32> to vector<176x128xf32>
    %8 = vector.extract_strided_slice %3 {offsets = [528, 0], sizes = [176, 128], strides = [1, 1]} : vector<704x128xf32> to vector<176x128xf32>
    %9 = arith.maximumf %7, %8 : vector<176x128xf32>
    %10 = arith.maximumf %6, %9 : vector<176x128xf32>
    %c0_4 = arith.constant 0 : index
    %c0_5 = arith.constant 0 : index
    %11 = vector.load %arg3[%c0_4, %c0_5] : memref<1x128xf32, #tpu.memory_space<vmem>>, vector<1x128xf32>
    %12 = vector.broadcast %11 : vector<1x128xf32> to vector<176x128xf32>
    %13 = arith.addf %10, %12 : vector<176x128xf32>
    %cst_6 = arith.constant 0.000000e+00 : f32
    %14 = vector.broadcast %cst_6 : f32 to vector<176x128xf32>
    %15 = arith.maximumf %13, %14 : vector<176x128xf32>
    %c0_7 = arith.constant 0 : index
    %c0_8 = arith.constant 0 : index
    %c0_9 = arith.constant 0 : index
    %16 = vector.load %arg4[%c0_7, %c0_8, %c0_9] : memref<1x176x128xf32, #tpu.memory_space<vmem>>, vector<1x176x128xf32>
    %17 = vector.shape_cast %16 : vector<1x176x128xf32> to vector<176x128xf32>
    %18 = vector.shape_cast %15 : vector<176x128xf32> to vector<1x176x128xf32>
    tpu.vector_store %arg4[%c0_7, %c0_8, %c0_9], %18 {strides = array<i32>} : memref<1x176x128xf32, #tpu.memory_space<vmem>>, vector<1x176x128xf32>,
    return
  }
  func.func @transform_0(%arg0: i32) -> (i32, i32, i32) {
    %c0_i32 = arith.constant 0 : i32
    %c0_i32_0 = arith.constant 0 : i32
    %c0_i32_1 = arith.constant 0 : i32
    return %arg0, %c0_i32, %c0_i32_0 : i32, i32, i32
  }
  func.func @transform_1(%arg0: i32) -> (i32, i32) {
    %c0_i32 = arith.constant 0 : i32
    %c0_i32_0 = arith.constant 0 : i32
    %c0_i32_1 = arith.constant 0 : i32
    return %c0_i32, %c0_i32_0 : i32, i32
  }
  func.func @transform_2(%arg0: i32) -> (i32, i32) {
    %c0_i32 = arith.constant 0 : i32
    %c0_i32_0 = arith.constant 0 : i32
    %c0_i32_1 = arith.constant 0 : i32
    return %c0_i32, %c0_i32_0 : i32, i32
  }
  func.func @transform_3(%arg0: i32) -> (i32, i32, i32) {
    %c0_i32 = arith.constant 0 : i32
    %c0_i32_0 = arith.constant 0 : i32
    %c0_i32_1 = arith.constant 0 : i32
    return %arg0, %c0_i32, %c0_i32_0 : i32, i32, i32
  }
}

module attributes {stable_mosaic.version = 11 : i64} {
  func.func @_mlp3_kernel(%arg0: i32, %arg1: memref<8x8192xf32, #tpu.memory_space<vmem>>, %arg2: memref<8192x128xf32, #tpu.memory_space<vmem>>, %arg3: memref<1x128xf32, #tpu.memory_space<vmem>>, %arg4: memref<128x128xf32, #tpu.memory_space<vmem>>, %arg5: memref<1x128xf32, #tpu.memory_space<vmem>>, %arg6: memref<128x128xf32, #tpu.memory_space<vmem>>, %arg7: memref<1x128xf32, #tpu.memory_space<vmem>>, %arg8: memref<8x128xf32, #tpu.memory_space<vmem>>) attributes {dimension_semantics = [#tpu.dimension_semantics<parallel>], iteration_bounds = array<i64: 1>, scalar_prefetch = 0 : i64, scratch_operands = 0 : i64, tpu.core_type = #tpu.core_type<tc>, window_params = [{transform_indices = @transform_0, window_bounds = array<i64: 8, 8192>}, {pipeline_mode = #tpu.pipeline_mode<synchronous>, transform_indices = @transform_1, window_bounds = array<i64: 8192, 128>}, {pipeline_mode = #tpu.pipeline_mode<synchronous>, transform_indices = @transform_2, window_bounds = array<i64: 1, 128>}, {pipeline_mode = #tpu.pipeline_mode<synchronous>, transform_indices = @transform_3, window_bounds = array<i64: 128, 128>}, {pipeline_mode = #tpu.pipeline_mode<synchronous>, transform_indices = @transform_4, window_bounds = array<i64: 1, 128>}, {pipeline_mode = #tpu.pipeline_mode<synchronous>, transform_indices = @transform_5, window_bounds = array<i64: 128, 128>}, {pipeline_mode = #tpu.pipeline_mode<synchronous>, transform_indices = @transform_6, window_bounds = array<i64: 1, 128>}, {transform_indices = @transform_7, window_bounds = array<i64: 8, 128>}]} {
    %c0 = arith.constant 0 : index
    %c0_0 = arith.constant 0 : index
    %0 = vector.load %arg1[%c0, %c0_0] : memref<8x8192xf32, #tpu.memory_space<vmem>>, vector<8x8192xf32>
    %c0_1 = arith.constant 0 : index
    %c0_2 = arith.constant 0 : index
    %1 = vector.load %arg2[%c0_1, %c0_2] : memref<8192x128xf32, #tpu.memory_space<vmem>>, vector<8192x128xf32>
    %cst = arith.constant dense<0.000000e+00> : vector<8x128xf32>
    %2 = tpu.matmul %0, %1, %cst {dimension_numbers = #tpu.dot_dimension_numbers<[1], [0], [0], [1], [0, 0, 1, 1], [], []>} : vector<8x8192xf32>, vector<8192x128xf32>, vector<8x128xf32> -> vector<8x128xf32>
    %c0_3 = arith.constant 0 : index
    %c0_4 = arith.constant 0 : index
    %3 = vector.load %arg3[%c0_3, %c0_4] : memref<1x128xf32, #tpu.memory_space<vmem>>, vector<1x128xf32>
    %4 = vector.broadcast %3 : vector<1x128xf32> to vector<8x128xf32>
    %5 = arith.addf %2, %4 : vector<8x128xf32>
    %cst_5 = arith.constant 0.000000e+00 : f32
    %6 = vector.broadcast %cst_5 : f32 to vector<8x128xf32>
    %7 = arith.maximumf %5, %6 : vector<8x128xf32>
    %c0_6 = arith.constant 0 : index
    %c0_7 = arith.constant 0 : index
    %8 = vector.load %arg4[%c0_6, %c0_7] : memref<128x128xf32, #tpu.memory_space<vmem>>, vector<128x128xf32>
    %cst_8 = arith.constant dense<0.000000e+00> : vector<8x128xf32>
    %9 = tpu.matmul %7, %8, %cst_8 {dimension_numbers = #tpu.dot_dimension_numbers<[1], [0], [0], [1], [0, 0, 1, 1], [], []>} : vector<8x128xf32>, vector<128x128xf32>, vector<8x128xf32> -> vector<8x128xf32>
    %c0_9 = arith.constant 0 : index
    %c0_10 = arith.constant 0 : index
    %10 = vector.load %arg5[%c0_9, %c0_10] : memref<1x128xf32, #tpu.memory_space<vmem>>, vector<1x128xf32>
    %11 = vector.broadcast %10 : vector<1x128xf32> to vector<8x128xf32>
    %12 = arith.addf %9, %11 : vector<8x128xf32>
    %cst_11 = arith.constant 0.000000e+00 : f32
    %13 = vector.broadcast %cst_11 : f32 to vector<8x128xf32>
    %14 = arith.maximumf %12, %13 : vector<8x128xf32>
    %c0_12 = arith.constant 0 : index
    %c0_13 = arith.constant 0 : index
    %15 = vector.load %arg6[%c0_12, %c0_13] : memref<128x128xf32, #tpu.memory_space<vmem>>, vector<128x128xf32>
    %cst_14 = arith.constant dense<0.000000e+00> : vector<8x128xf32>
    %16 = tpu.matmul %14, %15, %cst_14 {dimension_numbers = #tpu.dot_dimension_numbers<[1], [0], [0], [1], [0, 0, 1, 1], [], []>} : vector<8x128xf32>, vector<128x128xf32>, vector<8x128xf32> -> vector<8x128xf32>
    %c0_15 = arith.constant 0 : index
    %c0_16 = arith.constant 0 : index
    %17 = vector.load %arg7[%c0_15, %c0_16] : memref<1x128xf32, #tpu.memory_space<vmem>>, vector<1x128xf32>
    %18 = vector.broadcast %17 : vector<1x128xf32> to vector<8x128xf32>
    %19 = arith.addf %16, %18 : vector<8x128xf32>
    %c0_17 = arith.constant 0 : index
    %c0_18 = arith.constant 0 : index
    %20 = vector.load %arg8[%c0_17, %c0_18] : memref<8x128xf32, #tpu.memory_space<vmem>>, vector<8x128xf32>
    tpu.vector_store %arg8[%c0_17, %c0_18], %19 {strides = array<i32>} : memref<8x128xf32, #tpu.memory_space<vmem>>, vector<8x128xf32>,
    return
  }
  func.func @transform_0(%arg0: i32) -> (i32, i32) {
    %c0_i32 = arith.constant 0 : i32
    %c0_i32_0 = arith.constant 0 : i32
    return %arg0, %c0_i32 : i32, i32
  }
  func.func @transform_1(%arg0: i32) -> (i32, i32) {
    %c0_i32 = arith.constant 0 : i32
    %c0_i32_0 = arith.constant 0 : i32
    %c0_i32_1 = arith.constant 0 : i32
    return %c0_i32, %c0_i32_0 : i32, i32
  }
  func.func @transform_2(%arg0: i32) -> (i32, i32) {
    %c0_i32 = arith.constant 0 : i32
    %c0_i32_0 = arith.constant 0 : i32
    %c0_i32_1 = arith.constant 0 : i32
    return %c0_i32, %c0_i32_0 : i32, i32
  }
  func.func @transform_3(%arg0: i32) -> (i32, i32) {
    %c0_i32 = arith.constant 0 : i32
    %c0_i32_0 = arith.constant 0 : i32
    %c0_i32_1 = arith.constant 0 : i32
    return %c0_i32, %c0_i32_0 : i32, i32
  }
  func.func @transform_4(%arg0: i32) -> (i32, i32) {
    %c0_i32 = arith.constant 0 : i32
    %c0_i32_0 = arith.constant 0 : i32
    %c0_i32_1 = arith.constant 0 : i32
    return %c0_i32, %c0_i32_0 : i32, i32
  }
  func.func @transform_5(%arg0: i32) -> (i32, i32) {
    %c0_i32 = arith.constant 0 : i32
    %c0_i32_0 = arith.constant 0 : i32
    %c0_i32_1 = arith.constant 0 : i32
    return %c0_i32, %c0_i32_0 : i32, i32
  }
  func.func @transform_6(%arg0: i32) -> (i32, i32) {
    %c0_i32 = arith.constant 0 : i32
    %c0_i32_0 = arith.constant 0 : i32
    %c0_i32_1 = arith.constant 0 : i32
    return %c0_i32, %c0_i32_0 : i32, i32
  }
  func.func @transform_7(%arg0: i32) -> (i32, i32) {
    %c0_i32 = arith.constant 0 : i32
    %c0_i32_0 = arith.constant 0 : i32
    return %arg0, %c0_i32 : i32, i32
  }
}

</mosaic_0001>

<bundles_post_ra>
// kernel: forward_pallas.3
= control target key start
LH: loop header
LB: loop body
LE: loop exit
PB: predicated region body
PF: predicated region fallthrough
CT: control target
= control target key end

     0   :  { %s4979_s12 = smov 0   ;;  %s6418_s0 = inlined_call_operand.vmem [shape: f32[2,3616,128], index: 0, kind: input, shape index: {}]   ;;  %s6419_s1 = inlined_call_operand.vmem [shape: f32[128,128], index: 1, kind: input, shape index: {}]   ;;  %s6420_s2 = inlined_call_operand.vmem [shape: f32[1,128], index: 2, kind: input, shape index: {}]   ;;  %s6421_s3 = inlined_call_operand.vmem [shape: f32[2,904,128], index: 3, kind: output, shape index: {}]  }
   0x1 LB: > { %s3704_s13 = sadd.s32 4294967295, %s4957_s12   ;;  %p3708_p0 = scmp.ge.s32.totalorder %s4957_s12, 1  ;;  %s4957_s12 = sphi %s4979_s12, %s13_s12  }
   0x2   : > { %p137_p1 = scmp.lt.s32.totalorder %s4957_s12, 3 }
   0x4   : > { %p138_p2 = pnand %p3708_p0, %p137_p1 }
   0x6   : > { %141 = sbr.rel (%p138_p2) target bundleno = 719 (0x2cf), region = 32 }
   0xd   : > { %v623_v0 = vld [vmem:[%s6419_s1] sm:$0xff]  ;;  %v624_v1 = vld [vmem:[%s6419_s1 + $0x8] sm:$0xff]  ;;  %v625_v2 = vld [vmem:[%s6419_s1 + $0x10] sm:$0xff]  ;;  %p161_p3 = scmp.lt.s32.totalorder %s3704_s13, 1 }
   0xe   : > { %v4892_v3 = vpack.c.bf16 %v624_v1, %v623_v0  ;;  %v626_v4 = vld [vmem:[%s6419_s1 + $0x18] sm:$0xff]  ;;  %v627_v6 = vld [vmem:[%s6419_s1 + $0x20] sm:$0xff]  ;;  %v628_v7 = vld [vmem:[%s6419_s1 + $0x28] sm:$0xff] }
   0xf   : > { %v4896_v5 = vpack.c.bf16 %v626_v4, %v625_v2  ;;  %s6779_s13 = smov (!%p161_p3, %s3704_s13), 1  ;;  %v4900_v8 = vpack.c.bf16 %v628_v7, %v627_v6  ;;  %v629_v9 = vld [vmem:[%s6419_s1 + $0x30] sm:$0xff]  ;;  %v630_v10 = vld [vmem:[%s6419_s1 + $0x38] sm:$0xff]  ;;  %v631_v14 = vld [vmem:[%s6419_s1 + $0x40] sm:$0xff] }
  0x10   : > { %4893 = vmatprep.subr.bf16.mxu0 %v4892_v3  ;;  %4924 = vmatprep.subr.bf16.mxu1 %v4892_v3  ;;  %s4940_s26 = smul.u32 3616, %s6779_s13  ;;  %v4904_v13 = vpack.c.bf16 %v630_v10, %v629_v9  ;;  %v632_v15 = vld [vmem:[%s6419_s1 + $0x48] sm:$0xff]  ;;  %v633_v17 = vld [vmem:[%s6419_s1 + $0x50] sm:$0xff]  ;;  %v634_v18 = vld [vmem:[%s6419_s1 + $0x58] sm:$0xff] }
  0x11   : > { %4895 = vmatpush3.bf16.msra.mxu0 %v4892_v3  ;;  %4932 = vmatpush3.bf16.msra.mxu1 %v4892_v3  ;;  %v4908_v16 = vpack.c.bf16 %v632_v15, %v631_v14  ;;  %v4912_v19 = vpack.c.bf16 %v634_v18, %v633_v17  ;;  %v635_v20 = vld [vmem:[%s6419_s1 + $0x60] sm:$0xff]  ;;  %v636_v21 = vld [vmem:[%s6419_s1 + $0x68] sm:$0xff]  ;;  %v637_v23 = vld [vmem:[%s6419_s1 + $0x70] sm:$0xff]  ;;  %s4941_s25 = smul.u32 904, %s6779_s13 }
  0x12   : > { %4897 = vmatprep.subr.bf16.mxu0 %v4896_v5  ;;  %4925 = vmatprep.subr.bf16.mxu1 %v4896_v5  ;;  %s5017_s6 = scalar_lea.vmem %s6418_s0, %s4940_s26  ;;  %v4916_v22 = vpack.c.bf16 %v636_v21, %v635_v20  ;;  %v638_v24 = vld [vmem:[%s6419_s1 + $0x78] sm:$0xff] }
  0x13   : > { %v171_v11 = vld [vmem:[%s5017_s6] sm:$0xff]  ;;  %v397_v12 = vld [vmem:[%s5017_s6 + $0x710] sm:$0xff]  ;;  %v4920_v25 = vpack.c.bf16 %v638_v24, %v637_v23  ;;  %v172_v26 = vld [vmem:[%s5017_s6 + $0x8] sm:$0xff]  ;;  %s5955_s29 = scalar_lea.vmem %s6421_s3, %s4941_s25 }
  0x14   : > { %4214 = vmatprep.mubr.f32.mxu0 %v171_v11  ;;  %4553 = vmatprep.mubr.f32.mxu1 %v397_v12  ;;  %v398_v27 = vld [vmem:[%s5017_s6 + $0x718] sm:$0xff]  ;;  %v173_v28 = vld [vmem:[%s5017_s6 + $0x10] sm:$0xff]  ;;  %v399_v29 = vld [vmem:[%s5017_s6 + $0x720] sm:$0xff] }
  0x15   : > { %4899 = vmatpush3.bf16.msra.mxu0 %v4896_v5  ;;  %4933 = vmatpush3.bf16.msra.mxu1 %v4896_v5  ;;  %v174_v30 = vld [vmem:[%s5017_s6 + $0x18] sm:$0xff]  ;;  %v400_v31 = vld [vmem:[%s5017_s6 + $0x728] sm:$0xff]  ;;  %v175_v32 = vld [vmem:[%s5017_s6 + $0x20] sm:$0xff] }
  0x16   : > { %4901 = vmatprep.subr.bf16.mxu0 %v4900_v8  ;;  %4926 = vmatprep.subr.bf16.mxu1 %v4900_v8  ;;  %v401_v33 = vld [vmem:[%s5017_s6 + $0x730] sm:$0xff]  ;;  %v176_v34 = vld [vmem:[%s5017_s6 + $0x28] sm:$0xff]  ;;  %v402_v35 = vld [vmem:[%s5017_s6 + $0x738] sm:$0xff] }
  0x17   : > { %v177_v36 = vld [vmem:[%s5017_s6 + $0x30] sm:$0xff]  ;;  %v403_v37 = vld [vmem:[%s5017_s6 + $0x740] sm:$0xff]  ;;  %v178_v38 = vld [vmem:[%s5017_s6 + $0x38] sm:$0xff] }
  0x18   : > { %v404_v39 = vld [vmem:[%s5017_s6 + $0x748] sm:$0xff]  ;;  %v179_v40 = vld [vmem:[%s5017_s6 + $0x40] sm:$0xff]  ;;  %v405_v41 = vld [vmem:[%s5017_s6 + $0x750] sm:$0xff] }
  0x19   : > { %4903 = vmatpush3.bf16.msra.mxu0 %v4900_v8  ;;  %4934 = vmatpush3.bf16.msra.mxu1 %v4900_v8  ;;  %v180_v42 = vld [vmem:[%s5017_s6 + $0x48] sm:$0xff]  ;;  %v406_v43 = vld [vmem:[%s5017_s6 + $0x758] sm:$0xff]  ;;  %v181_v44 = vld [vmem:[%s5017_s6 + $0x50] sm:$0xff] }
  0x1a   : > { %4905 = vmatprep.subr.bf16.mxu0 %v4904_v13  ;;  %4927 = vmatprep.subr.bf16.mxu1 %v4904_v13  ;;  %v407_v45 = vld [vmem:[%s5017_s6 + $0x760] sm:$0xff]  ;;  %v182_v46 = vld [vmem:[%s5017_s6 + $0x58] sm:$0xff]  ;;  %v408_v47 = vld [vmem:[%s5017_s6 + $0x768] sm:$0xff] }
  0x1b   : > { %v183_v48 = vld [vmem:[%s5017_s6 + $0x60] sm:$0xff]  ;;  %v409_v49 = vld [vmem:[%s5017_s6 + $0x770] sm:$0xff]  ;;  %v184_v50 = vld [vmem:[%s5017_s6 + $0x68] sm:$0xff] }
  0x1c   : > { %v410_v51 = vld [vmem:[%s5017_s6 + $0x778] sm:$0xff]  ;;  %v185_v52 = vld [vmem:[%s5017_s6 + $0x70] sm:$0xff]  ;;  %v411_v53 = vld [vmem:[%s5017_s6 + $0x780] sm:$0xff] }
  0x1d   : > { %4907 = vmatpush3.bf16.msra.mxu0 %v4904_v13  ;;  %4935 = vmatpush3.bf16.msra.mxu1 %v4904_v13  ;;  %v186_v54 = vld [vmem:[%s5017_s6 + $0x78] sm:$0xff]  ;;  %v412_v55 = vld [vmem:[%s5017_s6 + $0x788] sm:$0xff]  ;;  %v187_v56 = vld [vmem:[%s5017_s6 + $0x80] sm:$0xff] }
  0x1e   : > { %4909 = vmatprep.subr.bf16.mxu0 %v4908_v16  ;;  %4928 = vmatprep.subr.bf16.mxu1 %v4908_v16  ;;  %v413_v57 = vld [vmem:[%s5017_s6 + $0x790] sm:$0xff]  ;;  %v188_v58 = vld [vmem:[%s5017_s6 + $0x88] sm:$0xff]  ;;  %v414_v59 = vld [vmem:[%s5017_s6 + $0x798] sm:$0xff] }
  0x1f   : > { %v189_v60 = vld [vmem:[%s5017_s6 + $0x90] sm:$0xff]  ;;  %v415_v61 = vld [vmem:[%s5017_s6 + $0x7a0] sm:$0xff]  ;;  %v190_v62 = vld [vmem:[%s5017_s6 + $0x98] sm:$0xff] }
  0x20   : > { %v416_v63 = vld [vmem:[%s5017_s6 + $0x7a8] sm:$0xff]  ;;  %v191_v0 = vld [vmem:[%s5017_s6 + $0xa0] sm:$0xff]  ;;  %v417_v1 = vld [vmem:[%s5017_s6 + $0x7b0] sm:$0xff] }
  0x21   : > { %4911 = vmatpush3.bf16.msra.mxu0 %v4908_v16  ;;  %4936 = vmatpush3.bf16.msra.mxu1 %v4908_v16  ;;  %v192_v2 = vld [vmem:[%s5017_s6 + $0xa8] sm:$0xff]  ;;  %v418_v3 = vld [vmem:[%s5017_s6 + $0x7b8] sm:$0xff]  ;;  %v193_v4 = vld [vmem:[%s5017_s6 + $0xb0] sm:$0xff] }
  0x22   : > { %4913 = vmatprep.subr.bf16.mxu0 %v4912_v19  ;;  %4929 = vmatprep.subr.bf16.mxu1 %v4912_v19  ;;  %v419_v5 = vld [vmem:[%s5017_s6 + $0x7c0] sm:$0xff]  ;;  %v194_v6 = vld [vmem:[%s5017_s6 + $0xb8] sm:$0xff]  ;;  %v420_v7 = vld [vmem:[%s5017_s6 + $0x7c8] sm:$0xff] }
  0x23   : > { %v195_v8 = vld [vmem:[%s5017_s6 + $0xc0] sm:$0xff]  ;;  %v421_v9 = vld [vmem:[%s5017_s6 + $0x7d0] sm:$0xff]  ;;  %v196_v10 = vld [vmem:[%s5017_s6 + $0xc8] sm:$0xff] }
  0x24   : > { %v422_v11 = vld [vmem:[%s5017_s6 + $0x7d8] sm:$0xff]  ;;  %v197_v12 = vld [vmem:[%s5017_s6 + $0xd0] sm:$0xff]  ;;  %v423_v13 = vld [vmem:[%s5017_s6 + $0x7e0] sm:$0xff] }
  0x25   : > { %4915 = vmatpush3.bf16.msra.mxu0 %v4912_v19  ;;  %4937 = vmatpush3.bf16.msra.mxu1 %v4912_v19  ;;  %v198_v14 = vld [vmem:[%s5017_s6 + $0xd8] sm:$0xff]  ;;  %v424_v15 = vld [vmem:[%s5017_s6 + $0x7e8] sm:$0xff]  ;;  %v199_v16 = vld [vmem:[%s5017_s6 + $0xe0] sm:$0xff] }
  0x26   : > { %4917 = vmatprep.subr.bf16.mxu0 %v4916_v22  ;;  %4930 = vmatprep.subr.bf16.mxu1 %v4916_v22  ;;  %v425_v17 = vld [vmem:[%s5017_s6 + $0x7f0] sm:$0xff]  ;;  %v200_v18 = vld [vmem:[%s5017_s6 + $0xe8] sm:$0xff]  ;;  %v426_v19 = vld [vmem:[%s5017_s6 + $0x7f8] sm:$0xff] }
  0x27   : > { %v201_v20 = vld [vmem:[%s5017_s6 + $0xf0] sm:$0xff]  ;;  %v427_v21 = vld [vmem:[%s5017_s6 + $0x800] sm:$0xff]  ;;  %v428_v23 = vld [vmem:[%s5017_s6 + $0x808] sm:$0xff] }
  0x28   : > { %v203_v24 = vld [vmem:[%s5017_s6 + $0x100] sm:$0xff] }
  0x29   : > { %4919 = vmatpush3.bf16.msra.mxu0 %v4916_v22  ;;  %4938 = vmatpush3.bf16.msra.mxu1 %v4916_v22  ;;  %v202_v22 = vld [vmem:[%s5017_s6 + $0xf8] sm:$0xff] }
  0x2a   : > { %4921 = vmatprep.subr.bf16.mxu0 %v4920_v25  ;;  %4931 = vmatprep.subr.bf16.mxu1 %v4920_v25 }
  0x2d   : > { %4923 = vmatpush3.bf16.msra.mxu0 %v4920_v25  ;;  %4939 = vmatpush3.bf16.msra.mxu1 %v4920_v25  ;;  %v429_v25 = vld [vmem:[%s5017_s6 + $0x810] sm:$0xff] }
  0x30   : > { %4215 = vmatmul.mubr.f32.vlgmr.msra.gmra.mrb[0].mxu0 %v172_v26  ;;  %4554 = vmatmul.mubr.f32.vlgmr.msra.gmra.mrb[0].mxu1 %v398_v27  ;;  %v204_v26 = vld [vmem:[%s5017_s6 + $0x108] sm:$0xff]  ;;  %v430_v27 = vld [vmem:[%s5017_s6 + $0x818] sm:$0xff] }
  0x31   : > { %4217 = vmatprep.mubr.f32.mxu0 %v173_v28  ;;  %4556 = vmatprep.mubr.f32.mxu1 %v399_v29  ;;  %v205_v28 = vld [vmem:[%s5017_s6 + $0x110] sm:$0xff]  ;;  %v431_v29 = vld [vmem:[%s5017_s6 + $0x820] sm:$0xff] }
  0x34   : > { %4218 = vmatmul.mubr.f32.gmra.mrb[2].mxu0 %v174_v30  ;;  %4557 = vmatmul.mubr.f32.gmra.mrb[2].mxu1 %v400_v31  ;;  %v206_v30 = vld [vmem:[%s5017_s6 + $0x118] sm:$0xff]  ;;  %v432_v31 = vld [vmem:[%s5017_s6 + $0x828] sm:$0xff] }
  0x35   : > { %4220 = vmatprep.mubr.f32.mxu0 %v175_v32  ;;  %4559 = vmatprep.mubr.f32.mxu1 %v401_v33  ;;  %v207_v32 = vld [vmem:[%s5017_s6 + $0x120] sm:$0xff]  ;;  %v433_v33 = vld [vmem:[%s5017_s6 + $0x830] sm:$0xff] }
  0x38   : > { %4221 = vmatmul.mubr.f32.gmra.mrb[4].mxu0 %v176_v34  ;;  %4560 = vmatmul.mubr.f32.gmra.mrb[4].mxu1 %v402_v35  ;;  %v208_v34 = vld [vmem:[%s5017_s6 + $0x128] sm:$0xff]  ;;  %v434_v35 = vld [vmem:[%s5017_s6 + $0x838] sm:$0xff] }
  0x39   : > { %4223 = vmatprep.mubr.f32.mxu0 %v177_v36  ;;  %4562 = vmatprep.mubr.f32.mxu1 %v403_v37  ;;  %v209_v36 = vld [vmem:[%s5017_s6 + $0x130] sm:$0xff]  ;;  %v435_v37 = vld [vmem:[%s5017_s6 + $0x840] sm:$0xff] }
  0x3c   : > { %4224 = vmatmul.mubr.f32.gmra.mrb[6].mxu0 %v178_v38  ;;  %4563 = vmatmul.mubr.f32.gmra.mrb[6].mxu1 %v404_v39  ;;  %v210_v38 = vld [vmem:[%s5017_s6 + $0x138] sm:$0xff]  ;;  %v436_v39 = vld [vmem:[%s5017_s6 + $0x848] sm:$0xff] }
  0x3d   : > { %4226 = vmatprep.mubr.f32.mxu0 %v179_v40  ;;  %4565 = vmatprep.mubr.f32.mxu1 %v405_v41  ;;  %v211_v40 = vld [vmem:[%s5017_s6 + $0x140] sm:$0xff]  ;;  %v437_v41 = vld [vmem:[%s5017_s6 + $0x850] sm:$0xff] }
  0x40   : > { %4227 = vmatmul.mubr.f32.gmra.mrb[8].mxu0 %v180_v42  ;;  %4566 = vmatmul.mubr.f32.gmra.mrb[8].mxu1 %v406_v43  ;;  %v212_v42 = vld [vmem:[%s5017_s6 + $0x148] sm:$0xff]  ;;  %v438_v43 = vld [vmem:[%s5017_s6 + $0x858] sm:$0xff] }
  0x41   : > { %4229 = vmatprep.mubr.f32.mxu0 %v181_v44  ;;  %4568 = vmatprep.mubr.f32.mxu1 %v407_v45  ;;  %v213_v44 = vld [vmem:[%s5017_s6 + $0x150] sm:$0xff]  ;;  %v439_v45 = vld [vmem:[%s5017_s6 + $0x860] sm:$0xff] }
  0x44   : > { %4230 = vmatmul.mubr.f32.gmra.mrb[10].mxu0 %v182_v46  ;;  %4569 = vmatmul.mubr.f32.gmra.mrb[10].mxu1 %v408_v47  ;;  %v214_v46 = vld [vmem:[%s5017_s6 + $0x158] sm:$0xff]  ;;  %v440_v47 = vld [vmem:[%s5017_s6 + $0x868] sm:$0xff] }
  0x45   : > { %4232 = vmatprep.mubr.f32.mxu0 %v183_v48  ;;  %4571 = vmatprep.mubr.f32.mxu1 %v409_v49  ;;  %v215_v48 = vld [vmem:[%s5017_s6 + $0x160] sm:$0xff]  ;;  %v441_v49 = vld [vmem:[%s5017_s6 + $0x870] sm:$0xff] }
  0x48   : > { %4233 = vmatmul.mubr.f32.gmra.mrb[12].mxu0 %v184_v50  ;;  %4572 = vmatmul.mubr.f32.gmra.mrb[12].mxu1 %v410_v51  ;;  %v216_v50 = vld [vmem:[%s5017_s6 + $0x168] sm:$0xff]  ;;  %v442_v51 = vld [vmem:[%s5017_s6 + $0x878] sm:$0xff] }
  0x49   : > { %4235 = vmatprep.mubr.f32.mxu0 %v185_v52  ;;  %4574 = vmatprep.mubr.f32.mxu1 %v411_v53  ;;  %v217_v52 = vld [vmem:[%s5017_s6 + $0x170] sm:$0xff]  ;;  %v443_v53 = vld [vmem:[%s5017_s6 + $0x880] sm:$0xff] }
  0x4c   : > { %4236 = vmatmul.mubr.f32.gmra.mrb[14].mxu0 %v186_v54  ;;  %4575 = vmatmul.mubr.f32.gmra.mrb[14].mxu1 %v412_v55  ;;  %v218_v54 = vld [vmem:[%s5017_s6 + $0x178] sm:$0xff]  ;;  %v444_v55 = vld [vmem:[%s5017_s6 + $0x888] sm:$0xff] }
  0x4d   : > { %4238 = vmatprep.mubr.f32.mxu0 %v187_v56  ;;  %4577 = vmatprep.mubr.f32.mxu1 %v413_v57  ;;  %v219_v56 = vld [vmem:[%s5017_s6 + $0x180] sm:$0xff]  ;;  %v445_v57 = vld [vmem:[%s5017_s6 + $0x890] sm:$0xff] }
  0x50   : > { %4239 = vmatmul.mubr.f32.gmra.mrb[16].mxu0 %v188_v58  ;;  %4578 = vmatmul.mubr.f32.gmra.mrb[16].mxu1 %v414_v59  ;;  %v220_v58 = vld [vmem:[%s5017_s6 + $0x188] sm:$0xff]  ;;  %v446_v59 = vld [vmem:[%s5017_s6 + $0x898] sm:$0xff] }
  0x51   : > { %4241 = vmatprep.mubr.f32.mxu0 %v189_v60  ;;  %4580 = vmatprep.mubr.f32.mxu1 %v415_v61  ;;  %v221_v60 = vld [vmem:[%s5017_s6 + $0x190] sm:$0xff]  ;;  %v447_v61 = vld [vmem:[%s5017_s6 + $0x8a0] sm:$0xff] }
  0x54   : > { %4242 = vmatmul.mubr.f32.gmra.mrb[18].mxu0 %v190_v62  ;;  %4581 = vmatmul.mubr.f32.gmra.mrb[18].mxu1 %v416_v63  ;;  %v222_v62 = vld [vmem:[%s5017_s6 + $0x198] sm:$0xff]  ;;  %v448_v63 = vld [vmem:[%s5017_s6 + $0x8a8] sm:$0xff] }
  0x55   : > { %4244 = vmatprep.mubr.f32.mxu0 %v191_v0  ;;  %4583 = vmatprep.mubr.f32.mxu1 %v417_v1  ;;  %v223_v0 = vld [vmem:[%s5017_s6 + $0x1a0] sm:$0xff]  ;;  %v449_v1 = vld [vmem:[%s5017_s6 + $0x8b0] sm:$0xff] }
  0x58   : > { %4245 = vmatmul.mubr.f32.gmra.mrb[20].mxu0 %v192_v2  ;;  %4584 = vmatmul.mubr.f32.gmra.mrb[20].mxu1 %v418_v3  ;;  %v224_v2 = vld [vmem:[%s5017_s6 + $0x1a8] sm:$0xff]  ;;  %v450_v3 = vld [vmem:[%s5017_s6 + $0x8b8] sm:$0xff] }
  0x59   : > { %4247 = vmatprep.mubr.f32.mxu0 %v193_v4  ;;  %4586 = vmatprep.mubr.f32.mxu1 %v419_v5  ;;  %v225_v4 = vld [vmem:[%s5017_s6 + $0x1b0] sm:$0xff]  ;;  %v451_v5 = vld [vmem:[%s5017_s6 + $0x8c0] sm:$0xff] }
  0x5c   : > { %4248 = vmatmul.mubr.f32.gmra.mrb[22].mxu0 %v194_v6  ;;  %4587 = vmatmul.mubr.f32.gmra.mrb[22].mxu1 %v420_v7  ;;  %v226_v6 = vld [vmem:[%s5017_s6 + $0x1b8] sm:$0xff]  ;;  %v452_v7 = vld [vmem:[%s5017_s6 + $0x8c8] sm:$0xff] }
  0x5d   : > { %4250 = vmatprep.mubr.f32.mxu0 %v195_v8  ;;  %4589 = vmatprep.mubr.f32.mxu1 %v421_v9  ;;  %v227_v8 = vld [vmem:[%s5017_s6 + $0x1c0] sm:$0xff]  ;;  %v453_v9 = vld [vmem:[%s5017_s6 + $0x8d0] sm:$0xff] }
  0x60   : > { %4251 = vmatmul.mubr.f32.gmra.mrb[24].mxu0 %v196_v10  ;;  %4590 = vmatmul.mubr.f32.gmra.mrb[24].mxu1 %v422_v11  ;;  %v228_v10 = vld [vmem:[%s5017_s6 + $0x1c8] sm:$0xff]  ;;  %v454_v11 = vld [vmem:[%s5017_s6 + $0x8d8] sm:$0xff] }
  0x61   : > { %4253 = vmatprep.mubr.f32.mxu0 %v197_v12  ;;  %4592 = vmatprep.mubr.f32.mxu1 %v423_v13  ;;  %v229_v12 = vld [vmem:[%s5017_s6 + $0x1d0] sm:$0xff]  ;;  %v455_v13 = vld [vmem:[%s5017_s6 + $0x8e0] sm:$0xff] }
  0x64   : > { %4254 = vmatmul.mubr.f32.gmra.mrb[26].mxu0 %v198_v14  ;;  %4593 = vmatmul.mubr.f32.gmra.mrb[26].mxu1 %v424_v15  ;;  %v230_v14 = vld [vmem:[%s5017_s6 + $0x1d8] sm:$0xff]  ;;  %v456_v15 = vld [vmem:[%s5017_s6 + $0x8e8] sm:$0xff] }
  0x65   : > { %4256 = vmatprep.mubr.f32.mxu0 %v199_v16  ;;  %4595 = vmatprep.mubr.f32.mxu1 %v425_v17  ;;  %v231_v16 = vld [vmem:[%s5017_s6 + $0x1e0] sm:$0xff]  ;;  %v457_v17 = vld [vmem:[%s5017_s6 + $0x8f0] sm:$0xff] }
  0x68   : > { %4257 = vmatmul.mubr.f32.gmra.mrb[28].mxu0 %v200_v18  ;;  %4596 = vmatmul.mubr.f32.gmra.mrb[28].mxu1 %v426_v19  ;;  %v232_v18 = vld [vmem:[%s5017_s6 + $0x1e8] sm:$0xff]  ;;  %v458_v19 = vld [vmem:[%s5017_s6 + $0x8f8] sm:$0xff] }
  0x69   : > { %4259 = vmatprep.mubr.f32.mxu0 %v201_v20  ;;  %4598 = vmatprep.mubr.f32.mxu1 %v427_v21  ;;  %v233_v20 = vld [vmem:[%s5017_s6 + $0x1f0] sm:$0xff]  ;;  %v459_v21 = vld [vmem:[%s5017_s6 + $0x900] sm:$0xff] }
  0x6c   : > { %4260 = vmatmul.mubr.f32.gmra.mrb[30].mxu0 %v202_v22  ;;  %4599 = vmatmul.mubr.f32.gmra.mrb[30].mxu1 %v428_v23  ;;  %v234_v22 = vld [vmem:[%s5017_s6 + $0x1f8] sm:$0xff]  ;;  %v460_v23 = vld [vmem:[%s5017_s6 + $0x908] sm:$0xff] }
  0x6d   : > { %4262 = vmatprep.mubr.f32.mxu0 %v203_v24  ;;  %4601 = vmatprep.mubr.f32.mxu1 %v429_v25  ;;  %v235_v24 = vld [vmem:[%s5017_s6 + $0x200] sm:$0xff]  ;;  %v461_v25 = vld [vmem:[%s5017_s6 + $0x910] sm:$0xff] }
  0x70   : > { %4263 = vmatmul.mubr.f32.gmra.mrb[32].mxu0 %v204_v26  ;;  %4602 = vmatmul.mubr.f32.gmra.mrb[32].mxu1 %v430_v27  ;;  %v236_v26 = vld [vmem:[%s5017_s6 + $0x208] sm:$0xff]  ;;  %v462_v27 = vld [vmem:[%s5017_s6 + $0x918] sm:$0xff] }
  0x71   : > { %4265 = vmatprep.mubr.f32.mxu0 %v205_v28  ;;  %4604 = vmatprep.mubr.f32.mxu1 %v431_v29  ;;  %v237_v28 = vld [vmem:[%s5017_s6 + $0x210] sm:$0xff]  ;;  %v463_v29 = vld [vmem:[%s5017_s6 + $0x920] sm:$0xff] }
  0x74   : > { %4266 = vmatmul.mubr.f32.gmra.mrb[34].mxu0 %v206_v30  ;;  %4605 = vmatmul.mubr.f32.gmra.mrb[34].mxu1 %v432_v31  ;;  %v238_v30 = vld [vmem:[%s5017_s6 + $0x218] sm:$0xff]  ;;  %v464_v31 = vld [vmem:[%s5017_s6 + $0x928] sm:$0xff] }
  0x75   : > { %4268 = vmatprep.mubr.f32.mxu0 %v207_v32  ;;  %4607 = vmatprep.mubr.f32.mxu1 %v433_v33  ;;  %v239_v32 = vld [vmem:[%s5017_s6 + $0x220] sm:$0xff]  ;;  %v465_v33 = vld [vmem:[%s5017_s6 + $0x930] sm:$0xff] }
  0x78   : > { %4269 = vmatmul.mubr.f32.gmra.mrb[36].mxu0 %v208_v34  ;;  %4608 = vmatmul.mubr.f32.gmra.mrb[36].mxu1 %v434_v35  ;;  %v240_v34 = vld [vmem:[%s5017_s6 + $0x228] sm:$0xff]  ;;  %v466_v35 = vld [vmem:[%s5017_s6 + $0x938] sm:$0xff] }
  0x79   : > { %4271 = vmatprep.mubr.f32.mxu0 %v209_v36  ;;  %4610 = vmatprep.mubr.f32.mxu1 %v435_v37  ;;  %v241_v36 = vld [vmem:[%s5017_s6 + $0x230] sm:$0xff]  ;;  %v467_v37 = vld [vmem:[%s5017_s6 + $0x940] sm:$0xff] }
  0x7c   : > { %4272 = vmatmul.mubr.f32.gmra.mrb[38].mxu0 %v210_v38  ;;  %4611 = vmatmul.mubr.f32.gmra.mrb[38].mxu1 %v436_v39  ;;  %v242_v38 = vld [vmem:[%s5017_s6 + $0x238] sm:$0xff]  ;;  %v468_v39 = vld [vmem:[%s5017_s6 + $0x948] sm:$0xff] }
  0x7d   : > { %4274 = vmatprep.mubr.f32.mxu0 %v211_v40  ;;  %4613 = vmatprep.mubr.f32.mxu1 %v437_v41  ;;  %v243_v40 = vld [vmem:[%s5017_s6 + $0x240] sm:$0xff]  ;;  %v469_v41 = vld [vmem:[%s5017_s6 + $0x950] sm:$0xff] }
  0x80   : > { %4275 = vmatmul.mubr.f32.gmra.mrb[40].mxu0 %v212_v42  ;;  %4614 = vmatmul.mubr.f32.gmra.mrb[40].mxu1 %v438_v43  ;;  %v244_v42 = vld [vmem:[%s5017_s6 + $0x248] sm:$0xff]  ;;  %v470_v43 = vld [vmem:[%s5017_s6 + $0x958] sm:$0xff] }
  0x81   : > { %4277 = vmatprep.mubr.f32.mxu0 %v213_v44  ;;  %4616 = vmatprep.mubr.f32.mxu1 %v439_v45  ;;  %v245_v44 = vld [vmem:[%s5017_s6 + $0x250] sm:$0xff]  ;;  %v471_v45 = vld [vmem:[%s5017_s6 + $0x960] sm:$0xff] }
  0x84   : > { %4278 = vmatmul.mubr.f32.gmra.mrb[42].mxu0 %v214_v46  ;;  %4617 = vmatmul.mubr.f32.gmra.mrb[42].mxu1 %v440_v47  ;;  %v246_v46 = vld [vmem:[%s5017_s6 + $0x258] sm:$0xff]  ;;  %v472_v47 = vld [vmem:[%s5017_s6 + $0x968] sm:$0xff] }
  0x85   : > { %4280 = vmatprep.mubr.f32.mxu0 %v215_v48  ;;  %4619 = vmatprep.mubr.f32.mxu1 %v441_v49  ;;  %v247_v48 = vld [vmem:[%s5017_s6 + $0x260] sm:$0xff]  ;;  %v473_v49 = vld [vmem:[%s5017_s6 + $0x970] sm:$0xff] }
  0x88   : > { %4281 = vmatmul.mubr.f32.gmra.mrb[44].mxu0 %v216_v50  ;;  %4620 = vmatmul.mubr.f32.gmra.mrb[44].mxu1 %v442_v51  ;;  %v248_v50 = vld [vmem:[%s5017_s6 + $0x268] sm:$0xff]  ;;  %v474_v51 = vld [vmem:[%s5017_s6 + $0x978] sm:$0xff] }
  0x89   : > { %4283 = vmatprep.mubr.f32.mxu0 %v217_v52  ;;  %4622 = vmatprep.mubr.f32.mxu1 %v443_v53  ;;  %v249_v52 = vld [vmem:[%s5017_s6 + $0x270] sm:$0xff]  ;;  %v475_v53 = vld [vmem:[%s5017_s6 + $0x980] sm:$0xff] }
  0x8c   : > { %4284 = vmatmul.mubr.f32.gmra.mrb[46].mxu0 %v218_v54  ;;  %4623 = vmatmul.mubr.f32.gmra.mrb[46].mxu1 %v444_v55  ;;  %v250_v54 = vld [vmem:[%s5017_s6 + $0x278] sm:$0xff]  ;;  %v476_v55 = vld [vmem:[%s5017_s6 + $0x988] sm:$0xff] }
  0x8d   : > { %4286 = vmatprep.mubr.f32.mxu0 %v219_v56  ;;  %4625 = vmatprep.mubr.f32.mxu1 %v445_v57  ;;  %v251_v56 = vld [vmem:[%s5017_s6 + $0x280] sm:$0xff]  ;;  %v477_v57 = vld [vmem:[%s5017_s6 + $0x990] sm:$0xff] }
  0x90   : > { %4287 = vmatmul.mubr.f32.gmra.mrb[48].mxu0 %v220_v58  ;;  %4626 = vmatmul.mubr.f32.gmra.mrb[48].mxu1 %v446_v59  ;;  %v252_v58 = vld [vmem:[%s5017_s6 + $0x288] sm:$0xff]  ;;  %v478_v59 = vld [vmem:[%s5017_s6 + $0x998] sm:$0xff] }
  0x91   : > { %4289 = vmatprep.mubr.f32.mxu0 %v221_v60  ;;  %4628 = vmatprep.mubr.f32.mxu1 %v447_v61  ;;  %v253_v60 = vld [vmem:[%s5017_s6 + $0x290] sm:$0xff]  ;;  %v479_v61 = vld [vmem:[%s5017_s6 + $0x9a0] sm:$0xff] }
  0x94   : > { %4290 = vmatmul.mubr.f32.gmra.mrb[50].mxu0 %v222_v62  ;;  %4629 = vmatmul.mubr.f32.gmra.mrb[50].mxu1 %v448_v63  ;;  %v254_v62 = vld [vmem:[%s5017_s6 + $0x298] sm:$0xff]  ;;  %v480_v63 = vld [vmem:[%s5017_s6 + $0x9a8] sm:$0xff] }
  0x95   : > { %4292 = vmatprep.mubr.f32.mxu0 %v223_v0  ;;  %4631 = vmatprep.mubr.f32.mxu1 %v449_v1  ;;  %v255_v0 = vld [vmem:[%s5017_s6 + $0x2a0] sm:$0xff]  ;;  %v481_v1 = vld [vmem:[%s5017_s6 + $0x9b0] sm:$0xff] }
  0x98   : > { %4293 = vmatmul.mubr.f32.gmra.mrb[52].mxu0 %v224_v2  ;;  %4632 = vmatmul.mubr.f32.gmra.mrb[52].mxu1 %v450_v3  ;;  %v256_v2 = vld [vmem:[%s5017_s6 + $0x2a8] sm:$0xff]  ;;  %v482_v3 = vld [vmem:[%s5017_s6 + $0x9b8] sm:$0xff] }
  0x99   : > { %4295 = vmatprep.mubr.f32.mxu0 %v225_v4  ;;  %4634 = vmatprep.mubr.f32.mxu1 %v451_v5  ;;  %v257_v4 = vld [vmem:[%s5017_s6 + $0x2b0] sm:$0xff]  ;;  %v483_v5 = vld [vmem:[%s5017_s6 + $0x9c0] sm:$0xff] }
  0x9c   : > { %4296 = vmatmul.mubr.f32.gmra.mrb[54].mxu0 %v226_v6  ;;  %4635 = vmatmul.mubr.f32.gmra.mrb[54].mxu1 %v452_v7  ;;  %v258_v6 = vld [vmem:[%s5017_s6 + $0x2b8] sm:$0xff]  ;;  %v484_v7 = vld [vmem:[%s5017_s6 + $0x9c8] sm:$0xff] }
  0x9d   : > { %4298 = vmatprep.mubr.f32.mxu0 %v227_v8  ;;  %4637 = vmatprep.mubr.f32.mxu1 %v453_v9  ;;  %v259_v8 = vld [vmem:[%s5017_s6 + $0x2c0] sm:$0xff]  ;;  %v485_v9 = vld [vmem:[%s5017_s6 + $0x9d0] sm:$0xff] }
  0xa0   : > { %4299 = vmatmul.mubr.f32.gmra.mrb[56].mxu0 %v228_v10  ;;  %4638 = vmatmul.mubr.f32.gmra.mrb[56].mxu1 %v454_v11  ;;  %v260_v10 = vld [vmem:[%s5017_s6 + $0x2c8] sm:$0xff]  ;;  %v486_v11 = vld [vmem:[%s5017_s6 + $0x9d8] sm:$0xff] }
  0xa1   : > { %4301 = vmatprep.mubr.f32.mxu0 %v229_v12  ;;  %4640 = vmatprep.mubr.f32.mxu1 %v455_v13  ;;  %v261_v12 = vld [vmem:[%s5017_s6 + $0x2d0] sm:$0xff]  ;;  %v487_v13 = vld [vmem:[%s5017_s6 + $0x9e0] sm:$0xff] }
  0xa4   : > { %4302 = vmatmul.mubr.f32.gmra.mrb[58].mxu0 %v230_v14  ;;  %4641 = vmatmul.mubr.f32.gmra.mrb[58].mxu1 %v456_v15  ;;  %v262_v14 = vld [vmem:[%s5017_s6 + $0x2d8] sm:$0xff]  ;;  %v488_v15 = vld [vmem:[%s5017_s6 + $0x9e8] sm:$0xff] }
  0xa5   : > { %4304 = vmatprep.mubr.f32.mxu0 %v231_v16  ;;  %4643 = vmatprep.mubr.f32.mxu1 %v457_v17  ;;  %v263_v16 = vld [vmem:[%s5017_s6 + $0x2e0] sm:$0xff]  ;;  %v489_v17 = vld [vmem:[%s5017_s6 + $0x9f0] sm:$0xff] }
  0xa8   : > { %4305 = vmatmul.mubr.f32.gmra.mrb[60].mxu0 %v232_v18  ;;  %4644 = vmatmul.mubr.f32.gmra.mrb[60].mxu1 %v458_v19  ;;  %v264_v18 = vld [vmem:[%s5017_s6 + $0x2e8] sm:$0xff]  ;;  %v490_v19 = vld [vmem:[%s5017_s6 + $0x9f8] sm:$0xff] }
  0xa9   : > { %4307 = vmatprep.mubr.f32.mxu0 %v233_v20  ;;  %4646 = vmatprep.mubr.f32.mxu1 %v459_v21  ;;  %v265_v20 = vld [vmem:[%s5017_s6 + $0x2f0] sm:$0xff]  ;;  %v491_v21 = vld [vmem:[%s5017_s6 + $0xa00] sm:$0xff] }
  0xac   : > { %4308 = vmatmul.mubr.f32.gmra.mrb[62].mxu0 %v234_v22  ;;  %4647 = vmatmul.mubr.f32.gmra.mrb[62].mxu1 %v460_v23  ;;  %v266_v22 = vld [vmem:[%s5017_s6 + $0x2f8] sm:$0xff]  ;;  %v492_v23 = vld [vmem:[%s5017_s6 + $0xa08] sm:$0xff] }
  0xad   : > { %4310 = vmatprep.mubr.f32.mxu0 %v235_v24  ;;  %4649 = vmatprep.mubr.f32.mxu1 %v461_v25  ;;  %v267_v24 = vld [vmem:[%s5017_s6 + $0x300] sm:$0xff]  ;;  %v493_v25 = vld [vmem:[%s5017_s6 + $0xa10] sm:$0xff] }
  0xb0   : > { %4311 = vmatmul.mubr.f32.gmra.mrb[64].mxu0 %v236_v26  ;;  %4650 = vmatmul.mubr.f32.gmra.mrb[64].mxu1 %v462_v27  ;;  %v268_v26 = vld [vmem:[%s5017_s6 + $0x308] sm:$0xff]  ;;  %v494_v27 = vld [vmem:[%s5017_s6 + $0xa18] sm:$0xff] }
  0xb1   : > { %4313 = vmatprep.mubr.f32.mxu0 %v237_v28  ;;  %4652 = vmatprep.mubr.f32.mxu1 %v463_v29  ;;  %v269_v28 = vld [vmem:[%s5017_s6 + $0x310] sm:$0xff]  ;;  %v495_v29 = vld [vmem:[%s5017_s6 + $0xa20] sm:$0xff] }
  0xb4   : > { %4314 = vmatmul.mubr.f32.gmra.mrb[66].mxu0 %v238_v30  ;;  %4653 = vmatmul.mubr.f32.gmra.mrb[66].mxu1 %v464_v31  ;;  %v270_v30 = vld [vmem:[%s5017_s6 + $0x318] sm:$0xff]  ;;  %v496_v31 = vld [vmem:[%s5017_s6 + $0xa28] sm:$0xff] }
  0xb5   : > { %4316 = vmatprep.mubr.f32.mxu0 %v239_v32  ;;  %4655 = vmatprep.mubr.f32.mxu1 %v465_v33  ;;  %v271_v32 = vld [vmem:[%s5017_s6 + $0x320] sm:$0xff]  ;;  %v497_v33 = vld [vmem:[%s5017_s6 + $0xa30] sm:$0xff] }
  0xb8   : > { %4317 = vmatmul.mubr.f32.gmra.mrb[68].mxu0 %v240_v34  ;;  %4656 = vmatmul.mubr.f32.gmra.mrb[68].mxu1 %v466_v35  ;;  %v272_v34 = vld [vmem:[%s5017_s6 + $0x328] sm:$0xff]  ;;  %v498_v35 = vld [vmem:[%s5017_s6 + $0xa38] sm:$0xff] }
  0xb9   : > { %4319 = vmatprep.mubr.f32.mxu0 %v241_v36  ;;  %4658 = vmatprep.mubr.f32.mxu1 %v467_v37  ;;  %v273_v36 = vld [vmem:[%s5017_s6 + $0x330] sm:$0xff]  ;;  %v499_v37 = vld [vmem:[%s5017_s6 + $0xa40] sm:$0xff] }
  0xbc   : > { %4320 = vmatmul.mubr.f32.gmra.mrb[70].mxu0 %v242_v38  ;;  %4659 = vmatmul.mubr.f32.gmra.mrb[70].mxu1 %v468_v39  ;;  %v274_v38 = vld [vmem:[%s5017_s6 + $0x338] sm:$0xff]  ;;  %v500_v39 = vld [vmem:[%s5017_s6 + $0xa48] sm:$0xff] }
  0xbd   : > { %4322 = vmatprep.mubr.f32.mxu0 %v243_v40  ;;  %4661 = vmatprep.mubr.f32.mxu1 %v469_v41  ;;  %v275_v40 = vld [vmem:[%s5017_s6 + $0x340] sm:$0xff]  ;;  %v501_v41 = vld [vmem:[%s5017_s6 + $0xa50] sm:$0xff] }
  0xc0   : > { %4323 = vmatmul.mubr.f32.gmra.mrb[72].mxu0 %v244_v42  ;;  %4662 = vmatmul.mubr.f32.gmra.mrb[72].mxu1 %v470_v43  ;;  %v276_v42 = vld [vmem:[%s5017_s6 + $0x348] sm:$0xff]  ;;  %v502_v43 = vld [vmem:[%s5017_s6 + $0xa58] sm:$0xff] }
  0xc1   : > { %4325 = vmatprep.mubr.f32.mxu0 %v245_v44  ;;  %4664 = vmatprep.mubr.f32.mxu1 %v471_v45  ;;  %v277_v44 = vld [vmem:[%s5017_s6 + $0x350] sm:$0xff]  ;;  %v503_v45 = vld [vmem:[%s5017_s6 + $0xa60] sm:$0xff] }
  0xc4   : > { %4326 = vmatmul.mubr.f32.gmra.mrb[74].mxu0 %v246_v46  ;;  %4665 = vmatmul.mubr.f32.gmra.mrb[74].mxu1 %v472_v47  ;;  %v278_v46 = vld [vmem:[%s5017_s6 + $0x358] sm:$0xff]  ;;  %v504_v47 = vld [vmem:[%s5017_s6 + $0xa68] sm:$0xff] }
  0xc5   : > { %4328 = vmatprep.mubr.f32.mxu0 %v247_v48  ;;  %4667 = vmatprep.mubr.f32.mxu1 %v473_v49  ;;  %v279_v48 = vld [vmem:[%s5017_s6 + $0x360] sm:$0xff]  ;;  %v505_v49 = vld [vmem:[%s5017_s6 + $0xa70] sm:$0xff] }
  0xc8   : > { %4329 = vmatmul.mubr.f32.gmra.mrb[76].mxu0 %v248_v50  ;;  %4668 = vmatmul.mubr.f32.gmra.mrb[76].mxu1 %v474_v51 }
  0xc9   : > { %4331 = vmatprep.mubr.f32.mxu0 %v249_v52  ;;  %4670 = vmatprep.mubr.f32.mxu1 %v475_v53 }
  0xcc   : > { %4332 = vmatmul.mubr.f32.gmra.mrb[78].mxu0 %v250_v54  ;;  %4671 = vmatmul.mubr.f32.gmra.mrb[78].mxu1 %v476_v55  ;;  %v280_v54 = vld [vmem:[%s5017_s6 + $0x368] sm:$0xff]  ;;  %v506_v55 = vld [vmem:[%s5017_s6 + $0xa78] sm:$0xff] }
  0xcd   : > { %4334 = vmatprep.mubr.f32.mxu0 %v251_v56  ;;  %4673 = vmatprep.mubr.f32.mxu1 %v477_v57  ;;  %v281_v56 = vld [vmem:[%s5017_s6 + $0x370] sm:$0xff]  ;;  %v507_v57 = vld [vmem:[%s5017_s6 + $0xa80] sm:$0xff] }
  0xd0   : > { %4335 = vmatmul.mubr.f32.gmra.mrb[80].mxu0 %v252_v58  ;;  %4674 = vmatmul.mubr.f32.gmra.mrb[80].mxu1 %v478_v59 }
  0xd1   : > { %4337 = vmatprep.mubr.f32.mxu0 %v253_v60  ;;  %4676 = vmatprep.mubr.f32.mxu1 %v479_v61 }
  0xd4   : > { %4338 = vmatmul.mubr.f32.gmra.mrb[82].mxu0 %v254_v62  ;;  %4677 = vmatmul.mubr.f32.gmra.mrb[82].mxu1 %v480_v63  ;;  %v282_v62 = vld [vmem:[%s5017_s6 + $0x378] sm:$0xff]  ;;  %v508_v63 = vld [vmem:[%s5017_s6 + $0xa88] sm:$0xff] }
  0xd5   : > { %4340 = vmatprep.mubr.f32.mxu0 %v255_v0  ;;  %4679 = vmatprep.mubr.f32.mxu1 %v481_v1  ;;  %v283_v0 = vld [vmem:[%s5017_s6 + $0x380] sm:$0xff]  ;;  %v509_v1 = vld [vmem:[%s5017_s6 + $0xa90] sm:$0xff] }
  0xd8   : > { %4341 = vmatmul.mubr.f32.gmra.mrb[84].mxu0 %v256_v2  ;;  %4680 = vmatmul.mubr.f32.gmra.mrb[84].mxu1 %v482_v3 }
  0xd9   : > { %4343 = vmatprep.mubr.f32.mxu0 %v257_v4  ;;  %4682 = vmatprep.mubr.f32.mxu1 %v483_v5 }
  0xdc   : > { %4344 = vmatmul.mubr.f32.gmra.mrb[86].mxu0 %v258_v6  ;;  %4683 = vmatmul.mubr.f32.gmra.mrb[86].mxu1 %v484_v7  ;;  %v284_v6 = vld [vmem:[%s5017_s6 + $0x388] sm:$0xff]  ;;  %v510_v7 = vld [vmem:[%s5017_s6 + $0xa98] sm:$0xff] }
  0xdd   : > { %4346 = vmatprep.mubr.f32.mxu0 %v259_v8  ;;  %4685 = vmatprep.mubr.f32.mxu1 %v485_v9  ;;  %v285_v8 = vld [vmem:[%s5017_s6 + $0x390] sm:$0xff]  ;;  %v511_v9 = vld [vmem:[%s5017_s6 + $0xaa0] sm:$0xff] }
  0xe0   : > { %4347 = vmatmul.mubr.f32.gmra.mrb[88].mxu0 %v260_v10  ;;  %4686 = vmatmul.mubr.f32.gmra.mrb[88].mxu1 %v486_v11 }
  0xe1   : > { %4349 = vmatprep.mubr.f32.mxu0 %v261_v12  ;;  %4688 = vmatprep.mubr.f32.mxu1 %v487_v13 }
  0xe4   : > { %4350 = vmatmul.mubr.f32.gmra.mrb[90].mxu0 %v262_v14  ;;  %4689 = vmatmul.mubr.f32.gmra.mrb[90].mxu1 %v488_v15  ;;  %v286_v14 = vld [vmem:[%s5017_s6 + $0x398] sm:$0xff]  ;;  %v512_v15 = vld [vmem:[%s5017_s6 + $0xaa8] sm:$0xff] }
  0xe5   : > { %4352 = vmatprep.mubr.f32.mxu0 %v263_v16  ;;  %4691 = vmatprep.mubr.f32.mxu1 %v489_v17  ;;  %v287_v16 = vld [vmem:[%s5017_s6 + $0x3a0] sm:$0xff]  ;;  %v513_v17 = vld [vmem:[%s5017_s6 + $0xab0] sm:$0xff] }
  0xe8   : > { %4353 = vmatmul.mubr.f32.gmra.mrb[92].mxu0 %v264_v18  ;;  %4692 = vmatmul.mubr.f32.gmra.mrb[92].mxu1 %v490_v19 }
  0xe9   : > { %4355 = vmatprep.mubr.f32.mxu0 %v265_v20  ;;  %4694 = vmatprep.mubr.f32.mxu1 %v491_v21 }
  0xec   : > { %4356 = vmatmul.mubr.f32.gmra.mrb[94].mxu0 %v266_v22  ;;  %4695 = vmatmul.mubr.f32.gmra.mrb[94].mxu1 %v492_v23  ;;  %v288_v22 = vld [vmem:[%s5017_s6 + $0x3a8] sm:$0xff]  ;;  %v514_v23 = vld [vmem:[%s5017_s6 + $0xab8] sm:$0xff] }
  0xed   : > { %4358 = vmatprep.mubr.f32.mxu0 %v267_v24  ;;  %4697 = vmatprep.mubr.f32.mxu1 %v493_v25  ;;  %v289_v24 = vld [vmem:[%s5017_s6 + $0x3b0] sm:$0xff]  ;;  %v515_v25 = vld [vmem:[%s5017_s6 + $0xac0] sm:$0xff] }
  0xf0   : > { %4359 = vmatmul.mubr.f32.gmra.mrb[96].mxu0 %v268_v26  ;;  %4698 = vmatmul.mubr.f32.gmra.mrb[96].mxu1 %v494_v27 }
  0xf1   : > { %4361 = vmatprep.mubr.f32.mxu0 %v269_v28  ;;  %4700 = vmatprep.mubr.f32.mxu1 %v495_v29 }
  0xf4   : > { %4362 = vmatmul.mubr.f32.gmra.mrb[98].mxu0 %v270_v30  ;;  %4701 = vmatmul.mubr.f32.gmra.mrb[98].mxu1 %v496_v31  ;;  %v290_v30 = vld [vmem:[%s5017_s6 + $0x3b8] sm:$0xff]  ;;  %v516_v31 = vld [vmem:[%s5017_s6 + $0xac8] sm:$0xff] }
  0xf5   : > { %4364 = vmatprep.mubr.f32.mxu0 %v271_v32  ;;  %4703 = vmatprep.mubr.f32.mxu1 %v497_v33  ;;  %v291_v32 = vld [vmem:[%s5017_s6 + $0x3c0] sm:$0xff]  ;;  %v517_v33 = vld [vmem:[%s5017_s6 + $0xad0] sm:$0xff] }
  0xf8   : > { %4365 = vmatmul.mubr.f32.gmra.mrb[100].mxu0 %v272_v34  ;;  %4704 = vmatmul.mubr.f32.gmra.mrb[100].mxu1 %v498_v35 }
  0xf9   : > { %4367 = vmatprep.mubr.f32.mxu0 %v273_v36  ;;  %4706 = vmatprep.mubr.f32.mxu1 %v499_v37 }
  0xfc   : > { %4368 = vmatmul.mubr.f32.gmra.mrb[102].mxu0 %v274_v38  ;;  %4707 = vmatmul.mubr.f32.gmra.mrb[102].mxu1 %v500_v39  ;;  %v292_v38 = vld [vmem:[%s5017_s6 + $0x3c8] sm:$0xff]  ;;  %v518_v39 = vld [vmem:[%s5017_s6 + $0xad8] sm:$0xff] }
  0xfd   : > { %4370 = vmatprep.mubr.f32.mxu0 %v275_v40  ;;  %4709 = vmatprep.mubr.f32.mxu1 %v501_v41  ;;  %v293_v40 = vld [vmem:[%s5017_s6 + $0x3d0] sm:$0xff]  ;;  %v519_v41 = vld [vmem:[%s5017_s6 + $0xae0] sm:$0xff] }
 0x100   : > { %4371 = vmatmul.mubr.f32.gmra.mrb[104].mxu0 %v276_v42  ;;  %4710 = vmatmul.mubr.f32.gmra.mrb[104].mxu1 %v502_v43 }
 0x101   : > { %4373 = vmatprep.mubr.f32.mxu0 %v277_v44  ;;  %4712 = vmatprep.mubr.f32.mxu1 %v503_v45 }
 0x103   : > { %v5261_v50 = vpop.f32.mrb[0].mxu0  ;;  %v5263_v51 = vpop.f32.mrb[0].mxu1 }
 0x104   : > { %v5265_v52 = vpop.f32.mrb[1].mxu0  ;;  %4374 = vmatmul.mubr.f32.gmra.mrb[106].mxu0 %v278_v46  ;;  %v5267_v53 = vpop.f32.mrb[1].mxu1  ;;  %4713 = vmatmul.mubr.f32.gmra.mrb[106].mxu1 %v504_v47  ;;  %v294_v46 = vld [vmem:[%s5017_s6 + $0x3d8] sm:$0xff]  ;;  %v520_v47 = vld [vmem:[%s5017_s6 + $0xae8] sm:$0xff] }
 0x105   : > { %4376 = vmatprep.mubr.f32.mxu0 %v279_v48  ;;  %4715 = vmatprep.mubr.f32.mxu1 %v505_v49  ;;  %v295_v48 = vld [vmem:[%s5017_s6 + $0x3e0] sm:$0xff]  ;;  %v521_v49 = vld [vmem:[%s5017_s6 + $0xaf0] sm:$0xff] }
 0x107   : > { %v5273_v58 = vpop.f32.mrb[2].mxu0  ;;  %v5275_v59 = vpop.f32.mrb[2].mxu1 }
 0x108   : > { %v5277_v60 = vpop.f32.mrb[3].mxu0  ;;  %4377 = vmatmul.mubr.f32.gmra.mrb[108].mxu0 %v280_v54  ;;  %v5279_v61 = vpop.f32.mrb[3].mxu1  ;;  %4716 = vmatmul.mubr.f32.gmra.mrb[108].mxu1 %v506_v55 }
 0x109   : > { %4379 = vmatprep.mubr.f32.mxu0 %v281_v56  ;;  %4718 = vmatprep.mubr.f32.mxu1 %v507_v57 }
 0x10b   : > { %v5285_v2 = vpop.f32.mrb[4].mxu0  ;;  %v5287_v3 = vpop.f32.mrb[4].mxu1 }
 0x10c   : > { %v5289_v4 = vpop.f32.mrb[5].mxu0  ;;  %4380 = vmatmul.mubr.f32.gmra.mrb[110].mxu0 %v282_v62  ;;  %v5291_v5 = vpop.f32.mrb[5].mxu1  ;;  %4719 = vmatmul.mubr.f32.gmra.mrb[110].mxu1 %v508_v63  ;;  %v296_v62 = vld [vmem:[%s5017_s6 + $0x3e8] sm:$0xff]  ;;  %v522_v63 = vld [vmem:[%s5017_s6 + $0xaf8] sm:$0xff] }
 0x10d   : > { %4382 = vmatprep.mubr.f32.mxu0 %v283_v0  ;;  %4721 = vmatprep.mubr.f32.mxu1 %v509_v1  ;;  %v297_v0 = vld [vmem:[%s5017_s6 + $0x3f0] sm:$0xff]  ;;  %v523_v1 = vld [vmem:[%s5017_s6 + $0xb00] sm:$0xff] }
 0x10f   : > { %v5297_v10 = vpop.f32.mrb[6].mxu0  ;;  %v5299_v11 = vpop.f32.mrb[6].mxu1 }
 0x110   : > { %v5301_v12 = vpop.f32.mrb[7].mxu0  ;;  %4383 = vmatmul.mubr.f32.gmra.mrb[112].mxu0 %v284_v6  ;;  %v5303_v13 = vpop.f32.mrb[7].mxu1  ;;  %4722 = vmatmul.mubr.f32.gmra.mrb[112].mxu1 %v510_v7 }
 0x111   : > { %4385 = vmatprep.mubr.f32.mxu0 %v285_v8  ;;  %4724 = vmatprep.mubr.f32.mxu1 %v511_v9 }
 0x113   : > { %v5309_v18 = vpop.f32.mrb[8].mxu0  ;;  %v5311_v19 = vpop.f32.mrb[8].mxu1 }
 0x114   : > { %v5313_v20 = vpop.f32.mrb[9].mxu0  ;;  %4386 = vmatmul.mubr.f32.gmra.mrb[114].mxu0 %v286_v14  ;;  %v5315_v21 = vpop.f32.mrb[9].mxu1  ;;  %4725 = vmatmul.mubr.f32.gmra.mrb[114].mxu1 %v512_v15  ;;  %v298_v14 = vld [vmem:[%s5017_s6 + $0x3f8] sm:$0xff]  ;;  %v524_v15 = vld [vmem:[%s5017_s6 + $0xb08] sm:$0xff] }
 0x115   : > { %4388 = vmatprep.mubr.f32.mxu0 %v287_v16  ;;  %4727 = vmatprep.mubr.f32.mxu1 %v513_v17  ;;  %v299_v16 = vld [vmem:[%s5017_s6 + $0x400] sm:$0xff]  ;;  %v525_v17 = vld [vmem:[%s5017_s6 + $0xb10] sm:$0xff] }
 0x117   : > { %v5321_v26 = vpop.f32.mrb[10].mxu0  ;;  %v5323_v27 = vpop.f32.mrb[10].mxu1 }
 0x118   : > { %v5325_v28 = vpop.f32.mrb[11].mxu0  ;;  %4389 = vmatmul.mubr.f32.gmra.mrb[116].mxu0 %v288_v22  ;;  %v5327_v29 = vpop.f32.mrb[11].mxu1  ;;  %4728 = vmatmul.mubr.f32.gmra.mrb[116].mxu1 %v514_v23 }
 0x119   : > { %4391 = vmatprep.mubr.f32.mxu0 %v289_v24  ;;  %4730 = vmatprep.mubr.f32.mxu1 %v515_v25 }
 0x11b   : > { %v5333_v34 = vpop.f32.mrb[12].mxu0  ;;  %v5335_v35 = vpop.f32.mrb[12].mxu1 }
 0x11c   : > { %v5337_v36 = vpop.f32.mrb[13].mxu0  ;;  %4392 = vmatmul.mubr.f32.gmra.mrb[118].mxu0 %v290_v30  ;;  %v5339_v37 = vpop.f32.mrb[13].mxu1  ;;  %4731 = vmatmul.mubr.f32.gmra.mrb[118].mxu1 %v516_v31  ;;  %v300_v30 = vld [vmem:[%s5017_s6 + $0x408] sm:$0xff]  ;;  %v526_v31 = vld [vmem:[%s5017_s6 + $0xb18] sm:$0xff] }
 0x11d   : > { %4394 = vmatprep.mubr.f32.mxu0 %v291_v32  ;;  %4733 = vmatprep.mubr.f32.mxu1 %v517_v33  ;;  %v301_v32 = vld [vmem:[%s5017_s6 + $0x410] sm:$0xff]  ;;  %v527_v33 = vld [vmem:[%s5017_s6 + $0xb20] sm:$0xff] }
 0x11f   : > { %v5345_v42 = vpop.f32.mrb[14].mxu0  ;;  %v5347_v43 = vpop.f32.mrb[14].mxu1 }
 0x120   : > { %v5349_v44 = vpop.f32.mrb[15].mxu0  ;;  %4395 = vmatmul.mubr.f32.gmra.mrb[120].mxu0 %v292_v38  ;;  %v5351_v45 = vpop.f32.mrb[15].mxu1  ;;  %4734 = vmatmul.mubr.f32.gmra.mrb[120].mxu1 %v518_v39 }
 0x121   : > { %4397 = vmatprep.mubr.f32.mxu0 %v293_v40  ;;  %4736 = vmatprep.mubr.f32.mxu1 %v519_v41 }
 0x123   : > { %v5357_v54 = vpop.f32.mrb[16].mxu0  ;;  %v5359_v55 = vpop.f32.mrb[16].mxu1 }
 0x124   : > { %v5361_v56 = vpop.f32.mrb[17].mxu0  ;;  %4398 = vmatmul.mubr.f32.gmra.mrb[122].mxu0 %v294_v46  ;;  %v5363_v57 = vpop.f32.mrb[17].mxu1  ;;  %4737 = vmatmul.mubr.f32.gmra.mrb[122].mxu1 %v520_v47  ;;  %v302_v46 = vld [vmem:[%s5017_s6 + $0x418] sm:$0xff]  ;;  %v528_v47 = vld [vmem:[%s5017_s6 + $0xb28] sm:$0xff] }
 0x125   : > { %4400 = vmatprep.mubr.f32.mxu0 %v295_v48  ;;  %4739 = vmatprep.mubr.f32.mxu1 %v521_v49  ;;  %v303_v48 = vld [vmem:[%s5017_s6 + $0x420] sm:$0xff]  ;;  %v529_v49 = vld [vmem:[%s5017_s6 + $0xb30] sm:$0xff] }
 0x127   : > { %v5369_v6 = vpop.f32.mrb[18].mxu0  ;;  %v5371_v7 = vpop.f32.mrb[18].mxu1 }
 0x128   : > { %v5373_v8 = vpop.f32.mrb[19].mxu0  ;;  %4401 = vmatmul.mubr.f32.gmra.mrb[124].mxu0 %v296_v62  ;;  %v5375_v9 = vpop.f32.mrb[19].mxu1  ;;  %4740 = vmatmul.mubr.f32.gmra.mrb[124].mxu1 %v522_v63 }
 0x129   : > { %4403 = vmatprep.mubr.f32.mxu0 %v297_v0  ;;  %4742 = vmatprep.mubr.f32.mxu1 %v523_v1 }
 0x12b   : > { %v5381_v22 = vpop.f32.mrb[20].mxu0  ;;  %v5383_v23 = vpop.f32.mrb[20].mxu1 }
 0x12c   : > { %v5385_v24 = vpop.f32.mrb[21].mxu0  ;;  %4404 = vmatmul.mubr.f32.gmra.mrb[126].mxu0 %v298_v14  ;;  %v5387_v25 = vpop.f32.mrb[21].mxu1  ;;  %4743 = vmatmul.mubr.f32.gmra.mrb[126].mxu1 %v524_v15  ;;  %v304_v14 = vld [vmem:[%s5017_s6 + $0x428] sm:$0xff]  ;;  %v530_v15 = vld [vmem:[%s5017_s6 + $0xb38] sm:$0xff] }
 0x12d   : > { %4406 = vmatprep.mubr.f32.mxu0 %v299_v16  ;;  %4745 = vmatprep.mubr.f32.mxu1 %v525_v17  ;;  %v305_v16 = vld [vmem:[%s5017_s6 + $0x430] sm:$0xff]  ;;  %v531_v17 = vld [vmem:[%s5017_s6 + $0xb40] sm:$0xff] }
 0x12f   : > { %v5393_v38 = vpop.f32.mrb[22].mxu0  ;;  %v5395_v39 = vpop.f32.mrb[22].mxu1 }
 0x130   : > { %6422 = vst [vmem:[#allocation2_spill] sm:$0xff] %v5393_v38  ;;  %6423 = vst [vmem:[#allocation3_spill] sm:$0xff] %v5395_v39  ;;  %v5397_v40 = vpop.f32.mrb[23].mxu0  ;;  %4407 = vmatmul.mubr.f32.gmra.mrb[128].mxu0 %v300_v30  ;;  %v5399_v41 = vpop.f32.mrb[23].mxu1  ;;  %4746 = vmatmul.mubr.f32.gmra.mrb[128].mxu1 %v526_v31 }
 0x131   : > { %4409 = vmatprep.mubr.f32.mxu0 %v301_v32  ;;  %4748 = vmatprep.mubr.f32.mxu1 %v527_v33 }
 0x133   : > { %v5405_v62 = vpop.f32.mrb[24].mxu0  ;;  %v5407_v63 = vpop.f32.mrb[24].mxu1 }
 0x134   : > { %6424 = vst [vmem:[#allocation4_spill] sm:$0xff] %v5405_v62  ;;  %6425 = vst [vmem:[#allocation5_spill] sm:$0xff] %v5407_v63  ;;  %v5409_v0 = vpop.f32.mrb[25].mxu0  ;;  %4410 = vmatmul.mubr.f32.gmra.mrb[130].mxu0 %v302_v46  ;;  %v5411_v1 = vpop.f32.mrb[25].mxu1  ;;  %4749 = vmatmul.mubr.f32.gmra.mrb[130].mxu1 %v528_v47  ;;  %v306_v46 = vld [vmem:[%s5017_s6 + $0x438] sm:$0xff]  ;;  %v532_v47 = vld [vmem:[%s5017_s6 + $0xb48] sm:$0xff] }
 0x135   : > { %4412 = vmatprep.mubr.f32.mxu0 %v303_v48  ;;  %4751 = vmatprep.mubr.f32.mxu1 %v529_v49  ;;  %v307_v48 = vld [vmem:[%s5017_s6 + $0x440] sm:$0xff]  ;;  %v533_v49 = vld [vmem:[%s5017_s6 + $0xb50] sm:$0xff] }
 0x136   : > { %v535_v62 = vld [vmem:[%s5017_s6 + $0xb60] sm:$0xff] }
 0x137   : > { %v5417_v30 = vpop.f32.mrb[26].mxu0  ;;  %v5419_v31 = vpop.f32.mrb[26].mxu1 }
 0x138   : > { %6426 = vst [vmem:[#allocation6_spill] sm:$0xff] %v5417_v30  ;;  %6427 = vst [vmem:[#allocation7_spill] sm:$0xff] %v5419_v31  ;;  %v5421_v32 = vpop.f32.mrb[27].mxu0  ;;  %4413 = vmatmul.mubr.f32.gmra.mrb[132].mxu0 %v304_v14  ;;  %v5423_v33 = vpop.f32.mrb[27].mxu1  ;;  %4752 = vmatmul.mubr.f32.gmra.mrb[132].mxu1 %v530_v15  ;;  %v308_v15 = vld [vmem:[%s5017_s6 + $0x448] sm:$0xff] }
 0x139   : > { %6428 = vst [vmem:[#allocation8_spill] sm:$0xff] %v5421_v32  ;;  %6429 = vst [vmem:[#allocation9_spill] sm:$0xff] %v5423_v33  ;;  %4415 = vmatprep.mubr.f32.mxu0 %v305_v16  ;;  %4754 = vmatprep.mubr.f32.mxu1 %v531_v17  ;;  %v534_v16 = vld [vmem:[%s5017_s6 + $0xb58] sm:$0xff]  ;;  %v309_v17 = vld [vmem:[%s5017_s6 + $0x450] sm:$0xff] }
 0x13b   : > { %v5429_v63 = vpop.f32.mrb[28].mxu0  ;;  %v5431_v30 = vpop.f32.mrb[28].mxu1 }
 0x13c   : > { %6430 = vst [vmem:[#allocation10_spill] sm:$0xff] %v5429_v63  ;;  %6431 = vst [vmem:[#allocation11_spill] sm:$0xff] %v5431_v30  ;;  %v5433_v31 = vpop.f32.mrb[29].mxu0  ;;  %4416 = vmatmul.mubr.f32.gmra.mrb[134].mxu0 %v306_v46  ;;  %v5435_v14 = vpop.f32.mrb[29].mxu1  ;;  %4755 = vmatmul.mubr.f32.gmra.mrb[134].mxu1 %v532_v47  ;;  %v310_v47 = vld [vmem:[%s5017_s6 + $0x458] sm:$0xff] }
 0x13d   : > { %6432 = vst [vmem:[#allocation12_spill] sm:$0xff] %v5433_v31  ;;  %6433 = vst [vmem:[#allocation13_spill] sm:$0xff] %v5435_v14  ;;  %4418 = vmatprep.mubr.f32.mxu0 %v307_v48  ;;  %4757 = vmatprep.mubr.f32.mxu1 %v533_v49  ;;  %v536_v48 = vld [vmem:[%s5017_s6 + $0xb68] sm:$0xff]  ;;  %v311_v49 = vld [vmem:[%s5017_s6 + $0x460] sm:$0xff] }
 0x13e   : > { %v537_v14 = vld [vmem:[%s5017_s6 + $0xb70] sm:$0xff] }
 0x13f   : > { %v5441_v33 = vpop.f32.mrb[30].mxu0  ;;  %v5443_v63 = vpop.f32.mrb[30].mxu1 }
 0x140   : > { %6434 = vst [vmem:[#allocation14_spill] sm:$0xff] %v5441_v33  ;;  %6435 = vst [vmem:[#allocation15_spill] sm:$0xff] %v5443_v63  ;;  %v5445_v30 = vpop.f32.mrb[31].mxu0  ;;  %4419 = vmatmul.mubr.f32.gmra.mrb[136].mxu0 %v308_v15  ;;  %v5447_v46 = vpop.f32.mrb[31].mxu1  ;;  %4758 = vmatmul.mubr.f32.gmra.mrb[136].mxu1 %v534_v16  ;;  %v538_v16 = vld [vmem:[%s5017_s6 + $0xb78] sm:$0xff] }
 0x141   : > { %6436 = vst [vmem:[#allocation16_spill] sm:$0xff] %v5445_v30  ;;  %6437 = vst [vmem:[#allocation17_spill] sm:$0xff] %v5447_v46  ;;  %4421 = vmatprep.mubr.f32.mxu0 %v309_v17  ;;  %4760 = vmatprep.mubr.f32.mxu1 %v535_v62  ;;  %v312_v62 = vld [vmem:[%s5017_s6 + $0x468] sm:$0xff]  ;;  %v313_v17 = vld [vmem:[%s5017_s6 + $0x470] sm:$0xff] }
 0x142   : > { %v539_v46 = vld [vmem:[%s5017_s6 + $0xb80] sm:$0xff] }
 0x143   : > { %v5453_v31 = vpop.f32.mrb[32].mxu0  ;;  %v5455_v33 = vpop.f32.mrb[32].mxu1 }
 0x144   : > { %6438 = vst [vmem:[#allocation18_spill] sm:$0xff] %v5453_v31  ;;  %6439 = vst [vmem:[#allocation19_spill] sm:$0xff] %v5455_v33  ;;  %v5457_v63 = vpop.f32.mrb[33].mxu0  ;;  %4422 = vmatmul.mubr.f32.gmra.mrb[138].mxu0 %v310_v47  ;;  %v5459_v15 = vpop.f32.mrb[33].mxu1  ;;  %4761 = vmatmul.mubr.f32.gmra.mrb[138].mxu1 %v536_v48  ;;  %v540_v48 = vld [vmem:[%s5017_s6 + $0xb88] sm:$0xff] }
 0x145   : > { %6440 = vst [vmem:[#allocation20_spill] sm:$0xff] %v5457_v63  ;;  %6441 = vst [vmem:[#allocation21_spill] sm:$0xff] %v5459_v15  ;;  %4424 = vmatprep.mubr.f32.mxu0 %v311_v49  ;;  %4763 = vmatprep.mubr.f32.mxu1 %v537_v14  ;;  %v314_v14 = vld [vmem:[%s5017_s6 + $0x478] sm:$0xff]  ;;  %v315_v49 = vld [vmem:[%s5017_s6 + $0x480] sm:$0xff] }
 0x146   : > { %v541_v15 = vld [vmem:[%s5017_s6 + $0xb90] sm:$0xff] }
 0x147   : > { %v5465_v30 = vpop.f32.mrb[34].mxu0  ;;  %v5467_v31 = vpop.f32.mrb[34].mxu1 }
 0x148   : > { %6442 = vst [vmem:[#allocation22_spill] sm:$0xff] %v5465_v30  ;;  %6443 = vst [vmem:[#allocation23_spill] sm:$0xff] %v5467_v31  ;;  %v5469_v33 = vpop.f32.mrb[35].mxu0  ;;  %4425 = vmatmul.mubr.f32.gmra.mrb[140].mxu0 %v312_v62  ;;  %v5471_v47 = vpop.f32.mrb[35].mxu1  ;;  %4764 = vmatmul.mubr.f32.gmra.mrb[140].mxu1 %v538_v16  ;;  %v542_v16 = vld [vmem:[%s5017_s6 + $0xb98] sm:$0xff] }
 0x149   : > { %6444 = vst [vmem:[#allocation24_spill] sm:$0xff] %v5469_v33  ;;  %6445 = vst [vmem:[#allocation25_spill] sm:$0xff] %v5471_v47  ;;  %4427 = vmatprep.mubr.f32.mxu0 %v313_v17  ;;  %4766 = vmatprep.mubr.f32.mxu1 %v539_v46  ;;  %v316_v46 = vld [vmem:[%s5017_s6 + $0x488] sm:$0xff]  ;;  %v317_v17 = vld [vmem:[%s5017_s6 + $0x490] sm:$0xff] }
 0x14a   : > { %v543_v47 = vld [vmem:[%s5017_s6 + $0xba0] sm:$0xff] }
 0x14b   : > { %v5477_v63 = vpop.f32.mrb[36].mxu0  ;;  %v5479_v30 = vpop.f32.mrb[36].mxu1 }
 0x14c   : > { %6446 = vst [vmem:[#allocation26_spill] sm:$0xff] %v5477_v63  ;;  %6447 = vst [vmem:[#allocation27_spill] sm:$0xff] %v5479_v30  ;;  %v5481_v31 = vpop.f32.mrb[37].mxu0  ;;  %4428 = vmatmul.mubr.f32.gmra.mrb[142].mxu0 %v314_v14  ;;  %v5483_v62 = vpop.f32.mrb[37].mxu1  ;;  %4767 = vmatmul.mubr.f32.gmra.mrb[142].mxu1 %v540_v48  ;;  %v544_v48 = vld [vmem:[%s5017_s6 + $0xba8] sm:$0xff] }
 0x14d   : > { %6448 = vst [vmem:[#allocation28_spill] sm:$0xff] %v5481_v31  ;;  %6449 = vst [vmem:[#allocation29_spill] sm:$0xff] %v5483_v62  ;;  %4430 = vmatprep.mubr.f32.mxu0 %v315_v49  ;;  %4769 = vmatprep.mubr.f32.mxu1 %v541_v15  ;;  %v318_v15 = vld [vmem:[%s5017_s6 + $0x498] sm:$0xff]  ;;  %v319_v49 = vld [vmem:[%s5017_s6 + $0x4a0] sm:$0xff] }
 0x14e   : > { %v545_v62 = vld [vmem:[%s5017_s6 + $0xbb0] sm:$0xff] }
 0x14f   : > { %v5489_v33 = vpop.f32.mrb[38].mxu0  ;;  %v5491_v63 = vpop.f32.mrb[38].mxu1 }
 0x150   : > { %6450 = vst [vmem:[#allocation30_spill] sm:$0xff] %v5489_v33  ;;  %6451 = vst [vmem:[#allocation31_spill] sm:$0xff] %v5491_v63  ;;  %v5493_v30 = vpop.f32.mrb[39].mxu0  ;;  %4431 = vmatmul.mubr.f32.gmra.mrb[144].mxu0 %v316_v46  ;;  %v5495_v14 = vpop.f32.mrb[39].mxu1  ;;  %4770 = vmatmul.mubr.f32.gmra.mrb[144].mxu1 %v542_v16  ;;  %v546_v16 = vld [vmem:[%s5017_s6 + $0xbb8] sm:$0xff] }
 0x151   : > { %6452 = vst [vmem:[#allocation32_spill] sm:$0xff] %v5493_v30  ;;  %6453 = vst [vmem:[#allocation33_spill] sm:$0xff] %v5495_v14  ;;  %4433 = vmatprep.mubr.f32.mxu0 %v317_v17  ;;  %4772 = vmatprep.mubr.f32.mxu1 %v543_v47  ;;  %v320_v47 = vld [vmem:[%s5017_s6 + $0x4a8] sm:$0xff]  ;;  %v321_v17 = vld [vmem:[%s5017_s6 + $0x4b0] sm:$0xff] }
 0x152   : > { %v547_v14 = vld [vmem:[%s5017_s6 + $0xbc0] sm:$0xff] }
 0x153   : > { %v5501_v31 = vpop.f32.mrb[40].mxu0  ;;  %v5503_v33 = vpop.f32.mrb[40].mxu1 }
 0x154   : > { %6454 = vst [vmem:[#allocation34_spill] sm:$0xff] %v5501_v31  ;;  %6455 = vst [vmem:[#allocation35_spill] sm:$0xff] %v5503_v33  ;;  %v5505_v63 = vpop.f32.mrb[41].mxu0  ;;  %4434 = vmatmul.mubr.f32.gmra.mrb[146].mxu0 %v318_v15  ;;  %v5507_v46 = vpop.f32.mrb[41].mxu1  ;;  %4773 = vmatmul.mubr.f32.gmra.mrb[146].mxu1 %v544_v48  ;;  %v548_v48 = vld [vmem:[%s5017_s6 + $0xbc8] sm:$0xff] }
 0x155   : > { %6456 = vst [vmem:[#allocation36_spill] sm:$0xff] %v5505_v63  ;;  %6457 = vst [vmem:[#allocation37_spill] sm:$0xff] %v5507_v46  ;;  %4436 = vmatprep.mubr.f32.mxu0 %v319_v49  ;;  %4775 = vmatprep.mubr.f32.mxu1 %v545_v62  ;;  %v322_v62 = vld [vmem:[%s5017_s6 + $0x4b8] sm:$0xff]  ;;  %v323_v49 = vld [vmem:[%s5017_s6 + $0x4c0] sm:$0xff] }
 0x156   : > { %v549_v46 = vld [vmem:[%s5017_s6 + $0xbd0] sm:$0xff] }
 0x157   : > { %v5513_v30 = vpop.f32.mrb[42].mxu0  ;;  %v5515_v31 = vpop.f32.mrb[42].mxu1 }
 0x158   : > { %6458 = vst [vmem:[#allocation38_spill] sm:$0xff] %v5513_v30  ;;  %6459 = vst [vmem:[#allocation39_spill] sm:$0xff] %v5515_v31  ;;  %v5517_v33 = vpop.f32.mrb[43].mxu0  ;;  %4437 = vmatmul.mubr.f32.gmra.mrb[148].mxu0 %v320_v47  ;;  %v5519_v15 = vpop.f32.mrb[43].mxu1  ;;  %4776 = vmatmul.mubr.f32.gmra.mrb[148].mxu1 %v546_v16  ;;  %v550_v16 = vld [vmem:[%s5017_s6 + $0xbd8] sm:$0xff] }
 0x159   : > { %6460 = vst [vmem:[#allocation40_spill] sm:$0xff] %v5517_v33  ;;  %6461 = vst [vmem:[#allocation41_spill] sm:$0xff] %v5519_v15  ;;  %4439 = vmatprep.mubr.f32.mxu0 %v321_v17  ;;  %4778 = vmatprep.mubr.f32.mxu1 %v547_v14  ;;  %v324_v14 = vld [vmem:[%s5017_s6 + $0x4c8] sm:$0xff]  ;;  %v325_v17 = vld [vmem:[%s5017_s6 + $0x4d0] sm:$0xff] }
 0x15a   : > { %v551_v15 = vld [vmem:[%s5017_s6 + $0xbe0] sm:$0xff] }
 0x15b   : > { %v5525_v63 = vpop.f32.mrb[44].mxu0  ;;  %v5527_v30 = vpop.f32.mrb[44].mxu1 }
 0x15c   : > { %6462 = vst [vmem:[#allocation42_spill] sm:$0xff] %v5525_v63  ;;  %6463 = vst [vmem:[#allocation43_spill] sm:$0xff] %v5527_v30  ;;  %v5529_v31 = vpop.f32.mrb[45].mxu0  ;;  %4440 = vmatmul.mubr.f32.gmra.mrb[150].mxu0 %v322_v62  ;;  %v5531_v47 = vpop.f32.mrb[45].mxu1  ;;  %4779 = vmatmul.mubr.f32.gmra.mrb[150].mxu1 %v548_v48  ;;  %v552_v48 = vld [vmem:[%s5017_s6 + $0xbe8] sm:$0xff] }
 0x15d   : > { %6464 = vst [vmem:[#allocation44_spill] sm:$0xff] %v5529_v31  ;;  %6465 = vst [vmem:[#allocation45_spill] sm:$0xff] %v5531_v47  ;;  %4442 = vmatprep.mubr.f32.mxu0 %v323_v49  ;;  %4781 = vmatprep.mubr.f32.mxu1 %v549_v46  ;;  %v326_v46 = vld [vmem:[%s5017_s6 + $0x4d8] sm:$0xff]  ;;  %v327_v49 = vld [vmem:[%s5017_s6 + $0x4e0] sm:$0xff] }
 0x15e   : > { %v553_v47 = vld [vmem:[%s5017_s6 + $0xbf0] sm:$0xff] }
 0x15f   : > { %v5537_v33 = vpop.f32.mrb[46].mxu0  ;;  %v5539_v63 = vpop.f32.mrb[46].mxu1 }
 0x160   : > { %6466 = vst [vmem:[#allocation46_spill] sm:$0xff] %v5537_v33  ;;  %6467 = vst [vmem:[#allocation47_spill] sm:$0xff] %v5539_v63  ;;  %v5541_v30 = vpop.f32.mrb[47].mxu0  ;;  %4443 = vmatmul.mubr.f32.gmra.mrb[152].mxu0 %v324_v14  ;;  %v5543_v62 = vpop.f32.mrb[47].mxu1  ;;  %4782 = vmatmul.mubr.f32.gmra.mrb[152].mxu1 %v550_v16  ;;  %v554_v16 = vld [vmem:[%s5017_s6 + $0xbf8] sm:$0xff] }
 0x161   : > { %6468 = vst [vmem:[#allocation48_spill] sm:$0xff] %v5541_v30  ;;  %6469 = vst [vmem:[#allocation49_spill] sm:$0xff] %v5543_v62  ;;  %4445 = vmatprep.mubr.f32.mxu0 %v325_v17  ;;  %4784 = vmatprep.mubr.f32.mxu1 %v551_v15  ;;  %v328_v15 = vld [vmem:[%s5017_s6 + $0x4e8] sm:$0xff]  ;;  %v329_v17 = vld [vmem:[%s5017_s6 + $0x4f0] sm:$0xff] }
 0x162   : > { %v555_v62 = vld [vmem:[%s5017_s6 + $0xc00] sm:$0xff] }
 0x163   : > { %v5549_v31 = vpop.f32.mrb[48].mxu0  ;;  %v5551_v33 = vpop.f32.mrb[48].mxu1 }
 0x164   : > { %6470 = vst [vmem:[#allocation50_spill] sm:$0xff] %v5549_v31  ;;  %6471 = vst [vmem:[#allocation51_spill] sm:$0xff] %v5551_v33  ;;  %v5553_v63 = vpop.f32.mrb[49].mxu0  ;;  %4446 = vmatmul.mubr.f32.gmra.mrb[154].mxu0 %v326_v46  ;;  %v5555_v14 = vpop.f32.mrb[49].mxu1  ;;  %4785 = vmatmul.mubr.f32.gmra.mrb[154].mxu1 %v552_v48  ;;  %v556_v48 = vld [vmem:[%s5017_s6 + $0xc08] sm:$0xff] }
 0x165   : > { %6472 = vst [vmem:[#allocation52_spill] sm:$0xff] %v5553_v63  ;;  %6473 = vst [vmem:[#allocation53_spill] sm:$0xff] %v5555_v14  ;;  %4448 = vmatprep.mubr.f32.mxu0 %v327_v49  ;;  %4787 = vmatprep.mubr.f32.mxu1 %v553_v47  ;;  %v330_v47 = vld [vmem:[%s5017_s6 + $0x4f8] sm:$0xff]  ;;  %v331_v49 = vld [vmem:[%s5017_s6 + $0x500] sm:$0xff] }
 0x166   : > { %v557_v14 = vld [vmem:[%s5017_s6 + $0xc10] sm:$0xff] }
 0x167   : > { %v5561_v30 = vpop.f32.mrb[50].mxu0  ;;  %v5563_v31 = vpop.f32.mrb[50].mxu1 }
 0x168   : > { %6474 = vst [vmem:[#allocation54_spill] sm:$0xff] %v5561_v30  ;;  %6475 = vst [vmem:[#allocation55_spill] sm:$0xff] %v5563_v31  ;;  %v5565_v33 = vpop.f32.mrb[51].mxu0  ;;  %4449 = vmatmul.mubr.f32.gmra.mrb[156].mxu0 %v328_v15  ;;  %v5567_v46 = vpop.f32.mrb[51].mxu1  ;;  %4788 = vmatmul.mubr.f32.gmra.mrb[156].mxu1 %v554_v16  ;;  %v558_v16 = vld [vmem:[%s5017_s6 + $0xc18] sm:$0xff] }
 0x169   : > { %6476 = vst [vmem:[#allocation56_spill] sm:$0xff] %v5565_v33  ;;  %6477 = vst [vmem:[#allocation57_spill] sm:$0xff] %v5567_v46  ;;  %4451 = vmatprep.mubr.f32.mxu0 %v329_v17  ;;  %4790 = vmatprep.mubr.f32.mxu1 %v555_v62  ;;  %v332_v62 = vld [vmem:[%s5017_s6 + $0x508] sm:$0xff]  ;;  %v333_v17 = vld [vmem:[%s5017_s6 + $0x510] sm:$0xff] }
 0x16a   : > { %v559_v46 = vld [vmem:[%s5017_s6 + $0xc20] sm:$0xff] }
 0x16b   : > { %v5573_v63 = vpop.f32.mrb[52].mxu0  ;;  %v5575_v30 = vpop.f32.mrb[52].mxu1 }
 0x16c   : > { %6478 = vst [vmem:[#allocation58_spill] sm:$0xff] %v5573_v63  ;;  %6479 = vst [vmem:[#allocation59_spill] sm:$0xff] %v5575_v30  ;;  %v5577_v31 = vpop.f32.mrb[53].mxu0  ;;  %4452 = vmatmul.mubr.f32.gmra.mrb[158].mxu0 %v330_v47  ;;  %v5579_v15 = vpop.f32.mrb[53].mxu1  ;;  %4791 = vmatmul.mubr.f32.gmra.mrb[158].mxu1 %v556_v48  ;;  %v560_v48 = vld [vmem:[%s5017_s6 + $0xc28] sm:$0xff] }
 0x16d   : > { %6480 = vst [vmem:[#allocation60_spill] sm:$0xff] %v5577_v31  ;;  %6481 = vst [vmem:[#allocation61_spill] sm:$0xff] %v5579_v15  ;;  %4454 = vmatprep.mubr.f32.mxu0 %v331_v49  ;;  %4793 = vmatprep.mubr.f32.mxu1 %v557_v14  ;;  %v334_v14 = vld [vmem:[%s5017_s6 + $0x518] sm:$0xff]  ;;  %v335_v49 = vld [vmem:[%s5017_s6 + $0x520] sm:$0xff] }
 0x16e   : > { %v561_v15 = vld [vmem:[%s5017_s6 + $0xc30] sm:$0xff] }
 0x16f   : > { %v5585_v33 = vpop.f32.mrb[54].mxu0  ;;  %v5587_v63 = vpop.f32.mrb[54].mxu1 }
 0x170   : > { %6482 = vst [vmem:[#allocation62_spill] sm:$0xff] %v5585_v33  ;;  %6483 = vst [vmem:[#allocation63_spill] sm:$0xff] %v5587_v63  ;;  %v5589_v30 = vpop.f32.mrb[55].mxu0  ;;  %4455 = vmatmul.mubr.f32.gmra.mrb[160].mxu0 %v332_v62  ;;  %v5591_v47 = vpop.f32.mrb[55].mxu1  ;;  %4794 = vmatmul.mubr.f32.gmra.mrb[160].mxu1 %v558_v16  ;;  %v562_v16 = vld [vmem:[%s5017_s6 + $0xc38] sm:$0xff] }
 0x171   : > { %6484 = vst [vmem:[#allocation64_spill] sm:$0xff] %v5589_v30  ;;  %6485 = vst [vmem:[#allocation65_spill] sm:$0xff] %v5591_v47  ;;  %4457 = vmatprep.mubr.f32.mxu0 %v333_v17  ;;  %4796 = vmatprep.mubr.f32.mxu1 %v559_v46  ;;  %v336_v46 = vld [vmem:[%s5017_s6 + $0x528] sm:$0xff]  ;;  %v337_v17 = vld [vmem:[%s5017_s6 + $0x530] sm:$0xff] }
 0x172   : > { %v563_v47 = vld [vmem:[%s5017_s6 + $0xc40] sm:$0xff] }
 0x173   : > { %v5597_v31 = vpop.f32.mrb[56].mxu0  ;;  %v5599_v33 = vpop.f32.mrb[56].mxu1 }
 0x174   : > { %6486 = vst [vmem:[#allocation66_spill] sm:$0xff] %v5597_v31  ;;  %6487 = vst [vmem:[#allocation67_spill] sm:$0xff] %v5599_v33  ;;  %v5601_v63 = vpop.f32.mrb[57].mxu0  ;;  %4458 = vmatmul.mubr.f32.gmra.mrb[162].mxu0 %v334_v14  ;;  %v5603_v62 = vpop.f32.mrb[57].mxu1  ;;  %4797 = vmatmul.mubr.f32.gmra.mrb[162].mxu1 %v560_v48  ;;  %v564_v48 = vld [vmem:[%s5017_s6 + $0xc48] sm:$0xff] }
 0x175   : > { %6488 = vst [vmem:[#allocation68_spill] sm:$0xff] %v5601_v63  ;;  %6489 = vst [vmem:[#allocation69_spill] sm:$0xff] %v5603_v62  ;;  %4460 = vmatprep.mubr.f32.mxu0 %v335_v49  ;;  %4799 = vmatprep.mubr.f32.mxu1 %v561_v15  ;;  %v338_v15 = vld [vmem:[%s5017_s6 + $0x538] sm:$0xff]  ;;  %v339_v49 = vld [vmem:[%s5017_s6 + $0x540] sm:$0xff] }
 0x176   : > { %v565_v62 = vld [vmem:[%s5017_s6 + $0xc50] sm:$0xff] }
 0x177   : > { %v5609_v30 = vpop.f32.mrb[58].mxu0  ;;  %v5611_v31 = vpop.f32.mrb[58].mxu1 }
 0x178   : > { %6490 = vst [vmem:[#allocation70_spill] sm:$0xff] %v5609_v30  ;;  %6491 = vst [vmem:[#allocation71_spill] sm:$0xff] %v5611_v31  ;;  %v5613_v33 = vpop.f32.mrb[59].mxu0  ;;  %4461 = vmatmul.mubr.f32.gmra.mrb[164].mxu0 %v336_v46  ;;  %v5615_v14 = vpop.f32.mrb[59].mxu1  ;;  %4800 = vmatmul.mubr.f32.gmra.mrb[164].mxu1 %v562_v16  ;;  %v566_v16 = vld [vmem:[%s5017_s6 + $0xc58] sm:$0xff] }
 0x179   : > { %6492 = vst [vmem:[#allocation72_spill] sm:$0xff] %v5613_v33  ;;  %6493 = vst [vmem:[#allocation73_spill] sm:$0xff] %v5615_v14  ;;  %4463 = vmatprep.mubr.f32.mxu0 %v337_v17  ;;  %4802 = vmatprep.mubr.f32.mxu1 %v563_v47  ;;  %v340_v47 = vld [vmem:[%s5017_s6 + $0x548] sm:$0xff]  ;;  %v341_v17 = vld [vmem:[%s5017_s6 + $0x550] sm:$0xff] }
 0x17a   : > { %v567_v14 = vld [vmem:[%s5017_s6 + $0xc60] sm:$0xff] }
 0x17b   : > { %v5621_v63 = vpop.f32.mrb[60].mxu0  ;;  %v5623_v30 = vpop.f32.mrb[60].mxu1 }
 0x17c   : > { %6494 = vst [vmem:[#allocation74_spill] sm:$0xff] %v5621_v63  ;;  %6495 = vst [vmem:[#allocation75_spill] sm:$0xff] %v5623_v30  ;;  %v5625_v31 = vpop.f32.mrb[61].mxu0  ;;  %4464 = vmatmul.mubr.f32.gmra.mrb[166].mxu0 %v338_v15  ;;  %v5627_v46 = vpop.f32.mrb[61].mxu1  ;;  %4803 = vmatmul.mubr.f32.gmra.mrb[166].mxu1 %v564_v48  ;;  %v568_v48 = vld [vmem:[%s5017_s6 + $0xc68] sm:$0xff] }
 0x17d   : > { %6496 = vst [vmem:[#allocation76_spill] sm:$0xff] %v5625_v31  ;;  %6497 = vst [vmem:[#allocation77_spill] sm:$0xff] %v5627_v46  ;;  %4466 = vmatprep.mubr.f32.mxu0 %v339_v49  ;;  %4805 = vmatprep.mubr.f32.mxu1 %v565_v62  ;;  %v342_v62 = vld [vmem:[%s5017_s6 + $0x558] sm:$0xff]  ;;  %v343_v49 = vld [vmem:[%s5017_s6 + $0x560] sm:$0xff] }
 0x17e   : > { %v569_v46 = vld [vmem:[%s5017_s6 + $0xc70] sm:$0xff] }
 0x17f   : > { %v5633_v33 = vpop.f32.mrb[62].mxu0  ;;  %v5635_v63 = vpop.f32.mrb[62].mxu1 }
 0x180   : > { %6498 = vst [vmem:[#allocation78_spill] sm:$0xff] %v5633_v33  ;;  %6499 = vst [vmem:[#allocation79_spill] sm:$0xff] %v5635_v63  ;;  %v5637_v30 = vpop.f32.mrb[63].mxu0  ;;  %4467 = vmatmul.mubr.f32.gmra.mrb[168].mxu0 %v340_v47  ;;  %v5639_v15 = vpop.f32.mrb[63].mxu1  ;;  %4806 = vmatmul.mubr.f32.gmra.mrb[168].mxu1 %v566_v16  ;;  %v570_v16 = vld [vmem:[%s5017_s6 + $0xc78] sm:$0xff] }
 0x181   : > { %6500 = vst [vmem:[#allocation80_spill] sm:$0xff] %v5637_v30  ;;  %6501 = vst [vmem:[#allocation81_spill] sm:$0xff] %v5639_v15  ;;  %4469 = vmatprep.mubr.f32.mxu0 %v341_v17  ;;  %4808 = vmatprep.mubr.f32.mxu1 %v567_v14  ;;  %v344_v14 = vld [vmem:[%s5017_s6 + $0x568] sm:$0xff]  ;;  %v345_v17 = vld [vmem:[%s5017_s6 + $0x570] sm:$0xff] }
 0x182   : > { %v571_v15 = vld [vmem:[%s5017_s6 + $0xc80] sm:$0xff] }
 0x183   : > { %v5645_v31 = vpop.f32.mrb[64].mxu0  ;;  %v5647_v33 = vpop.f32.mrb[64].mxu1 }
 0x184   : > { %6502 = vst [vmem:[#allocation82_spill] sm:$0xff] %v5645_v31  ;;  %6503 = vst [vmem:[#allocation83_spill] sm:$0xff] %v5647_v33  ;;  %v5649_v63 = vpop.f32.mrb[65].mxu0  ;;  %4470 = vmatmul.mubr.f32.gmra.mrb[170].mxu0 %v342_v62  ;;  %v5651_v47 = vpop.f32.mrb[65].mxu1  ;;  %4809 = vmatmul.mubr.f32.gmra.mrb[170].mxu1 %v568_v48  ;;  %v572_v48 = vld [vmem:[%s5017_s6 + $0xc88] sm:$0xff] }
 0x185   : > { %6504 = vst [vmem:[#allocation84_spill] sm:$0xff] %v5649_v63  ;;  %6505 = vst [vmem:[#allocation85_spill] sm:$0xff] %v5651_v47  ;;  %4472 = vmatprep.mubr.f32.mxu0 %v343_v49  ;;  %4811 = vmatprep.mubr.f32.mxu1 %v569_v46  ;;  %v346_v46 = vld [vmem:[%s5017_s6 + $0x578] sm:$0xff]  ;;  %v347_v49 = vld [vmem:[%s5017_s6 + $0x580] sm:$0xff] }
 0x186   : > { %v573_v47 = vld [vmem:[%s5017_s6 + $0xc90] sm:$0xff] }
 0x187   : > { %v5657_v30 = vpop.f32.mrb[66].mxu0  ;;  %v5659_v31 = vpop.f32.mrb[66].mxu1 }
 0x188   : > { %6506 = vst [vmem:[#allocation86_spill] sm:$0xff] %v5657_v30  ;;  %6507 = vst [vmem:[#allocation87_spill] sm:$0xff] %v5659_v31  ;;  %v5661_v33 = vpop.f32.mrb[67].mxu0  ;;  %4473 = vmatmul.mubr.f32.gmra.mrb[172].mxu0 %v344_v14  ;;  %v5663_v62 = vpop.f32.mrb[67].mxu1  ;;  %4812 = vmatmul.mubr.f32.gmra.mrb[172].mxu1 %v570_v16  ;;  %v574_v16 = vld [vmem:[%s5017_s6 + $0xc98] sm:$0xff] }
 0x189   : > { %6508 = vst [vmem:[#allocation88_spill] sm:$0xff] %v5661_v33  ;;  %6509 = vst [vmem:[#allocation89_spill] sm:$0xff] %v5663_v62  ;;  %4475 = vmatprep.mubr.f32.mxu0 %v345_v17  ;;  %4814 = vmatprep.mubr.f32.mxu1 %v571_v15  ;;  %v348_v15 = vld [vmem:[%s5017_s6 + $0x588] sm:$0xff]  ;;  %v349_v17 = vld [vmem:[%s5017_s6 + $0x590] sm:$0xff] }
 0x18a   : > { %v575_v62 = vld [vmem:[%s5017_s6 + $0xca0] sm:$0xff] }
 0x18b   : > { %v5669_v63 = vpop.f32.mrb[68].mxu0  ;;  %v5671_v30 = vpop.f32.mrb[68].mxu1 }
 0x18c   : > { %6510 = vst [vmem:[#allocation90_spill] sm:$0xff] %v5669_v63  ;;  %6511 = vst [vmem:[#allocation91_spill] sm:$0xff] %v5671_v30  ;;  %v5673_v31 = vpop.f32.mrb[69].mxu0  ;;  %4476 = vmatmul.mubr.f32.gmra.mrb[174].mxu0 %v346_v46  ;;  %v5675_v14 = vpop.f32.mrb[69].mxu1  ;;  %4815 = vmatmul.mubr.f32.gmra.mrb[174].mxu1 %v572_v48  ;;  %v576_v48 = vld [vmem:[%s5017_s6 + $0xca8] sm:$0xff] }
 0x18d   : > { %6512 = vst [vmem:[#allocation92_spill] sm:$0xff] %v5673_v31  ;;  %6513 = vst [vmem:[#allocation93_spill] sm:$0xff] %v5675_v14  ;;  %4478 = vmatprep.mubr.f32.mxu0 %v347_v49  ;;  %4817 = vmatprep.mubr.f32.mxu1 %v573_v47  ;;  %v350_v47 = vld [vmem:[%s5017_s6 + $0x598] sm:$0xff]  ;;  %v351_v49 = vld [vmem:[%s5017_s6 + $0x5a0] sm:$0xff] }
 0x18e   : > { %v577_v14 = vld [vmem:[%s5017_s6 + $0xcb0] sm:$0xff] }
 0x18f   : > { %v5681_v33 = vpop.f32.mrb[70].mxu0  ;;  %v5683_v63 = vpop.f32.mrb[70].mxu1 }
 0x190   : > { %6514 = vst [vmem:[#allocation94_spill] sm:$0xff] %v5681_v33  ;;  %6515 = vst [vmem:[#allocation95_spill] sm:$0xff] %v5683_v63  ;;  %v5685_v30 = vpop.f32.mrb[71].mxu0  ;;  %4479 = vmatmul.mubr.f32.gmra.mrb[176].mxu0 %v348_v15  ;;  %v5687_v46 = vpop.f32.mrb[71].mxu1  ;;  %4818 = vmatmul.mubr.f32.gmra.mrb[176].mxu1 %v574_v16  ;;  %v578_v16 = vld [vmem:[%s5017_s6 + $0xcb8] sm:$0xff] }
 0x191   : > { %6516 = vst [vmem:[#allocation96_spill] sm:$0xff] %v5685_v30  ;;  %6517 = vst [vmem:[#allocation97_spill] sm:$0xff] %v5687_v46  ;;  %4481 = vmatprep.mubr.f32.mxu0 %v349_v17  ;;  %4820 = vmatprep.mubr.f32.mxu1 %v575_v62  ;;  %v352_v62 = vld [vmem:[%s5017_s6 + $0x5a8] sm:$0xff]  ;;  %v353_v17 = vld [vmem:[%s5017_s6 + $0x5b0] sm:$0xff] }
 0x192   : > { %v579_v46 = vld [vmem:[%s5017_s6 + $0xcc0] sm:$0xff] }
 0x193   : > { %v5693_v31 = vpop.f32.mrb[72].mxu0  ;;  %v5695_v33 = vpop.f32.mrb[72].mxu1 }
 0x194   : > { %6518 = vst [vmem:[#allocation98_spill] sm:$0xff] %v5693_v31  ;;  %6519 = vst [vmem:[#allocation99_spill] sm:$0xff] %v5695_v33  ;;  %v5697_v63 = vpop.f32.mrb[73].mxu0  ;;  %4482 = vmatmul.mubr.f32.gmra.mrb[178].mxu0 %v350_v47  ;;  %v5699_v15 = vpop.f32.mrb[73].mxu1  ;;  %4821 = vmatmul.mubr.f32.gmra.mrb[178].mxu1 %v576_v48  ;;  %v580_v48 = vld [vmem:[%s5017_s6 + $0xcc8] sm:$0xff] }
 0x195   : > { %6520 = vst [vmem:[#allocation100_spill] sm:$0xff] %v5697_v63  ;;  %6521 = vst [vmem:[#allocation101_spill] sm:$0xff] %v5699_v15  ;;  %4484 = vmatprep.mubr.f32.mxu0 %v351_v49  ;;  %4823 = vmatprep.mubr.f32.mxu1 %v577_v14  ;;  %v354_v14 = vld [vmem:[%s5017_s6 + $0x5b8] sm:$0xff]  ;;  %v355_v49 = vld [vmem:[%s5017_s6 + $0x5c0] sm:$0xff] }
 0x196   : > { %v581_v15 = vld [vmem:[%s5017_s6 + $0xcd0] sm:$0xff] }
 0x197   : > { %v5705_v30 = vpop.f32.mrb[74].mxu0  ;;  %v5707_v31 = vpop.f32.mrb[74].mxu1 }
 0x198   : > { %6522 = vst [vmem:[#allocation102_spill] sm:$0xff] %v5705_v30  ;;  %6523 = vst [vmem:[#allocation103_spill] sm:$0xff] %v5707_v31  ;;  %v5709_v33 = vpop.f32.mrb[75].mxu0  ;;  %4485 = vmatmul.mubr.f32.gmra.mrb[180].mxu0 %v352_v62  ;;  %v5711_v47 = vpop.f32.mrb[75].mxu1  ;;  %4824 = vmatmul.mubr.f32.gmra.mrb[180].mxu1 %v578_v16  ;;  %v582_v16 = vld [vmem:[%s5017_s6 + $0xcd8] sm:$0xff] }
 0x199   : > { %6524 = vst [vmem:[#allocation104_spill] sm:$0xff] %v5709_v33  ;;  %6525 = vst [vmem:[#allocation105_spill] sm:$0xff] %v5711_v47  ;;  %4487 = vmatprep.mubr.f32.mxu0 %v353_v17  ;;  %4826 = vmatprep.mubr.f32.mxu1 %v579_v46  ;;  %v356_v46 = vld [vmem:[%s5017_s6 + $0x5c8] sm:$0xff]  ;;  %v357_v17 = vld [vmem:[%s5017_s6 + $0x5d0] sm:$0xff] }
 0x19a   : > { %v583_v47 = vld [vmem:[%s5017_s6 + $0xce0] sm:$0xff] }
 0x19b   : > { %v5717_v63 = vpop.f32.mrb[76].mxu0  ;;  %v5719_v30 = vpop.f32.mrb[76].mxu1 }
 0x19c   : > { %6526 = vst [vmem:[#allocation106_spill] sm:$0xff] %v5717_v63  ;;  %6527 = vst [vmem:[#allocation107_spill] sm:$0xff] %v5719_v30  ;;  %v5721_v31 = vpop.f32.mrb[77].mxu0  ;;  %4488 = vmatmul.mubr.f32.gmra.mrb[182].mxu0 %v354_v14  ;;  %v5723_v62 = vpop.f32.mrb[77].mxu1  ;;  %4827 = vmatmul.mubr.f32.gmra.mrb[182].mxu1 %v580_v48  ;;  %v584_v48 = vld [vmem:[%s5017_s6 + $0xce8] sm:$0xff] }
 0x19d   : > { %6528 = vst [vmem:[#allocation108_spill] sm:$0xff] %v5721_v31  ;;  %6529 = vst [vmem:[#allocation109_spill] sm:$0xff] %v5723_v62  ;;  %4490 = vmatprep.mubr.f32.mxu0 %v355_v49  ;;  %4829 = vmatprep.mubr.f32.mxu1 %v581_v15  ;;  %v358_v15 = vld [vmem:[%s5017_s6 + $0x5d8] sm:$0xff]  ;;  %v359_v49 = vld [vmem:[%s5017_s6 + $0x5e0] sm:$0xff] }
 0x19e   : > { %v585_v62 = vld [vmem:[%s5017_s6 + $0xcf0] sm:$0xff] }
 0x19f   : > { %v5729_v33 = vpop.f32.mrb[78].mxu0  ;;  %v5731_v63 = vpop.f32.mrb[78].mxu1 }
 0x1a0   : > { %6530 = vst [vmem:[#allocation110_spill] sm:$0xff] %v5729_v33  ;;  %6531 = vst [vmem:[#allocation111_spill] sm:$0xff] %v5731_v63  ;;  %v5733_v30 = vpop.f32.mrb[79].mxu0  ;;  %4491 = vmatmul.mubr.f32.gmra.mrb[184].mxu0 %v356_v46  ;;  %v5735_v14 = vpop.f32.mrb[79].mxu1  ;;  %4830 = vmatmul.mubr.f32.gmra.mrb[184].mxu1 %v582_v16  ;;  %v586_v16 = vld [vmem:[%s5017_s6 + $0xcf8] sm:$0xff] }
 0x1a1   : > { %6532 = vst [vmem:[#allocation112_spill] sm:$0xff] %v5733_v30  ;;  %6533 = vst [vmem:[#allocation113_spill] sm:$0xff] %v5735_v14  ;;  %4493 = vmatprep.mubr.f32.mxu0 %v357_v17  ;;  %4832 = vmatprep.mubr.f32.mxu1 %v583_v47  ;;  %v360_v47 = vld [vmem:[%s5017_s6 + $0x5e8] sm:$0xff]  ;;  %v361_v17 = vld [vmem:[%s5017_s6 + $0x5f0] sm:$0xff] }
 0x1a2   : > { %v587_v14 = vld [vmem:[%s5017_s6 + $0xd00] sm:$0xff] }
 0x1a3   : > { %v5741_v31 = vpop.f32.mrb[80].mxu0  ;;  %v5743_v33 = vpop.f32.mrb[80].mxu1 }
 0x1a4   : > { %6534 = vst [vmem:[#allocation114_spill] sm:$0xff] %v5741_v31  ;;  %6535 = vst [vmem:[#allocation115_spill] sm:$0xff] %v5743_v33  ;;  %v5745_v63 = vpop.f32.mrb[81].mxu0  ;;  %4494 = vmatmul.mubr.f32.gmra.mrb[186].mxu0 %v358_v15  ;;  %v5747_v46 = vpop.f32.mrb[81].mxu1  ;;  %4833 = vmatmul.mubr.f32.gmra.mrb[186].mxu1 %v584_v48  ;;  %v588_v48 = vld [vmem:[%s5017_s6 + $0xd08] sm:$0xff] }
 0x1a5   : > { %6536 = vst [vmem:[#allocation116_spill] sm:$0xff] %v5745_v63  ;;  %6537 = vst [vmem:[#allocation117_spill] sm:$0xff] %v5747_v46  ;;  %4496 = vmatprep.mubr.f32.mxu0 %v359_v49  ;;  %4835 = vmatprep.mubr.f32.mxu1 %v585_v62  ;;  %v362_v62 = vld [vmem:[%s5017_s6 + $0x5f8] sm:$0xff]  ;;  %v363_v49 = vld [vmem:[%s5017_s6 + $0x600] sm:$0xff] }
 0x1a6   : > { %v589_v46 = vld [vmem:[%s5017_s6 + $0xd10] sm:$0xff] }
 0x1a7   : > { %v5753_v30 = vpop.f32.mrb[82].mxu0  ;;  %v5755_v31 = vpop.f32.mrb[82].mxu1 }
 0x1a8   : > { %6538 = vst [vmem:[#allocation118_spill] sm:$0xff] %v5753_v30  ;;  %6539 = vst [vmem:[#allocation119_spill] sm:$0xff] %v5755_v31  ;;  %v5757_v33 = vpop.f32.mrb[83].mxu0  ;;  %4497 = vmatmul.mubr.f32.gmra.mrb[188].mxu0 %v360_v47  ;;  %v5759_v15 = vpop.f32.mrb[83].mxu1  ;;  %4836 = vmatmul.mubr.f32.gmra.mrb[188].mxu1 %v586_v16  ;;  %v590_v16 = vld [vmem:[%s5017_s6 + $0xd18] sm:$0xff] }
 0x1a9   : > { %6540 = vst [vmem:[#allocation120_spill] sm:$0xff] %v5757_v33  ;;  %6541 = vst [vmem:[#allocation121_spill] sm:$0xff] %v5759_v15  ;;  %4499 = vmatprep.mubr.f32.mxu0 %v361_v17  ;;  %4838 = vmatprep.mubr.f32.mxu1 %v587_v14  ;;  %v364_v14 = vld [vmem:[%s5017_s6 + $0x608] sm:$0xff]  ;;  %v365_v17 = vld [vmem:[%s5017_s6 + $0x610] sm:$0xff] }
 0x1aa   : > { %v591_v15 = vld [vmem:[%s5017_s6 + $0xd20] sm:$0xff] }
 0x1ab   : > { %v5765_v63 = vpop.f32.mrb[84].mxu0  ;;  %v5767_v30 = vpop.f32.mrb[84].mxu1 }
 0x1ac   : > { %6542 = vst [vmem:[#allocation122_spill] sm:$0xff] %v5765_v63  ;;  %6543 = vst [vmem:[#allocation123_spill] sm:$0xff] %v5767_v30  ;;  %v5769_v31 = vpop.f32.mrb[85].mxu0  ;;  %4500 = vmatmul.mubr.f32.gmra.mrb[190].mxu0 %v362_v62  ;;  %v5771_v47 = vpop.f32.mrb[85].mxu1  ;;  %4839 = vmatmul.mubr.f32.gmra.mrb[190].mxu1 %v588_v48  ;;  %v592_v48 = vld [vmem:[%s5017_s6 + $0xd28] sm:$0xff] }
 0x1ad   : > { %6544 = vst [vmem:[#allocation124_spill] sm:$0xff] %v5769_v31  ;;  %6545 = vst [vmem:[#allocation125_spill] sm:$0xff] %v5771_v47  ;;  %4502 = vmatprep.mubr.f32.mxu0 %v363_v49  ;;  %4841 = vmatprep.mubr.f32.mxu1 %v589_v46  ;;  %v366_v46 = vld [vmem:[%s5017_s6 + $0x618] sm:$0xff]  ;;  %v367_v49 = vld [vmem:[%s5017_s6 + $0x620] sm:$0xff] }
 0x1ae   : > { %v593_v47 = vld [vmem:[%s5017_s6 + $0xd30] sm:$0xff] }
 0x1af   : > { %v5777_v33 = vpop.f32.mrb[86].mxu0  ;;  %v5779_v63 = vpop.f32.mrb[86].mxu1 }
 0x1b0   : > { %6546 = vst [vmem:[#allocation126_spill] sm:$0xff] %v5777_v33  ;;  %6547 = vst [vmem:[#allocation127_spill] sm:$0xff] %v5779_v63  ;;  %v5781_v30 = vpop.f32.mrb[87].mxu0  ;;  %4503 = vmatmul.mubr.f32.gmra.mrb[192].mxu0 %v364_v14  ;;  %v5783_v62 = vpop.f32.mrb[87].mxu1  ;;  %4842 = vmatmul.mubr.f32.gmra.mrb[192].mxu1 %v590_v16  ;;  %v594_v16 = vld [vmem:[%s5017_s6 + $0xd38] sm:$0xff] }
 0x1b1   : > { %6548 = vst [vmem:[#allocation128_spill] sm:$0xff] %v5781_v30  ;;  %6549 = vst [vmem:[#allocation129_spill] sm:$0xff] %v5783_v62  ;;  %4505 = vmatprep.mubr.f32.mxu0 %v365_v17  ;;  %4844 = vmatprep.mubr.f32.mxu1 %v591_v15  ;;  %v368_v15 = vld [vmem:[%s5017_s6 + $0x628] sm:$0xff]  ;;  %v369_v17 = vld [vmem:[%s5017_s6 + $0x630] sm:$0xff] }
 0x1b2   : > { %v595_v62 = vld [vmem:[%s5017_s6 + $0xd40] sm:$0xff] }
 0x1b3   : > { %v5789_v31 = vpop.f32.mrb[88].mxu0  ;;  %v5791_v33 = vpop.f32.mrb[88].mxu1 }
 0x1b4   : > { %6550 = vst [vmem:[#allocation130_spill] sm:$0xff] %v5789_v31  ;;  %6551 = vst [vmem:[#allocation131_spill] sm:$0xff] %v5791_v33  ;;  %v5793_v63 = vpop.f32.mrb[89].mxu0  ;;  %4506 = vmatmul.mubr.f32.gmra.mrb[194].mxu0 %v366_v46  ;;  %v5795_v14 = vpop.f32.mrb[89].mxu1  ;;  %4845 = vmatmul.mubr.f32.gmra.mrb[194].mxu1 %v592_v48  ;;  %v596_v48 = vld [vmem:[%s5017_s6 + $0xd48] sm:$0xff] }
 0x1b5   : > { %6552 = vst [vmem:[#allocation132_spill] sm:$0xff] %v5793_v63  ;;  %6553 = vst [vmem:[#allocation133_spill] sm:$0xff] %v5795_v14  ;;  %4508 = vmatprep.mubr.f32.mxu0 %v367_v49  ;;  %4847 = vmatprep.mubr.f32.mxu1 %v593_v47  ;;  %v370_v47 = vld [vmem:[%s5017_s6 + $0x638] sm:$0xff]  ;;  %v371_v49 = vld [vmem:[%s5017_s6 + $0x640] sm:$0xff] }
 0x1b6   : > { %v597_v14 = vld [vmem:[%s5017_s6 + $0xd50] sm:$0xff] }
 0x1b7   : > { %v5801_v30 = vpop.f32.mrb[90].mxu0  ;;  %v5803_v31 = vpop.f32.mrb[90].mxu1 }
 0x1b8   : > { %6554 = vst [vmem:[#allocation134_spill] sm:$0xff] %v5801_v30  ;;  %6555 = vst [vmem:[#allocation135_spill] sm:$0xff] %v5803_v31  ;;  %v5805_v33 = vpop.f32.mrb[91].mxu0  ;;  %4509 = vmatmul.mubr.f32.gmra.mrb[196].mxu0 %v368_v15  ;;  %v5807_v46 = vpop.f32.mrb[91].mxu1  ;;  %4848 = vmatmul.mubr.f32.gmra.mrb[196].mxu1 %v594_v16  ;;  %v598_v16 = vld [vmem:[%s5017_s6 + $0xd58] sm:$0xff] }
 0x1b9   : > { %6556 = vst [vmem:[#allocation136_spill] sm:$0xff] %v5805_v33  ;;  %6557 = vst [vmem:[#allocation137_spill] sm:$0xff] %v5807_v46  ;;  %4511 = vmatprep.mubr.f32.mxu0 %v369_v17  ;;  %4850 = vmatprep.mubr.f32.mxu1 %v595_v62  ;;  %v372_v62 = vld [vmem:[%s5017_s6 + $0x648] sm:$0xff]  ;;  %v373_v17 = vld [vmem:[%s5017_s6 + $0x650] sm:$0xff] }
 0x1ba   : > { %v599_v46 = vld [vmem:[%s5017_s6 + $0xd60] sm:$0xff] }
 0x1bb   : > { %v5813_v63 = vpop.f32.mrb[92].mxu0  ;;  %v5815_v30 = vpop.f32.mrb[92].mxu1 }
 0x1bc   : > { %6558 = vst [vmem:[#allocation138_spill] sm:$0xff] %v5813_v63  ;;  %6559 = vst [vmem:[#allocation139_spill] sm:$0xff] %v5815_v30  ;;  %v5817_v31 = vpop.f32.mrb[93].mxu0  ;;  %4512 = vmatmul.mubr.f32.gmra.mrb[198].mxu0 %v370_v47  ;;  %v5819_v15 = vpop.f32.mrb[93].mxu1  ;;  %4851 = vmatmul.mubr.f32.gmra.mrb[198].mxu1 %v596_v48  ;;  %v600_v48 = vld [vmem:[%s5017_s6 + $0xd68] sm:$0xff] }
 0x1bd   : > { %6560 = vst [vmem:[#allocation140_spill] sm:$0xff] %v5817_v31  ;;  %6561 = vst [vmem:[#allocation141_spill] sm:$0xff] %v5819_v15  ;;  %4514 = vmatprep.mubr.f32.mxu0 %v371_v49  ;;  %4853 = vmatprep.mubr.f32.mxu1 %v597_v14  ;;  %v374_v14 = vld [vmem:[%s5017_s6 + $0x658] sm:$0xff]  ;;  %v375_v49 = vld [vmem:[%s5017_s6 + $0x660] sm:$0xff] }
 0x1be   : > { %v601_v15 = vld [vmem:[%s5017_s6 + $0xd70] sm:$0xff] }
 0x1bf   : > { %v5825_v33 = vpop.f32.mrb[94].mxu0  ;;  %v5827_v63 = vpop.f32.mrb[94].mxu1 }
 0x1c0   : > { %6562 = vst [vmem:[#allocation142_spill] sm:$0xff] %v5825_v33  ;;  %6563 = vst [vmem:[#allocation143_spill] sm:$0xff] %v5827_v63  ;;  %v5829_v30 = vpop.f32.mrb[95].mxu0  ;;  %4515 = vmatmul.mubr.f32.gmra.mrb[200].mxu0 %v372_v62  ;;  %v5831_v47 = vpop.f32.mrb[95].mxu1  ;;  %4854 = vmatmul.mubr.f32.gmra.mrb[200].mxu1 %v598_v16  ;;  %v602_v16 = vld [vmem:[%s5017_s6 + $0xd78] sm:$0xff] }
 0x1c1   : > { %6564 = vst [vmem:[#allocation144_spill] sm:$0xff] %v5829_v30  ;;  %6565 = vst [vmem:[#allocation145_spill] sm:$0xff] %v5831_v47  ;;  %4517 = vmatprep.mubr.f32.mxu0 %v373_v17  ;;  %4856 = vmatprep.mubr.f32.mxu1 %v599_v46  ;;  %v376_v46 = vld [vmem:[%s5017_s6 + $0x668] sm:$0xff]  ;;  %v377_v17 = vld [vmem:[%s5017_s6 + $0x670] sm:$0xff] }
 0x1c2   : > { %v603_v47 = vld [vmem:[%s5017_s6 + $0xd80] sm:$0xff] }
 0x1c3   : > { %v5837_v31 = vpop.f32.mrb[96].mxu0  ;;  %v5839_v33 = vpop.f32.mrb[96].mxu1 }
 0x1c4   : > { %6566 = vst [vmem:[#allocation146_spill] sm:$0xff] %v5837_v31  ;;  %6567 = vst [vmem:[#allocation147_spill] sm:$0xff] %v5839_v33  ;;  %v5841_v63 = vpop.f32.mrb[97].mxu0  ;;  %4518 = vmatmul.mubr.f32.gmra.mrb[202].mxu0 %v374_v14  ;;  %v5843_v62 = vpop.f32.mrb[97].mxu1  ;;  %4857 = vmatmul.mubr.f32.gmra.mrb[202].mxu1 %v600_v48  ;;  %v604_v48 = vld [vmem:[%s5017_s6 + $0xd88] sm:$0xff] }
 0x1c5   : > { %6568 = vst [vmem:[#allocation148_spill] sm:$0xff] %v5841_v63  ;;  %6569 = vst [vmem:[#allocation149_spill] sm:$0xff] %v5843_v62  ;;  %4520 = vmatprep.mubr.f32.mxu0 %v375_v49  ;;  %4859 = vmatprep.mubr.f32.mxu1 %v601_v15  ;;  %v378_v15 = vld [vmem:[%s5017_s6 + $0x678] sm:$0xff]  ;;  %v379_v49 = vld [vmem:[%s5017_s6 + $0x680] sm:$0xff] }
 0x1c6   : > { %v605_v62 = vld [vmem:[%s5017_s6 + $0xd90] sm:$0xff] }
 0x1c7   : > { %v5849_v30 = vpop.f32.mrb[98].mxu0  ;;  %v5851_v31 = vpop.f32.mrb[98].mxu1 }
 0x1c8   : > { %6570 = vst [vmem:[#allocation150_spill] sm:$0xff] %v5849_v30  ;;  %6571 = vst [vmem:[#allocation151_spill] sm:$0xff] %v5851_v31  ;;  %v5853_v33 = vpop.f32.mrb[99].mxu0  ;;  %4521 = vmatmul.mubr.f32.gmra.mrb[204].mxu0 %v376_v46  ;;  %v5855_v14 = vpop.f32.mrb[99].mxu1  ;;  %4860 = vmatmul.mubr.f32.gmra.mrb[204].mxu1 %v602_v16  ;;  %v606_v16 = vld [vmem:[%s5017_s6 + $0xd98] sm:$0xff] }
 0x1c9   : > { %6572 = vst [vmem:[#allocation152_spill] sm:$0xff] %v5853_v33  ;;  %6573 = vst [vmem:[#allocation153_spill] sm:$0xff] %v5855_v14  ;;  %4523 = vmatprep.mubr.f32.mxu0 %v377_v17  ;;  %4862 = vmatprep.mubr.f32.mxu1 %v603_v47  ;;  %v380_v47 = vld [vmem:[%s5017_s6 + $0x688] sm:$0xff]  ;;  %v381_v17 = vld [vmem:[%s5017_s6 + $0x690] sm:$0xff] }
 0x1ca   : > { %v607_v14 = vld [vmem:[%s5017_s6 + $0xda0] sm:$0xff] }
 0x1cb   : > { %v5861_v63 = vpop.f32.mrb[100].mxu0  ;;  %v5863_v30 = vpop.f32.mrb[100].mxu1 }
 0x1cc   : > { %6574 = vst [vmem:[#allocation154_spill] sm:$0xff] %v5861_v63  ;;  %6575 = vst [vmem:[#allocation155_spill] sm:$0xff] %v5863_v30  ;;  %v5865_v31 = vpop.f32.mrb[101].mxu0  ;;  %4524 = vmatmul.mubr.f32.gmra.mrb[206].mxu0 %v378_v15  ;;  %v5867_v46 = vpop.f32.mrb[101].mxu1  ;;  %4863 = vmatmul.mubr.f32.gmra.mrb[206].mxu1 %v604_v48  ;;  %v608_v48 = vld [vmem:[%s5017_s6 + $0xda8] sm:$0xff] }
 0x1cd   : > { %6576 = vst [vmem:[#allocation156_spill] sm:$0xff] %v5865_v31  ;;  %6577 = vst [vmem:[#allocation157_spill] sm:$0xff] %v5867_v46  ;;  %4526 = vmatprep.mubr.f32.mxu0 %v379_v49  ;;  %4865 = vmatprep.mubr.f32.mxu1 %v605_v62  ;;  %v382_v62 = vld [vmem:[%s5017_s6 + $0x698] sm:$0xff]  ;;  %v383_v49 = vld [vmem:[%s5017_s6 + $0x6a0] sm:$0xff] }
 0x1ce   : > { %v609_v46 = vld [vmem:[%s5017_s6 + $0xdb0] sm:$0xff] }
 0x1cf   : > { %v5873_v33 = vpop.f32.mrb[102].mxu0  ;;  %v5875_v63 = vpop.f32.mrb[102].mxu1 }
 0x1d0   : > { %6578 = vst [vmem:[#allocation158_spill] sm:$0xff] %v5873_v33  ;;  %6579 = vst [vmem:[#allocation159_spill] sm:$0xff] %v5875_v63  ;;  %v5877_v30 = vpop.f32.mrb[103].mxu0  ;;  %4527 = vmatmul.mubr.f32.gmra.mrb[208].mxu0 %v380_v47  ;;  %v5879_v15 = vpop.f32.mrb[103].mxu1  ;;  %4866 = vmatmul.mubr.f32.gmra.mrb[208].mxu1 %v606_v16  ;;  %v610_v16 = vld [vmem:[%s5017_s6 + $0xdb8] sm:$0xff] }
 0x1d1   : > { %6580 = vst [vmem:[#allocation160_spill] sm:$0xff] %v5877_v30  ;;  %6581 = vst [vmem:[#allocation161_spill] sm:$0xff] %v5879_v15  ;;  %4529 = vmatprep.mubr.f32.mxu0 %v381_v17  ;;  %4868 = vmatprep.mubr.f32.mxu1 %v607_v14  ;;  %v384_v14 = vld [vmem:[%s5017_s6 + $0x6a8] sm:$0xff]  ;;  %v385_v17 = vld [vmem:[%s5017_s6 + $0x6b0] sm:$0xff] }
 0x1d2   : > { %v611_v15 = vld [vmem:[%s5017_s6 + $0xdc0] sm:$0xff] }
 0x1d3   : > { %v5885_v31 = vpop.f32.mrb[104].mxu0  ;;  %v5887_v33 = vpop.f32.mrb[104].mxu1 }
 0x1d4   : > { %6582 = vst [vmem:[#allocation162_spill] sm:$0xff] %v5885_v31  ;;  %6583 = vst [vmem:[#allocation163_spill] sm:$0xff] %v5887_v33  ;;  %v5889_v63 = vpop.f32.mrb[105].mxu0  ;;  %4530 = vmatmul.mubr.f32.gmra.mrb[210].mxu0 %v382_v62  ;;  %v5891_v47 = vpop.f32.mrb[105].mxu1  ;;  %4869 = vmatmul.mubr.f32.gmra.mrb[210].mxu1 %v608_v48  ;;  %v612_v48 = vld [vmem:[%s5017_s6 + $0xdc8] sm:$0xff] }
 0x1d5   : > { %6584 = vst [vmem:[#allocation164_spill] sm:$0xff] %v5889_v63  ;;  %6585 = vst [vmem:[#allocation165_spill] sm:$0xff] %v5891_v47  ;;  %4532 = vmatprep.mubr.f32.mxu0 %v383_v49  ;;  %4871 = vmatprep.mubr.f32.mxu1 %v609_v46  ;;  %v386_v46 = vld [vmem:[%s5017_s6 + $0x6b8] sm:$0xff]  ;;  %v387_v49 = vld [vmem:[%s5017_s6 + $0x6c0] sm:$0xff] }
 0x1d6   : > { %v613_v47 = vld [vmem:[%s5017_s6 + $0xdd0] sm:$0xff] }
 0x1d7   : > { %v5897_v30 = vpop.f32.mrb[106].mxu0  ;;  %v5899_v31 = vpop.f32.mrb[106].mxu1 }
 0x1d8   : > { %6586 = vst [vmem:[#allocation166_spill] sm:$0xff] %v5897_v30  ;;  %6587 = vst [vmem:[#allocation167_spill] sm:$0xff] %v5899_v31  ;;  %v5901_v33 = vpop.f32.mrb[107].mxu0  ;;  %4533 = vmatmul.mubr.f32.gmra.mrb[212].mxu0 %v384_v14  ;;  %v5903_v62 = vpop.f32.mrb[107].mxu1  ;;  %4872 = vmatmul.mubr.f32.gmra.mrb[212].mxu1 %v610_v16  ;;  %v614_v16 = vld [vmem:[%s5017_s6 + $0xdd8] sm:$0xff] }
 0x1d9   : > { %6588 = vst [vmem:[#allocation168_spill] sm:$0xff] %v5901_v33  ;;  %6589 = vst [vmem:[#allocation169_spill] sm:$0xff] %v5903_v62  ;;  %4535 = vmatprep.mubr.f32.mxu0 %v385_v17  ;;  %4874 = vmatprep.mubr.f32.mxu1 %v611_v15  ;;  %v388_v15 = vld [vmem:[%s5017_s6 + $0x6c8] sm:$0xff]  ;;  %v389_v17 = vld [vmem:[%s5017_s6 + $0x6d0] sm:$0xff] }
 0x1da   : > { %v615_v62 = vld [vmem:[%s5017_s6 + $0xde0] sm:$0xff] }
 0x1db   : > { %v5909_v63 = vpop.f32.mrb[108].mxu0  ;;  %v5911_v30 = vpop.f32.mrb[108].mxu1 }
 0x1dc   : > { %6590 = vst [vmem:[#allocation170_spill] sm:$0xff] %v5909_v63  ;;  %6591 = vst [vmem:[#allocation171_spill] sm:$0xff] %v5911_v30  ;;  %v5913_v31 = vpop.f32.mrb[109].mxu0  ;;  %4536 = vmatmul.mubr.f32.gmra.mrb[214].mxu0 %v386_v46  ;;  %v5915_v14 = vpop.f32.mrb[109].mxu1  ;;  %4875 = vmatmul.mubr.f32.gmra.mrb[214].mxu1 %v612_v48  ;;  %v390_v48 = vld [vmem:[%s5017_s6 + $0x6d8] sm:$0xff] }
 0x1dd   : > { %6592 = vst [vmem:[#allocation172_spill] sm:$0xff] %v5913_v31  ;;  %6593 = vst [vmem:[#allocation173_spill] sm:$0xff] %v5915_v14  ;;  %4538 = vmatprep.mubr.f32.mxu0 %v387_v49  ;;  %4877 = vmatprep.mubr.f32.mxu1 %v613_v47  ;;  %v616_v47 = vld [vmem:[%s5017_s6 + $0xde8] sm:$0xff]  ;;  %v391_v49 = vld [vmem:[%s5017_s6 + $0x6e0] sm:$0xff] }
 0x1de   : > { %v617_v14 = vld [vmem:[%s5017_s6 + $0xdf0] sm:$0xff] }
 0x1df   : > { %v5921_v33 = vpop.f32.mrb[110].mxu0  ;;  %v5923_v63 = vpop.f32.mrb[110].mxu1 }
 0x1e0   : > { %6594 = vst [vmem:[#allocation174_spill] sm:$0xff] %v5921_v33  ;;  %6595 = vst [vmem:[#allocation175_spill] sm:$0xff] %v5923_v63  ;;  %v5925_v30 = vpop.f32.mrb[111].mxu0  ;;  %4539 = vmatmul.mubr.f32.gmra.mrb[216].mxu0 %v388_v15  ;;  %v5927_v46 = vpop.f32.mrb[111].mxu1  ;;  %4878 = vmatmul.mubr.f32.gmra.mrb[216].mxu1 %v614_v16 }
 0x1e1   : > { %6596 = vst [vmem:[#allocation176_spill] sm:$0xff] %v5925_v30  ;;  %6597 = vst [vmem:[#allocation177_spill] sm:$0xff] %v5927_v46  ;;  %4541 = vmatprep.mubr.f32.mxu0 %v389_v17  ;;  %4880 = vmatprep.mubr.f32.mxu1 %v615_v62  ;;  %v5943_v62 = vld [vmem:[%s6420_s2] ss:$0 sm:$0xff]  ;;  %v392_v17 = vld [vmem:[%s5017_s6 + $0x6e8] sm:$0xff] }
 0x1e2   : > { %v618_v46 = vld [vmem:[%s5017_s6 + $0xdf8] sm:$0xff] }
 0x1e3   : > { %v4384_v31 = vpop.f32.mrb[112].mxu0  ;;  %v4723_v33 = vpop.f32.mrb[112].mxu1 }
 0x1e4   : > { %v2964_v63 = vmax.f32 %v5265_v52, %v4384_v31  ;;  %v3077_v15 = vmax.f32 %v5267_v53, %v4723_v33  ;;  %v5935_v30 = vpop.f32.mrb[113].mxu0  ;;  %4542 = vmatmul.mubr.f32.gmra.mrb[218].mxu0 %v390_v48  ;;  %v5937_v16 = vpop.f32.mrb[113].mxu1  ;;  %4881 = vmatmul.mubr.f32.gmra.mrb[218].mxu1 %v616_v47  ;;  %v393_v52 = vld [vmem:[%s5017_s6 + $0x6f0] sm:$0xff]  ;;  %v619_v53 = vld [vmem:[%s5017_s6 + $0xe00] sm:$0xff] }
 0x1e5   : > { %6598 = vst [vmem:[#allocation178_spill] sm:$0xff] %v5935_v30  ;;  %6599 = vst [vmem:[#allocation179_spill] sm:$0xff] %v5937_v16  ;;  %4544 = vmatprep.mubr.f32.mxu0 %v391_v49  ;;  %4883 = vmatprep.mubr.f32.mxu1 %v617_v14  ;;  %v620_v49 = vld [vmem:[%s5017_s6 + $0xe08] sm:$0xff] }
 0x1e6   : > { %v3190_v32 = vmax.f32 %v2964_v63, %v3077_v15 }
 0x1e7   : > { %v4387_v31 = vpop.f32.mrb[114].mxu0  ;;  %v4726_v33 = vpop.f32.mrb[114].mxu1 }
 0x1e8   : > { %v3310_v48 = vadd.f32 %v5943_v62, %v3190_v32  ;;  %v2966_v47 = vmax.f32 %v5277_v60, %v4387_v31  ;;  %v3079_v16 = vmax.f32 %v5279_v61, %v4726_v33  ;;  %v1275_v30 = vpop.f32.mrb[115].mxu0  ;;  %4545 = vmatmul.mubr.f32.gmra.mrb[220].mxu0 %v392_v17  ;;  %v2405_v14 = vpop.f32.mrb[115].mxu1  ;;  %4884 = vmatmul.mubr.f32.gmra.mrb[220].mxu1 %v618_v46  ;;  %v394_v60 = vld [vmem:[%s5017_s6 + $0x6f8] sm:$0xff]  ;;  %v395_v31 = vld [vmem:[%s5017_s6 + $0x700] sm:$0xff]  ;;  %v621_v17 = vld [vmem:[%s5017_s6 + $0xe10] sm:$0xff] }
 0x1e9   : > { %v2965_v63 = vmax.f32 %v5261_v50, %v1275_v30  ;;  %v3078_v32 = vmax.f32 %v5263_v51, %v2405_v14  ;;  %4547 = vmatprep.mubr.f32.mxu0 %v393_v52  ;;  %4886 = vmatprep.mubr.f32.mxu1 %v619_v53  ;;  %v622_v14 = vld [vmem:[%s5017_s6 + $0xe18] sm:$0xff] }
 0x1ea   : > { %v3423_v15 = vmax.f32 %v3310_v48, 0.0  ;;  %v3192_v61 = vmax.f32 %v2966_v47, %v3079_v16  ;;  %v396_v47 = vld [vmem:[%s5017_s6 + $0x708] sm:$0xff] }
 0x1eb   : > { %v3191_v33 = vmax.f32 %v2965_v63, %v3078_v32  ;;  %v4390_v46 = vpop.f32.mrb[116].mxu0  ;;  %v4729_v39 = vpop.f32.mrb[116].mxu1 }
 0x1ec   : > { %3536 = vst [vmem:[%s5955_s29] sm:$0xff] %v3423_v15  ;;  %v3312_v38 = vadd.f32 %v5943_v62, %v3192_v61  ;;  %v2968_v50 = vmax.f32 %v5289_v4, %v4390_v46  ;;  %v3081_v51 = vmax.f32 %v5291_v5, %v4729_v39  ;;  %v1285_v30 = vpop.f32.mrb[117].mxu0  ;;  %4548 = vmatmul.mubr.f32.gmra.mrb[222].mxu0 %v394_v60  ;;  %v2415_v52 = vpop.f32.mrb[117].mxu1 }
 0x1ed   : > { %4887 = vmatmul.mubr.f32.gmra.mrb[222].mxu1 %v620_v49  ;;  %v3311_v16 = vadd.f32 %v5943_v62, %v3191_v33  ;;  %v2967_v53 = vmax.f32 %v5273_v58, %v1285_v30  ;;  %v3080_v48 = vmax.f32 %v5275_v59, %v2415_v52  ;;  %4550 = vmatprep.mubr.f32.mxu0 %v395_v31 }
 0x1ee   : > { %4889 = vmatprep.mubr.f32.mxu1 %v621_v17  ;;  %v3425_v63 = vmax.f32 %v3312_v38, 0.0  ;;  %v3194_v4 = vmax.f32 %v2968_v50, %v3081_v51 }
 0x1ef   : > { %v3424_v32 = vmax.f32 %v3311_v16, 0.0  ;;  %v3193_v5 = vmax.f32 %v2967_v53, %v3080_v48  ;;  %v4393_v39 = vpop.f32.mrb[118].mxu0  ;;  %v4732_v60 = vpop.f32.mrb[118].mxu1 }
 0x1f0   : > { %3538 = vst [vmem:[%s5955_s29 + $0x10] sm:$0xff] %v3425_v63  ;;  %v3314_v49 = vadd.f32 %v5943_v62, %v3194_v4  ;;  %v2970_v15 = vmax.f32 %v5301_v12, %v4393_v39  ;;  %v3083_v58 = vmax.f32 %v5303_v13, %v4732_v60  ;;  %v1295_v59 = vpop.f32.mrb[119].mxu0  ;;  %4551 = vmatmul.mubr.f32.gmra.mrb[224].mxu0 %v396_v47  ;;  %v2425_v61 = vpop.f32.mrb[119].mxu1 }
 0x1f1   : > { %4890 = vmatmul.mubr.f32.gmra.mrb[224].mxu1 %v622_v14  ;;  %3537 = vst [vmem:[%s5955_s29 + $0x8] sm:$0xff] %v3424_v32  ;;  %v3313_v38 = vadd.f32 %v5943_v62, %v3193_v5  ;;  %v2969_v31 = vmax.f32 %v5285_v2, %v1295_v59  ;;  %v3082_v17 = vmax.f32 %v5287_v3, %v2425_v61 }
 0x1f2   : > { %v3427_v33 = vmax.f32 %v3314_v49, 0.0  ;;  %v3196_v46 = vmax.f32 %v2970_v15, %v3083_v58 }
 0x1f3   : > { %v3426_v50 = vmax.f32 %v3313_v38, 0.0  ;;  %v3195_v51 = vmax.f32 %v2969_v31, %v3082_v17  ;;  %v4396_v12 = vpop.f32.mrb[120].mxu0  ;;  %v4735_v30 = vpop.f32.mrb[120].mxu1 }
 0x1f4   : > { %3540 = vst [vmem:[%s5955_s29 + $0x20] sm:$0xff] %v3427_v33  ;;  %v3316_v13 = vadd.f32 %v5943_v62, %v3196_v46  ;;  %v2972_v52 = vmax.f32 %v5313_v20, %v4396_v12  ;;  %v3085_v16 = vmax.f32 %v5315_v21, %v4735_v30  ;;  %v1305_v53 = vpop.f32.mrb[121].mxu0  ;;  %v2435_v48 = vpop.f32.mrb[121].mxu1 }
 0x1f5   : > { %3539 = vst [vmem:[%s5955_s29 + $0x18] sm:$0xff] %v3426_v50  ;;  %v3315_v2 = vadd.f32 %v5943_v62, %v3195_v51  ;;  %v2971_v3 = vmax.f32 %v5297_v10, %v1305_v53  ;;  %v3084_v47 = vmax.f32 %v5299_v11, %v2435_v48 }
 0x1f6   : > { %v3429_v14 = vmax.f32 %v3316_v13, 0.0  ;;  %v3198_v63 = vmax.f32 %v2972_v52, %v3085_v16 }
 0x1f7   : > { %v3428_v4 = vmax.f32 %v3315_v2, 0.0  ;;  %v3197_v32 = vmax.f32 %v2971_v3, %v3084_v47  ;;  %v4399_v5 = vpop.f32.mrb[122].mxu0  ;;  %v4738_v39 = vpop.f32.mrb[122].mxu1 }
 0x1f8   : > { %3542 = vst [vmem:[%s5955_s29 + $0x30] sm:$0xff] %v3429_v14  ;;  %v3318_v20 = vadd.f32 %v5943_v62, %v3198_v63  ;;  %v2974_v21 = vmax.f32 %v5325_v28, %v4399_v5  ;;  %v3087_v60 = vmax.f32 %v5327_v29, %v4738_v39  ;;  %v1315_v49 = vpop.f32.mrb[123].mxu0  ;;  %v2445_v15 = vpop.f32.mrb[123].mxu1 }
 0x1f9   : > { %3541 = vst [vmem:[%s5955_s29 + $0x28] sm:$0xff] %v3428_v4  ;;  %v3317_v10 = vadd.f32 %v5943_v62, %v3197_v32  ;;  %v2973_v11 = vmax.f32 %v5309_v18, %v1315_v49  ;;  %v3086_v58 = vmax.f32 %v5311_v19, %v2445_v15 }
 0x1fa   : > { %v3431_v59 = vmax.f32 %v3318_v20, 0.0  ;;  %v3200_v61 = vmax.f32 %v2974_v21, %v3087_v60 }
 0x1fb   : > { %v3430_v38 = vmax.f32 %v3317_v10, 0.0  ;;  %v3199_v31 = vmax.f32 %v2973_v11, %v3086_v58  ;;  %v4402_v17 = vpop.f32.mrb[124].mxu0  ;;  %v4741_v33 = vpop.f32.mrb[124].mxu1 }
 0x1fc   : > { %3544 = vst [vmem:[%s5955_s29 + $0x40] sm:$0xff] %v3431_v59  ;;  %v3320_v28 = vadd.f32 %v5943_v62, %v3200_v61  ;;  %v2976_v29 = vmax.f32 %v5337_v36, %v4402_v17  ;;  %v3089_v46 = vmax.f32 %v5339_v37, %v4741_v33  ;;  %v1325_v50 = vpop.f32.mrb[125].mxu0  ;;  %v2455_v51 = vpop.f32.mrb[125].mxu1 }
 0x1fd   : > { %3543 = vst [vmem:[%s5955_s29 + $0x38] sm:$0xff] %v3430_v38  ;;  %v3319_v18 = vadd.f32 %v5943_v62, %v3199_v31  ;;  %v2975_v19 = vmax.f32 %v5321_v26, %v1325_v50  ;;  %v3088_v12 = vmax.f32 %v5323_v27, %v2455_v51 }
 0x1fe   : > { %v3433_v30 = vmax.f32 %v3320_v28, 0.0  ;;  %v3202_v13 = vmax.f32 %v2976_v29, %v3089_v46 }
 0x1ff   : > { %v3432_v52 = vmax.f32 %v3319_v18, 0.0  ;;  %v3201_v16 = vmax.f32 %v2975_v19, %v3088_v12  ;;  %v4405_v53 = vpop.f32.mrb[126].mxu0  ;;  %v4744_v48 = vpop.f32.mrb[126].mxu1 }
 0x200   : > { %3546 = vst [vmem:[%s5955_s29 + $0x50] sm:$0xff] %v3433_v30  ;;  %v3322_v36 = vadd.f32 %v5943_v62, %v3202_v13  ;;  %v2978_v37 = vmax.f32 %v5349_v44, %v4405_v53  ;;  %v3091_v2 = vmax.f32 %v5351_v45, %v4744_v48  ;;  %v1335_v3 = vpop.f32.mrb[127].mxu0  ;;  %v2465_v47 = vpop.f32.mrb[127].mxu1 }
 0x201   : > { %3545 = vst [vmem:[%s5955_s29 + $0x48] sm:$0xff] %v3432_v52  ;;  %v3321_v26 = vadd.f32 %v5943_v62, %v3201_v16  ;;  %v2977_v27 = vmax.f32 %v5333_v34, %v1335_v3  ;;  %v3090_v14 = vmax.f32 %v5335_v35, %v2465_v47 }
 0x202   : > { %v3435_v63 = vmax.f32 %v3322_v36, 0.0  ;;  %v3204_v4 = vmax.f32 %v2978_v37, %v3091_v2 }
 0x203   : > { %v3434_v32 = vmax.f32 %v3321_v26, 0.0  ;;  %v3203_v5 = vmax.f32 %v2977_v27, %v3090_v14  ;;  %v4408_v39 = vpop.f32.mrb[128].mxu0  ;;  %v4747_v20 = vpop.f32.mrb[128].mxu1 }
 0x204   : > { %3548 = vst [vmem:[%s5955_s29 + $0x60] sm:$0xff] %v3435_v63  ;;  %v3324_v44 = vadd.f32 %v5943_v62, %v3204_v4  ;;  %v2980_v45 = vmax.f32 %v5361_v56, %v4408_v39  ;;  %v3093_v21 = vmax.f32 %v5363_v57, %v4747_v20  ;;  %v1345_v60 = vpop.f32.mrb[129].mxu0  ;;  %v2475_v49 = vpop.f32.mrb[129].mxu1 }
 0x205   : > { %3547 = vst [vmem:[%s5955_s29 + $0x58] sm:$0xff] %v3434_v32  ;;  %v3323_v34 = vadd.f32 %v5943_v62, %v3203_v5  ;;  %v2979_v35 = vmax.f32 %v5345_v42, %v1345_v60  ;;  %v3092_v15 = vmax.f32 %v5347_v43, %v2475_v49  ;;  %v6601_v60 = vld [vmem:[#allocation3_spill] sm:$0xff] }
 0x206   : > { %v3437_v10 = vmax.f32 %v3324_v44, 0.0  ;;  %v3206_v11 = vmax.f32 %v2980_v45, %v3093_v21 }
 0x207   : > { %v3436_v58 = vmax.f32 %v3323_v34, 0.0  ;;  %v3205_v59 = vmax.f32 %v2979_v35, %v3092_v15  ;;  %v4411_v61 = vpop.f32.mrb[130].mxu0  ;;  %v4750_v38 = vpop.f32.mrb[130].mxu1 }
 0x208   : > { %3550 = vst [vmem:[%s5955_s29 + $0x70] sm:$0xff] %v3437_v10  ;;  %v3326_v56 = vadd.f32 %v5943_v62, %v3206_v11  ;;  %v2982_v57 = vmax.f32 %v5373_v8, %v4411_v61  ;;  %v3095_v31 = vmax.f32 %v5375_v9, %v4750_v38  ;;  %v1355_v17 = vpop.f32.mrb[131].mxu0  ;;  %v2485_v33 = vpop.f32.mrb[131].mxu1  ;;  %v6603_v61 = vld [vmem:[#allocation9_spill] sm:$0xff] }
 0x209   : > { %3549 = vst [vmem:[%s5955_s29 + $0x68] sm:$0xff] %v3436_v58  ;;  %v3325_v42 = vadd.f32 %v5943_v62, %v3205_v59  ;;  %v2981_v43 = vmax.f32 %v5357_v54, %v1355_v17  ;;  %v3094_v28 = vmax.f32 %v5359_v55, %v2485_v33  ;;  %v6604_v17 = vld [vmem:[#allocation4_spill] sm:$0xff] }
 0x20a   : > { %v3439_v29 = vmax.f32 %v3326_v56, 0.0  ;;  %v3208_v46 = vmax.f32 %v2982_v57, %v3095_v31 }
 0x20b   : > { %v3438_v50 = vmax.f32 %v3325_v42, 0.0  ;;  %v3207_v51 = vmax.f32 %v2981_v43, %v3094_v28  ;;  %v4414_v18 = vpop.f32.mrb[132].mxu0  ;;  %v4753_v19 = vpop.f32.mrb[132].mxu1  ;;  %v6605_v42 = vld [vmem:[#allocation5_spill] sm:$0xff] }
 0x20c   : > { %3552 = vst [vmem:[%s5955_s29 + $0x80] sm:$0xff] %v3439_v29  ;;  %v3328_v8 = vadd.f32 %v5943_v62, %v3208_v46  ;;  %v2984_v9 = vmax.f32 %v5385_v24, %v4414_v18  ;;  %v3097_v12 = vmax.f32 %v5387_v25, %v4753_v19  ;;  %v1365_v30 = vpop.f32.mrb[133].mxu0  ;;  %v2495_v13 = vpop.f32.mrb[133].mxu1 }
 0x20d   : > { %3551 = vst [vmem:[%s5955_s29 + $0x78] sm:$0xff] %v3438_v50  ;;  %v3327_v54 = vadd.f32 %v5943_v62, %v3207_v51  ;;  %v2983_v55 = vmax.f32 %v5369_v6, %v1365_v30  ;;  %v3096_v52 = vmax.f32 %v5371_v7, %v2495_v13 }
 0x20e   : > { %v3441_v16 = vmax.f32 %v3328_v8, 0.0  ;;  %v3210_v53 = vmax.f32 %v2984_v9, %v3097_v12  ;;  %v6606_v8 = vld [vmem:[#allocation12_spill] sm:$0xff]  ;;  %v6607_v12 = vld [vmem:[#allocation13_spill] sm:$0xff] }
 0x20f   : > { %v3440_v48 = vmax.f32 %v3327_v54, 0.0  ;;  %v3209_v36 = vmax.f32 %v2983_v55, %v3096_v52  ;;  %v4417_v37 = vpop.f32.mrb[134].mxu0  ;;  %v4756_v2 = vpop.f32.mrb[134].mxu1  ;;  %v6608_v52 = vld [vmem:[#allocation6_spill] sm:$0xff] }
 0x210   : > { %3554 = vst [vmem:[%s5955_s29 + $0x90] sm:$0xff] %v3441_v16  ;;  %v3330_v24 = vadd.f32 %v5943_v62, %v3210_v53  ;;  %v2986_v25 = vmax.f32 %v5397_v40, %v4417_v37  ;;  %v3099_v3 = vmax.f32 %v5399_v41, %v4756_v2  ;;  %v1375_v47 = vpop.f32.mrb[135].mxu0  ;;  %v2505_v26 = vpop.f32.mrb[135].mxu1  ;;  %v6609_v53 = vld [vmem:[#allocation7_spill] sm:$0xff] }
 0x211   : > { %3553 = vst [vmem:[%s5955_s29 + $0x88] sm:$0xff] %v3440_v48  ;;  %v3329_v6 = vadd.f32 %v5943_v62, %v3209_v36  ;;  %v2985_v7 = vmax.f32 %v5381_v22, %v1375_v47  ;;  %v3098_v27 = vmax.f32 %v5383_v23, %v2505_v26  ;;  %v6600_v23 = vld [vmem:[#allocation2_spill] sm:$0xff]  ;;  %v6610_v26 = vld [vmem:[#allocation16_spill] sm:$0xff] }
 0x212   : > { %v3443_v14 = vmax.f32 %v3330_v24, 0.0  ;;  %v3212_v63 = vmax.f32 %v2986_v25, %v3099_v3 }
 0x213   : > { %v3442_v4 = vmax.f32 %v3329_v6, 0.0  ;;  %v3211_v32 = vmax.f32 %v2985_v7, %v3098_v27  ;;  %v4420_v5 = vpop.f32.mrb[136].mxu0  ;;  %v4759_v39 = vpop.f32.mrb[136].mxu1  ;;  %v6611_v7 = vld [vmem:[#allocation17_spill] sm:$0xff] }
 0x214   : > { %3556 = vst [vmem:[%s5955_s29 + $0xa0] sm:$0xff] %v3443_v14  ;;  %v3332_v40 = vadd.f32 %v5943_v62, %v3212_v63  ;;  %v2988_v41 = vmax.f32 %v5409_v0, %v4420_v5  ;;  %v3101_v20 = vmax.f32 %v5411_v1, %v4759_v39  ;;  %v1385_v44 = vpop.f32.mrb[137].mxu0  ;;  %v2515_v45 = vpop.f32.mrb[137].mxu1  ;;  %v6602_v1 = vld [vmem:[#allocation8_spill] sm:$0xff]  ;;  %v6613_v39 = vld [vmem:[#allocation11_spill] sm:$0xff] }
 0x215   : > { %3555 = vst [vmem:[%s5955_s29 + $0x98] sm:$0xff] %v3442_v4  ;;  %v3331_v22 = vadd.f32 %v5943_v62, %v3211_v32  ;;  %v2987_v21 = vmax.f32 %v6600_v23, %v1385_v44  ;;  %v3100_v49 = vmax.f32 %v6601_v60, %v2515_v45  ;;  %v6612_v32 = vld [vmem:[#allocation10_spill] sm:$0xff]  ;;  %v6614_v60 = vld [vmem:[#allocation20_spill] sm:$0xff] }
 0x216   : > { %v3445_v34 = vmax.f32 %v3332_v40, 0.0  ;;  %v3214_v35 = vmax.f32 %v2988_v41, %v3101_v20 }
 0x217   : > { %v3444_v15 = vmax.f32 %v3331_v22, 0.0  ;;  %v3213_v10 = vmax.f32 %v2987_v21, %v3100_v49  ;;  %v4423_v11 = vpop.f32.mrb[138].mxu0  ;;  %v4762_v58 = vpop.f32.mrb[138].mxu1 }
 0x218   : > { %3558 = vst [vmem:[%s5955_s29 + $0xb0] sm:$0xff] %v3445_v34  ;;  %v3334_v0 = vadd.f32 %v5943_v62, %v3214_v35  ;;  %v2990_v59 = vmax.f32 %v6602_v1, %v4423_v11  ;;  %v3103_v38 = vmax.f32 %v6603_v61, %v4762_v58  ;;  %v1395_v56 = vpop.f32.mrb[139].mxu0  ;;  %v2525_v57 = vpop.f32.mrb[139].mxu1  ;;  %v6615_v34 = vld [vmem:[#allocation21_spill] sm:$0xff]  ;;  %v6616_v58 = vld [vmem:[#allocation14_spill] sm:$0xff]  ;;  %v6617_v1 = vld [vmem:[#allocation15_spill] sm:$0xff] }
 0x219   : > { %3557 = vst [vmem:[%s5955_s29 + $0xa8] sm:$0xff] %v3444_v15  ;;  %v3333_v31 = vadd.f32 %v5943_v62, %v3213_v10  ;;  %v2989_v33 = vmax.f32 %v6604_v17, %v1395_v56  ;;  %v3102_v43 = vmax.f32 %v6605_v42, %v2525_v57  ;;  %v6618_v42 = vld [vmem:[#allocation24_spill] sm:$0xff] }
 0x21a   : > { %v3447_v28 = vmax.f32 %v3334_v0, 0.0  ;;  %v3216_v29 = vmax.f32 %v2990_v59, %v3103_v38 }
 0x21b   : > { %v3446_v46 = vmax.f32 %v3333_v31, 0.0  ;;  %v3215_v50 = vmax.f32 %v2989_v33, %v3102_v43  ;;  %v4426_v51 = vpop.f32.mrb[140].mxu0  ;;  %v4765_v18 = vpop.f32.mrb[140].mxu1 }
 0x21c   : > { %3560 = vst [vmem:[%s5955_s29 + $0xc0] sm:$0xff] %v3447_v28  ;;  %v3336_v19 = vadd.f32 %v5943_v62, %v3216_v29  ;;  %v2992_v9 = vmax.f32 %v6606_v8, %v4426_v51  ;;  %v3105_v30 = vmax.f32 %v6607_v12, %v4765_v18  ;;  %v1405_v13 = vpop.f32.mrb[141].mxu0  ;;  %v2535_v54 = vpop.f32.mrb[141].mxu1  ;;  %v6619_v28 = vld [vmem:[#allocation25_spill] sm:$0xff]  ;;  %v6620_v18 = vld [vmem:[#allocation18_spill] sm:$0xff]  ;;  %v6621_v8 = vld [vmem:[#allocation19_spill] sm:$0xff] }
 0x21d   : > { %3559 = vst [vmem:[%s5955_s29 + $0xb8] sm:$0xff] %v3446_v46  ;;  %v3335_v55 = vadd.f32 %v5943_v62, %v3215_v50  ;;  %v2991_v16 = vmax.f32 %v6608_v52, %v1405_v13  ;;  %v3104_v48 = vmax.f32 %v6609_v53, %v2535_v54  ;;  %v6622_v53 = vld [vmem:[#allocation28_spill] sm:$0xff] }
 0x21e   : > { %v3449_v36 = vmax.f32 %v3336_v19, 0.0  ;;  %v3218_v37 = vmax.f32 %v2992_v9, %v3105_v30 }
 0x21f   : > { %v3448_v2 = vmax.f32 %v3335_v55, 0.0  ;;  %v3217_v24 = vmax.f32 %v2991_v16, %v3104_v48  ;;  %v4429_v25 = vpop.f32.mrb[142].mxu0  ;;  %v4768_v3 = vpop.f32.mrb[142].mxu1 }
 0x220   : > { %3562 = vst [vmem:[%s5955_s29 + $0xd0] sm:$0xff] %v3449_v36  ;;  %v3338_v47 = vadd.f32 %v5943_v62, %v3218_v37  ;;  %v2994_v6 = vmax.f32 %v6610_v26, %v4429_v25  ;;  %v3107_v27 = vmax.f32 %v6611_v7, %v4768_v3  ;;  %v1415_v14 = vpop.f32.mrb[143].mxu0  ;;  %v2545_v63 = vpop.f32.mrb[143].mxu1  ;;  %v6623_v36 = vld [vmem:[#allocation29_spill] sm:$0xff]  ;;  %v6624_v3 = vld [vmem:[#allocation22_spill] sm:$0xff]  ;;  %v6625_v26 = vld [vmem:[#allocation23_spill] sm:$0xff] }
 0x221   : > { %3561 = vst [vmem:[%s5955_s29 + $0xc8] sm:$0xff] %v3448_v2  ;;  %v3337_v4 = vadd.f32 %v5943_v62, %v3217_v24  ;;  %v2993_v5 = vmax.f32 %v6612_v32, %v1415_v14  ;;  %v3106_v40 = vmax.f32 %v6613_v39, %v2545_v63  ;;  %v6626_v39 = vld [vmem:[#allocation32_spill] sm:$0xff] }
 0x222   : > { %v3451_v41 = vmax.f32 %v3338_v47, 0.0  ;;  %v3220_v20 = vmax.f32 %v2994_v6, %v3107_v27 }
 0x223   : > { %v3450_v44 = vmax.f32 %v3337_v4, 0.0  ;;  %v3219_v45 = vmax.f32 %v2993_v5, %v3106_v40  ;;  %v4432_v22 = vpop.f32.mrb[144].mxu0  ;;  %v4771_v23 = vpop.f32.mrb[144].mxu1 }
 0x224   : > { %3564 = vst [vmem:[%s5955_s29 + $0xe0] sm:$0xff] %v3451_v41  ;;  %v3340_v21 = vadd.f32 %v5943_v62, %v3220_v20  ;;  %v2996_v49 = vmax.f32 %v6614_v60, %v4432_v22  ;;  %v3109_v35 = vmax.f32 %v6615_v34, %v4771_v23  ;;  %v1425_v15 = vpop.f32.mrb[145].mxu0  ;;  %v2555_v10 = vpop.f32.mrb[145].mxu1  ;;  %v6627_v41 = vld [vmem:[#allocation33_spill] sm:$0xff]  ;;  %v6628_v23 = vld [vmem:[#allocation26_spill] sm:$0xff]  ;;  %v6629_v60 = vld [vmem:[#allocation27_spill] sm:$0xff] }
 0x225   : > { %3563 = vst [vmem:[%s5955_s29 + $0xd8] sm:$0xff] %v3450_v44  ;;  %v3339_v11 = vadd.f32 %v5943_v62, %v3219_v45  ;;  %v2995_v0 = vmax.f32 %v6616_v58, %v1425_v15  ;;  %v3108_v59 = vmax.f32 %v6617_v1, %v2555_v10  ;;  %v6630_v1 = vld [vmem:[#allocation36_spill] sm:$0xff] }
 0x226   : > { %v3453_v61 = vmax.f32 %v3340_v21, 0.0  ;;  %v3222_v38 = vmax.f32 %v2996_v49, %v3109_v35 }
 0x227   : > { %v3452_v56 = vmax.f32 %v3339_v11, 0.0  ;;  %v3221_v57 = vmax.f32 %v2995_v0, %v3108_v59  ;;  %v4435_v31 = vpop.f32.mrb[146].mxu0  ;;  %v4774_v17 = vpop.f32.mrb[146].mxu1 }
 0x228   : > { %3566 = vst [vmem:[%s5955_s29 + $0xf0] sm:$0xff] %v3453_v61  ;;  %v3342_v33 = vadd.f32 %v5943_v62, %v3222_v38  ;;  %v2998_v43 = vmax.f32 %v6618_v42, %v4435_v31  ;;  %v3111_v29 = vmax.f32 %v6619_v28, %v4774_v17  ;;  %v1435_v46 = vpop.f32.mrb[147].mxu0  ;;  %v2565_v50 = vpop.f32.mrb[147].mxu1  ;;  %v6631_v61 = vld [vmem:[#allocation37_spill] sm:$0xff]  ;;  %v6632_v17 = vld [vmem:[#allocation30_spill] sm:$0xff]  ;;  %v6633_v42 = vld [vmem:[#allocation31_spill] sm:$0xff] }
 0x229   : > { %3565 = vst [vmem:[%s5955_s29 + $0xe8] sm:$0xff] %v3452_v56  ;;  %v3341_v51 = vadd.f32 %v5943_v62, %v3221_v57  ;;  %v2997_v19 = vmax.f32 %v6620_v18, %v1435_v46  ;;  %v3110_v9 = vmax.f32 %v6621_v8, %v2565_v50  ;;  %v6634_v8 = vld [vmem:[#allocation40_spill] sm:$0xff] }
 0x22a   : > { %v3455_v12 = vmax.f32 %v3342_v33, 0.0  ;;  %v3224_v30 = vmax.f32 %v2998_v43, %v3111_v29 }
 0x22b   : > { %v3454_v13 = vmax.f32 %v3341_v51, 0.0  ;;  %v3223_v54 = vmax.f32 %v2997_v19, %v3110_v9  ;;  %v4438_v55 = vpop.f32.mrb[148].mxu0  ;;  %v4777_v52 = vpop.f32.mrb[148].mxu1 }
 0x22c   : > { %3568 = vst [vmem:[%s5955_s29 + $0x100] sm:$0xff] %v3455_v12  ;;  %v3344_v16 = vadd.f32 %v5943_v62, %v3224_v30  ;;  %v3000_v48 = vmax.f32 %v6622_v53, %v4438_v55  ;;  %v3113_v37 = vmax.f32 %v6623_v36, %v4777_v52  ;;  %v1445_v2 = vpop.f32.mrb[149].mxu0  ;;  %v2575_v24 = vpop.f32.mrb[149].mxu1  ;;  %v6635_v12 = vld [vmem:[#allocation41_spill] sm:$0xff]  ;;  %v6636_v52 = vld [vmem:[#allocation34_spill] sm:$0xff]  ;;  %v6637_v53 = vld [vmem:[#allocation35_spill] sm:$0xff] }
 0x22d   : > { %3567 = vst [vmem:[%s5955_s29 + $0xf8] sm:$0xff] %v3454_v13  ;;  %v3343_v25 = vadd.f32 %v5943_v62, %v3223_v54  ;;  %v2999_v47 = vmax.f32 %v6624_v3, %v1445_v2  ;;  %v3112_v6 = vmax.f32 %v6625_v26, %v2575_v24  ;;  %v6638_v26 = vld [vmem:[#allocation44_spill] sm:$0xff] }
 0x22e   : > { %v3457_v7 = vmax.f32 %v3344_v16, 0.0  ;;  %v3226_v27 = vmax.f32 %v3000_v48, %v3113_v37 }
 0x22f   : > { %v3456_v14 = vmax.f32 %v3343_v25, 0.0  ;;  %v3225_v63 = vmax.f32 %v2999_v47, %v3112_v6  ;;  %v4441_v4 = vpop.f32.mrb[150].mxu0  ;;  %v4780_v32 = vpop.f32.mrb[150].mxu1 }
 0x230   : > { %3570 = vst [vmem:[%s5955_s29 + $0x110] sm:$0xff] %v3457_v7  ;;  %v3346_v5 = vadd.f32 %v5943_v62, %v3226_v27  ;;  %v3002_v40 = vmax.f32 %v6626_v39, %v4441_v4  ;;  %v3115_v20 = vmax.f32 %v6627_v41, %v4780_v32  ;;  %v1455_v44 = vpop.f32.mrb[151].mxu0  ;;  %v2585_v45 = vpop.f32.mrb[151].mxu1  ;;  %v6639_v7 = vld [vmem:[#allocation45_spill] sm:$0xff]  ;;  %v6640_v32 = vld [vmem:[#allocation38_spill] sm:$0xff]  ;;  %v6641_v39 = vld [vmem:[#allocation39_spill] sm:$0xff] }
 0x231   : > { %3569 = vst [vmem:[%s5955_s29 + $0x108] sm:$0xff] %v3456_v14  ;;  %v3345_v22 = vadd.f32 %v5943_v62, %v3225_v63  ;;  %v3001_v21 = vmax.f32 %v6628_v23, %v1455_v44  ;;  %v3114_v49 = vmax.f32 %v6629_v60, %v2585_v45  ;;  %v6642_v60 = vld [vmem:[#allocation48_spill] sm:$0xff] }
 0x232   : > { %v3459_v34 = vmax.f32 %v3346_v5, 0.0  ;;  %v3228_v35 = vmax.f32 %v3002_v40, %v3115_v20 }
 0x233   : > { %v3458_v15 = vmax.f32 %v3345_v22, 0.0  ;;  %v3227_v10 = vmax.f32 %v3001_v21, %v3114_v49  ;;  %v4444_v11 = vpop.f32.mrb[152].mxu0  ;;  %v4783_v58 = vpop.f32.mrb[152].mxu1 }
 0x234   : > { %3572 = vst [vmem:[%s5955_s29 + $0x120] sm:$0xff] %v3459_v34  ;;  %v3348_v0 = vadd.f32 %v5943_v62, %v3228_v35  ;;  %v3004_v59 = vmax.f32 %v6630_v1, %v4444_v11  ;;  %v3117_v38 = vmax.f32 %v6631_v61, %v4783_v58  ;;  %v1465_v56 = vpop.f32.mrb[153].mxu0  ;;  %v2595_v57 = vpop.f32.mrb[153].mxu1  ;;  %v6643_v34 = vld [vmem:[#allocation49_spill] sm:$0xff]  ;;  %v6644_v58 = vld [vmem:[#allocation42_spill] sm:$0xff]  ;;  %v6645_v1 = vld [vmem:[#allocation43_spill] sm:$0xff] }
 0x235   : > { %3571 = vst [vmem:[%s5955_s29 + $0x118] sm:$0xff] %v3458_v15  ;;  %v3347_v31 = vadd.f32 %v5943_v62, %v3227_v10  ;;  %v3003_v33 = vmax.f32 %v6632_v17, %v1465_v56  ;;  %v3116_v43 = vmax.f32 %v6633_v42, %v2595_v57  ;;  %v6646_v42 = vld [vmem:[#allocation52_spill] sm:$0xff] }
 0x236   : > { %v3461_v28 = vmax.f32 %v3348_v0, 0.0  ;;  %v3230_v29 = vmax.f32 %v3004_v59, %v3117_v38 }
 0x237   : > { %v3460_v46 = vmax.f32 %v3347_v31, 0.0  ;;  %v3229_v50 = vmax.f32 %v3003_v33, %v3116_v43  ;;  %v4447_v51 = vpop.f32.mrb[154].mxu0  ;;  %v4786_v18 = vpop.f32.mrb[154].mxu1 }
 0x238   : > { %3574 = vst [vmem:[%s5955_s29 + $0x130] sm:$0xff] %v3461_v28  ;;  %v3350_v19 = vadd.f32 %v5943_v62, %v3230_v29  ;;  %v3006_v9 = vmax.f32 %v6634_v8, %v4447_v51  ;;  %v3119_v30 = vmax.f32 %v6635_v12, %v4786_v18  ;;  %v1475_v13 = vpop.f32.mrb[155].mxu0  ;;  %v2605_v54 = vpop.f32.mrb[155].mxu1  ;;  %v6647_v28 = vld [vmem:[#allocation53_spill] sm:$0xff]  ;;  %v6648_v18 = vld [vmem:[#allocation46_spill] sm:$0xff]  ;;  %v6649_v8 = vld [vmem:[#allocation47_spill] sm:$0xff] }
 0x239   : > { %3573 = vst [vmem:[%s5955_s29 + $0x128] sm:$0xff] %v3460_v46  ;;  %v3349_v55 = vadd.f32 %v5943_v62, %v3229_v50  ;;  %v3005_v16 = vmax.f32 %v6636_v52, %v1475_v13  ;;  %v3118_v48 = vmax.f32 %v6637_v53, %v2605_v54  ;;  %v6650_v53 = vld [vmem:[#allocation56_spill] sm:$0xff] }
 0x23a   : > { %v3463_v36 = vmax.f32 %v3350_v19, 0.0  ;;  %v3232_v37 = vmax.f32 %v3006_v9, %v3119_v30 }
 0x23b   : > { %v3462_v2 = vmax.f32 %v3349_v55, 0.0  ;;  %v3231_v24 = vmax.f32 %v3005_v16, %v3118_v48  ;;  %v4450_v25 = vpop.f32.mrb[156].mxu0  ;;  %v4789_v3 = vpop.f32.mrb[156].mxu1 }
 0x23c   : > { %3576 = vst [vmem:[%s5955_s29 + $0x140] sm:$0xff] %v3463_v36  ;;  %v3352_v47 = vadd.f32 %v5943_v62, %v3232_v37  ;;  %v3008_v6 = vmax.f32 %v6638_v26, %v4450_v25  ;;  %v3121_v27 = vmax.f32 %v6639_v7, %v4789_v3  ;;  %v1485_v14 = vpop.f32.mrb[157].mxu0  ;;  %v2615_v63 = vpop.f32.mrb[157].mxu1  ;;  %v6651_v36 = vld [vmem:[#allocation57_spill] sm:$0xff]  ;;  %v6652_v3 = vld [vmem:[#allocation50_spill] sm:$0xff]  ;;  %v6653_v26 = vld [vmem:[#allocation51_spill] sm:$0xff] }
 0x23d   : > { %3575 = vst [vmem:[%s5955_s29 + $0x138] sm:$0xff] %v3462_v2  ;;  %v3351_v4 = vadd.f32 %v5943_v62, %v3231_v24  ;;  %v3007_v5 = vmax.f32 %v6640_v32, %v1485_v14  ;;  %v3120_v40 = vmax.f32 %v6641_v39, %v2615_v63  ;;  %v6654_v39 = vld [vmem:[#allocation60_spill] sm:$0xff] }
 0x23e   : > { %v3465_v41 = vmax.f32 %v3352_v47, 0.0  ;;  %v3234_v20 = vmax.f32 %v3008_v6, %v3121_v27 }
 0x23f   : > { %v3464_v44 = vmax.f32 %v3351_v4, 0.0  ;;  %v3233_v45 = vmax.f32 %v3007_v5, %v3120_v40  ;;  %v4453_v22 = vpop.f32.mrb[158].mxu0  ;;  %v4792_v23 = vpop.f32.mrb[158].mxu1 }
 0x240   : > { %3578 = vst [vmem:[%s5955_s29 + $0x150] sm:$0xff] %v3465_v41  ;;  %v3354_v21 = vadd.f32 %v5943_v62, %v3234_v20  ;;  %v3010_v49 = vmax.f32 %v6642_v60, %v4453_v22  ;;  %v3123_v35 = vmax.f32 %v6643_v34, %v4792_v23  ;;  %v1495_v15 = vpop.f32.mrb[159].mxu0  ;;  %v2625_v10 = vpop.f32.mrb[159].mxu1  ;;  %v6655_v41 = vld [vmem:[#allocation61_spill] sm:$0xff]  ;;  %v6656_v23 = vld [vmem:[#allocation54_spill] sm:$0xff]  ;;  %v6657_v60 = vld [vmem:[#allocation55_spill] sm:$0xff] }
 0x241   : > { %3577 = vst [vmem:[%s5955_s29 + $0x148] sm:$0xff] %v3464_v44  ;;  %v3353_v11 = vadd.f32 %v5943_v62, %v3233_v45  ;;  %v3009_v0 = vmax.f32 %v6644_v58, %v1495_v15  ;;  %v3122_v59 = vmax.f32 %v6645_v1, %v2625_v10  ;;  %v6658_v1 = vld [vmem:[#allocation64_spill] sm:$0xff] }
 0x242   : > { %v3467_v61 = vmax.f32 %v3354_v21, 0.0  ;;  %v3236_v38 = vmax.f32 %v3010_v49, %v3123_v35 }
 0x243   : > { %v3466_v56 = vmax.f32 %v3353_v11, 0.0  ;;  %v3235_v57 = vmax.f32 %v3009_v0, %v3122_v59  ;;  %v4456_v31 = vpop.f32.mrb[160].mxu0  ;;  %v4795_v17 = vpop.f32.mrb[160].mxu1 }
 0x244   : > { %3580 = vst [vmem:[%s5955_s29 + $0x160] sm:$0xff] %v3467_v61  ;;  %v3356_v33 = vadd.f32 %v5943_v62, %v3236_v38  ;;  %v3012_v43 = vmax.f32 %v6646_v42, %v4456_v31  ;;  %v3125_v29 = vmax.f32 %v6647_v28, %v4795_v17  ;;  %v1505_v46 = vpop.f32.mrb[161].mxu0  ;;  %v2635_v50 = vpop.f32.mrb[161].mxu1  ;;  %v6659_v61 = vld [vmem:[#allocation65_spill] sm:$0xff]  ;;  %v6660_v17 = vld [vmem:[#allocation58_spill] sm:$0xff]  ;;  %v6661_v42 = vld [vmem:[#allocation59_spill] sm:$0xff] }
 0x245   : > { %3579 = vst [vmem:[%s5955_s29 + $0x158] sm:$0xff] %v3466_v56  ;;  %v3355_v51 = vadd.f32 %v5943_v62, %v3235_v57  ;;  %v3011_v19 = vmax.f32 %v6648_v18, %v1505_v46  ;;  %v3124_v9 = vmax.f32 %v6649_v8, %v2635_v50  ;;  %v6662_v8 = vld [vmem:[#allocation68_spill] sm:$0xff] }
 0x246   : > { %v3469_v12 = vmax.f32 %v3356_v33, 0.0  ;;  %v3238_v30 = vmax.f32 %v3012_v43, %v3125_v29 }
 0x247   : > { %v3468_v13 = vmax.f32 %v3355_v51, 0.0  ;;  %v3237_v54 = vmax.f32 %v3011_v19, %v3124_v9  ;;  %v4459_v55 = vpop.f32.mrb[162].mxu0  ;;  %v4798_v52 = vpop.f32.mrb[162].mxu1 }
 0x248   : > { %3582 = vst [vmem:[%s5955_s29 + $0x170] sm:$0xff] %v3469_v12  ;;  %v3358_v16 = vadd.f32 %v5943_v62, %v3238_v30  ;;  %v3014_v48 = vmax.f32 %v6650_v53, %v4459_v55  ;;  %v3127_v37 = vmax.f32 %v6651_v36, %v4798_v52  ;;  %v1515_v2 = vpop.f32.mrb[163].mxu0  ;;  %v2645_v24 = vpop.f32.mrb[163].mxu1  ;;  %v6663_v12 = vld [vmem:[#allocation69_spill] sm:$0xff]  ;;  %v6664_v52 = vld [vmem:[#allocation62_spill] sm:$0xff]  ;;  %v6665_v53 = vld [vmem:[#allocation63_spill] sm:$0xff] }
 0x249   : > { %3581 = vst [vmem:[%s5955_s29 + $0x168] sm:$0xff] %v3468_v13  ;;  %v3357_v25 = vadd.f32 %v5943_v62, %v3237_v54  ;;  %v3013_v47 = vmax.f32 %v6652_v3, %v1515_v2  ;;  %v3126_v6 = vmax.f32 %v6653_v26, %v2645_v24  ;;  %v6666_v26 = vld [vmem:[#allocation72_spill] sm:$0xff] }
 0x24a   : > { %v3471_v7 = vmax.f32 %v3358_v16, 0.0  ;;  %v3240_v27 = vmax.f32 %v3014_v48, %v3127_v37 }
 0x24b   : > { %v3470_v14 = vmax.f32 %v3357_v25, 0.0  ;;  %v3239_v63 = vmax.f32 %v3013_v47, %v3126_v6  ;;  %v4462_v4 = vpop.f32.mrb[164].mxu0  ;;  %v4801_v32 = vpop.f32.mrb[164].mxu1 }
 0x24c   : > { %3584 = vst [vmem:[%s5955_s29 + $0x180] sm:$0xff] %v3471_v7  ;;  %v3360_v5 = vadd.f32 %v5943_v62, %v3240_v27  ;;  %v3016_v40 = vmax.f32 %v6654_v39, %v4462_v4  ;;  %v3129_v20 = vmax.f32 %v6655_v41, %v4801_v32  ;;  %v1525_v44 = vpop.f32.mrb[165].mxu0  ;;  %v2655_v45 = vpop.f32.mrb[165].mxu1  ;;  %v6667_v7 = vld [vmem:[#allocation73_spill] sm:$0xff]  ;;  %v6668_v32 = vld [vmem:[#allocation66_spill] sm:$0xff]  ;;  %v6669_v39 = vld [vmem:[#allocation67_spill] sm:$0xff] }
 0x24d   : > { %3583 = vst [vmem:[%s5955_s29 + $0x178] sm:$0xff] %v3470_v14  ;;  %v3359_v22 = vadd.f32 %v5943_v62, %v3239_v63  ;;  %v3015_v21 = vmax.f32 %v6656_v23, %v1525_v44  ;;  %v3128_v49 = vmax.f32 %v6657_v60, %v2655_v45  ;;  %v6670_v60 = vld [vmem:[#allocation76_spill] sm:$0xff] }
 0x24e   : > { %v3473_v34 = vmax.f32 %v3360_v5, 0.0  ;;  %v3242_v35 = vmax.f32 %v3016_v40, %v3129_v20 }
 0x24f   : > { %v3472_v15 = vmax.f32 %v3359_v22, 0.0  ;;  %v3241_v10 = vmax.f32 %v3015_v21, %v3128_v49  ;;  %v4465_v11 = vpop.f32.mrb[166].mxu0  ;;  %v4804_v58 = vpop.f32.mrb[166].mxu1 }
 0x250   : > { %3586 = vst [vmem:[%s5955_s29 + $0x190] sm:$0xff] %v3473_v34  ;;  %v3362_v0 = vadd.f32 %v5943_v62, %v3242_v35  ;;  %v3018_v59 = vmax.f32 %v6658_v1, %v4465_v11  ;;  %v3131_v38 = vmax.f32 %v6659_v61, %v4804_v58  ;;  %v1535_v56 = vpop.f32.mrb[167].mxu0  ;;  %v2665_v57 = vpop.f32.mrb[167].mxu1  ;;  %v6671_v34 = vld [vmem:[#allocation77_spill] sm:$0xff]  ;;  %v6672_v58 = vld [vmem:[#allocation70_spill] sm:$0xff]  ;;  %v6673_v1 = vld [vmem:[#allocation71_spill] sm:$0xff] }
 0x251   : > { %3585 = vst [vmem:[%s5955_s29 + $0x188] sm:$0xff] %v3472_v15  ;;  %v3361_v31 = vadd.f32 %v5943_v62, %v3241_v10  ;;  %v3017_v33 = vmax.f32 %v6660_v17, %v1535_v56  ;;  %v3130_v43 = vmax.f32 %v6661_v42, %v2665_v57  ;;  %v6674_v42 = vld [vmem:[#allocation80_spill] sm:$0xff] }
 0x252   : > { %v3475_v28 = vmax.f32 %v3362_v0, 0.0  ;;  %v3244_v29 = vmax.f32 %v3018_v59, %v3131_v38 }
 0x253   : > { %v3474_v46 = vmax.f32 %v3361_v31, 0.0  ;;  %v3243_v50 = vmax.f32 %v3017_v33, %v3130_v43  ;;  %v4468_v51 = vpop.f32.mrb[168].mxu0  ;;  %v4807_v18 = vpop.f32.mrb[168].mxu1 }
 0x254   : > { %3588 = vst [vmem:[%s5955_s29 + $0x1a0] sm:$0xff] %v3475_v28  ;;  %v3364_v19 = vadd.f32 %v5943_v62, %v3244_v29  ;;  %v3020_v9 = vmax.f32 %v6662_v8, %v4468_v51  ;;  %v3133_v30 = vmax.f32 %v6663_v12, %v4807_v18  ;;  %v1545_v13 = vpop.f32.mrb[169].mxu0  ;;  %v2675_v54 = vpop.f32.mrb[169].mxu1  ;;  %v6675_v28 = vld [vmem:[#allocation81_spill] sm:$0xff]  ;;  %v6676_v18 = vld [vmem:[#allocation74_spill] sm:$0xff]  ;;  %v6677_v8 = vld [vmem:[#allocation75_spill] sm:$0xff] }
 0x255   : > { %3587 = vst [vmem:[%s5955_s29 + $0x198] sm:$0xff] %v3474_v46  ;;  %v3363_v55 = vadd.f32 %v5943_v62, %v3243_v50  ;;  %v3019_v16 = vmax.f32 %v6664_v52, %v1545_v13  ;;  %v3132_v48 = vmax.f32 %v6665_v53, %v2675_v54  ;;  %v6678_v53 = vld [vmem:[#allocation84_spill] sm:$0xff] }
 0x256   : > { %v3477_v36 = vmax.f32 %v3364_v19, 0.0  ;;  %v3246_v37 = vmax.f32 %v3020_v9, %v3133_v30 }
 0x257   : > { %v3476_v2 = vmax.f32 %v3363_v55, 0.0  ;;  %v3245_v24 = vmax.f32 %v3019_v16, %v3132_v48  ;;  %v4471_v25 = vpop.f32.mrb[170].mxu0  ;;  %v4810_v3 = vpop.f32.mrb[170].mxu1  ;;  %v6208_v16 = vld [vmem:[%s6420_s2] ss:$0 sm:$0xff] }
 0x258   : > { %3590 = vst [vmem:[%s5955_s29 + $0x1b0] sm:$0xff] %v3477_v36  ;;  %v3366_v47 = vadd.f32 %v5943_v62, %v3246_v37  ;;  %v3022_v6 = vmax.f32 %v6666_v26, %v4471_v25  ;;  %v3135_v27 = vmax.f32 %v6667_v7, %v4810_v3  ;;  %v1555_v14 = vpop.f32.mrb[171].mxu0  ;;  %v2685_v63 = vpop.f32.mrb[171].mxu1  ;;  %v6679_v36 = vld [vmem:[#allocation85_spill] sm:$0xff]  ;;  %v6680_v3 = vld [vmem:[#allocation78_spill] sm:$0xff]  ;;  %v6681_v26 = vld [vmem:[#allocation79_spill] sm:$0xff] }
 0x259   : > { %3589 = vst [vmem:[%s5955_s29 + $0x1a8] sm:$0xff] %v3476_v2  ;;  %v3365_v4 = vadd.f32 %v5943_v62, %v3245_v24  ;;  %v3021_v5 = vmax.f32 %v6668_v32, %v1555_v14  ;;  %v3134_v40 = vmax.f32 %v6669_v39, %v2685_v63  ;;  %v6682_v39 = vld [vmem:[#allocation88_spill] sm:$0xff] }
 0x25a   : > { %v3479_v41 = vmax.f32 %v3366_v47, 0.0  ;;  %v3248_v20 = vmax.f32 %v3022_v6, %v3135_v27 }
 0x25b   : > { %v3478_v44 = vmax.f32 %v3365_v4, 0.0  ;;  %v3247_v45 = vmax.f32 %v3021_v5, %v3134_v40  ;;  %v4474_v22 = vpop.f32.mrb[172].mxu0  ;;  %v4813_v23 = vpop.f32.mrb[172].mxu1 }
 0x25c   : > { %3592 = vst [vmem:[%s5955_s29 + $0x1c0] sm:$0xff] %v3479_v41  ;;  %v3368_v21 = vadd.f32 %v5943_v62, %v3248_v20  ;;  %v3024_v49 = vmax.f32 %v6670_v60, %v4474_v22  ;;  %v3137_v35 = vmax.f32 %v6671_v34, %v4813_v23  ;;  %v1565_v15 = vpop.f32.mrb[173].mxu0  ;;  %v2695_v10 = vpop.f32.mrb[173].mxu1  ;;  %v6683_v41 = vld [vmem:[#allocation89_spill] sm:$0xff]  ;;  %v6684_v23 = vld [vmem:[#allocation82_spill] sm:$0xff]  ;;  %v6685_v60 = vld [vmem:[#allocation83_spill] sm:$0xff] }
 0x25d   : > { %3591 = vst [vmem:[%s5955_s29 + $0x1b8] sm:$0xff] %v3478_v44  ;;  %v3367_v11 = vadd.f32 %v5943_v62, %v3247_v45  ;;  %v3023_v0 = vmax.f32 %v6672_v58, %v1565_v15  ;;  %v3136_v59 = vmax.f32 %v6673_v1, %v2695_v10  ;;  %v6686_v1 = vld [vmem:[#allocation92_spill] sm:$0xff] }
 0x25e   : > { %v3481_v61 = vmax.f32 %v3368_v21, 0.0  ;;  %v3250_v38 = vmax.f32 %v3024_v49, %v3137_v35 }
 0x25f   : > { %v3480_v56 = vmax.f32 %v3367_v11, 0.0  ;;  %v3249_v57 = vmax.f32 %v3023_v0, %v3136_v59  ;;  %v4477_v31 = vpop.f32.mrb[174].mxu0  ;;  %v4816_v17 = vpop.f32.mrb[174].mxu1 }
 0x260   : > { %3594 = vst [vmem:[%s5955_s29 + $0x1d0] sm:$0xff] %v3481_v61  ;;  %v3370_v33 = vadd.f32 %v5943_v62, %v3250_v38  ;;  %v3026_v43 = vmax.f32 %v6674_v42, %v4477_v31  ;;  %v3139_v29 = vmax.f32 %v6675_v28, %v4816_v17  ;;  %v1575_v46 = vpop.f32.mrb[175].mxu0  ;;  %v2705_v50 = vpop.f32.mrb[175].mxu1  ;;  %v6687_v61 = vld [vmem:[#allocation93_spill] sm:$0xff]  ;;  %v6688_v17 = vld [vmem:[#allocation86_spill] sm:$0xff]  ;;  %v6689_v42 = vld [vmem:[#allocation87_spill] sm:$0xff] }
 0x261   : > { %3593 = vst [vmem:[%s5955_s29 + $0x1c8] sm:$0xff] %v3480_v56  ;;  %v3369_v51 = vadd.f32 %v5943_v62, %v3249_v57  ;;  %v3025_v19 = vmax.f32 %v6676_v18, %v1575_v46  ;;  %v3138_v9 = vmax.f32 %v6677_v8, %v2705_v50  ;;  %v6690_v8 = vld [vmem:[#allocation96_spill] sm:$0xff] }
 0x262   : > { %v3483_v12 = vmax.f32 %v3370_v33, 0.0  ;;  %v3252_v30 = vmax.f32 %v3026_v43, %v3139_v29 }
 0x263   : > { %v3482_v13 = vmax.f32 %v3369_v51, 0.0  ;;  %v3251_v54 = vmax.f32 %v3025_v19, %v3138_v9  ;;  %v4480_v55 = vpop.f32.mrb[176].mxu0  ;;  %v4819_v52 = vpop.f32.mrb[176].mxu1 }
 0x264   : > { %3596 = vst [vmem:[%s5955_s29 + $0x1e0] sm:$0xff] %v3483_v12  ;;  %v3372_v62 = vadd.f32 %v6208_v16, %v3252_v30  ;;  %v3028_v48 = vmax.f32 %v6678_v53, %v4480_v55  ;;  %v3141_v37 = vmax.f32 %v6679_v36, %v4819_v52  ;;  %v1585_v2 = vpop.f32.mrb[177].mxu0  ;;  %v2715_v24 = vpop.f32.mrb[177].mxu1  ;;  %v6691_v12 = vld [vmem:[#allocation97_spill] sm:$0xff]  ;;  %v6692_v52 = vld [vmem:[#allocation90_spill] sm:$0xff]  ;;  %v6693_v53 = vld [vmem:[#allocation91_spill] sm:$0xff] }
 0x265   : > { %3595 = vst [vmem:[%s5955_s29 + $0x1d8] sm:$0xff] %v3482_v13  ;;  %v3371_v25 = vadd.f32 %v6208_v16, %v3251_v54  ;;  %v3027_v47 = vmax.f32 %v6680_v3, %v1585_v2  ;;  %v3140_v6 = vmax.f32 %v6681_v26, %v2715_v24  ;;  %v6694_v26 = vld [vmem:[#allocation100_spill] sm:$0xff] }
 0x266   : > { %v3485_v7 = vmax.f32 %v3372_v62, 0.0  ;;  %v3254_v27 = vmax.f32 %v3028_v48, %v3141_v37 }
 0x267   : > { %v3484_v14 = vmax.f32 %v3371_v25, 0.0  ;;  %v3253_v63 = vmax.f32 %v3027_v47, %v3140_v6  ;;  %v4483_v4 = vpop.f32.mrb[178].mxu0  ;;  %v4822_v32 = vpop.f32.mrb[178].mxu1 }
 0x268   : > { %3598 = vst [vmem:[%s5955_s29 + $0x1f0] sm:$0xff] %v3485_v7  ;;  %v3374_v5 = vadd.f32 %v6208_v16, %v3254_v27  ;;  %v3030_v40 = vmax.f32 %v6682_v39, %v4483_v4  ;;  %v3143_v20 = vmax.f32 %v6683_v41, %v4822_v32  ;;  %v1595_v44 = vpop.f32.mrb[179].mxu0  ;;  %v2725_v45 = vpop.f32.mrb[179].mxu1  ;;  %v6695_v7 = vld [vmem:[#allocation101_spill] sm:$0xff]  ;;  %v6696_v32 = vld [vmem:[#allocation94_spill] sm:$0xff]  ;;  %v6697_v39 = vld [vmem:[#allocation95_spill] sm:$0xff] }
 0x269   : > { %3597 = vst [vmem:[%s5955_s29 + $0x1e8] sm:$0xff] %v3484_v14  ;;  %v3373_v22 = vadd.f32 %v6208_v16, %v3253_v63  ;;  %v3029_v21 = vmax.f32 %v6684_v23, %v1595_v44  ;;  %v3142_v49 = vmax.f32 %v6685_v60, %v2725_v45  ;;  %v6698_v60 = vld [vmem:[#allocation104_spill] sm:$0xff] }
 0x26a   : > { %v3487_v34 = vmax.f32 %v3374_v5, 0.0  ;;  %v3256_v35 = vmax.f32 %v3030_v40, %v3143_v20 }
 0x26b   : > { %v3486_v15 = vmax.f32 %v3373_v22, 0.0  ;;  %v3255_v10 = vmax.f32 %v3029_v21, %v3142_v49  ;;  %v4486_v11 = vpop.f32.mrb[180].mxu0  ;;  %v4825_v58 = vpop.f32.mrb[180].mxu1 }
 0x26c   : > { %3600 = vst [vmem:[%s5955_s29 + $0x200] sm:$0xff] %v3487_v34  ;;  %v3376_v0 = vadd.f32 %v6208_v16, %v3256_v35  ;;  %v3032_v59 = vmax.f32 %v6686_v1, %v4486_v11  ;;  %v3145_v38 = vmax.f32 %v6687_v61, %v4825_v58  ;;  %v1605_v56 = vpop.f32.mrb[181].mxu0  ;;  %v2735_v57 = vpop.f32.mrb[181].mxu1  ;;  %v6699_v34 = vld [vmem:[#allocation105_spill] sm:$0xff]  ;;  %v6700_v58 = vld [vmem:[#allocation98_spill] sm:$0xff]  ;;  %v6701_v1 = vld [vmem:[#allocation99_spill] sm:$0xff] }
 0x26d   : > { %3599 = vst [vmem:[%s5955_s29 + $0x1f8] sm:$0xff] %v3486_v15  ;;  %v3375_v31 = vadd.f32 %v6208_v16, %v3255_v10  ;;  %v3031_v33 = vmax.f32 %v6688_v17, %v1605_v56  ;;  %v3144_v43 = vmax.f32 %v6689_v42, %v2735_v57  ;;  %v6702_v42 = vld [vmem:[#allocation108_spill] sm:$0xff] }
 0x26e   : > { %v3489_v28 = vmax.f32 %v3376_v0, 0.0  ;;  %v3258_v29 = vmax.f32 %v3032_v59, %v3145_v38 }
 0x26f   : > { %v3488_v46 = vmax.f32 %v3375_v31, 0.0  ;;  %v3257_v50 = vmax.f32 %v3031_v33, %v3144_v43  ;;  %v4489_v51 = vpop.f32.mrb[182].mxu0  ;;  %v4828_v18 = vpop.f32.mrb[182].mxu1 }
 0x270   : > { %3602 = vst [vmem:[%s5955_s29 + $0x210] sm:$0xff] %v3489_v28  ;;  %v3378_v19 = vadd.f32 %v6208_v16, %v3258_v29  ;;  %v3034_v9 = vmax.f32 %v6690_v8, %v4489_v51  ;;  %v3147_v30 = vmax.f32 %v6691_v12, %v4828_v18  ;;  %v1615_v13 = vpop.f32.mrb[183].mxu0  ;;  %v2745_v54 = vpop.f32.mrb[183].mxu1  ;;  %v6703_v28 = vld [vmem:[#allocation109_spill] sm:$0xff]  ;;  %v6704_v18 = vld [vmem:[#allocation102_spill] sm:$0xff]  ;;  %v6705_v8 = vld [vmem:[#allocation103_spill] sm:$0xff] }
 0x271   : > { %3601 = vst [vmem:[%s5955_s29 + $0x208] sm:$0xff] %v3488_v46  ;;  %v3377_v55 = vadd.f32 %v6208_v16, %v3257_v50  ;;  %v3033_v62 = vmax.f32 %v6692_v52, %v1615_v13  ;;  %v3146_v48 = vmax.f32 %v6693_v53, %v2745_v54  ;;  %v6706_v53 = vld [vmem:[#allocation112_spill] sm:$0xff] }
 0x272   : > { %v3491_v36 = vmax.f32 %v3378_v19, 0.0  ;;  %v3260_v37 = vmax.f32 %v3034_v9, %v3147_v30 }
 0x273   : > { %v3490_v2 = vmax.f32 %v3377_v55, 0.0  ;;  %v3259_v24 = vmax.f32 %v3033_v62, %v3146_v48  ;;  %v4492_v25 = vpop.f32.mrb[184].mxu0  ;;  %v4831_v3 = vpop.f32.mrb[184].mxu1 }
 0x274   : > { %3604 = vst [vmem:[%s5955_s29 + $0x220] sm:$0xff] %v3491_v36  ;;  %v3380_v47 = vadd.f32 %v6208_v16, %v3260_v37  ;;  %v3036_v6 = vmax.f32 %v6694_v26, %v4492_v25  ;;  %v3149_v27 = vmax.f32 %v6695_v7, %v4831_v3  ;;  %v1625_v14 = vpop.f32.mrb[185].mxu0  ;;  %v2755_v63 = vpop.f32.mrb[185].mxu1  ;;  %v6707_v36 = vld [vmem:[#allocation113_spill] sm:$0xff]  ;;  %v6708_v3 = vld [vmem:[#allocation106_spill] sm:$0xff]  ;;  %v6709_v26 = vld [vmem:[#allocation107_spill] sm:$0xff] }
 0x275   : > { %3603 = vst [vmem:[%s5955_s29 + $0x218] sm:$0xff] %v3490_v2  ;;  %v3379_v4 = vadd.f32 %v6208_v16, %v3259_v24  ;;  %v3035_v5 = vmax.f32 %v6696_v32, %v1625_v14  ;;  %v3148_v40 = vmax.f32 %v6697_v39, %v2755_v63  ;;  %v6710_v39 = vld [vmem:[#allocation116_spill] sm:$0xff] }
 0x276   : > { %v3493_v41 = vmax.f32 %v3380_v47, 0.0  ;;  %v3262_v20 = vmax.f32 %v3036_v6, %v3149_v27 }
 0x277   : > { %v3492_v44 = vmax.f32 %v3379_v4, 0.0  ;;  %v3261_v45 = vmax.f32 %v3035_v5, %v3148_v40  ;;  %v4495_v22 = vpop.f32.mrb[186].mxu0  ;;  %v4834_v23 = vpop.f32.mrb[186].mxu1 }
 0x278   : > { %3606 = vst [vmem:[%s5955_s29 + $0x230] sm:$0xff] %v3493_v41  ;;  %v3382_v21 = vadd.f32 %v6208_v16, %v3262_v20  ;;  %v3038_v49 = vmax.f32 %v6698_v60, %v4495_v22  ;;  %v3151_v35 = vmax.f32 %v6699_v34, %v4834_v23  ;;  %v1635_v15 = vpop.f32.mrb[187].mxu0  ;;  %v2765_v10 = vpop.f32.mrb[187].mxu1  ;;  %v6711_v41 = vld [vmem:[#allocation117_spill] sm:$0xff]  ;;  %v6712_v23 = vld [vmem:[#allocation110_spill] sm:$0xff]  ;;  %v6713_v60 = vld [vmem:[#allocation111_spill] sm:$0xff] }
 0x279   : > { %3605 = vst [vmem:[%s5955_s29 + $0x228] sm:$0xff] %v3492_v44  ;;  %v3381_v11 = vadd.f32 %v6208_v16, %v3261_v45  ;;  %v3037_v0 = vmax.f32 %v6700_v58, %v1635_v15  ;;  %v3150_v59 = vmax.f32 %v6701_v1, %v2765_v10  ;;  %v6714_v1 = vld [vmem:[#allocation120_spill] sm:$0xff] }
 0x27a   : > { %v3495_v61 = vmax.f32 %v3382_v21, 0.0  ;;  %v3264_v38 = vmax.f32 %v3038_v49, %v3151_v35 }
 0x27b   : > { %v3494_v56 = vmax.f32 %v3381_v11, 0.0  ;;  %v3263_v57 = vmax.f32 %v3037_v0, %v3150_v59  ;;  %v4498_v31 = vpop.f32.mrb[188].mxu0  ;;  %v4837_v17 = vpop.f32.mrb[188].mxu1 }
 0x27c   : > { %3608 = vst [vmem:[%s5955_s29 + $0x240] sm:$0xff] %v3495_v61  ;;  %v3384_v33 = vadd.f32 %v6208_v16, %v3264_v38  ;;  %v3040_v43 = vmax.f32 %v6702_v42, %v4498_v31  ;;  %v3153_v29 = vmax.f32 %v6703_v28, %v4837_v17  ;;  %v1645_v46 = vpop.f32.mrb[189].mxu0  ;;  %v2775_v50 = vpop.f32.mrb[189].mxu1  ;;  %v6715_v61 = vld [vmem:[#allocation121_spill] sm:$0xff]  ;;  %v6716_v17 = vld [vmem:[#allocation114_spill] sm:$0xff]  ;;  %v6717_v42 = vld [vmem:[#allocation115_spill] sm:$0xff] }
 0x27d   : > { %3607 = vst [vmem:[%s5955_s29 + $0x238] sm:$0xff] %v3494_v56  ;;  %v3383_v51 = vadd.f32 %v6208_v16, %v3263_v57  ;;  %v3039_v19 = vmax.f32 %v6704_v18, %v1645_v46  ;;  %v3152_v9 = vmax.f32 %v6705_v8, %v2775_v50  ;;  %v6718_v8 = vld [vmem:[#allocation124_spill] sm:$0xff] }
 0x27e   : > { %v3497_v12 = vmax.f32 %v3384_v33, 0.0  ;;  %v3266_v30 = vmax.f32 %v3040_v43, %v3153_v29 }
 0x27f   : > { %v3496_v13 = vmax.f32 %v3383_v51, 0.0  ;;  %v3265_v54 = vmax.f32 %v3039_v19, %v3152_v9  ;;  %v4501_v55 = vpop.f32.mrb[190].mxu0  ;;  %v4840_v52 = vpop.f32.mrb[190].mxu1 }
 0x280   : > { %3610 = vst [vmem:[%s5955_s29 + $0x250] sm:$0xff] %v3497_v12  ;;  %v3386_v62 = vadd.f32 %v6208_v16, %v3266_v30  ;;  %v3042_v48 = vmax.f32 %v6706_v53, %v4501_v55  ;;  %v3155_v37 = vmax.f32 %v6707_v36, %v4840_v52  ;;  %v1655_v2 = vpop.f32.mrb[191].mxu0  ;;  %v2785_v24 = vpop.f32.mrb[191].mxu1  ;;  %v6719_v12 = vld [vmem:[#allocation125_spill] sm:$0xff]  ;;  %v6720_v52 = vld [vmem:[#allocation118_spill] sm:$0xff]  ;;  %v6721_v53 = vld [vmem:[#allocation119_spill] sm:$0xff] }
 0x281   : > { %3609 = vst [vmem:[%s5955_s29 + $0x248] sm:$0xff] %v3496_v13  ;;  %v3385_v25 = vadd.f32 %v6208_v16, %v3265_v54  ;;  %v3041_v47 = vmax.f32 %v6708_v3, %v1655_v2  ;;  %v3154_v6 = vmax.f32 %v6709_v26, %v2785_v24  ;;  %v6722_v26 = vld [vmem:[#allocation128_spill] sm:$0xff] }
 0x282   : > { %v3499_v7 = vmax.f32 %v3386_v62, 0.0  ;;  %v3268_v27 = vmax.f32 %v3042_v48, %v3155_v37 }
 0x283   : > { %v3498_v14 = vmax.f32 %v3385_v25, 0.0  ;;  %v3267_v63 = vmax.f32 %v3041_v47, %v3154_v6  ;;  %v4504_v4 = vpop.f32.mrb[192].mxu0  ;;  %v4843_v32 = vpop.f32.mrb[192].mxu1 }
 0x284   : > { %3612 = vst [vmem:[%s5955_s29 + $0x260] sm:$0xff] %v3499_v7  ;;  %v3388_v5 = vadd.f32 %v6208_v16, %v3268_v27  ;;  %v3044_v40 = vmax.f32 %v6710_v39, %v4504_v4  ;;  %v3157_v20 = vmax.f32 %v6711_v41, %v4843_v32  ;;  %v1665_v44 = vpop.f32.mrb[193].mxu0  ;;  %v2795_v45 = vpop.f32.mrb[193].mxu1  ;;  %v6723_v7 = vld [vmem:[#allocation129_spill] sm:$0xff]  ;;  %v6724_v32 = vld [vmem:[#allocation122_spill] sm:$0xff]  ;;  %v6725_v39 = vld [vmem:[#allocation123_spill] sm:$0xff] }
 0x285   : > { %3611 = vst [vmem:[%s5955_s29 + $0x258] sm:$0xff] %v3498_v14  ;;  %v3387_v22 = vadd.f32 %v6208_v16, %v3267_v63  ;;  %v3043_v21 = vmax.f32 %v6712_v23, %v1665_v44  ;;  %v3156_v49 = vmax.f32 %v6713_v60, %v2795_v45  ;;  %v6726_v60 = vld [vmem:[#allocation132_spill] sm:$0xff] }
 0x286   : > { %v3501_v34 = vmax.f32 %v3388_v5, 0.0  ;;  %v3270_v35 = vmax.f32 %v3044_v40, %v3157_v20 }
 0x287   : > { %v3500_v15 = vmax.f32 %v3387_v22, 0.0  ;;  %v3269_v10 = vmax.f32 %v3043_v21, %v3156_v49  ;;  %v4507_v11 = vpop.f32.mrb[194].mxu0  ;;  %v4846_v58 = vpop.f32.mrb[194].mxu1 }
 0x288   : > { %3614 = vst [vmem:[%s5955_s29 + $0x270] sm:$0xff] %v3501_v34  ;;  %v3390_v0 = vadd.f32 %v6208_v16, %v3270_v35  ;;  %v3046_v59 = vmax.f32 %v6714_v1, %v4507_v11  ;;  %v3159_v38 = vmax.f32 %v6715_v61, %v4846_v58  ;;  %v1675_v56 = vpop.f32.mrb[195].mxu0  ;;  %v2805_v57 = vpop.f32.mrb[195].mxu1  ;;  %v6727_v34 = vld [vmem:[#allocation133_spill] sm:$0xff]  ;;  %v6728_v58 = vld [vmem:[#allocation126_spill] sm:$0xff]  ;;  %v6729_v1 = vld [vmem:[#allocation127_spill] sm:$0xff] }
 0x289   : > { %3613 = vst [vmem:[%s5955_s29 + $0x268] sm:$0xff] %v3500_v15  ;;  %v3389_v31 = vadd.f32 %v6208_v16, %v3269_v10  ;;  %v3045_v33 = vmax.f32 %v6716_v17, %v1675_v56  ;;  %v3158_v43 = vmax.f32 %v6717_v42, %v2805_v57  ;;  %v6730_v42 = vld [vmem:[#allocation136_spill] sm:$0xff] }
 0x28a   : > { %v3503_v28 = vmax.f32 %v3390_v0, 0.0  ;;  %v3272_v29 = vmax.f32 %v3046_v59, %v3159_v38 }
 0x28b   : > { %v3502_v46 = vmax.f32 %v3389_v31, 0.0  ;;  %v3271_v50 = vmax.f32 %v3045_v33, %v3158_v43  ;;  %v4510_v51 = vpop.f32.mrb[196].mxu0  ;;  %v4849_v18 = vpop.f32.mrb[196].mxu1 }
 0x28c   : > { %3616 = vst [vmem:[%s5955_s29 + $0x280] sm:$0xff] %v3503_v28  ;;  %v3392_v19 = vadd.f32 %v6208_v16, %v3272_v29  ;;  %v3048_v9 = vmax.f32 %v6718_v8, %v4510_v51  ;;  %v3161_v30 = vmax.f32 %v6719_v12, %v4849_v18  ;;  %v1685_v13 = vpop.f32.mrb[197].mxu0  ;;  %v2815_v54 = vpop.f32.mrb[197].mxu1  ;;  %v6731_v28 = vld [vmem:[#allocation137_spill] sm:$0xff]  ;;  %v6732_v18 = vld [vmem:[#allocation130_spill] sm:$0xff]  ;;  %v6733_v8 = vld [vmem:[#allocation131_spill] sm:$0xff] }
 0x28d   : > { %3615 = vst [vmem:[%s5955_s29 + $0x278] sm:$0xff] %v3502_v46  ;;  %v3391_v55 = vadd.f32 %v6208_v16, %v3271_v50  ;;  %v3047_v62 = vmax.f32 %v6720_v52, %v1685_v13  ;;  %v3160_v48 = vmax.f32 %v6721_v53, %v2815_v54  ;;  %v6734_v53 = vld [vmem:[#allocation140_spill] sm:$0xff] }
 0x28e   : > { %v3505_v36 = vmax.f32 %v3392_v19, 0.0  ;;  %v3274_v37 = vmax.f32 %v3048_v9, %v3161_v30 }
 0x28f   : > { %v3504_v2 = vmax.f32 %v3391_v55, 0.0  ;;  %v3273_v24 = vmax.f32 %v3047_v62, %v3160_v48  ;;  %v4513_v25 = vpop.f32.mrb[198].mxu0  ;;  %v4852_v3 = vpop.f32.mrb[198].mxu1 }
 0x290   : > { %3618 = vst [vmem:[%s5955_s29 + $0x290] sm:$0xff] %v3505_v36  ;;  %v3394_v47 = vadd.f32 %v6208_v16, %v3274_v37  ;;  %v3050_v6 = vmax.f32 %v6722_v26, %v4513_v25  ;;  %v3163_v27 = vmax.f32 %v6723_v7, %v4852_v3  ;;  %v1695_v14 = vpop.f32.mrb[199].mxu0  ;;  %v2825_v63 = vpop.f32.mrb[199].mxu1  ;;  %v6735_v36 = vld [vmem:[#allocation141_spill] sm:$0xff]  ;;  %v6736_v3 = vld [vmem:[#allocation134_spill] sm:$0xff]  ;;  %v6737_v26 = vld [vmem:[#allocation135_spill] sm:$0xff] }
 0x291   : > { %3617 = vst [vmem:[%s5955_s29 + $0x288] sm:$0xff] %v3504_v2  ;;  %v3393_v4 = vadd.f32 %v6208_v16, %v3273_v24  ;;  %v3049_v5 = vmax.f32 %v6724_v32, %v1695_v14  ;;  %v3162_v40 = vmax.f32 %v6725_v39, %v2825_v63  ;;  %v6738_v39 = vld [vmem:[#allocation144_spill] sm:$0xff] }
 0x292   : > { %v3507_v41 = vmax.f32 %v3394_v47, 0.0  ;;  %v3276_v20 = vmax.f32 %v3050_v6, %v3163_v27 }
 0x293   : > { %v3506_v44 = vmax.f32 %v3393_v4, 0.0  ;;  %v3275_v45 = vmax.f32 %v3049_v5, %v3162_v40  ;;  %v4516_v22 = vpop.f32.mrb[200].mxu0  ;;  %v4855_v23 = vpop.f32.mrb[200].mxu1 }
 0x294   : > { %3620 = vst [vmem:[%s5955_s29 + $0x2a0] sm:$0xff] %v3507_v41  ;;  %v3396_v21 = vadd.f32 %v6208_v16, %v3276_v20  ;;  %v3052_v49 = vmax.f32 %v6726_v60, %v4516_v22  ;;  %v3165_v35 = vmax.f32 %v6727_v34, %v4855_v23  ;;  %v1705_v15 = vpop.f32.mrb[201].mxu0  ;;  %v2835_v10 = vpop.f32.mrb[201].mxu1  ;;  %v6739_v41 = vld [vmem:[#allocation145_spill] sm:$0xff]  ;;  %v6740_v23 = vld [vmem:[#allocation138_spill] sm:$0xff]  ;;  %v6741_v60 = vld [vmem:[#allocation139_spill] sm:$0xff] }
 0x295   : > { %3619 = vst [vmem:[%s5955_s29 + $0x298] sm:$0xff] %v3506_v44  ;;  %v3395_v11 = vadd.f32 %v6208_v16, %v3275_v45  ;;  %v3051_v0 = vmax.f32 %v6728_v58, %v1705_v15  ;;  %v3164_v59 = vmax.f32 %v6729_v1, %v2835_v10  ;;  %v6742_v1 = vld [vmem:[#allocation148_spill] sm:$0xff] }
 0x296   : > { %v3509_v61 = vmax.f32 %v3396_v21, 0.0  ;;  %v3278_v38 = vmax.f32 %v3052_v49, %v3165_v35 }
 0x297   : > { %v3508_v56 = vmax.f32 %v3395_v11, 0.0  ;;  %v3277_v57 = vmax.f32 %v3051_v0, %v3164_v59  ;;  %v4519_v31 = vpop.f32.mrb[202].mxu0  ;;  %v4858_v17 = vpop.f32.mrb[202].mxu1 }
 0x298   : > { %3622 = vst [vmem:[%s5955_s29 + $0x2b0] sm:$0xff] %v3509_v61  ;;  %v3398_v33 = vadd.f32 %v6208_v16, %v3278_v38  ;;  %v3054_v43 = vmax.f32 %v6730_v42, %v4519_v31  ;;  %v3167_v29 = vmax.f32 %v6731_v28, %v4858_v17  ;;  %v1715_v46 = vpop.f32.mrb[203].mxu0  ;;  %v2845_v50 = vpop.f32.mrb[203].mxu1  ;;  %v6743_v61 = vld [vmem:[#allocation149_spill] sm:$0xff]  ;;  %v6744_v17 = vld [vmem:[#allocation142_spill] sm:$0xff]  ;;  %v6745_v42 = vld [vmem:[#allocation143_spill] sm:$0xff] }
 0x299   : > { %3621 = vst [vmem:[%s5955_s29 + $0x2a8] sm:$0xff] %v3508_v56  ;;  %v3397_v51 = vadd.f32 %v6208_v16, %v3277_v57  ;;  %v3053_v19 = vmax.f32 %v6732_v18, %v1715_v46  ;;  %v3166_v9 = vmax.f32 %v6733_v8, %v2845_v50  ;;  %v6746_v8 = vld [vmem:[#allocation152_spill] sm:$0xff] }
 0x29a   : > { %v3511_v12 = vmax.f32 %v3398_v33, 0.0  ;;  %v3280_v30 = vmax.f32 %v3054_v43, %v3167_v29 }
 0x29b   : > { %v3510_v13 = vmax.f32 %v3397_v51, 0.0  ;;  %v3279_v54 = vmax.f32 %v3053_v19, %v3166_v9  ;;  %v4522_v55 = vpop.f32.mrb[204].mxu0  ;;  %v4861_v52 = vpop.f32.mrb[204].mxu1 }
 0x29c   : > { %3624 = vst [vmem:[%s5955_s29 + $0x2c0] sm:$0xff] %v3511_v12  ;;  %v3400_v62 = vadd.f32 %v6208_v16, %v3280_v30  ;;  %v3056_v48 = vmax.f32 %v6734_v53, %v4522_v55  ;;  %v3169_v37 = vmax.f32 %v6735_v36, %v4861_v52  ;;  %v1725_v2 = vpop.f32.mrb[205].mxu0  ;;  %v2855_v24 = vpop.f32.mrb[205].mxu1  ;;  %v6747_v12 = vld [vmem:[#allocation153_spill] sm:$0xff]  ;;  %v6748_v52 = vld [vmem:[#allocation146_spill] sm:$0xff]  ;;  %v6749_v53 = vld [vmem:[#allocation147_spill] sm:$0xff] }
 0x29d   : > { %3623 = vst [vmem:[%s5955_s29 + $0x2b8] sm:$0xff] %v3510_v13  ;;  %v3399_v25 = vadd.f32 %v6208_v16, %v3279_v54  ;;  %v3055_v47 = vmax.f32 %v6736_v3, %v1725_v2  ;;  %v3168_v6 = vmax.f32 %v6737_v26, %v2855_v24  ;;  %v6750_v26 = vld [vmem:[#allocation156_spill] sm:$0xff] }
 0x29e   : > { %v3513_v7 = vmax.f32 %v3400_v62, 0.0  ;;  %v3282_v27 = vmax.f32 %v3056_v48, %v3169_v37 }
 0x29f   : > { %v3512_v14 = vmax.f32 %v3399_v25, 0.0  ;;  %v3281_v63 = vmax.f32 %v3055_v47, %v3168_v6  ;;  %v4525_v4 = vpop.f32.mrb[206].mxu0  ;;  %v4864_v32 = vpop.f32.mrb[206].mxu1 }
 0x2a0   : > { %3626 = vst [vmem:[%s5955_s29 + $0x2d0] sm:$0xff] %v3513_v7  ;;  %v3402_v5 = vadd.f32 %v6208_v16, %v3282_v27  ;;  %v3058_v40 = vmax.f32 %v6738_v39, %v4525_v4  ;;  %v3171_v20 = vmax.f32 %v6739_v41, %v4864_v32  ;;  %v1735_v44 = vpop.f32.mrb[207].mxu0  ;;  %v2865_v45 = vpop.f32.mrb[207].mxu1  ;;  %v6751_v7 = vld [vmem:[#allocation157_spill] sm:$0xff]  ;;  %v6752_v32 = vld [vmem:[#allocation150_spill] sm:$0xff]  ;;  %v6753_v39 = vld [vmem:[#allocation151_spill] sm:$0xff] }
 0x2a1   : > { %3625 = vst [vmem:[%s5955_s29 + $0x2c8] sm:$0xff] %v3512_v14  ;;  %v3401_v22 = vadd.f32 %v6208_v16, %v3281_v63  ;;  %v3057_v21 = vmax.f32 %v6740_v23, %v1735_v44  ;;  %v3170_v49 = vmax.f32 %v6741_v60, %v2865_v45  ;;  %v6754_v60 = vld [vmem:[#allocation160_spill] sm:$0xff] }
 0x2a2   : > { %v3515_v34 = vmax.f32 %v3402_v5, 0.0  ;;  %v3284_v35 = vmax.f32 %v3058_v40, %v3171_v20 }
 0x2a3   : > { %v3514_v15 = vmax.f32 %v3401_v22, 0.0  ;;  %v3283_v10 = vmax.f32 %v3057_v21, %v3170_v49  ;;  %v4528_v11 = vpop.f32.mrb[208].mxu0  ;;  %v4867_v58 = vpop.f32.mrb[208].mxu1 }
 0x2a4   : > { %3628 = vst [vmem:[%s5955_s29 + $0x2e0] sm:$0xff] %v3515_v34  ;;  %v3404_v0 = vadd.f32 %v6208_v16, %v3284_v35  ;;  %v3060_v59 = vmax.f32 %v6742_v1, %v4528_v11  ;;  %v3173_v38 = vmax.f32 %v6743_v61, %v4867_v58  ;;  %v1745_v56 = vpop.f32.mrb[209].mxu0  ;;  %v2875_v57 = vpop.f32.mrb[209].mxu1  ;;  %v6755_v34 = vld [vmem:[#allocation161_spill] sm:$0xff]  ;;  %v6756_v58 = vld [vmem:[#allocation154_spill] sm:$0xff]  ;;  %v6757_v1 = vld [vmem:[#allocation155_spill] sm:$0xff] }
 0x2a5   : > { %3627 = vst [vmem:[%s5955_s29 + $0x2d8] sm:$0xff] %v3514_v15  ;;  %v3403_v31 = vadd.f32 %v6208_v16, %v3283_v10  ;;  %v3059_v33 = vmax.f32 %v6744_v17, %v1745_v56  ;;  %v3172_v43 = vmax.f32 %v6745_v42, %v2875_v57  ;;  %v6758_v42 = vld [vmem:[#allocation164_spill] sm:$0xff] }
 0x2a6   : > { %v3517_v28 = vmax.f32 %v3404_v0, 0.0  ;;  %v3286_v29 = vmax.f32 %v3060_v59, %v3173_v38 }
 0x2a7   : > { %v3516_v46 = vmax.f32 %v3403_v31, 0.0  ;;  %v3285_v50 = vmax.f32 %v3059_v33, %v3172_v43  ;;  %v4531_v51 = vpop.f32.mrb[210].mxu0  ;;  %v4870_v18 = vpop.f32.mrb[210].mxu1 }
 0x2a8   : > { %3630 = vst [vmem:[%s5955_s29 + $0x2f0] sm:$0xff] %v3517_v28  ;;  %v3406_v19 = vadd.f32 %v6208_v16, %v3286_v29  ;;  %v3062_v9 = vmax.f32 %v6746_v8, %v4531_v51  ;;  %v3175_v30 = vmax.f32 %v6747_v12, %v4870_v18  ;;  %v1755_v13 = vpop.f32.mrb[211].mxu0  ;;  %v2885_v54 = vpop.f32.mrb[211].mxu1  ;;  %v6759_v28 = vld [vmem:[#allocation165_spill] sm:$0xff]  ;;  %v6760_v18 = vld [vmem:[#allocation158_spill] sm:$0xff]  ;;  %v6761_v8 = vld [vmem:[#allocation159_spill] sm:$0xff] }
 0x2a9   : > { %3629 = vst [vmem:[%s5955_s29 + $0x2e8] sm:$0xff] %v3516_v46  ;;  %v3405_v55 = vadd.f32 %v6208_v16, %v3285_v50  ;;  %v3061_v62 = vmax.f32 %v6748_v52, %v1755_v13  ;;  %v3174_v48 = vmax.f32 %v6749_v53, %v2885_v54  ;;  %v6762_v53 = vld [vmem:[#allocation168_spill] sm:$0xff] }
 0x2aa   : > { %v3519_v36 = vmax.f32 %v3406_v19, 0.0  ;;  %v3288_v37 = vmax.f32 %v3062_v9, %v3175_v30 }
 0x2ab   : > { %v3518_v2 = vmax.f32 %v3405_v55, 0.0  ;;  %v3287_v24 = vmax.f32 %v3061_v62, %v3174_v48  ;;  %v4534_v25 = vpop.f32.mrb[212].mxu0  ;;  %v4873_v3 = vpop.f32.mrb[212].mxu1 }
 0x2ac   : > { %3632 = vst [vmem:[%s5955_s29 + $0x300] sm:$0xff] %v3519_v36  ;;  %v3408_v47 = vadd.f32 %v6208_v16, %v3288_v37  ;;  %v3064_v6 = vmax.f32 %v6750_v26, %v4534_v25  ;;  %v3177_v27 = vmax.f32 %v6751_v7, %v4873_v3  ;;  %v1765_v14 = vpop.f32.mrb[213].mxu0  ;;  %v2895_v63 = vpop.f32.mrb[213].mxu1  ;;  %v6763_v36 = vld [vmem:[#allocation169_spill] sm:$0xff]  ;;  %v6764_v3 = vld [vmem:[#allocation162_spill] sm:$0xff]  ;;  %v6765_v26 = vld [vmem:[#allocation163_spill] sm:$0xff] }
 0x2ad   : > { %3631 = vst [vmem:[%s5955_s29 + $0x2f8] sm:$0xff] %v3518_v2  ;;  %v3407_v4 = vadd.f32 %v6208_v16, %v3287_v24  ;;  %v3063_v5 = vmax.f32 %v6752_v32, %v1765_v14  ;;  %v3176_v40 = vmax.f32 %v6753_v39, %v2895_v63  ;;  %v6766_v39 = vld [vmem:[#allocation172_spill] sm:$0xff] }
 0x2ae   : > { %v3521_v41 = vmax.f32 %v3408_v47, 0.0  ;;  %v3290_v20 = vmax.f32 %v3064_v6, %v3177_v27 }
 0x2af   : > { %v3520_v44 = vmax.f32 %v3407_v4, 0.0  ;;  %v3289_v45 = vmax.f32 %v3063_v5, %v3176_v40  ;;  %v4537_v22 = vpop.f32.mrb[214].mxu0  ;;  %v4876_v23 = vpop.f32.mrb[214].mxu1 }
 0x2b0   : > { %3634 = vst [vmem:[%s5955_s29 + $0x310] sm:$0xff] %v3521_v41  ;;  %v3410_v21 = vadd.f32 %v6208_v16, %v3290_v20  ;;  %v3066_v49 = vmax.f32 %v6754_v60, %v4537_v22  ;;  %v3179_v35 = vmax.f32 %v6755_v34, %v4876_v23  ;;  %v1775_v15 = vpop.f32.mrb[215].mxu0  ;;  %v2905_v10 = vpop.f32.mrb[215].mxu1  ;;  %v6767_v41 = vld [vmem:[#allocation173_spill] sm:$0xff]  ;;  %v6768_v23 = vld [vmem:[#allocation166_spill] sm:$0xff]  ;;  %v6769_v60 = vld [vmem:[#allocation167_spill] sm:$0xff] }
 0x2b1   : > { %3633 = vst [vmem:[%s5955_s29 + $0x308] sm:$0xff] %v3520_v44  ;;  %v3409_v11 = vadd.f32 %v6208_v16, %v3289_v45  ;;  %v3065_v0 = vmax.f32 %v6756_v58, %v1775_v15  ;;  %v3178_v59 = vmax.f32 %v6757_v1, %v2905_v10  ;;  %v6770_v1 = vld [vmem:[#allocation176_spill] sm:$0xff] }
 0x2b2   : > { %v3523_v61 = vmax.f32 %v3410_v21, 0.0  ;;  %v3292_v38 = vmax.f32 %v3066_v49, %v3179_v35 }
 0x2b3   : > { %v3522_v56 = vmax.f32 %v3409_v11, 0.0  ;;  %v3291_v57 = vmax.f32 %v3065_v0, %v3178_v59  ;;  %v4540_v31 = vpop.f32.mrb[216].mxu0  ;;  %v4879_v17 = vpop.f32.mrb[216].mxu1 }
 0x2b4   : > { %3636 = vst [vmem:[%s5955_s29 + $0x320] sm:$0xff] %v3523_v61  ;;  %v3412_v33 = vadd.f32 %v6208_v16, %v3292_v38  ;;  %v3068_v43 = vmax.f32 %v6758_v42, %v4540_v31  ;;  %v3181_v29 = vmax.f32 %v6759_v28, %v4879_v17  ;;  %v1785_v46 = vpop.f32.mrb[217].mxu0  ;;  %v2915_v50 = vpop.f32.mrb[217].mxu1  ;;  %v6771_v61 = vld [vmem:[#allocation177_spill] sm:$0xff]  ;;  %v6772_v17 = vld [vmem:[#allocation170_spill] sm:$0xff]  ;;  %v6773_v42 = vld [vmem:[#allocation171_spill] sm:$0xff] }
 0x2b5   : > { %3635 = vst [vmem:[%s5955_s29 + $0x318] sm:$0xff] %v3522_v56  ;;  %v3411_v51 = vadd.f32 %v6208_v16, %v3291_v57  ;;  %v3067_v19 = vmax.f32 %v6760_v18, %v1785_v46  ;;  %v3180_v9 = vmax.f32 %v6761_v8, %v2915_v50  ;;  %v6774_v8 = vld [vmem:[#allocation178_spill] sm:$0xff] }
 0x2b6   : > { %v3525_v12 = vmax.f32 %v3412_v33, 0.0  ;;  %v3294_v30 = vmax.f32 %v3068_v43, %v3181_v29 }
 0x2b7   : > { %v3524_v13 = vmax.f32 %v3411_v51, 0.0  ;;  %v3293_v54 = vmax.f32 %v3067_v19, %v3180_v9  ;;  %v4543_v55 = vpop.f32.mrb[218].mxu0  ;;  %v4882_v52 = vpop.f32.mrb[218].mxu1 }
 0x2b8   : > { %3638 = vst [vmem:[%s5955_s29 + $0x330] sm:$0xff] %v3525_v12  ;;  %v3414_v62 = vadd.f32 %v6208_v16, %v3294_v30  ;;  %v3070_v48 = vmax.f32 %v6762_v53, %v4543_v55  ;;  %v3183_v37 = vmax.f32 %v6763_v36, %v4882_v52  ;;  %v1795_v2 = vpop.f32.mrb[219].mxu0  ;;  %v2925_v24 = vpop.f32.mrb[219].mxu1  ;;  %v6775_v12 = vld [vmem:[#allocation179_spill] sm:$0xff]  ;;  %v6776_v52 = vld [vmem:[#allocation174_spill] sm:$0xff] }
 0x2b9   : > { %3637 = vst [vmem:[%s5955_s29 + $0x328] sm:$0xff] %v3524_v13  ;;  %v3413_v25 = vadd.f32 %v6208_v16, %v3293_v54  ;;  %v3069_v47 = vmax.f32 %v6764_v3, %v1795_v2  ;;  %v3182_v6 = vmax.f32 %v6765_v26, %v2925_v24  ;;  %v6777_v53 = vld [vmem:[#allocation175_spill] sm:$0xff] }
 0x2ba   : > { %v3527_v7 = vmax.f32 %v3414_v62, 0.0  ;;  %v3296_v27 = vmax.f32 %v3070_v48, %v3183_v37 }
 0x2bb   : > { %v3526_v14 = vmax.f32 %v3413_v25, 0.0  ;;  %v3295_v63 = vmax.f32 %v3069_v47, %v3182_v6  ;;  %v4546_v4 = vpop.f32.mrb[220].mxu0  ;;  %v4885_v32 = vpop.f32.mrb[220].mxu1 }
 0x2bc   : > { %3640 = vst [vmem:[%s5955_s29 + $0x340] sm:$0xff] %v3527_v7  ;;  %v3416_v5 = vadd.f32 %v6208_v16, %v3296_v27  ;;  %v3072_v40 = vmax.f32 %v6766_v39, %v4546_v4  ;;  %v3185_v20 = vmax.f32 %v6767_v41, %v4885_v32  ;;  %v1805_v44 = vpop.f32.mrb[221].mxu0  ;;  %v2935_v45 = vpop.f32.mrb[221].mxu1 }
 0x2bd   : > { %3639 = vst [vmem:[%s5955_s29 + $0x338] sm:$0xff] %v3526_v14  ;;  %v3415_v22 = vadd.f32 %v6208_v16, %v3295_v63  ;;  %v3071_v21 = vmax.f32 %v6768_v23, %v1805_v44  ;;  %v3184_v49 = vmax.f32 %v6769_v60, %v2935_v45 }
 0x2be   : > { %v3529_v34 = vmax.f32 %v3416_v5, 0.0  ;;  %v3298_v35 = vmax.f32 %v3072_v40, %v3185_v20 }
 0x2bf   : > { %v3528_v15 = vmax.f32 %v3415_v22, 0.0  ;;  %v3297_v10 = vmax.f32 %v3071_v21, %v3184_v49  ;;  %v4549_v11 = vpop.f32.mrb[222].mxu0 }
 0x2c0   : > { %v4888_v58 = vpop.f32.mrb[222].mxu1  ;;  %3642 = vst [vmem:[%s5955_s29 + $0x350] sm:$0xff] %v3529_v34  ;;  %v3418_v0 = vadd.f32 %v6208_v16, %v3298_v35  ;;  %v3074_v59 = vmax.f32 %v6770_v1, %v4549_v11  ;;  %v1815_v56 = vpop.f32.mrb[223].mxu0 }
 0x2c1   : > { %v3187_v38 = vmax.f32 %v6771_v61, %v4888_v58  ;;  %v2945_v57 = vpop.f32.mrb[223].mxu1  ;;  %3641 = vst [vmem:[%s5955_s29 + $0x348] sm:$0xff] %v3528_v15  ;;  %v3417_v31 = vadd.f32 %v6208_v16, %v3297_v10  ;;  %v3073_v33 = vmax.f32 %v6772_v17, %v1815_v56 }
 0x2c2   : > { %v3186_v43 = vmax.f32 %v6773_v42, %v2945_v57  ;;  %v3531_v28 = vmax.f32 %v3418_v0, 0.0 }
 0x2c3   : > { %v3300_v29 = vmax.f32 %v3074_v59, %v3187_v38  ;;  %v3530_v46 = vmax.f32 %v3417_v31, 0.0  ;;  %v4552_v51 = vpop.f32.mrb[224].mxu0 }
 0x2c4   : > { %v3299_v50 = vmax.f32 %v3073_v33, %v3186_v43  ;;  %v4891_v18 = vpop.f32.mrb[224].mxu1  ;;  %3644 = vst [vmem:[%s5955_s29 + $0x360] sm:$0xff] %v3531_v28  ;;  %v3076_v9 = vmax.f32 %v6774_v8, %v4552_v51  ;;  %v1825_v13 = vpop.f32.mrb[225].mxu0 }
 0x2c5   : > { %v3420_v19 = vadd.f32 %v6208_v16, %v3300_v29  ;;  %v3189_v30 = vmax.f32 %v6775_v12, %v4891_v18  ;;  %v2955_v54 = vpop.f32.mrb[225].mxu1  ;;  %3643 = vst [vmem:[%s5955_s29 + $0x358] sm:$0xff] %v3530_v46  ;;  %v3075_v62 = vmax.f32 %v6776_v52, %v1825_v13 }
 0x2c6   : > { %v3419_v55 = vadd.f32 %v6208_v16, %v3299_v50  ;;  %v3188_v48 = vmax.f32 %v6777_v53, %v2955_v54 }
 0x2c7   : > { %v3533_v36 = vmax.f32 %v3420_v19, 0.0  ;;  %v3302_v37 = vmax.f32 %v3076_v9, %v3189_v30 }
 0x2c8   : > { %v3532_v2 = vmax.f32 %v3419_v55, 0.0  ;;  %v3301_v24 = vmax.f32 %v3075_v62, %v3188_v48 }
 0x2c9   : > { %3646 = vst [vmem:[%s5955_s29 + $0x370] sm:$0xff] %v3533_v36  ;;  %v3422_v25 = vadd.f32 %v6208_v16, %v3302_v37 }
 0x2ca   : > { %3645 = vst [vmem:[%s5955_s29 + $0x368] sm:$0xff] %v3532_v2  ;;  %v3421_v3 = vadd.f32 %v6208_v16, %v3301_v24 }
 0x2cb   : > { %v3535_v47 = vmax.f32 %v3422_v25, 0.0 }
 0x2cc   : > { %v3534_v26 = vmax.f32 %v3421_v3, 0.0 }
 0x2cd   : > { %3648 = vst [vmem:[%s5955_s29 + $0x380] sm:$0xff] %v3535_v47 }
 0x2ce   : > { %3647 = vst [vmem:[%s5955_s29 + $0x378] sm:$0xff] %v3534_v26 }
 0x2cf PF: > { %s13_s12 = sadd.s32 1, %s4957_s12  }
 0x2d0   : > { %p10_p4 = scmp.ge.s32.totalorder %s13_s12, 4  }
 0x2d2   :  { %12 = sbr.rel (!%p10_p4) target bundleno = 1 (0x1), region = 62 }

// kernel: forward_pallas.4
= control target key start
LH: loop header
LB: loop body
LE: loop exit
PB: predicated region body
PF: predicated region fallthrough
CT: control target
= control target key end

     0   :  { %s2025_s12 = smov 0   ;;  %s2943_s0 = inlined_call_operand.vmem [shape: f32[2,704,512], index: 0, kind: input, shape index: {}]   ;;  %s2944_s1 = inlined_call_operand.vmem [shape: f32[512,128], index: 1, kind: input, shape index: {}]   ;;  %s2945_s2 = inlined_call_operand.vmem [shape: f32[1,128], index: 2, kind: input, shape index: {}]   ;;  %s2946_s3 = inlined_call_operand.vmem [shape: f32[2,176,128], index: 3, kind: output, shape index: {}]  }
   0x1 LB: > { %s1791_s13 = sadd.s32 4294967295, %s2002_s12   ;;  %p1795_p0 = scmp.ge.s32.totalorder %s2002_s12, 1  ;;  %s2002_s12 = sphi %s2025_s12, %s13_s12  }
   0x2   : > { %p137_p1 = scmp.lt.s32.totalorder %s2002_s12, 3 }
   0x4   : > { %p138_p2 = pnand %p1795_p0, %p137_p1 }
   0x6   : > { %141 = sbr.rel (%p138_p2) target bundleno = 651 (0x28b), region = 32 }
   0xd   : > { %v523_v0 = vld [vmem:[%s2944_s1] sm:$0xff]  ;;  %v524_v1 = vld [vmem:[%s2944_s1 + $0x8] sm:$0xff]  ;;  %v2004_v3 = vmov 0.0|0.0   ;;  %v525_v6 = vld [vmem:[%s2944_s1 + $0x10] sm:$0xff]  ;;  %p161_p3 = scmp.lt.s32.totalorder %s1791_s13, 1 }
   0xe   : > { %v555_v2 = vld [vmem:[%s2944_s1 + $0x100] sm:$0xff]  ;;  %1801 = vmatprep.subr.bf16.mxu1 %v2004_v3  ;;  %1849 = vmatprep.subr.bf16.mxu0 %v2004_v3  ;;  %v1802_v4 = vpack.c.bf16 %v524_v1, %v523_v0  ;;  %v556_v5 = vld [vmem:[%s2944_s1 + $0x108] sm:$0xff]  ;;  %v526_v7 = vld [vmem:[%s2944_s1 + $0x18] sm:$0xff] }
   0xf   : > { %v1850_v8 = vpack.c.bf16 %v556_v5, %v555_v2  ;;  %v557_v9 = vld [vmem:[%s2944_s1 + $0x110] sm:$0xff]  ;;  %v558_v10 = vld [vmem:[%s2944_s1 + $0x118] sm:$0xff]  ;;  %v1805_v11 = vpack.c.bf16 %v526_v7, %v525_v6  ;;  %v527_v13 = vld [vmem:[%s2944_s1 + $0x20] sm:$0xff]  ;;  %s3018_s13 = smov (!%p161_p3, %s1791_s13), 1 }
  0x10   : > { %1803 = vmatpush1.bf16.msra.mxu1 %v1802_v4  ;;  %v1853_v12 = vpack.c.bf16 %v558_v10, %v557_v9  ;;  %v528_v14 = vld [vmem:[%s2944_s1 + $0x28] sm:$0xff]  ;;  %v559_v15 = vld [vmem:[%s2944_s1 + $0x120] sm:$0xff]  ;;  %v529_v19 = vld [vmem:[%s2944_s1 + $0x30] sm:$0xff]  ;;  %s1985_s29 = smul.u32 2816, %s3018_s13 }
  0x11   : > { %1851 = vmatpush1.bf16.msra.mxu0 %v1850_v8  ;;  %1804 = vmatprep.subr.bf16.mxu1 %v2004_v3  ;;  %v560_v16 = vld [vmem:[%s2944_s1 + $0x128] sm:$0xff]  ;;  %v1808_v17 = vpack.c.bf16 %v528_v14, %v527_v13  ;;  %v530_v20 = vld [vmem:[%s2944_s1 + $0x38] sm:$0xff]  ;;  %v561_v21 = vld [vmem:[%s2944_s1 + $0x130] sm:$0xff] }
  0x12   : > { %1852 = vmatprep.subr.bf16.mxu0 %v2004_v3  ;;  %v1856_v18 = vpack.c.bf16 %v560_v16, %v559_v15  ;;  %v562_v22 = vld [vmem:[%s2944_s1 + $0x138] sm:$0xff]  ;;  %v1811_v23 = vpack.c.bf16 %v530_v20, %v529_v19  ;;  %v531_v25 = vld [vmem:[%s2944_s1 + $0x40] sm:$0xff]  ;;  %v532_v26 = vld [vmem:[%s2944_s1 + $0x48] sm:$0xff]  ;;  %s2125_s15 = scalar_lea.vmem %s2943_s0, %s1985_s29 }
  0x13   : > { %v1859_v24 = vpack.c.bf16 %v562_v22, %v561_v21  ;;  %v563_v27 = vld [vmem:[%s2944_s1 + $0x140] sm:$0xff]  ;;  %v564_v28 = vld [vmem:[%s2944_s1 + $0x148] sm:$0xff]  ;;  %v1814_v29 = vpack.c.bf16 %v532_v26, %v531_v25  ;;  %v533_v31 = vld [vmem:[%s2944_s1 + $0x50] sm:$0xff] }
  0x14   : > { %1806 = vmatpush1.bf16.msra.mxu1 %v1805_v11  ;;  %v1862_v30 = vpack.c.bf16 %v564_v28, %v563_v27  ;;  %v534_v32 = vld [vmem:[%s2944_s1 + $0x58] sm:$0xff]  ;;  %v565_v33 = vld [vmem:[%s2944_s1 + $0x150] sm:$0xff]  ;;  %v535_v37 = vld [vmem:[%s2944_s1 + $0x60] sm:$0xff] }
  0x15   : > { %1854 = vmatpush1.bf16.msra.mxu0 %v1853_v12  ;;  %1807 = vmatprep.subr.bf16.mxu1 %v2004_v3  ;;  %v566_v34 = vld [vmem:[%s2944_s1 + $0x158] sm:$0xff]  ;;  %v1817_v35 = vpack.c.bf16 %v534_v32, %v533_v31  ;;  %v536_v38 = vld [vmem:[%s2944_s1 + $0x68] sm:$0xff]  ;;  %v567_v39 = vld [vmem:[%s2944_s1 + $0x160] sm:$0xff] }
  0x16   : > { %1855 = vmatprep.subr.bf16.mxu0 %v2004_v3  ;;  %v1865_v36 = vpack.c.bf16 %v566_v34, %v565_v33  ;;  %v568_v40 = vld [vmem:[%s2944_s1 + $0x168] sm:$0xff]  ;;  %v174_v42 = vld [vmem:[%s2125_s15 + $0x18] sm:$0xff]  ;;  %v1820_v43 = vpack.c.bf16 %v536_v38, %v535_v37  ;;  %v537_v45 = vld [vmem:[%s2944_s1 + $0x70] sm:$0xff] }
  0x17   : > { %v172_v41 = vld [vmem:[%s2125_s15 + $0x8] sm:$0xff]  ;;  %1156 = vmatprep.mubr.f32.mxu0 %v174_v42  ;;  %v1868_v44 = vpack.c.bf16 %v568_v40, %v567_v39  ;;  %v538_v46 = vld [vmem:[%s2944_s1 + $0x78] sm:$0xff]  ;;  %v569_v47 = vld [vmem:[%s2944_s1 + $0x170] sm:$0xff] }
  0x18   : > { %1809 = vmatpush1.bf16.msra.mxu1 %v1808_v17  ;;  %651 = vmatprep.mubr.f32.mxu1 %v172_v41  ;;  %v570_v48 = vld [vmem:[%s2944_s1 + $0x178] sm:$0xff]  ;;  %v1823_v49 = vpack.c.bf16 %v538_v46, %v537_v45  ;;  %v539_v51 = vld [vmem:[%s2944_s1 + $0x80] sm:$0xff]  ;;  %v540_v52 = vld [vmem:[%s2944_s1 + $0x88] sm:$0xff] }
  0x19   : > { %1857 = vmatpush1.bf16.msra.mxu0 %v1856_v18  ;;  %1810 = vmatprep.subr.bf16.mxu1 %v2004_v3  ;;  %v1871_v50 = vpack.c.bf16 %v570_v48, %v569_v47  ;;  %v571_v53 = vld [vmem:[%s2944_s1 + $0x180] sm:$0xff]  ;;  %v572_v54 = vld [vmem:[%s2944_s1 + $0x188] sm:$0xff]  ;;  %v1826_v55 = vpack.c.bf16 %v540_v52, %v539_v51  ;;  %v541_v57 = vld [vmem:[%s2944_s1 + $0x90] sm:$0xff] }
  0x1a   : > { %1858 = vmatprep.subr.bf16.mxu0 %v2004_v3  ;;  %v1874_v56 = vpack.c.bf16 %v572_v54, %v571_v53  ;;  %v542_v58 = vld [vmem:[%s2944_s1 + $0x98] sm:$0xff]  ;;  %v573_v59 = vld [vmem:[%s2944_s1 + $0x190] sm:$0xff]  ;;  %v543_v63 = vld [vmem:[%s2944_s1 + $0xa0] sm:$0xff] }
  0x1b   : > { %v574_v60 = vld [vmem:[%s2944_s1 + $0x198] sm:$0xff]  ;;  %v1829_v61 = vpack.c.bf16 %v542_v58, %v541_v57  ;;  %v544_v0 = vld [vmem:[%s2944_s1 + $0xa8] sm:$0xff]  ;;  %v575_v1 = vld [vmem:[%s2944_s1 + $0x1a0] sm:$0xff] }
  0x1c   : > { %1812 = vmatpush1.bf16.msra.mxu1 %v1811_v23  ;;  %v1877_v62 = vpack.c.bf16 %v574_v60, %v573_v59  ;;  %v576_v2 = vld [vmem:[%s2944_s1 + $0x1a8] sm:$0xff]  ;;  %v1832_v4 = vpack.c.bf16 %v544_v0, %v543_v63  ;;  %v545_v6 = vld [vmem:[%s2944_s1 + $0xb0] sm:$0xff]  ;;  %v546_v7 = vld [vmem:[%s2944_s1 + $0xb8] sm:$0xff] }
  0x1d   : > { %1860 = vmatpush1.bf16.msra.mxu0 %v1859_v24  ;;  %1813 = vmatprep.subr.bf16.mxu1 %v2004_v3  ;;  %v1880_v5 = vpack.c.bf16 %v576_v2, %v575_v1  ;;  %v577_v8 = vld [vmem:[%s2944_s1 + $0x1b0] sm:$0xff]  ;;  %v578_v9 = vld [vmem:[%s2944_s1 + $0x1b8] sm:$0xff]  ;;  %v1835_v10 = vpack.c.bf16 %v546_v7, %v545_v6  ;;  %v547_v12 = vld [vmem:[%s2944_s1 + $0xc0] sm:$0xff] }
  0x1e   : > { %1861 = vmatprep.subr.bf16.mxu0 %v2004_v3  ;;  %v1883_v11 = vpack.c.bf16 %v578_v9, %v577_v8  ;;  %v548_v13 = vld [vmem:[%s2944_s1 + $0xc8] sm:$0xff]  ;;  %v579_v14 = vld [vmem:[%s2944_s1 + $0x1c0] sm:$0xff]  ;;  %v549_v18 = vld [vmem:[%s2944_s1 + $0xd0] sm:$0xff] }
  0x1f   : > { %v580_v15 = vld [vmem:[%s2944_s1 + $0x1c8] sm:$0xff]  ;;  %v1838_v16 = vpack.c.bf16 %v548_v13, %v547_v12  ;;  %v550_v19 = vld [vmem:[%s2944_s1 + $0xd8] sm:$0xff]  ;;  %v581_v20 = vld [vmem:[%s2944_s1 + $0x1d0] sm:$0xff] }
  0x20   : > { %1815 = vmatpush1.bf16.msra.mxu1 %v1814_v29  ;;  %v1886_v17 = vpack.c.bf16 %v580_v15, %v579_v14  ;;  %v582_v21 = vld [vmem:[%s2944_s1 + $0x1d8] sm:$0xff]  ;;  %v1841_v22 = vpack.c.bf16 %v550_v19, %v549_v18  ;;  %v551_v24 = vld [vmem:[%s2944_s1 + $0xe0] sm:$0xff]  ;;  %v552_v25 = vld [vmem:[%s2944_s1 + $0xe8] sm:$0xff] }
  0x21   : > { %1863 = vmatpush1.bf16.msra.mxu0 %v1862_v30  ;;  %1816 = vmatprep.subr.bf16.mxu1 %v2004_v3  ;;  %v1889_v23 = vpack.c.bf16 %v582_v21, %v581_v20  ;;  %v583_v26 = vld [vmem:[%s2944_s1 + $0x1e0] sm:$0xff]  ;;  %v584_v27 = vld [vmem:[%s2944_s1 + $0x1e8] sm:$0xff]  ;;  %v1844_v28 = vpack.c.bf16 %v552_v25, %v551_v24  ;;  %v553_v30 = vld [vmem:[%s2944_s1 + $0xf0] sm:$0xff] }
  0x22   : > { %1864 = vmatprep.subr.bf16.mxu0 %v2004_v3  ;;  %v1892_v29 = vpack.c.bf16 %v584_v27, %v583_v26  ;;  %v554_v31 = vld [vmem:[%s2944_s1 + $0xf8] sm:$0xff]  ;;  %v585_v32 = vld [vmem:[%s2944_s1 + $0x1f0] sm:$0xff]  ;;  %v176_v38 = vld [vmem:[%s2125_s15 + $0x28] sm:$0xff] }
  0x23   : > { %v586_v33 = vld [vmem:[%s2944_s1 + $0x1f8] sm:$0xff]  ;;  %v1847_v34 = vpack.c.bf16 %v554_v31, %v553_v30  ;;  %v173_v37 = vld [vmem:[%s2125_s15 + $0x10] sm:$0xff]  ;;  %v175_v40 = vld [vmem:[%s2125_s15 + $0x20] sm:$0xff] }
  0x24   : > { %1818 = vmatpush1.bf16.msra.mxu1 %v1817_v35  ;;  %v1895_v35 = vpack.c.bf16 %v586_v33, %v585_v32  ;;  %v178_v39 = vld [vmem:[%s2125_s15 + $0x38] sm:$0xff]  ;;  %v177_v41 = vld [vmem:[%s2125_s15 + $0x30] sm:$0xff]  ;;  %v180_v42 = vld [vmem:[%s2125_s15 + $0x48] sm:$0xff] }
  0x25   : > { %1866 = vmatpush1.bf16.msra.mxu0 %v1865_v36  ;;  %1819 = vmatprep.subr.bf16.mxu1 %v2004_v3  ;;  %v171_v36 = vld [vmem:[%s2125_s15] sm:$0xff]  ;;  %v184_v45 = vld [vmem:[%s2125_s15 + $0x68] sm:$0xff]  ;;  %v186_v46 = vld [vmem:[%s2125_s15 + $0x78] sm:$0xff] }
  0x26   : > { %1867 = vmatprep.subr.bf16.mxu0 %v2004_v3  ;;  %v183_v47 = vld [vmem:[%s2125_s15 + $0x60] sm:$0xff]  ;;  %v185_v48 = vld [vmem:[%s2125_s15 + $0x70] sm:$0xff]  ;;  %v192_v53 = vld [vmem:[%s2125_s15 + $0xa8] sm:$0xff] }
  0x27   : > { %v187_v51 = vld [vmem:[%s2125_s15 + $0x80] sm:$0xff]  ;;  %v189_v52 = vld [vmem:[%s2125_s15 + $0x90] sm:$0xff]  ;;  %v194_v54 = vld [vmem:[%s2125_s15 + $0xb8] sm:$0xff] }
  0x28   : > { %1821 = vmatpush1.bf16.msra.mxu1 %v1820_v43  ;;  %v179_v43 = vld [vmem:[%s2125_s15 + $0x40] sm:$0xff]  ;;  %v196_v57 = vld [vmem:[%s2125_s15 + $0xc8] sm:$0xff]  ;;  %v198_v58 = vld [vmem:[%s2125_s15 + $0xd8] sm:$0xff] }
  0x29   : > { %1869 = vmatpush1.bf16.msra.mxu0 %v1868_v44  ;;  %1822 = vmatprep.subr.bf16.mxu1 %v2004_v3  ;;  %v181_v44 = vld [vmem:[%s2125_s15 + $0x50] sm:$0xff]  ;;  %v195_v59 = vld [vmem:[%s2125_s15 + $0xc0] sm:$0xff]  ;;  %v204_v1 = vld [vmem:[%s2125_s15 + $0x108] sm:$0xff] }
  0x2a   : > { %1870 = vmatprep.subr.bf16.mxu0 %v2004_v3  ;;  %v197_v60 = vld [vmem:[%s2125_s15 + $0xd0] sm:$0xff]  ;;  %v199_v63 = vld [vmem:[%s2125_s15 + $0xe0] sm:$0xff]  ;;  %v206_v2 = vld [vmem:[%s2125_s15 + $0x118] sm:$0xff] }
  0x2b   : > { %v201_v0 = vld [vmem:[%s2125_s15 + $0xf0] sm:$0xff]  ;;  %v208_v6 = vld [vmem:[%s2125_s15 + $0x128] sm:$0xff]  ;;  %v210_v7 = vld [vmem:[%s2125_s15 + $0x138] sm:$0xff] }
  0x2c   : > { %1824 = vmatpush1.bf16.msra.mxu1 %v1823_v49  ;;  %v188_v49 = vld [vmem:[%s2125_s15 + $0x88] sm:$0xff]  ;;  %v207_v8 = vld [vmem:[%s2125_s15 + $0x120] sm:$0xff]  ;;  %v209_v9 = vld [vmem:[%s2125_s15 + $0x130] sm:$0xff] }
  0x2d   : > { %1872 = vmatpush1.bf16.msra.mxu0 %v1871_v50  ;;  %1825 = vmatprep.subr.bf16.mxu1 %v2004_v3  ;;  %v190_v50 = vld [vmem:[%s2125_s15 + $0x98] sm:$0xff]  ;;  %v211_v12 = vld [vmem:[%s2125_s15 + $0x140] sm:$0xff]  ;;  %v213_v13 = vld [vmem:[%s2125_s15 + $0x150] sm:$0xff] }
  0x2e   : > { %1873 = vmatprep.subr.bf16.mxu0 %v2004_v3  ;;  %v216_v14 = vld [vmem:[%s2125_s15 + $0x168] sm:$0xff]  ;;  %v218_v15 = vld [vmem:[%s2125_s15 + $0x178] sm:$0xff]  ;;  %v219_v20 = vld [vmem:[%s2125_s15 + $0x180] sm:$0xff] }
  0x2f   : > { %v220_v18 = vld [vmem:[%s2125_s15 + $0x188] sm:$0xff]  ;;  %v222_v19 = vld [vmem:[%s2125_s15 + $0x198] sm:$0xff]  ;;  %v221_v21 = vld [vmem:[%s2125_s15 + $0x190] sm:$0xff] }
  0x30   : > { %1827 = vmatpush1.bf16.msra.mxu1 %v1826_v55  ;;  %v191_v55 = vld [vmem:[%s2125_s15 + $0xa0] sm:$0xff]  ;;  %v225_v25 = vld [vmem:[%s2125_s15 + $0x1b0] sm:$0xff]  ;;  %v228_v26 = vld [vmem:[%s2125_s15 + $0x1c8] sm:$0xff] }
  0x31   : > { %1875 = vmatpush1.bf16.msra.mxu0 %v1874_v56  ;;  %1828 = vmatprep.subr.bf16.mxu1 %v2004_v3  ;;  %v193_v56 = vld [vmem:[%s2125_s15 + $0xb0] sm:$0xff]  ;;  %v223_v24 = vld [vmem:[%s2125_s15 + $0x1a0] sm:$0xff]  ;;  %v230_v27 = vld [vmem:[%s2125_s15 + $0x1d8] sm:$0xff] }
  0x32   : > { %1876 = vmatprep.subr.bf16.mxu0 %v2004_v3  ;;  %v232_v30 = vld [vmem:[%s2125_s15 + $0x1e8] sm:$0xff]  ;;  %v234_v31 = vld [vmem:[%s2125_s15 + $0x1f8] sm:$0xff]  ;;  %v231_v32 = vld [vmem:[%s2125_s15 + $0x1e0] sm:$0xff] }
  0x33   : > { %v233_v33 = vld [vmem:[%s2125_s15 + $0x1f0] sm:$0xff] }
  0x34   : > { %1830 = vmatpush1.bf16.msra.mxu1 %v1829_v61  ;;  %v200_v61 = vld [vmem:[%s2125_s15 + $0xe8] sm:$0xff] }
  0x35   : > { %1878 = vmatpush1.bf16.msra.mxu0 %v1877_v62  ;;  %1831 = vmatprep.subr.bf16.mxu1 %v2004_v3  ;;  %v202_v62 = vld [vmem:[%s2125_s15 + $0xf8] sm:$0xff] }
  0x36   : > { %1879 = vmatprep.subr.bf16.mxu0 %v2004_v3 }
  0x38   : > { %1833 = vmatpush1.bf16.msra.mxu1 %v1832_v4  ;;  %v203_v4 = vld [vmem:[%s2125_s15 + $0x100] sm:$0xff] }
  0x39   : > { %1881 = vmatpush1.bf16.msra.mxu0 %v1880_v5  ;;  %1834 = vmatprep.subr.bf16.mxu1 %v2004_v3  ;;  %v205_v5 = vld [vmem:[%s2125_s15 + $0x110] sm:$0xff] }
  0x3a   : > { %1882 = vmatprep.subr.bf16.mxu0 %v2004_v3 }
  0x3c   : > { %1836 = vmatpush1.bf16.msra.mxu1 %v1835_v10  ;;  %v212_v10 = vld [vmem:[%s2125_s15 + $0x148] sm:$0xff] }
  0x3d   : > { %1884 = vmatpush1.bf16.msra.mxu0 %v1883_v11  ;;  %1837 = vmatprep.subr.bf16.mxu1 %v2004_v3  ;;  %v214_v11 = vld [vmem:[%s2125_s15 + $0x158] sm:$0xff] }
  0x3e   : > { %1885 = vmatprep.subr.bf16.mxu0 %v2004_v3 }
  0x40   : > { %1839 = vmatpush1.bf16.msra.mxu1 %v1838_v16  ;;  %v215_v16 = vld [vmem:[%s2125_s15 + $0x160] sm:$0xff] }
  0x41   : > { %1887 = vmatpush1.bf16.msra.mxu0 %v1886_v17  ;;  %1840 = vmatprep.subr.bf16.mxu1 %v2004_v3  ;;  %v217_v17 = vld [vmem:[%s2125_s15 + $0x170] sm:$0xff] }
  0x42   : > { %1888 = vmatprep.subr.bf16.mxu0 %v2004_v3 }
  0x44   : > { %1842 = vmatpush1.bf16.msra.mxu1 %v1841_v22  ;;  %v224_v22 = vld [vmem:[%s2125_s15 + $0x1a8] sm:$0xff] }
  0x45   : > { %1890 = vmatpush1.bf16.msra.mxu0 %v1889_v23  ;;  %1843 = vmatprep.subr.bf16.mxu1 %v2004_v3  ;;  %v226_v23 = vld [vmem:[%s2125_s15 + $0x1b8] sm:$0xff] }
  0x46   : > { %1891 = vmatprep.subr.bf16.mxu0 %v2004_v3 }
  0x48   : > { %1845 = vmatpush1.bf16.msra.mxu1 %v1844_v28  ;;  %v227_v28 = vld [vmem:[%s2125_s15 + $0x1c0] sm:$0xff] }
  0x49   : > { %1893 = vmatpush1.bf16.msra.mxu0 %v1892_v29  ;;  %1846 = vmatprep.subr.bf16.mxu1 %v2004_v3  ;;  %v229_v29 = vld [vmem:[%s2125_s15 + $0x1d0] sm:$0xff] }
  0x4a   : > { %1894 = vmatprep.subr.bf16.mxu0 %v2004_v3  ;;  %v182_v3 = vld [vmem:[%s2125_s15 + $0x58] sm:$0xff] }
  0x4c   : > { %1848 = vmatpush1.bf16.msra.mxu1 %v1847_v34  ;;  %v236_v34 = vld [vmem:[%s2125_s15 + $0x208] sm:$0xff] }
  0x4d   : > { %1896 = vmatpush1.bf16.msra.mxu0 %v1895_v35  ;;  %v238_v35 = vld [vmem:[%s2125_s15 + $0x218] sm:$0xff] }
  0x4f   : > { %652 = vmatmul.mubr.f32.vlgmr.msra.gmra.mrb[0].mxu1 %v171_v36  ;;  %v235_v36 = vld [vmem:[%s2125_s15 + $0x200] sm:$0xff] }
  0x50   : > { %1157 = vmatmul.mubr.f32.vlgmr.msra.gmra.mrb[0].mxu0 %v173_v37  ;;  %656 = vmatprep.mubr.f32.mxu1 %v176_v38  ;;  %v237_v37 = vld [vmem:[%s2125_s15 + $0x210] sm:$0xff]  ;;  %v240_v38 = vld [vmem:[%s2125_s15 + $0x228] sm:$0xff] }
  0x51   : > { %1161 = vmatprep.mubr.f32.mxu0 %v178_v39  ;;  %v242_v39 = vld [vmem:[%s2125_s15 + $0x238] sm:$0xff] }
  0x53   : > { %657 = vmatmul.mubr.f32.gmra.mrb[2].mxu1 %v175_v40  ;;  %v239_v40 = vld [vmem:[%s2125_s15 + $0x220] sm:$0xff] }
  0x54   : > { %1162 = vmatmul.mubr.f32.gmra.mrb[2].mxu0 %v177_v41  ;;  %661 = vmatprep.mubr.f32.mxu1 %v180_v42  ;;  %v241_v41 = vld [vmem:[%s2125_s15 + $0x230] sm:$0xff]  ;;  %v244_v42 = vld [vmem:[%s2125_s15 + $0x248] sm:$0xff] }
  0x55   : > { %1166 = vmatprep.mubr.f32.mxu0 %v182_v3  ;;  %v246_v3 = vld [vmem:[%s2125_s15 + $0x258] sm:$0xff] }
  0x57   : > { %662 = vmatmul.mubr.f32.gmra.mrb[4].mxu1 %v179_v43  ;;  %v243_v43 = vld [vmem:[%s2125_s15 + $0x240] sm:$0xff] }
  0x58   : > { %1167 = vmatmul.mubr.f32.gmra.mrb[4].mxu0 %v181_v44  ;;  %666 = vmatprep.mubr.f32.mxu1 %v184_v45  ;;  %v245_v44 = vld [vmem:[%s2125_s15 + $0x250] sm:$0xff]  ;;  %v248_v45 = vld [vmem:[%s2125_s15 + $0x268] sm:$0xff] }
  0x59   : > { %1171 = vmatprep.mubr.f32.mxu0 %v186_v46  ;;  %v250_v46 = vld [vmem:[%s2125_s15 + $0x278] sm:$0xff] }
  0x5b   : > { %667 = vmatmul.mubr.f32.gmra.mrb[6].mxu1 %v183_v47  ;;  %v247_v47 = vld [vmem:[%s2125_s15 + $0x260] sm:$0xff] }
  0x5c   : > { %1172 = vmatmul.mubr.f32.gmra.mrb[6].mxu0 %v185_v48  ;;  %671 = vmatprep.mubr.f32.mxu1 %v188_v49  ;;  %v249_v48 = vld [vmem:[%s2125_s15 + $0x270] sm:$0xff]  ;;  %v252_v49 = vld [vmem:[%s2125_s15 + $0x288] sm:$0xff] }
  0x5d   : > { %1176 = vmatprep.mubr.f32.mxu0 %v190_v50  ;;  %v254_v50 = vld [vmem:[%s2125_s15 + $0x298] sm:$0xff] }
  0x5f   : > { %672 = vmatmul.mubr.f32.gmra.mrb[8].mxu1 %v187_v51  ;;  %v251_v51 = vld [vmem:[%s2125_s15 + $0x280] sm:$0xff] }
  0x60   : > { %1177 = vmatmul.mubr.f32.gmra.mrb[8].mxu0 %v189_v52  ;;  %676 = vmatprep.mubr.f32.mxu1 %v192_v53  ;;  %v253_v52 = vld [vmem:[%s2125_s15 + $0x290] sm:$0xff]  ;;  %v256_v53 = vld [vmem:[%s2125_s15 + $0x2a8] sm:$0xff] }
  0x61   : > { %1181 = vmatprep.mubr.f32.mxu0 %v194_v54  ;;  %v258_v54 = vld [vmem:[%s2125_s15 + $0x2b8] sm:$0xff] }
  0x63   : > { %677 = vmatmul.mubr.f32.gmra.mrb[10].mxu1 %v191_v55  ;;  %v255_v55 = vld [vmem:[%s2125_s15 + $0x2a0] sm:$0xff] }
  0x64   : > { %1182 = vmatmul.mubr.f32.gmra.mrb[10].mxu0 %v193_v56  ;;  %681 = vmatprep.mubr.f32.mxu1 %v196_v57  ;;  %v257_v56 = vld [vmem:[%s2125_s15 + $0x2b0] sm:$0xff]  ;;  %v260_v57 = vld [vmem:[%s2125_s15 + $0x2c8] sm:$0xff] }
  0x65   : > { %1186 = vmatprep.mubr.f32.mxu0 %v198_v58  ;;  %v262_v58 = vld [vmem:[%s2125_s15 + $0x2d8] sm:$0xff] }
  0x67   : > { %682 = vmatmul.mubr.f32.gmra.mrb[12].mxu1 %v195_v59  ;;  %v259_v59 = vld [vmem:[%s2125_s15 + $0x2c0] sm:$0xff] }
  0x68   : > { %1187 = vmatmul.mubr.f32.gmra.mrb[12].mxu0 %v197_v60  ;;  %686 = vmatprep.mubr.f32.mxu1 %v200_v61  ;;  %v261_v60 = vld [vmem:[%s2125_s15 + $0x2d0] sm:$0xff]  ;;  %v264_v61 = vld [vmem:[%s2125_s15 + $0x2e8] sm:$0xff] }
  0x69   : > { %1191 = vmatprep.mubr.f32.mxu0 %v202_v62  ;;  %v266_v62 = vld [vmem:[%s2125_s15 + $0x2f8] sm:$0xff] }
  0x6b   : > { %687 = vmatmul.mubr.f32.gmra.mrb[14].mxu1 %v199_v63  ;;  %v263_v63 = vld [vmem:[%s2125_s15 + $0x2e0] sm:$0xff] }
  0x6c   : > { %1192 = vmatmul.mubr.f32.gmra.mrb[14].mxu0 %v201_v0  ;;  %691 = vmatprep.mubr.f32.mxu1 %v204_v1  ;;  %v265_v0 = vld [vmem:[%s2125_s15 + $0x2f0] sm:$0xff]  ;;  %v268_v1 = vld [vmem:[%s2125_s15 + $0x308] sm:$0xff] }
  0x6d   : > { %1196 = vmatprep.mubr.f32.mxu0 %v206_v2  ;;  %v270_v2 = vld [vmem:[%s2125_s15 + $0x318] sm:$0xff] }
  0x6f   : > { %692 = vmatmul.mubr.f32.gmra.mrb[16].mxu1 %v203_v4  ;;  %v267_v4 = vld [vmem:[%s2125_s15 + $0x300] sm:$0xff] }
  0x70   : > { %1197 = vmatmul.mubr.f32.gmra.mrb[16].mxu0 %v205_v5  ;;  %696 = vmatprep.mubr.f32.mxu1 %v208_v6  ;;  %v269_v5 = vld [vmem:[%s2125_s15 + $0x310] sm:$0xff]  ;;  %v272_v6 = vld [vmem:[%s2125_s15 + $0x328] sm:$0xff] }
  0x71   : > { %1201 = vmatprep.mubr.f32.mxu0 %v210_v7  ;;  %v274_v7 = vld [vmem:[%s2125_s15 + $0x338] sm:$0xff] }
  0x73   : > { %697 = vmatmul.mubr.f32.gmra.mrb[18].mxu1 %v207_v8  ;;  %v271_v8 = vld [vmem:[%s2125_s15 + $0x320] sm:$0xff] }
  0x74   : > { %1202 = vmatmul.mubr.f32.gmra.mrb[18].mxu0 %v209_v9  ;;  %701 = vmatprep.mubr.f32.mxu1 %v212_v10  ;;  %v273_v9 = vld [vmem:[%s2125_s15 + $0x330] sm:$0xff]  ;;  %v276_v10 = vld [vmem:[%s2125_s15 + $0x348] sm:$0xff] }
  0x75   : > { %1206 = vmatprep.mubr.f32.mxu0 %v214_v11  ;;  %v278_v11 = vld [vmem:[%s2125_s15 + $0x358] sm:$0xff] }
  0x77   : > { %702 = vmatmul.mubr.f32.gmra.mrb[20].mxu1 %v211_v12  ;;  %v275_v12 = vld [vmem:[%s2125_s15 + $0x340] sm:$0xff] }
  0x78   : > { %1207 = vmatmul.mubr.f32.gmra.mrb[20].mxu0 %v213_v13  ;;  %706 = vmatprep.mubr.f32.mxu1 %v216_v14  ;;  %v277_v13 = vld [vmem:[%s2125_s15 + $0x350] sm:$0xff]  ;;  %v280_v14 = vld [vmem:[%s2125_s15 + $0x368] sm:$0xff] }
  0x79   : > { %1211 = vmatprep.mubr.f32.mxu0 %v218_v15  ;;  %v282_v15 = vld [vmem:[%s2125_s15 + $0x378] sm:$0xff] }
  0x7b   : > { %707 = vmatmul.mubr.f32.gmra.mrb[22].mxu1 %v215_v16  ;;  %v279_v16 = vld [vmem:[%s2125_s15 + $0x360] sm:$0xff] }
  0x7c   : > { %1212 = vmatmul.mubr.f32.gmra.mrb[22].mxu0 %v217_v17  ;;  %711 = vmatprep.mubr.f32.mxu1 %v220_v18  ;;  %v281_v17 = vld [vmem:[%s2125_s15 + $0x370] sm:$0xff]  ;;  %v284_v18 = vld [vmem:[%s2125_s15 + $0x388] sm:$0xff] }
  0x7d   : > { %1216 = vmatprep.mubr.f32.mxu0 %v222_v19  ;;  %v286_v19 = vld [vmem:[%s2125_s15 + $0x398] sm:$0xff] }
  0x7f   : > { %712 = vmatmul.mubr.f32.gmra.mrb[24].mxu1 %v219_v20  ;;  %v283_v20 = vld [vmem:[%s2125_s15 + $0x380] sm:$0xff] }
  0x80   : > { %1217 = vmatmul.mubr.f32.gmra.mrb[24].mxu0 %v221_v21  ;;  %716 = vmatprep.mubr.f32.mxu1 %v224_v22  ;;  %v285_v21 = vld [vmem:[%s2125_s15 + $0x390] sm:$0xff]  ;;  %v288_v22 = vld [vmem:[%s2125_s15 + $0x3a8] sm:$0xff] }
  0x81   : > { %1221 = vmatprep.mubr.f32.mxu0 %v226_v23  ;;  %v290_v23 = vld [vmem:[%s2125_s15 + $0x3b8] sm:$0xff] }
  0x83   : > { %717 = vmatmul.mubr.f32.gmra.mrb[26].mxu1 %v223_v24  ;;  %v287_v24 = vld [vmem:[%s2125_s15 + $0x3a0] sm:$0xff] }
  0x84   : > { %1222 = vmatmul.mubr.f32.gmra.mrb[26].mxu0 %v225_v25  ;;  %721 = vmatprep.mubr.f32.mxu1 %v228_v26  ;;  %v289_v25 = vld [vmem:[%s2125_s15 + $0x3b0] sm:$0xff]  ;;  %v292_v26 = vld [vmem:[%s2125_s15 + $0x3c8] sm:$0xff] }
  0x85   : > { %1226 = vmatprep.mubr.f32.mxu0 %v230_v27  ;;  %v294_v27 = vld [vmem:[%s2125_s15 + $0x3d8] sm:$0xff] }
  0x87   : > { %722 = vmatmul.mubr.f32.gmra.mrb[28].mxu1 %v227_v28  ;;  %v291_v28 = vld [vmem:[%s2125_s15 + $0x3c0] sm:$0xff] }
  0x88   : > { %1227 = vmatmul.mubr.f32.gmra.mrb[28].mxu0 %v229_v29  ;;  %726 = vmatprep.mubr.f32.mxu1 %v232_v30  ;;  %v293_v29 = vld [vmem:[%s2125_s15 + $0x3d0] sm:$0xff]  ;;  %v296_v30 = vld [vmem:[%s2125_s15 + $0x3e8] sm:$0xff] }
  0x89   : > { %1231 = vmatprep.mubr.f32.mxu0 %v234_v31  ;;  %v298_v31 = vld [vmem:[%s2125_s15 + $0x3f8] sm:$0xff] }
  0x8b   : > { %727 = vmatmul.mubr.f32.gmra.mrb[30].mxu1 %v231_v32  ;;  %v295_v32 = vld [vmem:[%s2125_s15 + $0x3e0] sm:$0xff] }
  0x8c   : > { %1232 = vmatmul.mubr.f32.gmra.mrb[30].mxu0 %v233_v33  ;;  %731 = vmatprep.mubr.f32.mxu1 %v236_v34  ;;  %v297_v33 = vld [vmem:[%s2125_s15 + $0x3f0] sm:$0xff]  ;;  %v300_v34 = vld [vmem:[%s2125_s15 + $0x408] sm:$0xff] }
  0x8d   : > { %1236 = vmatprep.mubr.f32.mxu0 %v238_v35  ;;  %v302_v35 = vld [vmem:[%s2125_s15 + $0x418] sm:$0xff] }
  0x8f   : > { %732 = vmatmul.mubr.f32.gmra.mrb[32].mxu1 %v235_v36  ;;  %v299_v36 = vld [vmem:[%s2125_s15 + $0x400] sm:$0xff] }
  0x90   : > { %1237 = vmatmul.mubr.f32.gmra.mrb[32].mxu0 %v237_v37  ;;  %736 = vmatprep.mubr.f32.mxu1 %v240_v38  ;;  %v301_v37 = vld [vmem:[%s2125_s15 + $0x410] sm:$0xff]  ;;  %v304_v38 = vld [vmem:[%s2125_s15 + $0x428] sm:$0xff] }
  0x91   : > { %1241 = vmatprep.mubr.f32.mxu0 %v242_v39  ;;  %v306_v39 = vld [vmem:[%s2125_s15 + $0x438] sm:$0xff] }
  0x93   : > { %737 = vmatmul.mubr.f32.gmra.mrb[34].mxu1 %v239_v40  ;;  %v303_v40 = vld [vmem:[%s2125_s15 + $0x420] sm:$0xff] }
  0x94   : > { %1242 = vmatmul.mubr.f32.gmra.mrb[34].mxu0 %v241_v41  ;;  %741 = vmatprep.mubr.f32.mxu1 %v244_v42  ;;  %v305_v41 = vld [vmem:[%s2125_s15 + $0x430] sm:$0xff]  ;;  %v308_v42 = vld [vmem:[%s2125_s15 + $0x448] sm:$0xff] }
  0x95   : > { %1246 = vmatprep.mubr.f32.mxu0 %v246_v3  ;;  %v310_v3 = vld [vmem:[%s2125_s15 + $0x458] sm:$0xff] }
  0x97   : > { %742 = vmatmul.mubr.f32.gmra.mrb[36].mxu1 %v243_v43  ;;  %v307_v43 = vld [vmem:[%s2125_s15 + $0x440] sm:$0xff] }
  0x98   : > { %1247 = vmatmul.mubr.f32.gmra.mrb[36].mxu0 %v245_v44  ;;  %746 = vmatprep.mubr.f32.mxu1 %v248_v45  ;;  %v309_v44 = vld [vmem:[%s2125_s15 + $0x450] sm:$0xff]  ;;  %v312_v45 = vld [vmem:[%s2125_s15 + $0x468] sm:$0xff] }
  0x99   : > { %1251 = vmatprep.mubr.f32.mxu0 %v250_v46  ;;  %v314_v46 = vld [vmem:[%s2125_s15 + $0x478] sm:$0xff] }
  0x9b   : > { %747 = vmatmul.mubr.f32.gmra.mrb[38].mxu1 %v247_v47  ;;  %v311_v47 = vld [vmem:[%s2125_s15 + $0x460] sm:$0xff] }
  0x9c   : > { %1252 = vmatmul.mubr.f32.gmra.mrb[38].mxu0 %v249_v48  ;;  %751 = vmatprep.mubr.f32.mxu1 %v252_v49  ;;  %v313_v48 = vld [vmem:[%s2125_s15 + $0x470] sm:$0xff]  ;;  %v316_v49 = vld [vmem:[%s2125_s15 + $0x488] sm:$0xff] }
  0x9d   : > { %1256 = vmatprep.mubr.f32.mxu0 %v254_v50  ;;  %v318_v50 = vld [vmem:[%s2125_s15 + $0x498] sm:$0xff] }
  0x9f   : > { %752 = vmatmul.mubr.f32.gmra.mrb[40].mxu1 %v251_v51  ;;  %v315_v51 = vld [vmem:[%s2125_s15 + $0x480] sm:$0xff] }
  0xa0   : > { %1257 = vmatmul.mubr.f32.gmra.mrb[40].mxu0 %v253_v52  ;;  %756 = vmatprep.mubr.f32.mxu1 %v256_v53  ;;  %v317_v52 = vld [vmem:[%s2125_s15 + $0x490] sm:$0xff]  ;;  %v320_v53 = vld [vmem:[%s2125_s15 + $0x4a8] sm:$0xff] }
  0xa1   : > { %1261 = vmatprep.mubr.f32.mxu0 %v258_v54  ;;  %v322_v54 = vld [vmem:[%s2125_s15 + $0x4b8] sm:$0xff] }
  0xa3   : > { %757 = vmatmul.mubr.f32.gmra.mrb[42].mxu1 %v255_v55  ;;  %v319_v55 = vld [vmem:[%s2125_s15 + $0x4a0] sm:$0xff] }
  0xa4   : > { %1262 = vmatmul.mubr.f32.gmra.mrb[42].mxu0 %v257_v56  ;;  %761 = vmatprep.mubr.f32.mxu1 %v260_v57  ;;  %v321_v56 = vld [vmem:[%s2125_s15 + $0x4b0] sm:$0xff]  ;;  %v324_v57 = vld [vmem:[%s2125_s15 + $0x4c8] sm:$0xff] }
  0xa5   : > { %1266 = vmatprep.mubr.f32.mxu0 %v262_v58  ;;  %v326_v58 = vld [vmem:[%s2125_s15 + $0x4d8] sm:$0xff] }
  0xa7   : > { %762 = vmatmul.mubr.f32.gmra.mrb[44].mxu1 %v259_v59  ;;  %v323_v59 = vld [vmem:[%s2125_s15 + $0x4c0] sm:$0xff] }
  0xa8   : > { %1267 = vmatmul.mubr.f32.gmra.mrb[44].mxu0 %v261_v60  ;;  %766 = vmatprep.mubr.f32.mxu1 %v264_v61  ;;  %v325_v60 = vld [vmem:[%s2125_s15 + $0x4d0] sm:$0xff]  ;;  %v328_v61 = vld [vmem:[%s2125_s15 + $0x4e8] sm:$0xff] }
  0xa9   : > { %1271 = vmatprep.mubr.f32.mxu0 %v266_v62  ;;  %v330_v62 = vld [vmem:[%s2125_s15 + $0x4f8] sm:$0xff] }
  0xab   : > { %767 = vmatmul.mubr.f32.gmra.mrb[46].mxu1 %v263_v63  ;;  %v327_v63 = vld [vmem:[%s2125_s15 + $0x4e0] sm:$0xff] }
  0xac   : > { %1272 = vmatmul.mubr.f32.gmra.mrb[46].mxu0 %v265_v0  ;;  %771 = vmatprep.mubr.f32.mxu1 %v268_v1  ;;  %v329_v0 = vld [vmem:[%s2125_s15 + $0x4f0] sm:$0xff]  ;;  %v332_v1 = vld [vmem:[%s2125_s15 + $0x508] sm:$0xff] }
  0xad   : > { %1276 = vmatprep.mubr.f32.mxu0 %v270_v2  ;;  %v334_v2 = vld [vmem:[%s2125_s15 + $0x518] sm:$0xff] }
  0xaf   : > { %772 = vmatmul.mubr.f32.gmra.mrb[48].mxu1 %v267_v4  ;;  %v331_v4 = vld [vmem:[%s2125_s15 + $0x500] sm:$0xff] }
  0xb0   : > { %1277 = vmatmul.mubr.f32.gmra.mrb[48].mxu0 %v269_v5  ;;  %776 = vmatprep.mubr.f32.mxu1 %v272_v6  ;;  %v333_v5 = vld [vmem:[%s2125_s15 + $0x510] sm:$0xff]  ;;  %v336_v6 = vld [vmem:[%s2125_s15 + $0x528] sm:$0xff] }
  0xb1   : > { %1281 = vmatprep.mubr.f32.mxu0 %v274_v7  ;;  %v338_v7 = vld [vmem:[%s2125_s15 + $0x538] sm:$0xff] }
  0xb3   : > { %777 = vmatmul.mubr.f32.gmra.mrb[50].mxu1 %v271_v8  ;;  %v335_v8 = vld [vmem:[%s2125_s15 + $0x520] sm:$0xff] }
  0xb4   : > { %1282 = vmatmul.mubr.f32.gmra.mrb[50].mxu0 %v273_v9  ;;  %781 = vmatprep.mubr.f32.mxu1 %v276_v10  ;;  %v337_v9 = vld [vmem:[%s2125_s15 + $0x530] sm:$0xff]  ;;  %v340_v10 = vld [vmem:[%s2125_s15 + $0x548] sm:$0xff] }
  0xb5   : > { %1286 = vmatprep.mubr.f32.mxu0 %v278_v11  ;;  %v342_v11 = vld [vmem:[%s2125_s15 + $0x558] sm:$0xff] }
  0xb7   : > { %782 = vmatmul.mubr.f32.gmra.mrb[52].mxu1 %v275_v12  ;;  %v339_v12 = vld [vmem:[%s2125_s15 + $0x540] sm:$0xff] }
  0xb8   : > { %1287 = vmatmul.mubr.f32.gmra.mrb[52].mxu0 %v277_v13  ;;  %786 = vmatprep.mubr.f32.mxu1 %v280_v14  ;;  %v341_v13 = vld [vmem:[%s2125_s15 + $0x550] sm:$0xff]  ;;  %v344_v14 = vld [vmem:[%s2125_s15 + $0x568] sm:$0xff] }
  0xb9   : > { %1291 = vmatprep.mubr.f32.mxu0 %v282_v15  ;;  %v346_v15 = vld [vmem:[%s2125_s15 + $0x578] sm:$0xff] }
  0xbb   : > { %787 = vmatmul.mubr.f32.gmra.mrb[54].mxu1 %v279_v16  ;;  %v343_v16 = vld [vmem:[%s2125_s15 + $0x560] sm:$0xff] }
  0xbc   : > { %1292 = vmatmul.mubr.f32.gmra.mrb[54].mxu0 %v281_v17  ;;  %791 = vmatprep.mubr.f32.mxu1 %v284_v18  ;;  %v345_v17 = vld [vmem:[%s2125_s15 + $0x570] sm:$0xff]  ;;  %v348_v18 = vld [vmem:[%s2125_s15 + $0x588] sm:$0xff] }
  0xbd   : > { %1296 = vmatprep.mubr.f32.mxu0 %v286_v19  ;;  %v350_v19 = vld [vmem:[%s2125_s15 + $0x598] sm:$0xff] }
  0xbf   : > { %792 = vmatmul.mubr.f32.gmra.mrb[56].mxu1 %v283_v20  ;;  %v347_v20 = vld [vmem:[%s2125_s15 + $0x580] sm:$0xff] }
  0xc0   : > { %1297 = vmatmul.mubr.f32.gmra.mrb[56].mxu0 %v285_v21  ;;  %796 = vmatprep.mubr.f32.mxu1 %v288_v22  ;;  %v349_v21 = vld [vmem:[%s2125_s15 + $0x590] sm:$0xff]  ;;  %v352_v22 = vld [vmem:[%s2125_s15 + $0x5a8] sm:$0xff] }
  0xc1   : > { %1301 = vmatprep.mubr.f32.mxu0 %v290_v23  ;;  %v354_v23 = vld [vmem:[%s2125_s15 + $0x5b8] sm:$0xff] }
  0xc3   : > { %797 = vmatmul.mubr.f32.gmra.mrb[58].mxu1 %v287_v24  ;;  %v351_v24 = vld [vmem:[%s2125_s15 + $0x5a0] sm:$0xff] }
  0xc4   : > { %1302 = vmatmul.mubr.f32.gmra.mrb[58].mxu0 %v289_v25  ;;  %801 = vmatprep.mubr.f32.mxu1 %v292_v26  ;;  %v353_v25 = vld [vmem:[%s2125_s15 + $0x5b0] sm:$0xff]  ;;  %v356_v26 = vld [vmem:[%s2125_s15 + $0x5c8] sm:$0xff] }
  0xc5   : > { %1306 = vmatprep.mubr.f32.mxu0 %v294_v27  ;;  %v358_v27 = vld [vmem:[%s2125_s15 + $0x5d8] sm:$0xff] }
  0xc7   : > { %802 = vmatmul.mubr.f32.gmra.mrb[60].mxu1 %v291_v28  ;;  %v355_v28 = vld [vmem:[%s2125_s15 + $0x5c0] sm:$0xff] }
  0xc8   : > { %1307 = vmatmul.mubr.f32.gmra.mrb[60].mxu0 %v293_v29  ;;  %806 = vmatprep.mubr.f32.mxu1 %v296_v30  ;;  %v357_v29 = vld [vmem:[%s2125_s15 + $0x5d0] sm:$0xff]  ;;  %v360_v30 = vld [vmem:[%s2125_s15 + $0x5e8] sm:$0xff] }
  0xc9   : > { %1311 = vmatprep.mubr.f32.mxu0 %v298_v31  ;;  %v362_v31 = vld [vmem:[%s2125_s15 + $0x5f8] sm:$0xff] }
  0xcb   : > { %807 = vmatmul.mubr.f32.gmra.mrb[62].mxu1 %v295_v32  ;;  %v359_v32 = vld [vmem:[%s2125_s15 + $0x5e0] sm:$0xff] }
  0xcc   : > { %1312 = vmatmul.mubr.f32.gmra.mrb[62].mxu0 %v297_v33  ;;  %811 = vmatprep.mubr.f32.mxu1 %v300_v34  ;;  %v361_v33 = vld [vmem:[%s2125_s15 + $0x5f0] sm:$0xff]  ;;  %v364_v34 = vld [vmem:[%s2125_s15 + $0x608] sm:$0xff] }
  0xcd   : > { %1316 = vmatprep.mubr.f32.mxu0 %v302_v35  ;;  %v366_v35 = vld [vmem:[%s2125_s15 + $0x618] sm:$0xff] }
  0xcf   : > { %812 = vmatmul.mubr.f32.gmra.mrb[64].mxu1 %v299_v36  ;;  %v363_v36 = vld [vmem:[%s2125_s15 + $0x600] sm:$0xff] }
  0xd0   : > { %1317 = vmatmul.mubr.f32.gmra.mrb[64].mxu0 %v301_v37  ;;  %816 = vmatprep.mubr.f32.mxu1 %v304_v38  ;;  %v365_v37 = vld [vmem:[%s2125_s15 + $0x610] sm:$0xff]  ;;  %v368_v38 = vld [vmem:[%s2125_s15 + $0x628] sm:$0xff] }
  0xd1   : > { %1321 = vmatprep.mubr.f32.mxu0 %v306_v39  ;;  %v370_v39 = vld [vmem:[%s2125_s15 + $0x638] sm:$0xff] }
  0xd3   : > { %817 = vmatmul.mubr.f32.gmra.mrb[66].mxu1 %v303_v40  ;;  %v367_v40 = vld [vmem:[%s2125_s15 + $0x620] sm:$0xff] }
  0xd4   : > { %1322 = vmatmul.mubr.f32.gmra.mrb[66].mxu0 %v305_v41  ;;  %821 = vmatprep.mubr.f32.mxu1 %v308_v42  ;;  %v369_v41 = vld [vmem:[%s2125_s15 + $0x630] sm:$0xff]  ;;  %v372_v42 = vld [vmem:[%s2125_s15 + $0x648] sm:$0xff] }
  0xd5   : > { %1326 = vmatprep.mubr.f32.mxu0 %v310_v3  ;;  %v374_v3 = vld [vmem:[%s2125_s15 + $0x658] sm:$0xff] }
  0xd7   : > { %822 = vmatmul.mubr.f32.gmra.mrb[68].mxu1 %v307_v43  ;;  %v371_v43 = vld [vmem:[%s2125_s15 + $0x640] sm:$0xff] }
  0xd8   : > { %1327 = vmatmul.mubr.f32.gmra.mrb[68].mxu0 %v309_v44  ;;  %826 = vmatprep.mubr.f32.mxu1 %v312_v45  ;;  %v373_v44 = vld [vmem:[%s2125_s15 + $0x650] sm:$0xff]  ;;  %v376_v45 = vld [vmem:[%s2125_s15 + $0x668] sm:$0xff] }
  0xd9   : > { %1331 = vmatprep.mubr.f32.mxu0 %v314_v46  ;;  %v378_v46 = vld [vmem:[%s2125_s15 + $0x678] sm:$0xff] }
  0xdb   : > { %827 = vmatmul.mubr.f32.gmra.mrb[70].mxu1 %v311_v47  ;;  %v375_v47 = vld [vmem:[%s2125_s15 + $0x660] sm:$0xff] }
  0xdc   : > { %1332 = vmatmul.mubr.f32.gmra.mrb[70].mxu0 %v313_v48  ;;  %831 = vmatprep.mubr.f32.mxu1 %v316_v49  ;;  %v377_v48 = vld [vmem:[%s2125_s15 + $0x670] sm:$0xff]  ;;  %v380_v49 = vld [vmem:[%s2125_s15 + $0x688] sm:$0xff] }
  0xdd   : > { %1336 = vmatprep.mubr.f32.mxu0 %v318_v50  ;;  %v382_v50 = vld [vmem:[%s2125_s15 + $0x698] sm:$0xff] }
  0xdf   : > { %832 = vmatmul.mubr.f32.gmra.mrb[72].mxu1 %v315_v51  ;;  %v379_v51 = vld [vmem:[%s2125_s15 + $0x680] sm:$0xff] }
  0xe0   : > { %1337 = vmatmul.mubr.f32.gmra.mrb[72].mxu0 %v317_v52  ;;  %836 = vmatprep.mubr.f32.mxu1 %v320_v53  ;;  %v381_v52 = vld [vmem:[%s2125_s15 + $0x690] sm:$0xff]  ;;  %v384_v53 = vld [vmem:[%s2125_s15 + $0x6a8] sm:$0xff] }
  0xe1   : > { %1341 = vmatprep.mubr.f32.mxu0 %v322_v54  ;;  %v386_v54 = vld [vmem:[%s2125_s15 + $0x6b8] sm:$0xff] }
  0xe3   : > { %837 = vmatmul.mubr.f32.gmra.mrb[74].mxu1 %v319_v55  ;;  %v383_v55 = vld [vmem:[%s2125_s15 + $0x6a0] sm:$0xff] }
  0xe4   : > { %1342 = vmatmul.mubr.f32.gmra.mrb[74].mxu0 %v321_v56  ;;  %841 = vmatprep.mubr.f32.mxu1 %v324_v57  ;;  %v385_v56 = vld [vmem:[%s2125_s15 + $0x6b0] sm:$0xff]  ;;  %v388_v57 = vld [vmem:[%s2125_s15 + $0x6c8] sm:$0xff] }
  0xe5   : > { %1346 = vmatprep.mubr.f32.mxu0 %v326_v58 }
  0xe7   : > { %842 = vmatmul.mubr.f32.gmra.mrb[76].mxu1 %v323_v59  ;;  %v390_v59 = vld [vmem:[%s2125_s15 + $0x6d8] sm:$0xff] }
  0xe8   : > { %1347 = vmatmul.mubr.f32.gmra.mrb[76].mxu0 %v325_v60  ;;  %846 = vmatprep.mubr.f32.mxu1 %v328_v61 }
  0xe9   : > { %1351 = vmatprep.mubr.f32.mxu0 %v330_v62 }
  0xeb   : > { %847 = vmatmul.mubr.f32.gmra.mrb[78].mxu1 %v327_v63 }
  0xec   : > { %1352 = vmatmul.mubr.f32.gmra.mrb[78].mxu0 %v329_v0  ;;  %851 = vmatprep.mubr.f32.mxu1 %v332_v1  ;;  %v387_v0 = vld [vmem:[%s2125_s15 + $0x6c0] sm:$0xff]  ;;  %v389_v1 = vld [vmem:[%s2125_s15 + $0x6d0] sm:$0xff] }
  0xed   : > { %1356 = vmatprep.mubr.f32.mxu0 %v334_v2  ;;  %v392_v2 = vld [vmem:[%s2125_s15 + $0x6e8] sm:$0xff] }
  0xef   : > { %852 = vmatmul.mubr.f32.gmra.mrb[80].mxu1 %v331_v4 }
  0xf0   : > { %1357 = vmatmul.mubr.f32.gmra.mrb[80].mxu0 %v333_v5  ;;  %856 = vmatprep.mubr.f32.mxu1 %v336_v6  ;;  %v394_v5 = vld [vmem:[%s2125_s15 + $0x6f8] sm:$0xff] }
  0xf1   : > { %1361 = vmatprep.mubr.f32.mxu0 %v338_v7 }
  0xf3   : > { %857 = vmatmul.mubr.f32.gmra.mrb[82].mxu1 %v335_v8 }
  0xf4   : > { %1362 = vmatmul.mubr.f32.gmra.mrb[82].mxu0 %v337_v9  ;;  %861 = vmatprep.mubr.f32.mxu1 %v340_v10  ;;  %v391_v10 = vld [vmem:[%s2125_s15 + $0x6e0] sm:$0xff] }
  0xf5   : > { %1366 = vmatprep.mubr.f32.mxu0 %v342_v11  ;;  %v393_v11 = vld [vmem:[%s2125_s15 + $0x6f0] sm:$0xff] }
  0xf7   : > { %862 = vmatmul.mubr.f32.gmra.mrb[84].mxu1 %v339_v12  ;;  %v396_v12 = vld [vmem:[%s2125_s15 + $0x708] sm:$0xff] }
  0xf8   : > { %1367 = vmatmul.mubr.f32.gmra.mrb[84].mxu0 %v341_v13  ;;  %866 = vmatprep.mubr.f32.mxu1 %v344_v14  ;;  %v398_v14 = vld [vmem:[%s2125_s15 + $0x718] sm:$0xff] }
  0xf9   : > { %1371 = vmatprep.mubr.f32.mxu0 %v346_v15 }
  0xfb   : > { %867 = vmatmul.mubr.f32.gmra.mrb[86].mxu1 %v343_v16 }
  0xfc   : > { %1372 = vmatmul.mubr.f32.gmra.mrb[86].mxu0 %v345_v17  ;;  %871 = vmatprep.mubr.f32.mxu1 %v348_v18 }
  0xfd   : > { %1376 = vmatprep.mubr.f32.mxu0 %v350_v19  ;;  %v395_v19 = vld [vmem:[%s2125_s15 + $0x700] sm:$0xff] }
  0xff   : > { %872 = vmatmul.mubr.f32.gmra.mrb[88].mxu1 %v347_v20  ;;  %v397_v20 = vld [vmem:[%s2125_s15 + $0x710] sm:$0xff] }
 0x100   : > { %1377 = vmatmul.mubr.f32.gmra.mrb[88].mxu0 %v349_v21  ;;  %876 = vmatprep.mubr.f32.mxu1 %v352_v22  ;;  %v400_v21 = vld [vmem:[%s2125_s15 + $0x728] sm:$0xff] }
 0x101   : > { %1381 = vmatprep.mubr.f32.mxu0 %v354_v23  ;;  %v402_v23 = vld [vmem:[%s2125_s15 + $0x738] sm:$0xff] }
 0x103   : > { %877 = vmatmul.mubr.f32.gmra.mrb[90].mxu1 %v351_v24 }
 0x104   : > { %1382 = vmatmul.mubr.f32.gmra.mrb[90].mxu0 %v353_v25  ;;  %881 = vmatprep.mubr.f32.mxu1 %v356_v26 }
 0x105   : > { %1386 = vmatprep.mubr.f32.mxu0 %v358_v27 }
 0x107   : > { %882 = vmatmul.mubr.f32.gmra.mrb[92].mxu1 %v355_v28  ;;  %v399_v28 = vld [vmem:[%s2125_s15 + $0x720] sm:$0xff] }
 0x108   : > { %1387 = vmatmul.mubr.f32.gmra.mrb[92].mxu0 %v357_v29  ;;  %886 = vmatprep.mubr.f32.mxu1 %v360_v30  ;;  %v401_v29 = vld [vmem:[%s2125_s15 + $0x730] sm:$0xff]  ;;  %v404_v30 = vld [vmem:[%s2125_s15 + $0x748] sm:$0xff] }
 0x109   : > { %1391 = vmatprep.mubr.f32.mxu0 %v362_v31 }
 0x10b   : > { %887 = vmatmul.mubr.f32.gmra.mrb[94].mxu1 %v359_v32  ;;  %v406_v32 = vld [vmem:[%s2125_s15 + $0x758] sm:$0xff] }
 0x10c   : > { %1392 = vmatmul.mubr.f32.gmra.mrb[94].mxu0 %v361_v33  ;;  %891 = vmatprep.mubr.f32.mxu1 %v364_v34 }
 0x10d   : > { %1396 = vmatprep.mubr.f32.mxu0 %v366_v35 }
 0x10f   : > { %892 = vmatmul.mubr.f32.gmra.mrb[96].mxu1 %v363_v36 }
 0x110   : > { %1397 = vmatmul.mubr.f32.gmra.mrb[96].mxu0 %v365_v37  ;;  %896 = vmatprep.mubr.f32.mxu1 %v368_v38  ;;  %v403_v37 = vld [vmem:[%s2125_s15 + $0x740] sm:$0xff]  ;;  %v405_v38 = vld [vmem:[%s2125_s15 + $0x750] sm:$0xff] }
 0x111   : > { %1401 = vmatprep.mubr.f32.mxu0 %v370_v39  ;;  %v408_v39 = vld [vmem:[%s2125_s15 + $0x768] sm:$0xff] }
 0x113   : > { %897 = vmatmul.mubr.f32.gmra.mrb[98].mxu1 %v367_v40 }
 0x114   : > { %1402 = vmatmul.mubr.f32.gmra.mrb[98].mxu0 %v369_v41  ;;  %901 = vmatprep.mubr.f32.mxu1 %v372_v42  ;;  %v410_v41 = vld [vmem:[%s2125_s15 + $0x778] sm:$0xff] }
 0x115   : > { %1406 = vmatprep.mubr.f32.mxu0 %v374_v3 }
 0x117   : > { %902 = vmatmul.mubr.f32.gmra.mrb[100].mxu1 %v371_v43 }
 0x118   : > { %1407 = vmatmul.mubr.f32.gmra.mrb[100].mxu0 %v373_v44  ;;  %906 = vmatprep.mubr.f32.mxu1 %v376_v45  ;;  %v407_v45 = vld [vmem:[%s2125_s15 + $0x760] sm:$0xff] }
 0x119   : > { %1411 = vmatprep.mubr.f32.mxu0 %v378_v46  ;;  %v409_v46 = vld [vmem:[%s2125_s15 + $0x770] sm:$0xff] }
 0x11b   : > { %907 = vmatmul.mubr.f32.gmra.mrb[102].mxu1 %v375_v47  ;;  %v412_v47 = vld [vmem:[%s2125_s15 + $0x788] sm:$0xff] }
 0x11c   : > { %1412 = vmatmul.mubr.f32.gmra.mrb[102].mxu0 %v377_v48  ;;  %911 = vmatprep.mubr.f32.mxu1 %v380_v49  ;;  %v414_v49 = vld [vmem:[%s2125_s15 + $0x798] sm:$0xff] }
 0x11d   : > { %1416 = vmatprep.mubr.f32.mxu0 %v382_v50 }
 0x11f   : > { %912 = vmatmul.mubr.f32.gmra.mrb[104].mxu1 %v379_v51 }
 0x120   : > { %1417 = vmatmul.mubr.f32.gmra.mrb[104].mxu0 %v381_v52  ;;  %916 = vmatprep.mubr.f32.mxu1 %v384_v53 }
 0x121   : > { %1421 = vmatprep.mubr.f32.mxu0 %v386_v54  ;;  %v411_v54 = vld [vmem:[%s2125_s15 + $0x780] sm:$0xff] }
 0x122   : > { %v653_v58 = vpop.f32.mrb[0].mxu1 }
 0x123   : > { %v1158_v60 = vpop.f32.mrb[0].mxu0  ;;  %v655_v61 = vpop.f32.mrb[1].mxu1  ;;  %917 = vmatmul.mubr.f32.gmra.mrb[106].mxu1 %v383_v55  ;;  %v413_v55 = vld [vmem:[%s2125_s15 + $0x790] sm:$0xff] }
 0x124   : > { %v2487_v62 = vadd.f32 %v1158_v60, %v653_v58  ;;  %v1160_v63 = vpop.f32.mrb[1].mxu0  ;;  %1422 = vmatmul.mubr.f32.gmra.mrb[106].mxu0 %v385_v56  ;;  %921 = vmatprep.mubr.f32.mxu1 %v388_v57  ;;  %v416_v56 = vld [vmem:[%s2125_s15 + $0x7a8] sm:$0xff]  ;;  %v418_v58 = vld [vmem:[%s2125_s15 + $0x7b8] sm:$0xff] }
 0x125   : > { %1426 = vmatprep.mubr.f32.mxu0 %v390_v59 }
 0x126   : > { %v658_v4 = vpop.f32.mrb[2].mxu1 }
 0x127   : > { %v1163_v6 = vpop.f32.mrb[2].mxu0  ;;  %v660_v7 = vpop.f32.mrb[3].mxu1  ;;  %922 = vmatmul.mubr.f32.gmra.mrb[108].mxu1 %v387_v0  ;;  %v415_v0 = vld [vmem:[%s2125_s15 + $0x7a0] sm:$0xff] }
 0x128   : > { %v2493_v8 = vadd.f32 %v1163_v6, %v658_v4  ;;  %v1165_v9 = vpop.f32.mrb[3].mxu0  ;;  %1427 = vmatmul.mubr.f32.gmra.mrb[108].mxu0 %v389_v1  ;;  %926 = vmatprep.mubr.f32.mxu1 %v392_v2  ;;  %v417_v1 = vld [vmem:[%s2125_s15 + $0x7b0] sm:$0xff]  ;;  %v420_v2 = vld [vmem:[%s2125_s15 + $0x7c8] sm:$0xff] }
 0x129   : > { %1431 = vmatprep.mubr.f32.mxu0 %v394_v5  ;;  %v422_v5 = vld [vmem:[%s2125_s15 + $0x7d8] sm:$0xff] }
 0x12a   : > { %v663_v13 = vpop.f32.mrb[4].mxu1 }
 0x12b   : > { %v1168_v15 = vpop.f32.mrb[4].mxu0  ;;  %v665_v16 = vpop.f32.mrb[5].mxu1  ;;  %927 = vmatmul.mubr.f32.gmra.mrb[110].mxu1 %v391_v10 }
 0x12c   : > { %v2499_v17 = vadd.f32 %v1168_v15, %v663_v13  ;;  %v1170_v18 = vpop.f32.mrb[5].mxu0  ;;  %1432 = vmatmul.mubr.f32.gmra.mrb[110].mxu0 %v393_v11  ;;  %931 = vmatprep.mubr.f32.mxu1 %v396_v12  ;;  %v419_v11 = vld [vmem:[%s2125_s15 + $0x7c0] sm:$0xff]  ;;  %v421_v12 = vld [vmem:[%s2125_s15 + $0x7d0] sm:$0xff]  ;;  %v424_v13 = vld [vmem:[%s2125_s15 + $0x7e8] sm:$0xff] }
 0x12d   : > { %1436 = vmatprep.mubr.f32.mxu0 %v398_v14  ;;  %v426_v15 = vld [vmem:[%s2125_s15 + $0x7f8] sm:$0xff] }
 0x12e   : > { %v668_v22 = vpop.f32.mrb[6].mxu1 }
 0x12f   : > { %v1173_v24 = vpop.f32.mrb[6].mxu0  ;;  %v670_v25 = vpop.f32.mrb[7].mxu1  ;;  %932 = vmatmul.mubr.f32.gmra.mrb[112].mxu1 %v395_v19 }
 0x130   : > { %v2505_v26 = vadd.f32 %v1173_v24, %v668_v22  ;;  %v1175_v27 = vpop.f32.mrb[7].mxu0  ;;  %1437 = vmatmul.mubr.f32.gmra.mrb[112].mxu0 %v397_v20  ;;  %936 = vmatprep.mubr.f32.mxu1 %v400_v21  ;;  %v423_v21 = vld [vmem:[%s2125_s15 + $0x7e0] sm:$0xff]  ;;  %v425_v22 = vld [vmem:[%s2125_s15 + $0x7f0] sm:$0xff]  ;;  %v430_v25 = vld [vmem:[%s2125_s15 + $0x818] sm:$0xff] }
 0x131   : > { %1441 = vmatprep.mubr.f32.mxu0 %v402_v23  ;;  %v428_v23 = vld [vmem:[%s2125_s15 + $0x808] sm:$0xff] }
 0x132   : > { %v673_v31 = vpop.f32.mrb[8].mxu1 }
 0x133   : > { %v1178_v33 = vpop.f32.mrb[8].mxu0  ;;  %v675_v34 = vpop.f32.mrb[9].mxu1  ;;  %937 = vmatmul.mubr.f32.gmra.mrb[114].mxu1 %v399_v28 }
 0x134   : > { %v2511_v35 = vadd.f32 %v1178_v33, %v673_v31  ;;  %v1180_v36 = vpop.f32.mrb[9].mxu0  ;;  %1442 = vmatmul.mubr.f32.gmra.mrb[114].mxu0 %v401_v29  ;;  %941 = vmatprep.mubr.f32.mxu1 %v404_v30  ;;  %v427_v31 = vld [vmem:[%s2125_s15 + $0x800] sm:$0xff]  ;;  %v432_v33 = vld [vmem:[%s2125_s15 + $0x828] sm:$0xff] }
 0x135   : > { %1446 = vmatprep.mubr.f32.mxu0 %v406_v32  ;;  %v429_v32 = vld [vmem:[%s2125_s15 + $0x810] sm:$0xff]  ;;  %v434_v36 = vld [vmem:[%s2125_s15 + $0x838] sm:$0xff] }
 0x136   : > { %v678_v40 = vpop.f32.mrb[10].mxu1 }
 0x137   : > { %v1183_v42 = vpop.f32.mrb[10].mxu0  ;;  %v680_v3 = vpop.f32.mrb[11].mxu1  ;;  %942 = vmatmul.mubr.f32.gmra.mrb[116].mxu1 %v403_v37 }
 0x138   : > { %v2517_v43 = vadd.f32 %v1183_v42, %v678_v40  ;;  %v1185_v44 = vpop.f32.mrb[11].mxu0  ;;  %1447 = vmatmul.mubr.f32.gmra.mrb[116].mxu0 %v405_v38  ;;  %946 = vmatprep.mubr.f32.mxu1 %v408_v39  ;;  %v433_v42 = vld [vmem:[%s2125_s15 + $0x830] sm:$0xff]  ;;  %v436_v3 = vld [vmem:[%s2125_s15 + $0x848] sm:$0xff] }
 0x139   : > { %1451 = vmatprep.mubr.f32.mxu0 %v410_v41  ;;  %v431_v41 = vld [vmem:[%s2125_s15 + $0x820] sm:$0xff] }
 0x13a   : > { %v683_v48 = vpop.f32.mrb[12].mxu1 }
 0x13b   : > { %v1188_v50 = vpop.f32.mrb[12].mxu0  ;;  %v685_v51 = vpop.f32.mrb[13].mxu1  ;;  %947 = vmatmul.mubr.f32.gmra.mrb[118].mxu1 %v407_v45  ;;  %v438_v45 = vld [vmem:[%s2125_s15 + $0x858] sm:$0xff] }
 0x13c   : > { %v2523_v52 = vadd.f32 %v1188_v50, %v683_v48  ;;  %v1190_v53 = vpop.f32.mrb[13].mxu0  ;;  %1452 = vmatmul.mubr.f32.gmra.mrb[118].mxu0 %v409_v46  ;;  %951 = vmatprep.mubr.f32.mxu1 %v412_v47  ;;  %v435_v50 = vld [vmem:[%s2125_s15 + $0x840] sm:$0xff]  ;;  %v437_v51 = vld [vmem:[%s2125_s15 + $0x850] sm:$0xff] }
 0x13d   : > { %1456 = vmatprep.mubr.f32.mxu0 %v414_v49  ;;  %v440_v53 = vld [vmem:[%s2125_s15 + $0x868] sm:$0xff] }
 0x13e   : > { %v688_v57 = vpop.f32.mrb[14].mxu1 }
 0x13f   : > { %v1193_v59 = vpop.f32.mrb[14].mxu0  ;;  %v690_v60 = vpop.f32.mrb[15].mxu1  ;;  %952 = vmatmul.mubr.f32.gmra.mrb[120].mxu1 %v411_v54 }
 0x140   : > { %v2529_v61 = vadd.f32 %v1193_v59, %v688_v57  ;;  %v1195_v63 = vpop.f32.mrb[15].mxu0  ;;  %1457 = vmatmul.mubr.f32.gmra.mrb[120].mxu0 %v413_v55  ;;  %956 = vmatprep.mubr.f32.mxu1 %v416_v56  ;;  %v442_v55 = vld [vmem:[%s2125_s15 + $0x878] sm:$0xff]  ;;  %v439_v60 = vld [vmem:[%s2125_s15 + $0x860] sm:$0xff] }
 0x141   : > { %1461 = vmatprep.mubr.f32.mxu0 %v418_v58  ;;  %v441_v63 = vld [vmem:[%s2125_s15 + $0x870] sm:$0xff] }
 0x142   : > { %v693_v4 = vpop.f32.mrb[16].mxu1 }
 0x143   : > { %v1198_v6 = vpop.f32.mrb[16].mxu0  ;;  %v695_v7 = vpop.f32.mrb[17].mxu1  ;;  %957 = vmatmul.mubr.f32.gmra.mrb[122].mxu1 %v415_v0  ;;  %v444_v0 = vld [vmem:[%s2125_s15 + $0x888] sm:$0xff] }
 0x144   : > { %v2535_v9 = vadd.f32 %v1198_v6, %v693_v4  ;;  %v1200_v10 = vpop.f32.mrb[17].mxu0  ;;  %1462 = vmatmul.mubr.f32.gmra.mrb[122].mxu0 %v417_v1  ;;  %961 = vmatprep.mubr.f32.mxu1 %v420_v2  ;;  %v446_v2 = vld [vmem:[%s2125_s15 + $0x898] sm:$0xff] }
 0x145   : > { %1466 = vmatprep.mubr.f32.mxu0 %v422_v5  ;;  %v443_v10 = vld [vmem:[%s2125_s15 + $0x880] sm:$0xff] }
 0x146   : > { %v698_v14 = vpop.f32.mrb[18].mxu1 }
 0x147   : > { %v1203_v16 = vpop.f32.mrb[18].mxu0  ;;  %v700_v18 = vpop.f32.mrb[19].mxu1  ;;  %962 = vmatmul.mubr.f32.gmra.mrb[124].mxu1 %v419_v11  ;;  %v445_v11 = vld [vmem:[%s2125_s15 + $0x890] sm:$0xff] }
 0x148   : > { %v2541_v19 = vadd.f32 %v1203_v16, %v698_v14  ;;  %v1205_v20 = vpop.f32.mrb[19].mxu0  ;;  %1467 = vmatmul.mubr.f32.gmra.mrb[124].mxu0 %v421_v12  ;;  %966 = vmatprep.mubr.f32.mxu1 %v424_v13  ;;  %v448_v12 = vld [vmem:[%s2125_s15 + $0x8a8] sm:$0xff]  ;;  %v450_v14 = vld [vmem:[%s2125_s15 + $0x8b8] sm:$0xff] }
 0x149   : > { %1471 = vmatprep.mubr.f32.mxu0 %v426_v15 }
 0x14a   : > { %v703_v24 = vpop.f32.mrb[20].mxu1 }
 0x14b   : > { %v1208_v27 = vpop.f32.mrb[20].mxu0  ;;  %v705_v28 = vpop.f32.mrb[21].mxu1  ;;  %967 = vmatmul.mubr.f32.gmra.mrb[126].mxu1 %v423_v21  ;;  %v447_v21 = vld [vmem:[%s2125_s15 + $0x8a0] sm:$0xff] }
 0x14c   : > { %v2547_v29 = vadd.f32 %v1208_v27, %v703_v24  ;;  %v1210_v30 = vpop.f32.mrb[21].mxu0  ;;  %1472 = vmatmul.mubr.f32.gmra.mrb[126].mxu0 %v425_v22  ;;  %971 = vmatprep.mubr.f32.mxu1 %v428_v23  ;;  %v449_v22 = vld [vmem:[%s2125_s15 + $0x8b0] sm:$0xff]  ;;  %v452_v23 = vld [vmem:[%s2125_s15 + $0x8c8] sm:$0xff] }
 0x14d   : > { %1476 = vmatprep.mubr.f32.mxu0 %v430_v25  ;;  %v454_v25 = vld [vmem:[%s2125_s15 + $0x8d8] sm:$0xff] }
 0x14e   : > { %v708_v34 = vpop.f32.mrb[22].mxu1 }
 0x14f   : > { %v1213_v37 = vpop.f32.mrb[22].mxu0  ;;  %v710_v38 = vpop.f32.mrb[23].mxu1  ;;  %972 = vmatmul.mubr.f32.gmra.mrb[128].mxu1 %v427_v31 }
 0x150   : > { %v2553_v39 = vadd.f32 %v1213_v37, %v708_v34  ;;  %v1215_v40 = vpop.f32.mrb[23].mxu0  ;;  %1477 = vmatmul.mubr.f32.gmra.mrb[128].mxu0 %v429_v32  ;;  %976 = vmatprep.mubr.f32.mxu1 %v432_v33  ;;  %v451_v32 = vld [vmem:[%s2125_s15 + $0x8c0] sm:$0xff]  ;;  %v453_v33 = vld [vmem:[%s2125_s15 + $0x8d0] sm:$0xff]  ;;  %v456_v34 = vld [vmem:[%s2125_s15 + $0x8e8] sm:$0xff] }
 0x151   : > { %1481 = vmatprep.mubr.f32.mxu0 %v434_v36  ;;  %v458_v37 = vld [vmem:[%s2125_s15 + $0x8f8] sm:$0xff] }
 0x152   : > { %v713_v44 = vpop.f32.mrb[24].mxu1 }
 0x153   : > { %v1218_v46 = vpop.f32.mrb[24].mxu0  ;;  %v715_v47 = vpop.f32.mrb[25].mxu1  ;;  %977 = vmatmul.mubr.f32.gmra.mrb[130].mxu1 %v431_v41 }
 0x154   : > { %v2559_v48 = vadd.f32 %v1218_v46, %v713_v44  ;;  %v1220_v49 = vpop.f32.mrb[25].mxu0  ;;  %1482 = vmatmul.mubr.f32.gmra.mrb[130].mxu0 %v433_v42  ;;  %981 = vmatprep.mubr.f32.mxu1 %v436_v3  ;;  %v455_v3 = vld [vmem:[%s2125_s15 + $0x8e0] sm:$0xff]  ;;  %v457_v44 = vld [vmem:[%s2125_s15 + $0x8f0] sm:$0xff]  ;;  %v462_v47 = vld [vmem:[%s2125_s15 + $0x918] sm:$0xff] }
 0x155   : > { %1486 = vmatprep.mubr.f32.mxu0 %v438_v45  ;;  %v460_v45 = vld [vmem:[%s2125_s15 + $0x908] sm:$0xff] }
 0x156   : > { %v718_v54 = vpop.f32.mrb[26].mxu1 }
 0x157   : > { %v1223_v56 = vpop.f32.mrb[26].mxu0  ;;  %v720_v57 = vpop.f32.mrb[27].mxu1  ;;  %982 = vmatmul.mubr.f32.gmra.mrb[132].mxu1 %v435_v50 }
 0x158   : > { %v2565_v58 = vadd.f32 %v1223_v56, %v718_v54  ;;  %v1225_v59 = vpop.f32.mrb[27].mxu0  ;;  %1487 = vmatmul.mubr.f32.gmra.mrb[132].mxu0 %v437_v51  ;;  %986 = vmatprep.mubr.f32.mxu1 %v440_v53  ;;  %v459_v54 = vld [vmem:[%s2125_s15 + $0x900] sm:$0xff]  ;;  %v464_v56 = vld [vmem:[%s2125_s15 + $0x928] sm:$0xff] }
 0x159   : > { %1491 = vmatprep.mubr.f32.mxu0 %v442_v55  ;;  %v461_v55 = vld [vmem:[%s2125_s15 + $0x910] sm:$0xff]  ;;  %v466_v59 = vld [vmem:[%s2125_s15 + $0x938] sm:$0xff] }
 0x15a   : > { %v723_v1 = vpop.f32.mrb[28].mxu1 }
 0x15b   : > { %v1228_v4 = vpop.f32.mrb[28].mxu0  ;;  %v725_v5 = vpop.f32.mrb[29].mxu1  ;;  %987 = vmatmul.mubr.f32.gmra.mrb[134].mxu1 %v439_v60 }
 0x15c   : > { %v2571_v6 = vadd.f32 %v1228_v4, %v723_v1  ;;  %v1230_v7 = vpop.f32.mrb[29].mxu0  ;;  %1492 = vmatmul.mubr.f32.gmra.mrb[134].mxu0 %v441_v63  ;;  %991 = vmatprep.mubr.f32.mxu1 %v444_v0  ;;  %v465_v4 = vld [vmem:[%s2125_s15 + $0x930] sm:$0xff]  ;;  %v468_v5 = vld [vmem:[%s2125_s15 + $0x948] sm:$0xff] }
 0x15d   : > { %1496 = vmatprep.mubr.f32.mxu0 %v446_v2  ;;  %v463_v2 = vld [vmem:[%s2125_s15 + $0x920] sm:$0xff] }
 0x15e   : > { %v728_v13 = vpop.f32.mrb[30].mxu1 }
 0x15f   : > { %v1233_v15 = vpop.f32.mrb[30].mxu0  ;;  %v730_v16 = vpop.f32.mrb[31].mxu1  ;;  %992 = vmatmul.mubr.f32.gmra.mrb[136].mxu1 %v443_v10  ;;  %v470_v10 = vld [vmem:[%s2125_s15 + $0x958] sm:$0xff] }
 0x160   : > { %v2577_v18 = vadd.f32 %v1233_v15, %v728_v13  ;;  %v1235_v20 = vpop.f32.mrb[31].mxu0  ;;  %1497 = vmatmul.mubr.f32.gmra.mrb[136].mxu0 %v445_v11  ;;  %996 = vmatprep.mubr.f32.mxu1 %v448_v12  ;;  %v467_v15 = vld [vmem:[%s2125_s15 + $0x940] sm:$0xff]  ;;  %v469_v16 = vld [vmem:[%s2125_s15 + $0x950] sm:$0xff] }
 0x161   : > { %1501 = vmatprep.mubr.f32.mxu0 %v450_v14  ;;  %v472_v20 = vld [vmem:[%s2125_s15 + $0x968] sm:$0xff] }
 0x162   : > { %2961 = vst [vmem:[#allocation2_spill] sm:$0xff] %v2577_v18  ;;  %v733_v24 = vpop.f32.mrb[32].mxu1 }
 0x163   : > { %v1238_v27 = vpop.f32.mrb[32].mxu0  ;;  %v735_v28 = vpop.f32.mrb[33].mxu1  ;;  %997 = vmatmul.mubr.f32.gmra.mrb[138].mxu1 %v447_v21 }
 0x164   : > { %v2583_v30 = vadd.f32 %v1238_v27, %v733_v24  ;;  %v1240_v31 = vpop.f32.mrb[33].mxu0  ;;  %1502 = vmatmul.mubr.f32.gmra.mrb[138].mxu0 %v449_v22  ;;  %1001 = vmatprep.mubr.f32.mxu1 %v452_v23  ;;  %v474_v22 = vld [vmem:[%s2125_s15 + $0x978] sm:$0xff]  ;;  %v471_v28 = vld [vmem:[%s2125_s15 + $0x960] sm:$0xff] }
 0x165   : > { %1506 = vmatprep.mubr.f32.mxu0 %v454_v25  ;;  %v473_v31 = vld [vmem:[%s2125_s15 + $0x970] sm:$0xff] }
 0x166   : > { %2962 = vst [vmem:[#allocation3_spill] sm:$0xff] %v2583_v30  ;;  %v738_v36 = vpop.f32.mrb[34].mxu1 }
 0x167   : > { %v1243_v38 = vpop.f32.mrb[34].mxu0  ;;  %v740_v40 = vpop.f32.mrb[35].mxu1  ;;  %1002 = vmatmul.mubr.f32.gmra.mrb[140].mxu1 %v451_v32  ;;  %v476_v32 = vld [vmem:[%s2125_s15 + $0x988] sm:$0xff] }
 0x168   : > { %v2589_v41 = vadd.f32 %v1243_v38, %v738_v36  ;;  %v1245_v42 = vpop.f32.mrb[35].mxu0  ;;  %1507 = vmatmul.mubr.f32.gmra.mrb[140].mxu0 %v453_v33  ;;  %1006 = vmatprep.mubr.f32.mxu1 %v456_v34  ;;  %v478_v34 = vld [vmem:[%s2125_s15 + $0x998] sm:$0xff] }
 0x169   : > { %1511 = vmatprep.mubr.f32.mxu0 %v458_v37  ;;  %v475_v42 = vld [vmem:[%s2125_s15 + $0x980] sm:$0xff] }
 0x16a   : > { %2963 = vst [vmem:[#allocation4_spill] sm:$0xff] %v2589_v41  ;;  %v743_v46 = vpop.f32.mrb[36].mxu1 }
 0x16b   : > { %v1248_v49 = vpop.f32.mrb[36].mxu0  ;;  %v745_v50 = vpop.f32.mrb[37].mxu1  ;;  %1007 = vmatmul.mubr.f32.gmra.mrb[142].mxu1 %v455_v3  ;;  %v477_v3 = vld [vmem:[%s2125_s15 + $0x990] sm:$0xff] }
 0x16c   : > { %v2595_v51 = vadd.f32 %v1248_v49, %v743_v46  ;;  %v1250_v53 = vpop.f32.mrb[37].mxu0  ;;  %1512 = vmatmul.mubr.f32.gmra.mrb[142].mxu0 %v457_v44  ;;  %1011 = vmatprep.mubr.f32.mxu1 %v460_v45  ;;  %v480_v44 = vld [vmem:[%s2125_s15 + $0x9a8] sm:$0xff] }
 0x16d   : > { %1516 = vmatprep.mubr.f32.mxu0 %v462_v47  ;;  %v482_v47 = vld [vmem:[%s2125_s15 + $0x9b8] sm:$0xff] }
 0x16e   : > { %2964 = vst [vmem:[#allocation5_spill] sm:$0xff] %v2595_v51  ;;  %v748_v57 = vpop.f32.mrb[38].mxu1 }
 0x16f   : > { %v1253_v60 = vpop.f32.mrb[38].mxu0  ;;  %v750_v63 = vpop.f32.mrb[39].mxu1  ;;  %1012 = vmatmul.mubr.f32.gmra.mrb[144].mxu1 %v459_v54 }
 0x170   : > { %v2601_v0 = vadd.f32 %v1253_v60, %v748_v57  ;;  %v1255_v1 = vpop.f32.mrb[39].mxu0  ;;  %1517 = vmatmul.mubr.f32.gmra.mrb[144].mxu0 %v461_v55  ;;  %1016 = vmatprep.mubr.f32.mxu1 %v464_v56  ;;  %v479_v55 = vld [vmem:[%s2125_s15 + $0x9a0] sm:$0xff]  ;;  %v481_v56 = vld [vmem:[%s2125_s15 + $0x9b0] sm:$0xff]  ;;  %v484_v57 = vld [vmem:[%s2125_s15 + $0x9c8] sm:$0xff] }
 0x171   : > { %1521 = vmatprep.mubr.f32.mxu0 %v466_v59  ;;  %v486_v63 = vld [vmem:[%s2125_s15 + $0x9d8] sm:$0xff] }
 0x172   : > { %2965 = vst [vmem:[#allocation6_spill] sm:$0xff] %v2601_v0  ;;  %v753_v7 = vpop.f32.mrb[40].mxu1 }
 0x173   : > { %v1258_v11 = vpop.f32.mrb[40].mxu0  ;;  %v755_v12 = vpop.f32.mrb[41].mxu1  ;;  %1017 = vmatmul.mubr.f32.gmra.mrb[146].mxu1 %v463_v2 }
 0x174   : > { %v2607_v13 = vadd.f32 %v1258_v11, %v753_v7  ;;  %v1260_v14 = vpop.f32.mrb[41].mxu0  ;;  %1522 = vmatmul.mubr.f32.gmra.mrb[146].mxu0 %v465_v4  ;;  %1021 = vmatprep.mubr.f32.mxu1 %v468_v5  ;;  %v483_v7 = vld [vmem:[%s2125_s15 + $0x9c0] sm:$0xff]  ;;  %v488_v11 = vld [vmem:[%s2125_s15 + $0x9e8] sm:$0xff] }
 0x175   : > { %1526 = vmatprep.mubr.f32.mxu0 %v470_v10  ;;  %v485_v10 = vld [vmem:[%s2125_s15 + $0x9d0] sm:$0xff] }
 0x176   : > { %2966 = vst [vmem:[#allocation7_spill] sm:$0xff] %v2607_v13  ;;  %v758_v21 = vpop.f32.mrb[42].mxu1 }
 0x177   : > { %v1263_v23 = vpop.f32.mrb[42].mxu0  ;;  %v760_v24 = vpop.f32.mrb[43].mxu1  ;;  %1022 = vmatmul.mubr.f32.gmra.mrb[148].mxu1 %v467_v15  ;;  %v490_v15 = vld [vmem:[%s2125_s15 + $0x9f8] sm:$0xff] }
 0x178   : > { %v2613_v25 = vadd.f32 %v1263_v23, %v758_v21  ;;  %v1265_v27 = vpop.f32.mrb[43].mxu0  ;;  %1527 = vmatmul.mubr.f32.gmra.mrb[148].mxu0 %v469_v16  ;;  %1026 = vmatprep.mubr.f32.mxu1 %v472_v20  ;;  %v487_v23 = vld [vmem:[%s2125_s15 + $0x9e0] sm:$0xff]  ;;  %v489_v24 = vld [vmem:[%s2125_s15 + $0x9f0] sm:$0xff] }
 0x179   : > { %1531 = vmatprep.mubr.f32.mxu0 %v474_v22  ;;  %v492_v27 = vld [vmem:[%s2125_s15 + $0xa08] sm:$0xff] }
 0x17a   : > { %2967 = vst [vmem:[#allocation8_spill] sm:$0xff] %v2613_v25  ;;  %v763_v33 = vpop.f32.mrb[44].mxu1 }
 0x17b   : > { %v1268_v36 = vpop.f32.mrb[44].mxu0  ;;  %v765_v37 = vpop.f32.mrb[45].mxu1  ;;  %1027 = vmatmul.mubr.f32.gmra.mrb[150].mxu1 %v471_v28 }
 0x17c   : > { %v2619_v38 = vadd.f32 %v1268_v36, %v763_v33  ;;  %v1270_v40 = vpop.f32.mrb[45].mxu0  ;;  %1532 = vmatmul.mubr.f32.gmra.mrb[150].mxu0 %v473_v31  ;;  %1031 = vmatprep.mubr.f32.mxu1 %v476_v32  ;;  %v494_v32 = vld [vmem:[%s2125_s15 + $0xa18] sm:$0xff] }
 0x17d   : > { %1536 = vmatprep.mubr.f32.mxu0 %v478_v34  ;;  %v491_v40 = vld [vmem:[%s2125_s15 + $0xa00] sm:$0xff] }
 0x17e   : > { %v768_v46 = vpop.f32.mrb[46].mxu1 }
 0x17f   : > { %v1273_v49 = vpop.f32.mrb[46].mxu0  ;;  %v770_v50 = vpop.f32.mrb[47].mxu1  ;;  %1032 = vmatmul.mubr.f32.gmra.mrb[152].mxu1 %v475_v42  ;;  %v493_v42 = vld [vmem:[%s2125_s15 + $0xa10] sm:$0xff] }
 0x180   : > { %v2627_v53 = vadd.f32 %v1273_v49, %v768_v46  ;;  %v1275_v54 = vpop.f32.mrb[47].mxu0  ;;  %1537 = vmatmul.mubr.f32.gmra.mrb[152].mxu0 %v477_v3  ;;  %1036 = vmatprep.mubr.f32.mxu1 %v480_v44  ;;  %v496_v3 = vld [vmem:[%s2125_s15 + $0xa28] sm:$0xff] }
 0x181   : > { %1541 = vmatprep.mubr.f32.mxu0 %v482_v47  ;;  %v498_v47 = vld [vmem:[%s2125_s15 + $0xa38] sm:$0xff] }
 0x182   : > { %v773_v60 = vpop.f32.mrb[48].mxu1 }
 0x183   : > { %v1278_v1 = vpop.f32.mrb[48].mxu0  ;;  %v775_v2 = vpop.f32.mrb[49].mxu1  ;;  %1037 = vmatmul.mubr.f32.gmra.mrb[154].mxu1 %v479_v55 }
 0x184   : > { %v2635_v4 = vadd.f32 %v1278_v1, %v773_v60  ;;  %v1280_v5 = vpop.f32.mrb[49].mxu0  ;;  %1542 = vmatmul.mubr.f32.gmra.mrb[154].mxu0 %v481_v56  ;;  %1041 = vmatprep.mubr.f32.mxu1 %v484_v57  ;;  %v495_v56 = vld [vmem:[%s2125_s15 + $0xa20] sm:$0xff]  ;;  %v497_v57 = vld [vmem:[%s2125_s15 + $0xa30] sm:$0xff]  ;;  %v500_v60 = vld [vmem:[%s2125_s15 + $0xa48] sm:$0xff] }
 0x185   : > { %1546 = vmatprep.mubr.f32.mxu0 %v486_v63  ;;  %v502_v2 = vld [vmem:[%s2125_s15 + $0xa58] sm:$0xff] }
 0x186   : > { %v778_v14 = vpop.f32.mrb[50].mxu1 }
 0x187   : > { %v1283_v16 = vpop.f32.mrb[50].mxu0  ;;  %v780_v20 = vpop.f32.mrb[51].mxu1  ;;  %1042 = vmatmul.mubr.f32.gmra.mrb[156].mxu1 %v483_v7 }
 0x188   : > { %v2643_v21 = vadd.f32 %v1283_v16, %v778_v14  ;;  %v1285_v22 = vpop.f32.mrb[51].mxu0  ;;  %1547 = vmatmul.mubr.f32.gmra.mrb[156].mxu0 %v485_v10  ;;  %1046 = vmatprep.mubr.f32.mxu1 %v488_v11  ;;  %v499_v14 = vld [vmem:[%s2125_s15 + $0xa40] sm:$0xff]  ;;  %v504_v16 = vld [vmem:[%s2125_s15 + $0xa68] sm:$0xff] }
 0x189   : > { %1551 = vmatprep.mubr.f32.mxu0 %v490_v15  ;;  %v501_v15 = vld [vmem:[%s2125_s15 + $0xa50] sm:$0xff] }
 0x18a   : > { %v783_v31 = vpop.f32.mrb[52].mxu1 }
 0x18b   : > { %v1288_v33 = vpop.f32.mrb[52].mxu0  ;;  %v785_v34 = vpop.f32.mrb[53].mxu1  ;;  %1047 = vmatmul.mubr.f32.gmra.mrb[158].mxu1 %v487_v23  ;;  %v506_v23 = vld [vmem:[%s2125_s15 + $0xa78] sm:$0xff] }
 0x18c   : > { %v2651_v36 = vadd.f32 %v1288_v33, %v783_v31  ;;  %v1290_v37 = vpop.f32.mrb[53].mxu0  ;;  %1552 = vmatmul.mubr.f32.gmra.mrb[158].mxu0 %v489_v24  ;;  %1051 = vmatprep.mubr.f32.mxu1 %v492_v27  ;;  %v503_v33 = vld [vmem:[%s2125_s15 + $0xa60] sm:$0xff]  ;;  %v505_v34 = vld [vmem:[%s2125_s15 + $0xa70] sm:$0xff] }
 0x18d   : > { %1556 = vmatprep.mubr.f32.mxu0 %v494_v32  ;;  %v508_v37 = vld [vmem:[%s2125_s15 + $0xa88] sm:$0xff] }
 0x18e   : > { %v788_v46 = vpop.f32.mrb[54].mxu1 }
 0x18f   : > { %v1293_v49 = vpop.f32.mrb[54].mxu0  ;;  %v790_v50 = vpop.f32.mrb[55].mxu1  ;;  %1052 = vmatmul.mubr.f32.gmra.mrb[160].mxu1 %v491_v40 }
 0x190   : > { %v2659_v54 = vadd.f32 %v1293_v49, %v788_v46  ;;  %v1295_v55 = vpop.f32.mrb[55].mxu0  ;;  %1557 = vmatmul.mubr.f32.gmra.mrb[160].mxu0 %v493_v42  ;;  %1056 = vmatprep.mubr.f32.mxu1 %v496_v3  ;;  %v510_v3 = vld [vmem:[%s2125_s15 + $0xa98] sm:$0xff] }
 0x191   : > { %1561 = vmatprep.mubr.f32.mxu0 %v498_v47  ;;  %v507_v55 = vld [vmem:[%s2125_s15 + $0xa80] sm:$0xff] }
 0x192   : > { %v793_v1 = vpop.f32.mrb[56].mxu1 }
 0x193   : > { %v1298_v5 = vpop.f32.mrb[56].mxu0  ;;  %v795_v7 = vpop.f32.mrb[57].mxu1  ;;  %1057 = vmatmul.mubr.f32.gmra.mrb[162].mxu1 %v495_v56  ;;  %v509_v56 = vld [vmem:[%s2125_s15 + $0xa90] sm:$0xff] }
 0x194   : > { %v2667_v10 = vadd.f32 %v1298_v5, %v793_v1  ;;  %v1300_v11 = vpop.f32.mrb[57].mxu0  ;;  %1562 = vmatmul.mubr.f32.gmra.mrb[162].mxu0 %v497_v57  ;;  %1061 = vmatprep.mubr.f32.mxu1 %v500_v60  ;;  %v512_v57 = vld [vmem:[%s2125_s15 + $0xaa8] sm:$0xff] }
 0x195   : > { %1566 = vmatprep.mubr.f32.mxu0 %v502_v2  ;;  %v514_v2 = vld [vmem:[%s2125_s15 + $0xab8] sm:$0xff] }
 0x196   : > { %v798_v22 = vpop.f32.mrb[58].mxu1 }
 0x197   : > { %v1303_v24 = vpop.f32.mrb[58].mxu0  ;;  %v800_v27 = vpop.f32.mrb[59].mxu1  ;;  %1062 = vmatmul.mubr.f32.gmra.mrb[164].mxu1 %v499_v14 }
 0x198   : > { %v2675_v31 = vadd.f32 %v1303_v24, %v798_v22  ;;  %v1305_v32 = vpop.f32.mrb[59].mxu0  ;;  %1567 = vmatmul.mubr.f32.gmra.mrb[164].mxu0 %v501_v15  ;;  %1066 = vmatprep.mubr.f32.mxu1 %v504_v16  ;;  %v511_v15 = vld [vmem:[%s2125_s15 + $0xaa0] sm:$0xff]  ;;  %v513_v16 = vld [vmem:[%s2125_s15 + $0xab0] sm:$0xff]  ;;  %v516_v22 = vld [vmem:[%s2125_s15 + $0xac8] sm:$0xff] }
 0x199   : > { %1571 = vmatprep.mubr.f32.mxu0 %v506_v23  ;;  %v518_v27 = vld [vmem:[%s2125_s15 + $0xad8] sm:$0xff] }
 0x19a   : > { %v803_v42 = vpop.f32.mrb[60].mxu1 }
 0x19b   : > { %v1308_v46 = vpop.f32.mrb[60].mxu0  ;;  %v805_v47 = vpop.f32.mrb[61].mxu1  ;;  %1067 = vmatmul.mubr.f32.gmra.mrb[166].mxu1 %v503_v33 }
 0x19c   : > { %v2683_v49 = vadd.f32 %v1308_v46, %v803_v42  ;;  %v1310_v50 = vpop.f32.mrb[61].mxu0  ;;  %1572 = vmatmul.mubr.f32.gmra.mrb[166].mxu0 %v505_v34  ;;  %1071 = vmatprep.mubr.f32.mxu1 %v508_v37  ;;  %v515_v42 = vld [vmem:[%s2125_s15 + $0xac0] sm:$0xff]  ;;  %v520_v46 = vld [vmem:[%s2125_s15 + $0xae8] sm:$0xff] }
 0x19d   : > { %1576 = vmatprep.mubr.f32.mxu0 %v510_v3  ;;  %v517_v3 = vld [vmem:[%s2125_s15 + $0xad0] sm:$0xff] }
 0x19e   : > { %v808_v1 = vpop.f32.mrb[62].mxu1 }
 0x19f   : > { %v1313_v5 = vpop.f32.mrb[62].mxu0  ;;  %v810_v7 = vpop.f32.mrb[63].mxu1  ;;  %1072 = vmatmul.mubr.f32.gmra.mrb[168].mxu1 %v507_v55  ;;  %v522_v55 = vld [vmem:[%s2125_s15 + $0xaf8] sm:$0xff] }
 0x1a0   : > { %v2691_v11 = vadd.f32 %v1313_v5, %v808_v1  ;;  %v1315_v14 = vpop.f32.mrb[63].mxu0  ;;  %1577 = vmatmul.mubr.f32.gmra.mrb[168].mxu0 %v509_v56  ;;  %1076 = vmatprep.mubr.f32.mxu1 %v512_v57  ;;  %v519_v5 = vld [vmem:[%s2125_s15 + $0xae0] sm:$0xff]  ;;  %v521_v7 = vld [vmem:[%s2125_s15 + $0xaf0] sm:$0xff]  ;;  %s1986_s15 = smul.u32 176, %s3018_s13 }
 0x1a1   : > { %1581 = vmatprep.mubr.f32.mxu0 %v514_v2 }
 0x1a2   : > { %v813_v24 = vpop.f32.mrb[64].mxu1  ;;  %s2812_s27 = scalar_lea.vmem %s2946_s3, %s1986_s15 }
 0x1a3   : > { %v1318_v32 = vpop.f32.mrb[64].mxu0  ;;  %v815_v33 = vpop.f32.mrb[65].mxu1  ;;  %1077 = vmatmul.mubr.f32.gmra.mrb[170].mxu1 %v511_v15 }
 0x1a4   : > { %v2699_v34 = vadd.f32 %v1318_v32, %v813_v24  ;;  %v1320_v37 = vpop.f32.mrb[65].mxu0  ;;  %1582 = vmatmul.mubr.f32.gmra.mrb[170].mxu0 %v513_v16  ;;  %1081 = vmatprep.mubr.f32.mxu1 %v516_v22 }
 0x1a5   : > { %1586 = vmatprep.mubr.f32.mxu0 %v518_v27 }
 0x1a6   : > { %v818_v50 = vpop.f32.mrb[66].mxu1 }
 0x1a7   : > { %v1323_v56 = vpop.f32.mrb[66].mxu0  ;;  %v820_v57 = vpop.f32.mrb[67].mxu1  ;;  %1082 = vmatmul.mubr.f32.gmra.mrb[172].mxu1 %v515_v42 }
 0x1a8   : > { %v2707_v1 = vadd.f32 %v1323_v56, %v818_v50  ;;  %v1325_v2 = vpop.f32.mrb[67].mxu0  ;;  %1587 = vmatmul.mubr.f32.gmra.mrb[172].mxu0 %v517_v3  ;;  %1086 = vmatprep.mubr.f32.mxu1 %v520_v46 }
 0x1a9   : > { %1591 = vmatprep.mubr.f32.mxu0 %v522_v55 }
 0x1aa   : > { %v823_v15 = vpop.f32.mrb[68].mxu1 }
 0x1ab   : > { %v1328_v16 = vpop.f32.mrb[68].mxu0  ;;  %v825_v22 = vpop.f32.mrb[69].mxu1  ;;  %1087 = vmatmul.mubr.f32.gmra.mrb[174].mxu1 %v519_v5 }
 0x1ac   : > { %v2713_v24 = vadd.f32 %v1328_v16, %v823_v15  ;;  %v1330_v27 = vpop.f32.mrb[69].mxu0  ;;  %1592 = vmatmul.mubr.f32.gmra.mrb[174].mxu0 %v521_v7 }
 0x1ae   : > { %v828_v33 = vpop.f32.mrb[70].mxu1 }
 0x1af   : > { %v1333_v37 = vpop.f32.mrb[70].mxu0  ;;  %v830_v42 = vpop.f32.mrb[71].mxu1 }
 0x1b0   : > { %v2717_v3 = vadd.f32 %v1333_v37, %v828_v33  ;;  %v1335_v46 = vpop.f32.mrb[71].mxu0 }
 0x1b2   : > { %v833_v55 = vpop.f32.mrb[72].mxu1 }
 0x1b3   : > { %v1338_v56 = vpop.f32.mrb[72].mxu0  ;;  %v835_v57 = vpop.f32.mrb[73].mxu1 }
 0x1b4   : > { %v2721_v2 = vadd.f32 %v1338_v56, %v833_v55  ;;  %v1340_v5 = vpop.f32.mrb[73].mxu0 }
 0x1b6   : > { %v838_v15 = vpop.f32.mrb[74].mxu1 }
 0x1b7   : > { %v1343_v16 = vpop.f32.mrb[74].mxu0  ;;  %v840_v22 = vpop.f32.mrb[75].mxu1 }
 0x1b8   : > { %v2725_v27 = vadd.f32 %v1343_v16, %v838_v15  ;;  %v1345_v33 = vpop.f32.mrb[75].mxu0 }
 0x1ba   : > { %2968 = vst [vmem:[#allocation9_spill] sm:$0xff] %v2725_v27  ;;  %v843_v42 = vpop.f32.mrb[76].mxu1 }
 0x1bb   : > { %v1348_v46 = vpop.f32.mrb[76].mxu0  ;;  %v845_v50 = vpop.f32.mrb[77].mxu1 }
 0x1bc   : > { %v2729_v32 = vadd.f32 %v1348_v46, %v843_v42  ;;  %v1350_v55 = vpop.f32.mrb[77].mxu0 }
 0x1be   : > { %2969 = vst [vmem:[#allocation10_spill] sm:$0xff] %v2729_v32  ;;  %v848_v57 = vpop.f32.mrb[78].mxu1 }
 0x1bf   : > { %v1353_v5 = vpop.f32.mrb[78].mxu0  ;;  %v850_v7 = vpop.f32.mrb[79].mxu1 }
 0x1c0   : > { %v2733_v14 = vadd.f32 %v1353_v5, %v848_v57  ;;  %v1355_v15 = vpop.f32.mrb[79].mxu0 }
 0x1c2   : > { %2970 = vst [vmem:[#allocation11_spill] sm:$0xff] %v2733_v14  ;;  %v853_v22 = vpop.f32.mrb[80].mxu1 }
 0x1c3   : > { %v1358_v33 = vpop.f32.mrb[80].mxu0  ;;  %v855_v37 = vpop.f32.mrb[81].mxu1 }
 0x1c4   : > { %v2737_v47 = vadd.f32 %v1358_v33, %v853_v22  ;;  %v1360_v50 = vpop.f32.mrb[81].mxu0 }
 0x1c6   : > { %2971 = vst [vmem:[#allocation12_spill] sm:$0xff] %v2737_v47  ;;  %v858_v46 = vpop.f32.mrb[82].mxu1 }
 0x1c7   : > { %v1363_v55 = vpop.f32.mrb[82].mxu0  ;;  %v860_v56 = vpop.f32.mrb[83].mxu1 }
 0x1c8   : > { %v2741_v23 = vadd.f32 %v1363_v55, %v858_v46  ;;  %v1365_v7 = vpop.f32.mrb[83].mxu0 }
 0x1ca   : > { %2972 = vst [vmem:[#allocation13_spill] sm:$0xff] %v2741_v23  ;;  %v863_v5 = vpop.f32.mrb[84].mxu1 }
 0x1cb   : > { %v1368_v15 = vpop.f32.mrb[84].mxu0  ;;  %v865_v16 = vpop.f32.mrb[85].mxu1 }
 0x1cc   : > { %v2745_v60 = vadd.f32 %v1368_v15, %v863_v5  ;;  %v1370_v37 = vpop.f32.mrb[85].mxu0 }
 0x1ce   : > { %2973 = vst [vmem:[#allocation14_spill] sm:$0xff] %v2745_v60  ;;  %v868_v33 = vpop.f32.mrb[86].mxu1 }
 0x1cf   : > { %v1373_v50 = vpop.f32.mrb[86].mxu0  ;;  %v870_v42 = vpop.f32.mrb[87].mxu1 }
 0x1d0   : > { %v2749_v40 = vadd.f32 %v1373_v50, %v868_v33  ;;  %v1375_v56 = vpop.f32.mrb[87].mxu0 }
 0x1d2   : > { %2974 = vst [vmem:[#allocation15_spill] sm:$0xff] %v2749_v40  ;;  %v873_v55 = vpop.f32.mrb[88].mxu1 }
 0x1d3   : > { %v1378_v7 = vpop.f32.mrb[88].mxu0  ;;  %v875_v57 = vpop.f32.mrb[89].mxu1 }
 0x1d4   : > { %v2753_v20 = vadd.f32 %v1378_v7, %v873_v55  ;;  %v1380_v16 = vpop.f32.mrb[89].mxu0 }
 0x1d6   : > { %v878_v5 = vpop.f32.mrb[90].mxu1 }
 0x1d7   : > { %v1383_v15 = vpop.f32.mrb[90].mxu0  ;;  %v880_v37 = vpop.f32.mrb[91].mxu1 }
 0x1d8   : > { %v2755_v63 = vadd.f32 %v1383_v15, %v878_v5  ;;  %v1385_v22 = vpop.f32.mrb[91].mxu0 }
 0x1da   : > { %v883_v44 = vpop.f32.mrb[92].mxu1 }
 0x1db   : > { %v1388_v42 = vpop.f32.mrb[92].mxu0  ;;  %v885_v33 = vpop.f32.mrb[93].mxu1 }
 0x1dc   : > { %v2757_v50 = vadd.f32 %v1388_v42, %v883_v44  ;;  %v1390_v56 = vpop.f32.mrb[93].mxu0 }
 0x1de   : > { %v888_v28 = vpop.f32.mrb[94].mxu1 }
 0x1df   : > { %v1393_v46 = vpop.f32.mrb[94].mxu0  ;;  %v890_v12 = vpop.f32.mrb[95].mxu1 }
 0x1e0   : > { %v2759_v59 = vadd.f32 %v1393_v46, %v888_v28  ;;  %v1395_v57 = vpop.f32.mrb[95].mxu0 }
 0x1e2   : > { %v893_v55 = vpop.f32.mrb[96].mxu1 }
 0x1e3   : > { %v1398_v7 = vpop.f32.mrb[96].mxu0  ;;  %v895_v16 = vpop.f32.mrb[97].mxu1 }
 0x1e4   : > { %v2761_v45 = vadd.f32 %v1398_v7, %v893_v55  ;;  %v1400_v5 = vpop.f32.mrb[97].mxu0 }
 0x1e6   : > { %v898_v15 = vpop.f32.mrb[98].mxu1 }
 0x1e7   : > { %v1403_v22 = vpop.f32.mrb[98].mxu0  ;;  %v900_v37 = vpop.f32.mrb[99].mxu1 }
 0x1e8   : > { %v2763_v40 = vadd.f32 %v1403_v22, %v898_v15  ;;  %v1405_v44 = vpop.f32.mrb[99].mxu0 }
 0x1ea   : > { %v903_v42 = vpop.f32.mrb[100].mxu1 }
 0x1eb   : > { %v1408_v33 = vpop.f32.mrb[100].mxu0  ;;  %v905_v56 = vpop.f32.mrb[101].mxu1 }
 0x1ec   : > { %v2765_v25 = vadd.f32 %v1408_v33, %v903_v42  ;;  %v1410_v12 = vpop.f32.mrb[101].mxu0 }
 0x1ee   : > { %v908_v28 = vpop.f32.mrb[102].mxu1 }
 0x1ef   : > { %v1413_v46 = vpop.f32.mrb[102].mxu0  ;;  %v910_v57 = vpop.f32.mrb[103].mxu1 }
 0x1f0   : > { %v2767_v60 = vadd.f32 %v1413_v46, %v908_v28  ;;  %v1415_v55 = vpop.f32.mrb[103].mxu0 }
 0x1f2   : > { %v913_v7 = vpop.f32.mrb[104].mxu1 }
 0x1f3   : > { %v1418_v16 = vpop.f32.mrb[104].mxu0  ;;  %v915_v5 = vpop.f32.mrb[105].mxu1 }
 0x1f4   : > { %v2769_v13 = vadd.f32 %v1418_v16, %v913_v7  ;;  %v1420_v15 = vpop.f32.mrb[105].mxu0 }
 0x1f6   : > { %v918_v22 = vpop.f32.mrb[106].mxu1 }
 0x1f7   : > { %v1423_v37 = vpop.f32.mrb[106].mxu0  ;;  %v920_v44 = vpop.f32.mrb[107].mxu1 }
 0x1f8   : > { %v2771_v23 = vadd.f32 %v1423_v37, %v918_v22  ;;  %v1425_v42 = vpop.f32.mrb[107].mxu0 }
 0x1fa   : > { %v923_v33 = vpop.f32.mrb[108].mxu1 }
 0x1fb   : > { %v1428_v56 = vpop.f32.mrb[108].mxu0  ;;  %v925_v12 = vpop.f32.mrb[109].mxu1 }
 0x1fc   : > { %v2773_v0 = vadd.f32 %v1428_v56, %v923_v33  ;;  %v1430_v28 = vpop.f32.mrb[109].mxu0 }
 0x1fe   : > { %v928_v46 = vpop.f32.mrb[110].mxu1 }
 0x1ff   : > { %v1433_v57 = vpop.f32.mrb[110].mxu0  ;;  %v930_v55 = vpop.f32.mrb[111].mxu1 }
 0x200   : > { %v2775_v47 = vadd.f32 %v1433_v57, %v928_v46  ;;  %v1435_v7 = vpop.f32.mrb[111].mxu0 }
 0x202   : > { %v933_v16 = vpop.f32.mrb[112].mxu1 }
 0x203   : > { %v1438_v5 = vpop.f32.mrb[112].mxu0  ;;  %v935_v15 = vpop.f32.mrb[113].mxu1 }
 0x204   : > { %v2777_v51 = vadd.f32 %v1438_v5, %v933_v16  ;;  %v1440_v22 = vpop.f32.mrb[113].mxu0 }
 0x206   : > { %v938_v37 = vpop.f32.mrb[114].mxu1 }
 0x207   : > { %v1443_v44 = vpop.f32.mrb[114].mxu0  ;;  %v940_v42 = vpop.f32.mrb[115].mxu1 }
 0x208   : > { %v2779_v14 = vadd.f32 %v1443_v44, %v938_v37  ;;  %v1445_v33 = vpop.f32.mrb[115].mxu0 }
 0x20a   : > { %v943_v56 = vpop.f32.mrb[116].mxu1 }
 0x20b   : > { %v1448_v12 = vpop.f32.mrb[116].mxu0  ;;  %v945_v28 = vpop.f32.mrb[117].mxu1 }
 0x20c   : > { %v2781_v41 = vadd.f32 %v1448_v12, %v943_v56  ;;  %v1450_v46 = vpop.f32.mrb[117].mxu0 }
 0x20e   : > { %v948_v57 = vpop.f32.mrb[118].mxu1 }
 0x20f   : > { %v1453_v55 = vpop.f32.mrb[118].mxu0  ;;  %v950_v7 = vpop.f32.mrb[119].mxu1 }
 0x210   : > { %v2783_v32 = vadd.f32 %v1453_v55, %v948_v57  ;;  %v1455_v16 = vpop.f32.mrb[119].mxu0 }
 0x212   : > { %2975 = vst [vmem:[#allocation16_spill] sm:$0xff] %v2783_v32  ;;  %v953_v5 = vpop.f32.mrb[120].mxu1 }
 0x213   : > { %v1458_v15 = vpop.f32.mrb[120].mxu0  ;;  %v955_v22 = vpop.f32.mrb[121].mxu1 }
 0x214   : > { %v2785_v30 = vadd.f32 %v1458_v15, %v953_v5  ;;  %v1460_v37 = vpop.f32.mrb[121].mxu0 }
 0x216   : > { %v958_v44 = vpop.f32.mrb[122].mxu1 }
 0x217   : > { %v1463_v42 = vpop.f32.mrb[122].mxu0  ;;  %v960_v33 = vpop.f32.mrb[123].mxu1 }
 0x218   : > { %v2787_v27 = vadd.f32 %v1463_v42, %v958_v44  ;;  %v1465_v56 = vpop.f32.mrb[123].mxu0 }
 0x21a   : > { %2976 = vst [vmem:[#allocation17_spill] sm:$0xff] %v2787_v27  ;;  %v963_v12 = vpop.f32.mrb[124].mxu1 }
 0x21b   : > { %v1468_v28 = vpop.f32.mrb[124].mxu0  ;;  %v965_v46 = vpop.f32.mrb[125].mxu1 }
 0x21c   : > { %v2789_v18 = vadd.f32 %v1468_v28, %v963_v12  ;;  %v1470_v57 = vpop.f32.mrb[125].mxu0 }
 0x21e   : > { %2977 = vst [vmem:[#allocation18_spill] sm:$0xff] %v2789_v18  ;;  %v968_v55 = vpop.f32.mrb[126].mxu1 }
 0x21f   : > { %v1473_v7 = vpop.f32.mrb[126].mxu0  ;;  %v970_v16 = vpop.f32.mrb[127].mxu1 }
 0x220   : > { %v2791_v32 = vadd.f32 %v1473_v7, %v968_v55  ;;  %v1475_v5 = vpop.f32.mrb[127].mxu0 }
 0x222   : > { %v973_v15 = vpop.f32.mrb[128].mxu1 }
 0x223   : > { %v1478_v22 = vpop.f32.mrb[128].mxu0  ;;  %v975_v37 = vpop.f32.mrb[129].mxu1 }
 0x224   : > { %v2793_v33 = vadd.f32 %v1478_v22, %v973_v15  ;;  %v1480_v44 = vpop.f32.mrb[129].mxu0  ;;  %v2802_v15 = vld [vmem:[%s2945_s2] ss:$0 sm:$0xff] }
 0x226   : > { %v978_v42 = vpop.f32.mrb[130].mxu1 }
 0x227   : > { %v1483_v56 = vpop.f32.mrb[130].mxu0  ;;  %v980_v27 = vpop.f32.mrb[131].mxu1 }
 0x228   : > { %v2795_v46 = vadd.f32 %v1483_v56, %v978_v42  ;;  %v1485_v12 = vpop.f32.mrb[131].mxu0  ;;  %v2978_v27 = vmax.f32 %v2487_v62, %v2619_v38  ;;  %v2979_v62 = vmax.f32 %v2493_v8, %v2627_v53 }
 0x22a   : > { %v983_v28 = vpop.f32.mrb[132].mxu1 }
 0x22b   : > { %v1488_v57 = vpop.f32.mrb[132].mxu0  ;;  %v985_v18 = vpop.f32.mrb[133].mxu1 }
 0x22c   : > { %v1489_v16 = vadd.f32 %v1488_v57, %v983_v28  ;;  %v1490_v55 = vpop.f32.mrb[133].mxu0 }
 0x22e   : > { %v1619_v7 = vmax.f32 %v2753_v20, %v1489_v16  ;;  %v988_v5 = vpop.f32.mrb[134].mxu1 }
 0x22f   : > { %v1493_v22 = vpop.f32.mrb[134].mxu0  ;;  %v990_v37 = vpop.f32.mrb[135].mxu1 }
 0x230   : > { %v1641_v44 = vmax.f32 %v2978_v27, %v1619_v7  ;;  %v1494_v42 = vadd.f32 %v1493_v22, %v988_v5  ;;  %v1495_v56 = vpop.f32.mrb[135].mxu0 }
 0x232   : > { %v1670_v18 = vadd.f32 %v2802_v15, %v1641_v44  ;;  %v1620_v12 = vmax.f32 %v2755_v63, %v1494_v42  ;;  %v993_v20 = vpop.f32.mrb[136].mxu1  ;;  %v2980_v42 = vmax.f32 %v2499_v17, %v2635_v4 }
 0x233   : > { %v1498_v28 = vpop.f32.mrb[136].mxu0  ;;  %v995_v57 = vpop.f32.mrb[137].mxu1 }
 0x234   : > { %v1692_v16 = vmax.f32 %v1670_v18, 0.0  ;;  %v1642_v38 = vmax.f32 %v2979_v62, %v1620_v12  ;;  %v1499_v55 = vadd.f32 %v1498_v28, %v993_v20  ;;  %v1500_v7 = vpop.f32.mrb[137].mxu0 }
 0x236   : > { %1714 = vst [vmem:[%s2812_s27] sm:$0xff] %v1692_v16  ;;  %v1671_v63 = vadd.f32 %v2802_v15, %v1642_v38  ;;  %v1621_v5 = vmax.f32 %v2757_v50, %v1499_v55  ;;  %v998_v22 = vpop.f32.mrb[138].mxu1  ;;  %v2981_v16 = vmax.f32 %v2505_v26, %v2643_v21 }
 0x237   : > { %v1503_v37 = vpop.f32.mrb[138].mxu0  ;;  %v1000_v27 = vpop.f32.mrb[139].mxu1 }
 0x238   : > { %v1693_v44 = vmax.f32 %v1671_v63, 0.0  ;;  %v1643_v56 = vmax.f32 %v2980_v42, %v1621_v5  ;;  %v1504_v18 = vadd.f32 %v1503_v37, %v998_v22  ;;  %v1505_v57 = vpop.f32.mrb[139].mxu0  ;;  %v2982_v22 = vmax.f32 %v2511_v35, %v2651_v36 }
 0x239   : > { %v2983_v57 = vmax.f32 %v2517_v43, %v2659_v54 }
 0x23a   : > { %1715 = vst [vmem:[%s2812_s27 + $0x8] sm:$0xff] %v1693_v44  ;;  %v1672_v8 = vadd.f32 %v2802_v15, %v1643_v56  ;;  %v1622_v53 = vmax.f32 %v2759_v59, %v1504_v18  ;;  %v1003_v12 = vpop.f32.mrb[140].mxu1 }
 0x23b   : > { %v1508_v20 = vpop.f32.mrb[140].mxu0  ;;  %v1005_v50 = vpop.f32.mrb[141].mxu1 }
 0x23c   : > { %v1694_v28 = vmax.f32 %v1672_v8, 0.0  ;;  %v1644_v62 = vmax.f32 %v2981_v16, %v1622_v53  ;;  %v1509_v38 = vadd.f32 %v1508_v20, %v1003_v12  ;;  %v1510_v55 = vpop.f32.mrb[141].mxu0  ;;  %v2984_v16 = vmax.f32 %v2523_v52, %v2667_v10 }
 0x23e   : > { %1716 = vst [vmem:[%s2812_s27 + $0x10] sm:$0xff] %v1694_v28  ;;  %v1673_v17 = vadd.f32 %v2802_v15, %v1644_v62  ;;  %v1623_v4 = vmax.f32 %v2761_v45, %v1509_v38  ;;  %v1008_v7 = vpop.f32.mrb[142].mxu1 }
 0x23f   : > { %v1513_v63 = vpop.f32.mrb[142].mxu0  ;;  %v1010_v59 = vpop.f32.mrb[143].mxu1 }
 0x240   : > { %v1695_v5 = vmax.f32 %v1673_v17, 0.0  ;;  %v1645_v37 = vmax.f32 %v2982_v22, %v1623_v4  ;;  %v1514_v27 = vadd.f32 %v1513_v63, %v1008_v7  ;;  %v1515_v44 = vpop.f32.mrb[143].mxu0  ;;  %v2985_v63 = vmax.f32 %v2529_v61, %v2675_v31 }
 0x242   : > { %1717 = vst [vmem:[%s2812_s27 + $0x18] sm:$0xff] %v1695_v5  ;;  %v1674_v26 = vadd.f32 %v2802_v15, %v1645_v37  ;;  %v1624_v21 = vmax.f32 %v2763_v40, %v1514_v27  ;;  %v1013_v42 = vpop.f32.mrb[144].mxu1 }
 0x243   : > { %v1518_v56 = vpop.f32.mrb[144].mxu0  ;;  %v1015_v45 = vpop.f32.mrb[145].mxu1 }
 0x244   : > { %v1696_v18 = vmax.f32 %v1674_v26, 0.0  ;;  %v1646_v8 = vmax.f32 %v2983_v57, %v1624_v21  ;;  %v1519_v53 = vadd.f32 %v1518_v56, %v1013_v42  ;;  %v1520_v12 = vpop.f32.mrb[145].mxu0  ;;  %v2986_v26 = vmax.f32 %v2535_v9, %v2683_v49 }
 0x246   : > { %1718 = vst [vmem:[%s2812_s27 + $0x20] sm:$0xff] %v1696_v18  ;;  %v1675_v35 = vadd.f32 %v2802_v15, %v1646_v8  ;;  %v1625_v36 = vmax.f32 %v2765_v25, %v1519_v53  ;;  %v1018_v20 = vpop.f32.mrb[146].mxu1  ;;  %v2987_v8 = vmax.f32 %v2541_v19, %v2691_v11 }
 0x247   : > { %v1523_v50 = vpop.f32.mrb[146].mxu0  ;;  %v1020_v40 = vpop.f32.mrb[147].mxu1 }
 0x248   : > { %v1697_v28 = vmax.f32 %v1675_v35, 0.0  ;;  %v1647_v62 = vmax.f32 %v2984_v16, %v1625_v36  ;;  %v1524_v38 = vadd.f32 %v1523_v50, %v1018_v20  ;;  %v1525_v55 = vpop.f32.mrb[147].mxu0  ;;  %v2988_v40 = vmax.f32 %v2547_v29, %v2699_v34 }
 0x24a   : > { %1719 = vst [vmem:[%s2812_s27 + $0x28] sm:$0xff] %v1697_v28  ;;  %v1676_v43 = vadd.f32 %v2802_v15, %v1647_v62  ;;  %v1626_v54 = vmax.f32 %v2767_v60, %v1524_v38  ;;  %v1023_v17 = vpop.f32.mrb[148].mxu1 }
 0x24b   : > { %v1528_v4 = vpop.f32.mrb[148].mxu0  ;;  %v1025_v25 = vpop.f32.mrb[149].mxu1 }
 0x24c   : > { %v1698_v7 = vmax.f32 %v1676_v43, 0.0  ;;  %v1648_v59 = vmax.f32 %v2985_v63, %v1626_v54  ;;  %v1529_v5 = vadd.f32 %v1528_v4, %v1023_v17  ;;  %v1530_v22 = vpop.f32.mrb[149].mxu0  ;;  %v2989_v54 = vmax.f32 %v2553_v39, %v2707_v1 }
 0x24e   : > { %1720 = vst [vmem:[%s2812_s27 + $0x30] sm:$0xff] %v1698_v7  ;;  %v1677_v52 = vadd.f32 %v2802_v15, %v1648_v59  ;;  %v1627_v10 = vmax.f32 %v2769_v13, %v1529_v5  ;;  %v1028_v37 = vpop.f32.mrb[150].mxu1  ;;  %v2990_v5 = vmax.f32 %v2559_v48, %v2713_v24 }
 0x24f   : > { %v1533_v27 = vpop.f32.mrb[150].mxu0  ;;  %v1030_v60 = vpop.f32.mrb[151].mxu1 }
 0x250   : > { %v1699_v44 = vmax.f32 %v1677_v52, 0.0  ;;  %v1649_v21 = vmax.f32 %v2986_v26, %v1627_v10  ;;  %v1534_v42 = vadd.f32 %v1533_v27, %v1028_v37  ;;  %v1535_v56 = vpop.f32.mrb[151].mxu0 }
 0x252   : > { %1721 = vst [vmem:[%s2812_s27 + $0x38] sm:$0xff] %v1699_v44  ;;  %v1678_v61 = vadd.f32 %v2802_v15, %v1649_v21  ;;  %v1628_v31 = vmax.f32 %v2771_v23, %v1534_v42  ;;  %v1033_v45 = vpop.f32.mrb[152].mxu1  ;;  %v2991_v44 = vmax.f32 %v2565_v58, %v2717_v3  ;;  %v2993_v3 = vld [vmem:[#allocation16_spill] sm:$0xff] }
 0x253   : > { %v1538_v18 = vpop.f32.mrb[152].mxu0  ;;  %v1035_v13 = vpop.f32.mrb[153].mxu1 }
 0x254   : > { %v1700_v57 = vmax.f32 %v1678_v61, 0.0  ;;  %v1650_v53 = vmax.f32 %v2987_v8, %v1628_v31  ;;  %v1539_v12 = vadd.f32 %v1538_v18, %v1033_v45  ;;  %v1540_v35 = vpop.f32.mrb[153].mxu0  ;;  %v2992_v45 = vmax.f32 %v2571_v6, %v2721_v2 }
 0x256   : > { %1722 = vst [vmem:[%s2812_s27 + $0x40] sm:$0xff] %v1700_v57  ;;  %v1679_v9 = vadd.f32 %v2802_v15, %v1650_v53  ;;  %v1629_v49 = vmax.f32 %v2773_v0, %v1539_v12  ;;  %v1038_v36 = vpop.f32.mrb[154].mxu1 }
 0x257   : > { %v1543_v20 = vpop.f32.mrb[154].mxu0  ;;  %v1040_v23 = vpop.f32.mrb[155].mxu1 }
 0x258   : > { %v1701_v50 = vmax.f32 %v1679_v9, 0.0  ;;  %v1651_v28 = vmax.f32 %v2988_v40, %v1629_v49  ;;  %v1544_v16 = vadd.f32 %v1543_v20, %v1038_v36  ;;  %v1545_v62 = vpop.f32.mrb[155].mxu0  ;;  %v2994_v9 = vld [vmem:[#allocation2_spill] sm:$0xff]  ;;  %v2995_v49 = vld [vmem:[#allocation9_spill] sm:$0xff] }
 0x259   : > { %v2996_v36 = vmax.f32 %v2994_v9, %v2995_v49  ;;  %v3011_v49 = vld [vmem:[#allocation7_spill] sm:$0xff] }
 0x25a   : > { %1723 = vst [vmem:[%s2812_s27 + $0x48] sm:$0xff] %v1701_v50  ;;  %v1680_v19 = vadd.f32 %v2802_v15, %v1651_v28  ;;  %v1630_v11 = vmax.f32 %v2775_v47, %v1544_v16  ;;  %v1043_v38 = vpop.f32.mrb[156].mxu1 }
 0x25b   : > { %v1548_v55 = vpop.f32.mrb[156].mxu0  ;;  %v1045_v0 = vpop.f32.mrb[157].mxu1 }
 0x25c   : > { %v1702_v43 = vmax.f32 %v1680_v19, 0.0  ;;  %v1652_v17 = vmax.f32 %v2989_v54, %v1630_v11  ;;  %v1549_v4 = vadd.f32 %v1548_v55, %v1043_v38  ;;  %v1550_v25 = vpop.f32.mrb[157].mxu0  ;;  %v2997_v19 = vld [vmem:[#allocation3_spill] sm:$0xff]  ;;  %v2998_v11 = vld [vmem:[#allocation10_spill] sm:$0xff] }
 0x25d   : > { %v2999_v38 = vmax.f32 %v2997_v19, %v2998_v11 }
 0x25e   : > { %1724 = vst [vmem:[%s2812_s27 + $0x50] sm:$0xff] %v1702_v43  ;;  %v1681_v29 = vadd.f32 %v2802_v15, %v1652_v17  ;;  %v1631_v34 = vmax.f32 %v2777_v51, %v1549_v4  ;;  %v1048_v7 = vpop.f32.mrb[158].mxu1  ;;  %v3000_v17 = vld [vmem:[#allocation17_spill] sm:$0xff] }
 0x25f   : > { %v1553_v63 = vpop.f32.mrb[158].mxu0  ;;  %v1050_v47 = vpop.f32.mrb[159].mxu1 }
 0x260   : > { %v1703_v59 = vmax.f32 %v1681_v29, 0.0  ;;  %v1653_v22 = vmax.f32 %v2990_v5, %v1631_v34  ;;  %v1554_v52 = vadd.f32 %v1553_v63, %v1048_v7  ;;  %v1555_v10 = vpop.f32.mrb[159].mxu0  ;;  %v3001_v7 = vld [vmem:[#allocation4_spill] sm:$0xff]  ;;  %v3002_v63 = vld [vmem:[#allocation11_spill] sm:$0xff] }
 0x261   : > { %v3003_v47 = vmax.f32 %v3001_v7, %v3002_v63  ;;  %v3004_v10 = vld [vmem:[#allocation18_spill] sm:$0xff] }
 0x262   : > { %1725 = vst [vmem:[%s2812_s27 + $0x58] sm:$0xff] %v1703_v59  ;;  %v1682_v39 = vadd.f32 %v2802_v15, %v1653_v22  ;;  %v1632_v1 = vmax.f32 %v2779_v14, %v1554_v52  ;;  %v1053_v37 = vpop.f32.mrb[160].mxu1 }
 0x263   : > { %v1558_v27 = vpop.f32.mrb[160].mxu0  ;;  %v1055_v51 = vpop.f32.mrb[161].mxu1 }
 0x264   : > { %v1704_v60 = vmax.f32 %v1682_v39, 0.0  ;;  %v1654_v26 = vmax.f32 %v2991_v44, %v1632_v1  ;;  %v1559_v21 = vadd.f32 %v1558_v27, %v1053_v37  ;;  %v1560_v42 = vpop.f32.mrb[161].mxu0  ;;  %v3006_v44 = vld [vmem:[#allocation12_spill] sm:$0xff] }
 0x266   : > { %1726 = vst [vmem:[%s2812_s27 + $0x60] sm:$0xff] %v1704_v60  ;;  %v1683_v48 = vadd.f32 %v2802_v15, %v1654_v26  ;;  %v1633_v24 = vmax.f32 %v2781_v41, %v1559_v21  ;;  %v1058_v56 = vpop.f32.mrb[162].mxu1  ;;  %v3005_v60 = vld [vmem:[#allocation5_spill] sm:$0xff] }
 0x267   : > { %v1563_v61 = vpop.f32.mrb[162].mxu0  ;;  %v1060_v14 = vpop.f32.mrb[163].mxu1  ;;  %v3007_v26 = vmax.f32 %v3005_v60, %v3006_v44 }
 0x268   : > { %v1705_v31 = vmax.f32 %v1683_v48, 0.0  ;;  %v1655_v18 = vmax.f32 %v2992_v45, %v1633_v24  ;;  %v1564_v13 = vadd.f32 %v1563_v61, %v1058_v56  ;;  %v1565_v57 = vpop.f32.mrb[163].mxu0 }
 0x26a   : > { %1727 = vst [vmem:[%s2812_s27 + $0x68] sm:$0xff] %v1705_v31  ;;  %v1684_v58 = vadd.f32 %v2802_v15, %v1655_v18  ;;  %v1634_v8 = vmax.f32 %v2993_v3, %v1564_v13  ;;  %v1063_v53 = vpop.f32.mrb[164].mxu1  ;;  %v3008_v18 = vld [vmem:[#allocation6_spill] sm:$0xff]  ;;  %v3009_v13 = vld [vmem:[#allocation13_spill] sm:$0xff] }
 0x26b   : > { %v1568_v12 = vpop.f32.mrb[164].mxu0  ;;  %v1065_v41 = vpop.f32.mrb[165].mxu1  ;;  %v3010_v57 = vmax.f32 %v3008_v18, %v3009_v13 }
 0x26c   : > { %v1706_v35 = vmax.f32 %v1684_v58, 0.0  ;;  %v1656_v20 = vmax.f32 %v2996_v36, %v1634_v8  ;;  %v1569_v23 = vadd.f32 %v1568_v12, %v1063_v53  ;;  %v1570_v50 = vpop.f32.mrb[165].mxu0  ;;  %v3012_v36 = vld [vmem:[#allocation14_spill] sm:$0xff] }
 0x26e   : > { %1728 = vst [vmem:[%s2812_s27 + $0x70] sm:$0xff] %v1706_v35  ;;  %v1685_v6 = vadd.f32 %v2802_v15, %v1656_v20  ;;  %v1635_v2 = vmax.f32 %v2785_v30, %v1569_v23  ;;  %v1068_v40 = vpop.f32.mrb[166].mxu1  ;;  %v3013_v20 = vmax.f32 %v3011_v49, %v3012_v36 }
 0x26f   : > { %v1573_v28 = vpop.f32.mrb[166].mxu0  ;;  %v1070_v16 = vpop.f32.mrb[167].mxu1 }
 0x270   : > { %v1707_v62 = vmax.f32 %v1685_v6, 0.0  ;;  %v1657_v55 = vmax.f32 %v2999_v38, %v1635_v2  ;;  %v1574_v0 = vadd.f32 %v1573_v28, %v1068_v40  ;;  %v1575_v43 = vpop.f32.mrb[167].mxu0  ;;  %v3014_v16 = vld [vmem:[#allocation8_spill] sm:$0xff] }
 0x272   : > { %1729 = vst [vmem:[%s2812_s27 + $0x78] sm:$0xff] %v1707_v62  ;;  %v1686_v54 = vadd.f32 %v2802_v15, %v1657_v55  ;;  %v1636_v4 = vmax.f32 %v3000_v17, %v1574_v0  ;;  %v1073_v25 = vpop.f32.mrb[168].mxu1  ;;  %v3015_v62 = vld [vmem:[#allocation15_spill] sm:$0xff] }
 0x273   : > { %v1578_v29 = vpop.f32.mrb[168].mxu0  ;;  %v1075_v30 = vpop.f32.mrb[169].mxu1 }
 0x274   : > { %v1708_v34 = vmax.f32 %v1686_v54, 0.0  ;;  %v1658_v59 = vmax.f32 %v3003_v47, %v1636_v4  ;;  %v1579_v5 = vadd.f32 %v1578_v29, %v1073_v25  ;;  %v1580_v22 = vpop.f32.mrb[169].mxu0 }
 0x276   : > { %1730 = vst [vmem:[%s2812_s27 + $0x80] sm:$0xff] %v1708_v34  ;;  %v1687_v52 = vadd.f32 %v2802_v15, %v1658_v59  ;;  %v1637_v39 = vmax.f32 %v3004_v10, %v1579_v5  ;;  %v1078_v1 = vpop.f32.mrb[170].mxu1 }
 0x277   : > { %v1583_v37 = vpop.f32.mrb[170].mxu0  ;;  %v1080_v27 = vpop.f32.mrb[171].mxu1 }
 0x278   : > { %v1709_v51 = vmax.f32 %v1687_v52, 0.0  ;;  %v1659_v21 = vmax.f32 %v3007_v26, %v1637_v39  ;;  %v1584_v42 = vadd.f32 %v1583_v37, %v1078_v1  ;;  %v1585_v48 = vpop.f32.mrb[171].mxu0 }
 0x27a   : > { %1731 = vst [vmem:[%s2812_s27 + $0x88] sm:$0xff] %v1709_v51  ;;  %v1688_v24 = vadd.f32 %v2802_v15, %v1659_v21  ;;  %v1638_v56 = vmax.f32 %v2791_v32, %v1584_v42  ;;  %v1083_v61 = vpop.f32.mrb[172].mxu1 }
 0x27b   : > { %v1588_v14 = vpop.f32.mrb[172].mxu0  ;;  %v1085_v31 = vpop.f32.mrb[173].mxu1 }
 0x27c   : > { %v1710_v45 = vmax.f32 %v1688_v24, 0.0  ;;  %v1660_v58 = vmax.f32 %v3010_v57, %v1638_v56  ;;  %v1589_v3 = vadd.f32 %v1588_v14, %v1083_v61  ;;  %v1590_v8 = vpop.f32.mrb[173].mxu0 }
 0x27e   : > { %1732 = vst [vmem:[%s2812_s27 + $0x90] sm:$0xff] %v1710_v45  ;;  %v1689_v53 = vadd.f32 %v2802_v15, %v1660_v58  ;;  %v1639_v12 = vmax.f32 %v2793_v33, %v1589_v3  ;;  %v1088_v41 = vpop.f32.mrb[174].mxu1  ;;  %v3016_v33 = vmax.f32 %v3014_v16, %v3015_v62 }
 0x27f   : > { %v1593_v32 = vpop.f32.mrb[174].mxu0  ;;  %v1090_v35 = vpop.f32.mrb[175].mxu1 }
 0x280   : > { %v1711_v9 = vmax.f32 %v1689_v53, 0.0  ;;  %v1661_v23 = vmax.f32 %v3013_v20, %v1639_v12  ;;  %v1594_v50 = vadd.f32 %v1593_v32, %v1088_v41  ;;  %v1595_v6 = vpop.f32.mrb[175].mxu0 }
 0x282   : > { %1733 = vst [vmem:[%s2812_s27 + $0x98] sm:$0xff] %v1711_v9  ;;  %v1690_v2 = vadd.f32 %v2802_v15, %v1661_v23  ;;  %v1640_v40 = vmax.f32 %v2795_v46, %v1594_v50 }
 0x284   : > { %v1712_v28 = vmax.f32 %v1690_v2, 0.0  ;;  %v1662_v19 = vmax.f32 %v3016_v33, %v1640_v40 }
 0x286   : > { %1734 = vst [vmem:[%s2812_s27 + $0xa0] sm:$0xff] %v1712_v28  ;;  %v1691_v11 = vadd.f32 %v2802_v15, %v1662_v19 }
 0x288   : > { %v1713_v38 = vmax.f32 %v1691_v11, 0.0 }
 0x28a   : > { %1735 = vst [vmem:[%s2812_s27 + $0xa8] sm:$0xff] %v1713_v38 }
 0x28b PF: > { %s13_s12 = sadd.s32 1, %s2002_s12  }
 0x28c   : > { %p10_p4 = scmp.ge.s32.totalorder %s13_s12, 4  }
 0x28e   :  { %12 = sbr.rel (!%p10_p4) target bundleno = 1 (0x1), region = 62 }

// kernel: forward_pallas.5
= control target key start
LH: loop header
LB: loop body
LE: loop exit
PB: predicated region body
PF: predicated region fallthrough
CT: control target
= control target key end

     0   :  { %vm5857_vm0 = vmmov 0   ;;  %s9311_s1 = inlined_call_operand.vmem [shape: f32[8192,128], index: 1, kind: input, shape index: {}]   ;;  %s9312_s0 = inlined_call_operand.vmem [shape: f32[8,8192], index: 0, kind: input, shape index: {}]   ;;  %s9313_s2 = inlined_call_operand.vmem [shape: f32[1,128], index: 2, kind: input, shape index: {}]   ;;  %s9314_s3 = inlined_call_operand.vmem [shape: f32[128,128], index: 3, kind: input, shape index: {}]   ;;  %s9315_s5 = inlined_call_operand.vmem [shape: f32[128,128], index: 5, kind: input, shape index: {}]   ;;  %s9316_s4 = inlined_call_operand.vmem [shape: f32[1,128], index: 4, kind: input, shape index: {}]   ;;  %s9317_s6 = inlined_call_operand.vmem [shape: f32[1,128], index: 6, kind: input, shape index: {}]   ;;  %s9318_s7 = inlined_call_operand.vmem [shape: f32[8,128], index: 7, kind: output, shape index: {}]  }
   0x1   :  { %v106_v0 = vld [vmem:[%s9311_s1 + $0x80] sm:$0xff]  ;;  %v107_v1 = vld [vmem:[%s9311_s1 + $0x88] sm:$0xff]  ;;  %v108_v11 = vld [vmem:[%s9311_s1 + $0x90] sm:$0xff] }
   0x2   :  { %v90_v2 = vld [vmem:[%s9311_s1] sm:$0xff]  ;;  %v4781_v3 = vpack.c.bf16 %v107_v1, %v106_v0  ;;  %v91_v4 = vld [vmem:[%s9311_s1 + $0x8] sm:$0xff]  ;;  %v109_v13 = vld [vmem:[%s9311_s1 + $0x98] sm:$0xff] }
   0x3   :  { %v138_v5 = vld [vmem:[%s9311_s1 + $0x180] sm:$0xff]  ;;  %v139_v6 = vld [vmem:[%s9311_s1 + $0x188] sm:$0xff]  ;;  %v4783_v7 = vpack.c.bf16 %v91_v4, %v90_v2  ;;  %v92_v14 = vld [vmem:[%s9311_s1 + $0x10] sm:$0xff]  ;;  %v4785_v16 = vpack.c.bf16 %v109_v13, %v108_v11 }
   0x4   :  { %v4813_v8 = vpack.c.bf16 %v139_v6, %v138_v5  ;;  %v122_v9 = vld [vmem:[%s9311_s1 + $0x100] sm:$0xff]  ;;  %v123_v10 = vld [vmem:[%s9311_s1 + $0x108] sm:$0xff]  ;;  %4782 = vmatprep.subr.bf16.mxu0 %v4781_v3  ;;  %v93_v15 = vld [vmem:[%s9311_s1 + $0x18] sm:$0xff] }
   0x5   :  { %v4815_v12 = vpack.c.bf16 %v123_v10, %v122_v9  ;;  %4784 = vmatpush3.bf16.msra.mxu0 %v4783_v7  ;;  %v4787_v17 = vpack.c.bf16 %v93_v15, %v92_v14  ;;  %v140_v18 = vld [vmem:[%s9311_s1 + $0x190] sm:$0xff]  ;;  %v141_v19 = vld [vmem:[%s9311_s1 + $0x198] sm:$0xff]  ;;  %v110_v23 = vld [vmem:[%s9311_s1 + $0xa0] sm:$0xff] }
   0x6   :  { %4814 = vmatprep.subr.bf16.mxu1 %v4813_v8  ;;  %v124_v20 = vld [vmem:[%s9311_s1 + $0x110] sm:$0xff]  ;;  %v4817_v21 = vpack.c.bf16 %v141_v19, %v140_v18  ;;  %v125_v22 = vld [vmem:[%s9311_s1 + $0x118] sm:$0xff]  ;;  %v111_v24 = vld [vmem:[%s9311_s1 + $0xa8] sm:$0xff]  ;;  %4786 = vmatprep.subr.bf16.mxu0 %v4785_v16 }
   0x7   :  { %4816 = vmatpush3.bf16.msra.mxu1 %v4815_v12  ;;  %v4819_v25 = vpack.c.bf16 %v125_v22, %v124_v20  ;;  %v4789_v26 = vpack.c.bf16 %v111_v24, %v110_v23  ;;  %v94_v27 = vld [vmem:[%s9311_s1 + $0x20] sm:$0xff]  ;;  %v95_v28 = vld [vmem:[%s9311_s1 + $0x28] sm:$0xff]  ;;  %v112_v35 = vld [vmem:[%s9311_s1 + $0xb0] sm:$0xff] }
   0x8   :  { %v142_v29 = vld [vmem:[%s9311_s1 + $0x1a0] sm:$0xff]  ;;  %4818 = vmatprep.subr.bf16.mxu1 %v4817_v21  ;;  %v143_v30 = vld [vmem:[%s9311_s1 + $0x1a8] sm:$0xff]  ;;  %v4791_v33 = vpack.c.bf16 %v95_v28, %v94_v27  ;;  %v113_v36 = vld [vmem:[%s9311_s1 + $0xb8] sm:$0xff] }
   0x9   :  { %v126_v31 = vld [vmem:[%s9311_s1 + $0x120] sm:$0xff]  ;;  %v127_v32 = vld [vmem:[%s9311_s1 + $0x128] sm:$0xff]  ;;  %4788 = vmatpush3.bf16.msra.mxu0 %v4787_v17  ;;  %v4821_v34 = vpack.c.bf16 %v143_v30, %v142_v29  ;;  %v96_v37 = vld [vmem:[%s9311_s1 + $0x30] sm:$0xff]  ;;  %v4793_v39 = vpack.c.bf16 %v113_v36, %v112_v35 }
   0xa   :  { %4790 = vmatprep.subr.bf16.mxu0 %v4789_v26  ;;  %v4823_v38 = vpack.c.bf16 %v127_v32, %v126_v31  ;;  %v97_v40 = vld [vmem:[%s9311_s1 + $0x38] sm:$0xff]  ;;  %v144_v41 = vld [vmem:[%s9311_s1 + $0x1b0] sm:$0xff]  ;;  %v114_v46 = vld [vmem:[%s9311_s1 + $0xc0] sm:$0xff] }
   0xb   :  { %4820 = vmatpush3.bf16.msra.mxu1 %v4819_v25  ;;  %v145_v42 = vld [vmem:[%s9311_s1 + $0x1b8] sm:$0xff]  ;;  %v128_v44 = vld [vmem:[%s9311_s1 + $0x130] sm:$0xff]  ;;  %v115_v47 = vld [vmem:[%s9311_s1 + $0xc8] sm:$0xff]  ;;  %v4795_v48 = vpack.c.bf16 %v97_v40, %v96_v37 }
   0xc   :  { %4822 = vmatprep.subr.bf16.mxu1 %v4821_v34  ;;  %v4825_v43 = vpack.c.bf16 %v145_v42, %v144_v41  ;;  %v129_v45 = vld [vmem:[%s9311_s1 + $0x138] sm:$0xff]  ;;  %v146_v49 = vld [vmem:[%s9311_s1 + $0x1c0] sm:$0xff]  ;;  %v147_v50 = vld [vmem:[%s9311_s1 + $0x1c8] sm:$0xff]  ;;  %v4797_v52 = vpack.c.bf16 %v115_v47, %v114_v46 }
   0xd   :  { %4792 = vmatpush3.bf16.msra.mxu0 %v4791_v33  ;;  %v4827_v51 = vpack.c.bf16 %v129_v45, %v128_v44  ;;  %v98_v53 = vld [vmem:[%s9311_s1 + $0x40] sm:$0xff]  ;;  %v99_v54 = vld [vmem:[%s9311_s1 + $0x48] sm:$0xff]  ;;  %v4829_v56 = vpack.c.bf16 %v147_v50, %v146_v49  ;;  %v116_v58 = vld [vmem:[%s9311_s1 + $0xd0] sm:$0xff] }
   0xe   :  { %4794 = vmatprep.subr.bf16.mxu0 %v4793_v39  ;;  %v130_v55 = vld [vmem:[%s9311_s1 + $0x140] sm:$0xff]  ;;  %v131_v57 = vld [vmem:[%s9311_s1 + $0x148] sm:$0xff]  ;;  %v117_v59 = vld [vmem:[%s9311_s1 + $0xd8] sm:$0xff]  ;;  %v4799_v62 = vpack.c.bf16 %v99_v54, %v98_v53 }
   0xf   :  { %4824 = vmatpush3.bf16.msra.mxu1 %v4823_v38  ;;  %v148_v60 = vld [vmem:[%s9311_s1 + $0x1d0] sm:$0xff]  ;;  %v149_v61 = vld [vmem:[%s9311_s1 + $0x1d8] sm:$0xff]  ;;  %v4831_v63 = vpack.c.bf16 %v131_v57, %v130_v55  ;;  %v4801_v0 = vpack.c.bf16 %v117_v59, %v116_v58  ;;  %v118_v6 = vld [vmem:[%s9311_s1 + $0xe0] sm:$0xff] }
  0x10   :  { %4826 = vmatprep.subr.bf16.mxu1 %v4825_v43  ;;  %v100_v1 = vld [vmem:[%s9311_s1 + $0x50] sm:$0xff]  ;;  %v101_v2 = vld [vmem:[%s9311_s1 + $0x58] sm:$0xff]  ;;  %v4833_v4 = vpack.c.bf16 %v149_v61, %v148_v60  ;;  %v119_v7 = vld [vmem:[%s9311_s1 + $0xe8] sm:$0xff] }
  0x11   :  { %4796 = vmatpush3.bf16.msra.mxu0 %v4795_v48  ;;  %v132_v3 = vld [vmem:[%s9311_s1 + $0x150] sm:$0xff]  ;;  %v133_v5 = vld [vmem:[%s9311_s1 + $0x158] sm:$0xff]  ;;  %v150_v8 = vld [vmem:[%s9311_s1 + $0x1e0] sm:$0xff]  ;;  %v4803_v10 = vpack.c.bf16 %v101_v2, %v100_v1  ;;  %v4805_v14 = vpack.c.bf16 %v119_v7, %v118_v6 }
  0x12   :  { %4798 = vmatprep.subr.bf16.mxu0 %v4797_v52  ;;  %v151_v9 = vld [vmem:[%s9311_s1 + $0x1e8] sm:$0xff]  ;;  %v102_v11 = vld [vmem:[%s9311_s1 + $0x60] sm:$0xff]  ;;  %v4835_v13 = vpack.c.bf16 %v133_v5, %v132_v3  ;;  %v120_v19 = vld [vmem:[%s9311_s1 + $0xf0] sm:$0xff] }
  0x13   :  { %4828 = vmatpush3.bf16.msra.mxu1 %v4827_v51  ;;  %v103_v12 = vld [vmem:[%s9311_s1 + $0x68] sm:$0xff]  ;;  %v134_v15 = vld [vmem:[%s9311_s1 + $0x160] sm:$0xff]  ;;  %v4837_v18 = vpack.c.bf16 %v151_v9, %v150_v8  ;;  %v121_v20 = vld [vmem:[%s9311_s1 + $0xf8] sm:$0xff] }
  0x14   :  { %4830 = vmatprep.subr.bf16.mxu1 %v4829_v56  ;;  %v135_v16 = vld [vmem:[%s9311_s1 + $0x168] sm:$0xff]  ;;  %v29_v21 = vld [vmem:[%s9312_s0 + $0x18] sm:$0xff]  ;;  %v152_v22 = vld [vmem:[%s9311_s1 + $0x1f0] sm:$0xff]  ;;  %v4807_v24 = vpack.c.bf16 %v103_v12, %v102_v11  ;;  %v4809_v26 = vpack.c.bf16 %v121_v20, %v120_v19 }
  0x15   :  { %4800 = vmatpush3.bf16.msra.mxu0 %v4799_v62  ;;  %v27_v17 = vld [vmem:[%s9312_s0 + $0x8] sm:$0xff]  ;;  %v153_v23 = vld [vmem:[%s9311_s1 + $0x1f8] sm:$0xff]  ;;  %1255 = vmatprep.mubr.f32.mxu1 %v29_v21  ;;  %v4839_v25 = vpack.c.bf16 %v135_v16, %v134_v15  ;;  %v104_v27 = vld [vmem:[%s9311_s1 + $0x70] sm:$0xff] }
  0x16   :  { %4802 = vmatprep.subr.bf16.mxu0 %v4801_v0  ;;  %1185 = vmatprep.mubr.f32.mxu0 %v27_v17  ;;  %v105_v28 = vld [vmem:[%s9311_s1 + $0x78] sm:$0xff]  ;;  %v136_v29 = vld [vmem:[%s9311_s1 + $0x170] sm:$0xff]  ;;  %v4841_v30 = vpack.c.bf16 %v153_v23, %v152_v22  ;;  %v170_v32 = vld [vmem:[%s9311_s1 + $0x280] sm:$0xff] }
  0x17   :  { %4832 = vmatpush3.bf16.msra.mxu1 %v4831_v63  ;;  %v137_v31 = vld [vmem:[%s9311_s1 + $0x178] sm:$0xff]  ;;  %v171_v33 = vld [vmem:[%s9311_s1 + $0x288] sm:$0xff]  ;;  %v202_v34 = vld [vmem:[%s9311_s1 + $0x380] sm:$0xff]  ;;  %v4811_v36 = vpack.c.bf16 %v105_v28, %v104_v27 }
  0x18   :  { %4834 = vmatprep.subr.bf16.mxu1 %v4833_v4  ;;  %v203_v35 = vld [vmem:[%s9311_s1 + $0x388] sm:$0xff]  ;;  %v4843_v37 = vpack.c.bf16 %v137_v31, %v136_v29  ;;  %v4845_v38 = vpack.c.bf16 %v171_v33, %v170_v32  ;;  %v154_v39 = vld [vmem:[%s9311_s1 + $0x200] sm:$0xff]  ;;  %v172_v44 = vld [vmem:[%s9311_s1 + $0x290] sm:$0xff] }
  0x19   :  { %4804 = vmatpush3.bf16.msra.mxu0 %v4803_v10  ;;  %v155_v40 = vld [vmem:[%s9311_s1 + $0x208] sm:$0xff]  ;;  %v186_v41 = vld [vmem:[%s9311_s1 + $0x300] sm:$0xff]  ;;  %v4877_v42 = vpack.c.bf16 %v203_v35, %v202_v34  ;;  %v173_v45 = vld [vmem:[%s9311_s1 + $0x298] sm:$0xff] }
  0x1a   :  { %4806 = vmatprep.subr.bf16.mxu0 %v4805_v14  ;;  %v187_v43 = vld [vmem:[%s9311_s1 + $0x308] sm:$0xff]  ;;  %v204_v46 = vld [vmem:[%s9311_s1 + $0x390] sm:$0xff]  ;;  %v205_v47 = vld [vmem:[%s9311_s1 + $0x398] sm:$0xff]  ;;  %v4847_v49 = vpack.c.bf16 %v155_v40, %v154_v39  ;;  %v4849_v52 = vpack.c.bf16 %v173_v45, %v172_v44 }
  0x1b   :  { %4836 = vmatpush3.bf16.msra.mxu1 %v4835_v13  ;;  %v26_v48 = vld [vmem:[%s9312_s0] sm:$0xff]  ;;  %v28_v50 = vld [vmem:[%s9312_s0 + $0x10] sm:$0xff]  ;;  %v4879_v51 = vpack.c.bf16 %v187_v43, %v186_v41  ;;  %v157_v54 = vld [vmem:[%s9311_s1 + $0x218] sm:$0xff]  ;;  %v4881_v56 = vpack.c.bf16 %v205_v47, %v204_v46 }
  0x1c   :  { %4838 = vmatprep.subr.bf16.mxu1 %v4837_v18  ;;  %v156_v53 = vld [vmem:[%s9311_s1 + $0x210] sm:$0xff]  ;;  %v189_v57 = vld [vmem:[%s9311_s1 + $0x318] sm:$0xff]  ;;  %v174_v58 = vld [vmem:[%s9311_s1 + $0x2a0] sm:$0xff] }
  0x1d   :  { %4808 = vmatpush3.bf16.msra.mxu0 %v4807_v24  ;;  %v188_v55 = vld [vmem:[%s9311_s1 + $0x310] sm:$0xff]  ;;  %v175_v59 = vld [vmem:[%s9311_s1 + $0x2a8] sm:$0xff]  ;;  %v206_v60 = vld [vmem:[%s9311_s1 + $0x3a0] sm:$0xff]  ;;  %v4851_v62 = vpack.c.bf16 %v157_v54, %v156_v53 }
  0x1e   :  { %4810 = vmatprep.subr.bf16.mxu0 %v4809_v26  ;;  %v207_v61 = vld [vmem:[%s9311_s1 + $0x3a8] sm:$0xff]  ;;  %v4883_v63 = vpack.c.bf16 %v189_v57, %v188_v55  ;;  %v4853_v0 = vpack.c.bf16 %v175_v59, %v174_v58  ;;  %v158_v1 = vld [vmem:[%s9311_s1 + $0x220] sm:$0xff]  ;;  %v176_v6 = vld [vmem:[%s9311_s1 + $0x2b0] sm:$0xff] }
  0x1f   :  { %4840 = vmatpush3.bf16.msra.mxu1 %v4839_v25  ;;  %v159_v2 = vld [vmem:[%s9311_s1 + $0x228] sm:$0xff]  ;;  %v190_v3 = vld [vmem:[%s9311_s1 + $0x320] sm:$0xff]  ;;  %v4885_v4 = vpack.c.bf16 %v207_v61, %v206_v60  ;;  %v177_v7 = vld [vmem:[%s9311_s1 + $0x2b8] sm:$0xff] }
  0x20   :  { %4842 = vmatprep.subr.bf16.mxu1 %v4841_v30  ;;  %v191_v5 = vld [vmem:[%s9311_s1 + $0x328] sm:$0xff]  ;;  %v208_v8 = vld [vmem:[%s9311_s1 + $0x3b0] sm:$0xff]  ;;  %v209_v9 = vld [vmem:[%s9311_s1 + $0x3b8] sm:$0xff]  ;;  %v4855_v10 = vpack.c.bf16 %v159_v2, %v158_v1  ;;  %v4857_v12 = vpack.c.bf16 %v177_v7, %v176_v6 }
  0x21   :  { %4812 = vmatpush3.bf16.msra.mxu0 %v4811_v36  ;;  %v4887_v11 = vpack.c.bf16 %v191_v5, %v190_v3  ;;  %v160_v13 = vld [vmem:[%s9311_s1 + $0x230] sm:$0xff]  ;;  %v161_v14 = vld [vmem:[%s9311_s1 + $0x238] sm:$0xff]  ;;  %v4889_v16 = vpack.c.bf16 %v209_v9, %v208_v8  ;;  %v178_v18 = vld [vmem:[%s9311_s1 + $0x2c0] sm:$0xff] }
  0x22   :  { %4846 = vmatprep.subr.bf16.mxu0 %v4845_v38  ;;  %v192_v15 = vld [vmem:[%s9311_s1 + $0x330] sm:$0xff]  ;;  %v193_v17 = vld [vmem:[%s9311_s1 + $0x338] sm:$0xff]  ;;  %v179_v19 = vld [vmem:[%s9311_s1 + $0x2c8] sm:$0xff]  ;;  %v4859_v22 = vpack.c.bf16 %v161_v14, %v160_v13 }
  0x23   :  { %4844 = vmatpush3.bf16.msra.mxu1 %v4843_v37  ;;  %v210_v20 = vld [vmem:[%s9311_s1 + $0x3c0] sm:$0xff]  ;;  %v211_v21 = vld [vmem:[%s9311_s1 + $0x3c8] sm:$0xff]  ;;  %v4891_v25 = vpack.c.bf16 %v193_v17, %v192_v15  ;;  %v4861_v26 = vpack.c.bf16 %v179_v19, %v178_v18  ;;  %v33_v29 = vld [vmem:[%s9312_s0 + $0x38] sm:$0xff] }
  0x24   :  { %4878 = vmatprep.subr.bf16.mxu1 %v4877_v42  ;;  %1186 = vmatmul.mubr.f32.vlgmr.msra.gmra.mrb[0].mxu0 %v26_v48  ;;  %v162_v23 = vld [vmem:[%s9311_s1 + $0x240] sm:$0xff]  ;;  %v31_v24 = vld [vmem:[%s9312_s0 + $0x28] sm:$0xff]  ;;  %v4893_v30 = vpack.c.bf16 %v211_v21, %v210_v20  ;;  %v180_v32 = vld [vmem:[%s9311_s1 + $0x2d0] sm:$0xff] }
  0x25   :  { %4848 = vmatpush3.bf16.msra.mxu0 %v4847_v49  ;;  %v163_v27 = vld [vmem:[%s9311_s1 + $0x248] sm:$0xff]  ;;  %v194_v28 = vld [vmem:[%s9311_s1 + $0x340] sm:$0xff]  ;;  %v181_v33 = vld [vmem:[%s9311_s1 + $0x2d8] sm:$0xff]  ;;  %1325 = vmatprep.mubr.f32.mxu0 %v31_v24 }
  0x26   :  { %1256 = vmatmul.mubr.f32.vlgmr.msra.gmra.mrb[0].mxu1 %v28_v50  ;;  %4850 = vmatprep.subr.bf16.mxu0 %v4849_v52  ;;  %v195_v31 = vld [vmem:[%s9311_s1 + $0x348] sm:$0xff]  ;;  %v212_v34 = vld [vmem:[%s9311_s1 + $0x3d0] sm:$0xff]  ;;  %v213_v35 = vld [vmem:[%s9311_s1 + $0x3d8] sm:$0xff]  ;;  %v4863_v36 = vpack.c.bf16 %v163_v27, %v162_v23  ;;  %v4865_v38 = vpack.c.bf16 %v181_v33, %v180_v32 }
  0x27   :  { %4880 = vmatpush3.bf16.msra.mxu1 %v4879_v51  ;;  %1395 = vmatprep.mubr.f32.mxu1 %v33_v29  ;;  %v4895_v37 = vpack.c.bf16 %v195_v31, %v194_v28  ;;  %v164_v39 = vld [vmem:[%s9311_s1 + $0x250] sm:$0xff]  ;;  %v165_v40 = vld [vmem:[%s9311_s1 + $0x258] sm:$0xff]  ;;  %v4897_v42 = vpack.c.bf16 %v213_v35, %v212_v34  ;;  %v182_v44 = vld [vmem:[%s9311_s1 + $0x2e0] sm:$0xff] }
  0x28   :  { %4882 = vmatprep.subr.bf16.mxu1 %v4881_v56  ;;  %v196_v41 = vld [vmem:[%s9311_s1 + $0x350] sm:$0xff]  ;;  %v197_v43 = vld [vmem:[%s9311_s1 + $0x358] sm:$0xff]  ;;  %v183_v45 = vld [vmem:[%s9311_s1 + $0x2e8] sm:$0xff]  ;;  %v4867_v48 = vpack.c.bf16 %v165_v40, %v164_v39 }
  0x29   :  { %4852 = vmatpush3.bf16.msra.mxu0 %v4851_v62  ;;  %v214_v46 = vld [vmem:[%s9311_s1 + $0x3e0] sm:$0xff]  ;;  %v215_v47 = vld [vmem:[%s9311_s1 + $0x3e8] sm:$0xff]  ;;  %v4899_v49 = vpack.c.bf16 %v197_v43, %v196_v41  ;;  %v4869_v50 = vpack.c.bf16 %v183_v45, %v182_v44  ;;  %v184_v56 = vld [vmem:[%s9311_s1 + $0x2f0] sm:$0xff] }
  0x2a   :  { %4854 = vmatprep.subr.bf16.mxu0 %v4853_v0  ;;  %v166_v51 = vld [vmem:[%s9311_s1 + $0x260] sm:$0xff]  ;;  %v167_v52 = vld [vmem:[%s9311_s1 + $0x268] sm:$0xff]  ;;  %v4901_v54 = vpack.c.bf16 %v215_v47, %v214_v46  ;;  %v185_v57 = vld [vmem:[%s9311_s1 + $0x2f8] sm:$0xff] }
  0x2b   :  { %4884 = vmatpush3.bf16.msra.mxu1 %v4883_v63  ;;  %v198_v53 = vld [vmem:[%s9311_s1 + $0x360] sm:$0xff]  ;;  %v199_v55 = vld [vmem:[%s9311_s1 + $0x368] sm:$0xff]  ;;  %v216_v58 = vld [vmem:[%s9311_s1 + $0x3f0] sm:$0xff]  ;;  %v4871_v60 = vpack.c.bf16 %v167_v52, %v166_v51  ;;  %v4873_v62 = vpack.c.bf16 %v185_v57, %v184_v56 }
  0x2c   :  { %4886 = vmatprep.subr.bf16.mxu1 %v4885_v4  ;;  %v217_v59 = vld [vmem:[%s9311_s1 + $0x3f8] sm:$0xff]  ;;  %v4903_v61 = vpack.c.bf16 %v199_v55, %v198_v53  ;;  %v168_v63 = vld [vmem:[%s9311_s1 + $0x270] sm:$0xff]  ;;  %v234_v4 = vld [vmem:[%s9311_s1 + $0x480] sm:$0xff] }
  0x2d   :  { %4856 = vmatpush3.bf16.msra.mxu0 %v4855_v10  ;;  %v169_v0 = vld [vmem:[%s9311_s1 + $0x278] sm:$0xff]  ;;  %v200_v1 = vld [vmem:[%s9311_s1 + $0x370] sm:$0xff]  ;;  %v4905_v2 = vpack.c.bf16 %v217_v59, %v216_v58  ;;  %v235_v5 = vld [vmem:[%s9311_s1 + $0x488] sm:$0xff] }
  0x2e   :  { %4858 = vmatprep.subr.bf16.mxu0 %v4857_v12  ;;  %v201_v3 = vld [vmem:[%s9311_s1 + $0x378] sm:$0xff]  ;;  %v266_v6 = vld [vmem:[%s9311_s1 + $0x580] sm:$0xff]  ;;  %v267_v7 = vld [vmem:[%s9311_s1 + $0x588] sm:$0xff]  ;;  %v4875_v8 = vpack.c.bf16 %v169_v0, %v168_v63  ;;  %v4909_v10 = vpack.c.bf16 %v235_v5, %v234_v4 }
  0x2f   :  { %4888 = vmatpush3.bf16.msra.mxu1 %v4887_v11  ;;  %v4907_v9 = vpack.c.bf16 %v201_v3, %v200_v1  ;;  %v218_v11 = vld [vmem:[%s9311_s1 + $0x400] sm:$0xff]  ;;  %v219_v12 = vld [vmem:[%s9311_s1 + $0x408] sm:$0xff]  ;;  %v4941_v14 = vpack.c.bf16 %v267_v7, %v266_v6  ;;  %v237_v17 = vld [vmem:[%s9311_s1 + $0x498] sm:$0xff] }
  0x30   :  { %4890 = vmatprep.subr.bf16.mxu1 %v4889_v16  ;;  %v250_v13 = vld [vmem:[%s9311_s1 + $0x500] sm:$0xff]  ;;  %v251_v15 = vld [vmem:[%s9311_s1 + $0x508] sm:$0xff]  ;;  %v236_v16 = vld [vmem:[%s9311_s1 + $0x490] sm:$0xff]  ;;  %v4911_v21 = vpack.c.bf16 %v219_v12, %v218_v11 }
  0x31   :  { %4860 = vmatpush3.bf16.msra.mxu0 %v4859_v22  ;;  %v268_v18 = vld [vmem:[%s9311_s1 + $0x590] sm:$0xff]  ;;  %v269_v19 = vld [vmem:[%s9311_s1 + $0x598] sm:$0xff]  ;;  %v30_v20 = vld [vmem:[%s9312_s0 + $0x20] sm:$0xff]  ;;  %v4943_v23 = vpack.c.bf16 %v251_v15, %v250_v13  ;;  %v4913_v24 = vpack.c.bf16 %v237_v17, %v236_v16 }
  0x32   :  { %4862 = vmatprep.subr.bf16.mxu0 %v4861_v26  ;;  %v32_v22 = vld [vmem:[%s9312_s0 + $0x30] sm:$0xff]  ;;  %v221_v26 = vld [vmem:[%s9311_s1 + $0x418] sm:$0xff]  ;;  %v4945_v28 = vpack.c.bf16 %v269_v19, %v268_v18  ;;  %v239_v31 = vld [vmem:[%s9311_s1 + $0x4a8] sm:$0xff] }
  0x33   :  { %4892 = vmatpush3.bf16.msra.mxu1 %v4891_v25  ;;  %v220_v25 = vld [vmem:[%s9311_s1 + $0x410] sm:$0xff]  ;;  %v253_v29 = vld [vmem:[%s9311_s1 + $0x518] sm:$0xff]  ;;  %v270_v32 = vld [vmem:[%s9311_s1 + $0x5a0] sm:$0xff] }
  0x34   :  { %4894 = vmatprep.subr.bf16.mxu1 %v4893_v30  ;;  %v252_v27 = vld [vmem:[%s9311_s1 + $0x510] sm:$0xff]  ;;  %v238_v30 = vld [vmem:[%s9311_s1 + $0x4a0] sm:$0xff]  ;;  %v271_v33 = vld [vmem:[%s9311_s1 + $0x5a8] sm:$0xff]  ;;  %v4915_v35 = vpack.c.bf16 %v221_v26, %v220_v25 }
  0x35   :  { %4864 = vmatpush3.bf16.msra.mxu0 %v4863_v36  ;;  %v35_v34 = vld [vmem:[%s9312_s0 + $0x48] sm:$0xff]  ;;  %v37_v36 = vld [vmem:[%s9312_s0 + $0x58] sm:$0xff]  ;;  %v222_v39 = vld [vmem:[%s9311_s1 + $0x420] sm:$0xff] }
  0x36   :  { %4866 = vmatprep.subr.bf16.mxu0 %v4865_v38  ;;  %v4917_v38 = vpack.c.bf16 %v239_v31, %v238_v30  ;;  %v223_v40 = vld [vmem:[%s9311_s1 + $0x428] sm:$0xff]  ;;  %v254_v41 = vld [vmem:[%s9311_s1 + $0x520] sm:$0xff]  ;;  %v240_v44 = vld [vmem:[%s9311_s1 + $0x4b0] sm:$0xff] }
  0x37   :  { %4896 = vmatpush3.bf16.msra.mxu1 %v4895_v37  ;;  %v4947_v37 = vpack.c.bf16 %v253_v29, %v252_v27  ;;  %v255_v43 = vld [vmem:[%s9311_s1 + $0x528] sm:$0xff]  ;;  %v241_v45 = vld [vmem:[%s9311_s1 + $0x4b8] sm:$0xff]  ;;  %v272_v46 = vld [vmem:[%s9311_s1 + $0x5b0] sm:$0xff] }
  0x38   :  { %4898 = vmatprep.subr.bf16.mxu1 %v4897_v42  ;;  %v4949_v42 = vpack.c.bf16 %v271_v33, %v270_v32  ;;  %v273_v47 = vld [vmem:[%s9311_s1 + $0x5b8] sm:$0xff]  ;;  %v224_v51 = vld [vmem:[%s9311_s1 + $0x430] sm:$0xff]  ;;  %v242_v56 = vld [vmem:[%s9311_s1 + $0x4c0] sm:$0xff] }
  0x39   :  { %4868 = vmatpush3.bf16.msra.mxu0 %v4867_v48  ;;  %v4919_v48 = vpack.c.bf16 %v223_v40, %v222_v39  ;;  %v225_v52 = vld [vmem:[%s9311_s1 + $0x438] sm:$0xff]  ;;  %v256_v53 = vld [vmem:[%s9311_s1 + $0x530] sm:$0xff]  ;;  %v243_v57 = vld [vmem:[%s9311_s1 + $0x4c8] sm:$0xff] }
  0x3a   :  { %4870 = vmatprep.subr.bf16.mxu0 %v4869_v50  ;;  %v4921_v50 = vpack.c.bf16 %v241_v45, %v240_v44  ;;  %v257_v55 = vld [vmem:[%s9311_s1 + $0x538] sm:$0xff]  ;;  %v274_v58 = vld [vmem:[%s9311_s1 + $0x5c0] sm:$0xff]  ;;  %v275_v59 = vld [vmem:[%s9311_s1 + $0x5c8] sm:$0xff] }
  0x3b   :  { %4900 = vmatpush3.bf16.msra.mxu1 %v4899_v49  ;;  %v4951_v49 = vpack.c.bf16 %v255_v43, %v254_v41  ;;  %v226_v63 = vld [vmem:[%s9311_s1 + $0x440] sm:$0xff]  ;;  %v227_v0 = vld [vmem:[%s9311_s1 + $0x448] sm:$0xff]  ;;  %v244_v4 = vld [vmem:[%s9311_s1 + $0x4d0] sm:$0xff] }
  0x3c   :  { %4902 = vmatprep.subr.bf16.mxu1 %v4901_v54  ;;  %v4953_v54 = vpack.c.bf16 %v273_v47, %v272_v46  ;;  %v258_v1 = vld [vmem:[%s9311_s1 + $0x540] sm:$0xff]  ;;  %v259_v3 = vld [vmem:[%s9311_s1 + $0x548] sm:$0xff]  ;;  %v245_v5 = vld [vmem:[%s9311_s1 + $0x4d8] sm:$0xff] }
  0x3d   :  { %4872 = vmatpush3.bf16.msra.mxu0 %v4871_v60  ;;  %v4923_v60 = vpack.c.bf16 %v225_v52, %v224_v51  ;;  %v276_v6 = vld [vmem:[%s9311_s1 + $0x5d0] sm:$0xff]  ;;  %v277_v7 = vld [vmem:[%s9311_s1 + $0x5d8] sm:$0xff]  ;;  %v246_v16 = vld [vmem:[%s9311_s1 + $0x4e0] sm:$0xff] }
  0x3e   :  { %4874 = vmatprep.subr.bf16.mxu0 %v4873_v62  ;;  %v4925_v62 = vpack.c.bf16 %v243_v57, %v242_v56  ;;  %v228_v11 = vld [vmem:[%s9311_s1 + $0x450] sm:$0xff]  ;;  %v229_v12 = vld [vmem:[%s9311_s1 + $0x458] sm:$0xff]  ;;  %v247_v17 = vld [vmem:[%s9311_s1 + $0x4e8] sm:$0xff] }
  0x3f   :  { %4904 = vmatpush3.bf16.msra.mxu1 %v4903_v61  ;;  %v4955_v61 = vpack.c.bf16 %v257_v55, %v256_v53  ;;  %v260_v13 = vld [vmem:[%s9311_s1 + $0x550] sm:$0xff]  ;;  %v261_v15 = vld [vmem:[%s9311_s1 + $0x558] sm:$0xff]  ;;  %v278_v18 = vld [vmem:[%s9311_s1 + $0x5e0] sm:$0xff] }
  0x40   :  { %4906 = vmatprep.subr.bf16.mxu1 %v4905_v2  ;;  %v4957_v2 = vpack.c.bf16 %v275_v59, %v274_v58  ;;  %v279_v19 = vld [vmem:[%s9311_s1 + $0x5e8] sm:$0xff]  ;;  %v262_v25 = vld [vmem:[%s9311_s1 + $0x560] sm:$0xff]  ;;  %v249_v29 = vld [vmem:[%s9311_s1 + $0x4f8] sm:$0xff] }
  0x41   :  { %4876 = vmatpush3.bf16.msra.mxu0 %v4875_v8  ;;  %v4927_v8 = vpack.c.bf16 %v227_v0, %v226_v63  ;;  %v4965_v26 = vpack.c.bf16 %v279_v19, %v278_v18  ;;  %v263_v27 = vld [vmem:[%s9311_s1 + $0x568] sm:$0xff]  ;;  %v280_v30 = vld [vmem:[%s9311_s1 + $0x5f0] sm:$0xff]  ;;  %v281_v31 = vld [vmem:[%s9311_s1 + $0x5f8] sm:$0xff] }
  0x42   :  { %4910 = vmatprep.subr.bf16.mxu0 %v4909_v10  ;;  %v4929_v10 = vpack.c.bf16 %v245_v5, %v244_v4  ;;  %v4967_v33 = vpack.c.bf16 %v263_v27, %v262_v25  ;;  %v265_v39 = vld [vmem:[%s9311_s1 + $0x578] sm:$0xff]  ;;  %v298_v40 = vld [vmem:[%s9311_s1 + $0x680] sm:$0xff]  ;;  %v299_v41 = vld [vmem:[%s9311_s1 + $0x688] sm:$0xff] }
  0x43   :  { %4908 = vmatpush3.bf16.msra.mxu1 %v4907_v9  ;;  %v4959_v9 = vpack.c.bf16 %v259_v3, %v258_v1  ;;  %v331_v43 = vld [vmem:[%s9311_s1 + $0x788] sm:$0xff]  ;;  %v4973_v46 = vpack.c.bf16 %v299_v41, %v298_v40  ;;  %v282_v47 = vld [vmem:[%s9311_s1 + $0x600] sm:$0xff]  ;;  %v300_v52 = vld [vmem:[%s9311_s1 + $0x690] sm:$0xff] }
  0x44   :  { %4942 = vmatprep.subr.bf16.mxu1 %v4941_v14  ;;  %1326 = vmatmul.mubr.f32.vlgmr.msra.gmra.mrb[2].mxu0 %v30_v20  ;;  %v4961_v14 = vpack.c.bf16 %v277_v7, %v276_v6  ;;  %v4931_v20 = vpack.c.bf16 %v229_v12, %v228_v11  ;;  %v315_v51 = vld [vmem:[%s9311_s1 + $0x708] sm:$0xff]  ;;  %v301_v53 = vld [vmem:[%s9311_s1 + $0x698] sm:$0xff]  ;;  %v34_v56 = vld [vmem:[%s9312_s0 + $0x40] sm:$0xff] }
  0x45   :  { %4912 = vmatpush3.bf16.msra.mxu0 %v4911_v21  ;;  %1465 = vmatprep.mubr.f32.mxu0 %v35_v34  ;;  %v4963_v21 = vpack.c.bf16 %v261_v15, %v260_v13  ;;  %v333_v55 = vld [vmem:[%s9311_s1 + $0x798] sm:$0xff]  ;;  %v36_v58 = vld [vmem:[%s9312_s0 + $0x50] sm:$0xff]  ;;  %v303_v3 = vld [vmem:[%s9311_s1 + $0x6a8] sm:$0xff] }
  0x46   :  { %1396 = vmatmul.mubr.f32.vlgmr.msra.gmra.mrb[2].mxu1 %v32_v22  ;;  %4914 = vmatprep.subr.bf16.mxu0 %v4913_v24  ;;  %v4933_v22 = vpack.c.bf16 %v247_v17, %v246_v16  ;;  %v231_v24 = vld [vmem:[%s9311_s1 + $0x468] sm:$0xff]  ;;  %v316_v63 = vld [vmem:[%s9311_s1 + $0x710] sm:$0xff]  ;;  %v317_v1 = vld [vmem:[%s9311_s1 + $0x718] sm:$0xff] }
  0x47   :  { %4944 = vmatpush3.bf16.msra.mxu1 %v4943_v23  ;;  %1535 = vmatprep.mubr.f32.mxu1 %v37_v36  ;;  %v230_v23 = vld [vmem:[%s9311_s1 + $0x460] sm:$0xff]  ;;  %v233_v36 = vld [vmem:[%s9311_s1 + $0x478] sm:$0xff]  ;;  %v335_v5 = vld [vmem:[%s9311_s1 + $0x7a8] sm:$0xff] }
  0x48   :  { %4946 = vmatprep.subr.bf16.mxu1 %v4945_v28  ;;  %v248_v28 = vld [vmem:[%s9311_s1 + $0x4f0] sm:$0xff]  ;;  %v4935_v32 = vpack.c.bf16 %v231_v24, %v230_v23  ;;  %v334_v4 = vld [vmem:[%s9311_s1 + $0x7a0] sm:$0xff]  ;;  %v39_v6 = vld [vmem:[%s9312_s0 + $0x68] sm:$0xff] }
  0x49   :  { %4916 = vmatpush3.bf16.msra.mxu0 %v4915_v35  ;;  %v4937_v34 = vpack.c.bf16 %v249_v29, %v248_v28  ;;  %v232_v35 = vld [vmem:[%s9311_s1 + $0x470] sm:$0xff]  ;;  %v286_v11 = vld [vmem:[%s9311_s1 + $0x620] sm:$0xff]  ;;  %v287_v12 = vld [vmem:[%s9311_s1 + $0x628] sm:$0xff] }
  0x4a   :  { %4918 = vmatprep.subr.bf16.mxu0 %v4917_v38  ;;  %v4969_v38 = vpack.c.bf16 %v281_v31, %v280_v30  ;;  %v4939_v44 = vpack.c.bf16 %v233_v36, %v232_v35  ;;  %v318_v13 = vld [vmem:[%s9311_s1 + $0x720] sm:$0xff]  ;;  %v319_v15 = vld [vmem:[%s9311_s1 + $0x728] sm:$0xff]  ;;  %v304_v16 = vld [vmem:[%s9311_s1 + $0x6b0] sm:$0xff] }
  0x4b   :  { %4948 = vmatpush3.bf16.msra.mxu1 %v4947_v37  ;;  %v264_v37 = vld [vmem:[%s9311_s1 + $0x570] sm:$0xff]  ;;  %v305_v17 = vld [vmem:[%s9311_s1 + $0x6b8] sm:$0xff]  ;;  %v306_v28 = vld [vmem:[%s9311_s1 + $0x6c0] sm:$0xff] }
  0x4c   :  { %4950 = vmatprep.subr.bf16.mxu1 %v4949_v42  ;;  %v330_v42 = vld [vmem:[%s9311_s1 + $0x780] sm:$0xff]  ;;  %v4971_v45 = vpack.c.bf16 %v265_v39, %v264_v37  ;;  %v336_v18 = vld [vmem:[%s9311_s1 + $0x7b0] sm:$0xff]  ;;  %v337_v19 = vld [vmem:[%s9311_s1 + $0x7b8] sm:$0xff] }
  0x4d   :  { %4920 = vmatpush3.bf16.msra.mxu0 %v4919_v48  ;;  %v283_v48 = vld [vmem:[%s9311_s1 + $0x608] sm:$0xff]  ;;  %v288_v23 = vld [vmem:[%s9311_s1 + $0x630] sm:$0xff]  ;;  %v289_v24 = vld [vmem:[%s9311_s1 + $0x638] sm:$0xff] }
  0x4e   :  { %4922 = vmatprep.subr.bf16.mxu0 %v4921_v50  ;;  %v5005_v50 = vpack.c.bf16 %v331_v43, %v330_v42  ;;  %v4975_v57 = vpack.c.bf16 %v283_v48, %v282_v47  ;;  %v320_v25 = vld [vmem:[%s9311_s1 + $0x730] sm:$0xff]  ;;  %v321_v27 = vld [vmem:[%s9311_s1 + $0x738] sm:$0xff]  ;;  %v307_v29 = vld [vmem:[%s9311_s1 + $0x6c8] sm:$0xff] }
  0x4f   :  { %4952 = vmatpush3.bf16.msra.mxu1 %v4951_v49  ;;  %v314_v49 = vld [vmem:[%s9311_s1 + $0x700] sm:$0xff]  ;;  %v339_v31 = vld [vmem:[%s9311_s1 + $0x7c8] sm:$0xff]  ;;  %v308_v40 = vld [vmem:[%s9311_s1 + $0x6d0] sm:$0xff] }
  0x50   :  { %4954 = vmatprep.subr.bf16.mxu1 %v4953_v54  ;;  %v332_v54 = vld [vmem:[%s9311_s1 + $0x790] sm:$0xff]  ;;  %v5007_v59 = vpack.c.bf16 %v315_v51, %v314_v49  ;;  %v338_v30 = vld [vmem:[%s9311_s1 + $0x7c0] sm:$0xff]  ;;  %v291_v36 = vld [vmem:[%s9311_s1 + $0x648] sm:$0xff] }
  0x51   :  { %4924 = vmatpush3.bf16.msra.mxu0 %v4923_v60  ;;  %v4977_v60 = vpack.c.bf16 %v301_v53, %v300_v52  ;;  %v5009_v0 = vpack.c.bf16 %v333_v55, %v332_v54  ;;  %v290_v35 = vld [vmem:[%s9311_s1 + $0x640] sm:$0xff]  ;;  %v323_v39 = vld [vmem:[%s9311_s1 + $0x748] sm:$0xff]  ;;  %v309_v41 = vld [vmem:[%s9311_s1 + $0x6d8] sm:$0xff] }
  0x52   :  { %4926 = vmatprep.subr.bf16.mxu0 %v4925_v62  ;;  %v285_v62 = vld [vmem:[%s9311_s1 + $0x618] sm:$0xff]  ;;  %v322_v37 = vld [vmem:[%s9311_s1 + $0x740] sm:$0xff]  ;;  %v340_v42 = vld [vmem:[%s9311_s1 + $0x7d0] sm:$0xff] }
  0x53   :  { %4956 = vmatpush3.bf16.msra.mxu1 %v4955_v61  ;;  %v284_v61 = vld [vmem:[%s9311_s1 + $0x610] sm:$0xff]  ;;  %v341_v43 = vld [vmem:[%s9311_s1 + $0x7d8] sm:$0xff]  ;;  %v310_v52 = vld [vmem:[%s9311_s1 + $0x6e0] sm:$0xff] }
  0x54   :  { %4958 = vmatprep.subr.bf16.mxu1 %v4957_v2  ;;  %v302_v2 = vld [vmem:[%s9311_s1 + $0x6a0] sm:$0xff]  ;;  %v4979_v7 = vpack.c.bf16 %v285_v62, %v284_v61  ;;  %v292_v47 = vld [vmem:[%s9311_s1 + $0x650] sm:$0xff]  ;;  %v293_v48 = vld [vmem:[%s9311_s1 + $0x658] sm:$0xff] }
  0x55   :  { %4928 = vmatpush3.bf16.msra.mxu0 %v4927_v8  ;;  %v41_v8 = vld [vmem:[%s9312_s0 + $0x78] sm:$0xff]  ;;  %v324_v49 = vld [vmem:[%s9311_s1 + $0x750] sm:$0xff]  ;;  %v311_v53 = vld [vmem:[%s9311_s1 + $0x6e8] sm:$0xff] }
  0x56   :  { %4930 = vmatprep.subr.bf16.mxu0 %v4929_v10  ;;  %v4981_v10 = vpack.c.bf16 %v303_v3, %v302_v2  ;;  %v325_v51 = vld [vmem:[%s9311_s1 + $0x758] sm:$0xff]  ;;  %v342_v54 = vld [vmem:[%s9311_s1 + $0x7e0] sm:$0xff]  ;;  %v343_v55 = vld [vmem:[%s9311_s1 + $0x7e8] sm:$0xff] }
  0x57   :  { %4960 = vmatpush3.bf16.msra.mxu1 %v4959_v9  ;;  %v5011_v9 = vpack.c.bf16 %v317_v1, %v316_v63  ;;  %v326_v61 = vld [vmem:[%s9311_s1 + $0x760] sm:$0xff]  ;;  %v5029_v62 = vpack.c.bf16 %v343_v55, %v342_v54  ;;  %v327_v63 = vld [vmem:[%s9311_s1 + $0x768] sm:$0xff]  ;;  %v313_v1 = vld [vmem:[%s9311_s1 + $0x6f8] sm:$0xff] }
  0x58   :  { %4962 = vmatprep.subr.bf16.mxu1 %v4961_v14  ;;  %v5013_v14 = vpack.c.bf16 %v335_v5, %v334_v4  ;;  %v344_v2 = vld [vmem:[%s9311_s1 + $0x7f0] sm:$0xff]  ;;  %v345_v3 = vld [vmem:[%s9311_s1 + $0x7f8] sm:$0xff]  ;;  %v5031_v5 = vpack.c.bf16 %v327_v63, %v326_v61 }
  0x59   :  { %4932 = vmatpush3.bf16.msra.mxu0 %v4931_v20  ;;  %v4983_v20 = vpack.c.bf16 %v287_v12, %v286_v11  ;;  %v329_v11 = vld [vmem:[%s9311_s1 + $0x778] sm:$0xff]  ;;  %v362_v12 = vld [vmem:[%s9311_s1 + $0x880] sm:$0xff]  ;;  %v400_v54 = vld [vmem:[%s9311_s1 + $0x9b0] sm:$0xff] }
  0x5a   :  { %4934 = vmatprep.subr.bf16.mxu0 %v4933_v22  ;;  %v4985_v22 = vpack.c.bf16 %v305_v17, %v304_v16  ;;  %v401_v55 = vld [vmem:[%s9311_s1 + $0x9b8] sm:$0xff]  ;;  %v384_v61 = vld [vmem:[%s9311_s1 + $0x930] sm:$0xff] }
  0x5b   :  { %4964 = vmatpush3.bf16.msra.mxu1 %v4963_v21  ;;  %v5015_v21 = vpack.c.bf16 %v319_v15, %v318_v13  ;;  %v363_v13 = vld [vmem:[%s9311_s1 + $0x888] sm:$0xff]  ;;  %v385_v63 = vld [vmem:[%s9311_s1 + $0x938] sm:$0xff] }
  0x5c   :  { %4966 = vmatprep.subr.bf16.mxu1 %v4965_v26  ;;  %v5017_v26 = vpack.c.bf16 %v337_v19, %v336_v18  ;;  %v395_v15 = vld [vmem:[%s9311_s1 + $0x988] sm:$0xff]  ;;  %v5037_v18 = vpack.c.bf16 %v363_v13, %v362_v12  ;;  %v346_v19 = vld [vmem:[%s9311_s1 + $0x800] sm:$0xff]  ;;  %v372_v12 = vld [vmem:[%s9311_s1 + $0x8d0] sm:$0xff] }
  0x5d   :  { %4936 = vmatpush3.bf16.msra.mxu0 %v4935_v32  ;;  %v4987_v32 = vpack.c.bf16 %v289_v24, %v288_v23  ;;  %v379_v23 = vld [vmem:[%s9311_s1 + $0x908] sm:$0xff]  ;;  %v364_v24 = vld [vmem:[%s9311_s1 + $0x890] sm:$0xff]  ;;  %v373_v13 = vld [vmem:[%s9311_s1 + $0x8d8] sm:$0xff] }
  0x5e   :  { %4938 = vmatprep.subr.bf16.mxu0 %v4937_v34  ;;  %v4989_v34 = vpack.c.bf16 %v307_v29, %v306_v28  ;;  %v38_v28 = vld [vmem:[%s9312_s0 + $0x60] sm:$0xff] }
  0x5f   :  { %4968 = vmatpush3.bf16.msra.mxu1 %v4967_v33  ;;  %v5019_v33 = vpack.c.bf16 %v321_v27, %v320_v25  ;;  %v365_v25 = vld [vmem:[%s9311_s1 + $0x898] sm:$0xff] }
  0x60   :  { %4970 = vmatprep.subr.bf16.mxu1 %v4969_v38  ;;  %v5021_v38 = vpack.c.bf16 %v339_v31, %v338_v30  ;;  %v397_v27 = vld [vmem:[%s9311_s1 + $0x998] sm:$0xff]  ;;  %v40_v30 = vld [vmem:[%s9312_s0 + $0x70] sm:$0xff] }
  0x61   :  { %4940 = vmatpush3.bf16.msra.mxu0 %v4939_v44  ;;  %v4991_v44 = vpack.c.bf16 %v291_v36, %v290_v35  ;;  %v380_v35 = vld [vmem:[%s9311_s1 + $0x910] sm:$0xff] }
  0x62   :  { %4974 = vmatprep.subr.bf16.mxu0 %v4973_v46  ;;  %v4993_v46 = vpack.c.bf16 %v309_v41, %v308_v40  ;;  %v398_v40 = vld [vmem:[%s9311_s1 + $0x9a0] sm:$0xff]  ;;  %v399_v41 = vld [vmem:[%s9311_s1 + $0x9a8] sm:$0xff] }
  0x63   :  { %4972 = vmatpush3.bf16.msra.mxu1 %v4971_v45  ;;  %v5023_v45 = vpack.c.bf16 %v323_v39, %v322_v37  ;;  %v381_v37 = vld [vmem:[%s9311_s1 + $0x918] sm:$0xff]  ;;  %v367_v39 = vld [vmem:[%s9311_s1 + $0x8a8] sm:$0xff] }
  0x64   :  { %5006 = vmatprep.subr.bf16.mxu1 %v5005_v50  ;;  %1466 = vmatmul.mubr.f32.vlgmr.msra.gmra.mrb[4].mxu0 %v34_v56  ;;  %v5025_v50 = vpack.c.bf16 %v341_v43, %v340_v42  ;;  %v4995_v56 = vpack.c.bf16 %v293_v48, %v292_v47  ;;  %v43_v42 = vld [vmem:[%s9312_s0 + $0x88] sm:$0xff]  ;;  %v350_v47 = vld [vmem:[%s9311_s1 + $0x820] sm:$0xff] }
  0x65   :  { %4976 = vmatpush3.bf16.msra.mxu0 %v4975_v57  ;;  %1605 = vmatprep.mubr.f32.mxu0 %v39_v6  ;;  %v5027_v57 = vpack.c.bf16 %v325_v51, %v324_v49  ;;  %v351_v48 = vld [vmem:[%s9311_s1 + $0x828] sm:$0xff]  ;;  %v382_v49 = vld [vmem:[%s9311_s1 + $0x920] sm:$0xff] }
  0x66   :  { %1536 = vmatmul.mubr.f32.vlgmr.msra.gmra.mrb[4].mxu1 %v36_v58  ;;  %4978 = vmatprep.subr.bf16.mxu0 %v4977_v60  ;;  %v4997_v58 = vpack.c.bf16 %v311_v53, %v310_v52  ;;  %v295_v60 = vld [vmem:[%s9311_s1 + $0x668] sm:$0xff]  ;;  %v368_v52 = vld [vmem:[%s9311_s1 + $0x8b0] sm:$0xff]  ;;  %v369_v53 = vld [vmem:[%s9311_s1 + $0x8b8] sm:$0xff] }
  0x67   :  { %5008 = vmatpush3.bf16.msra.mxu1 %v5007_v59  ;;  %1675 = vmatprep.mubr.f32.mxu1 %v41_v8  ;;  %v294_v59 = vld [vmem:[%s9311_s1 + $0x660] sm:$0xff]  ;;  %v297_v8 = vld [vmem:[%s9311_s1 + $0x678] sm:$0xff]  ;;  %v383_v51 = vld [vmem:[%s9311_s1 + $0x928] sm:$0xff] }
  0x68   :  { %5010 = vmatprep.subr.bf16.mxu1 %v5009_v0  ;;  %v312_v0 = vld [vmem:[%s9311_s1 + $0x6f0] sm:$0xff]  ;;  %v4999_v4 = vpack.c.bf16 %v295_v60, %v294_v59  ;;  %v353_v60 = vld [vmem:[%s9311_s1 + $0x838] sm:$0xff] }
  0x69   :  { %4980 = vmatpush3.bf16.msra.mxu0 %v4979_v7  ;;  %v5001_v6 = vpack.c.bf16 %v313_v1, %v312_v0  ;;  %v296_v7 = vld [vmem:[%s9311_s1 + $0x670] sm:$0xff]  ;;  %v370_v0 = vld [vmem:[%s9311_s1 + $0x8c0] sm:$0xff]  ;;  %v371_v1 = vld [vmem:[%s9311_s1 + $0x8c8] sm:$0xff] }
  0x6a   :  { %4982 = vmatprep.subr.bf16.mxu0 %v4981_v10  ;;  %v5033_v10 = vpack.c.bf16 %v345_v3, %v344_v2  ;;  %v5003_v16 = vpack.c.bf16 %v297_v8, %v296_v7  ;;  %v352_v59 = vld [vmem:[%s9311_s1 + $0x830] sm:$0xff]  ;;  %v402_v2 = vld [vmem:[%s9311_s1 + $0x9c0] sm:$0xff]  ;;  %v403_v3 = vld [vmem:[%s9311_s1 + $0x9c8] sm:$0xff] }
  0x6b   :  { %5012 = vmatpush3.bf16.msra.mxu1 %v5011_v9  ;;  %v328_v9 = vld [vmem:[%s9311_s1 + $0x770] sm:$0xff]  ;;  %v354_v7 = vld [vmem:[%s9311_s1 + $0x840] sm:$0xff]  ;;  %v355_v8 = vld [vmem:[%s9311_s1 + $0x848] sm:$0xff] }
  0x6c   :  { %5014 = vmatprep.subr.bf16.mxu1 %v5013_v14  ;;  %v394_v14 = vld [vmem:[%s9311_s1 + $0x980] sm:$0xff]  ;;  %v5035_v17 = vpack.c.bf16 %v329_v11, %v328_v9  ;;  %v387_v11 = vld [vmem:[%s9311_s1 + $0x948] sm:$0xff] }
  0x6d   :  { %4984 = vmatpush3.bf16.msra.mxu0 %v4983_v20  ;;  %v347_v20 = vld [vmem:[%s9311_s1 + $0x808] sm:$0xff]  ;;  %v386_v9 = vld [vmem:[%s9311_s1 + $0x940] sm:$0xff] }
  0x6e   :  { %4986 = vmatprep.subr.bf16.mxu0 %v4985_v22  ;;  %v5069_v22 = vpack.c.bf16 %v395_v15, %v394_v14  ;;  %v5039_v29 = vpack.c.bf16 %v347_v20, %v346_v19  ;;  %v404_v14 = vld [vmem:[%s9311_s1 + $0x9d0] sm:$0xff]  ;;  %v405_v15 = vld [vmem:[%s9311_s1 + $0x9d8] sm:$0xff] }
  0x6f   :  { %5016 = vmatpush3.bf16.msra.mxu1 %v5015_v21  ;;  %v378_v21 = vld [vmem:[%s9311_s1 + $0x900] sm:$0xff]  ;;  %v356_v19 = vld [vmem:[%s9311_s1 + $0x850] sm:$0xff]  ;;  %v357_v20 = vld [vmem:[%s9311_s1 + $0x858] sm:$0xff] }
  0x70   :  { %5018 = vmatprep.subr.bf16.mxu1 %v5017_v26  ;;  %v396_v26 = vld [vmem:[%s9311_s1 + $0x990] sm:$0xff]  ;;  %v5071_v31 = vpack.c.bf16 %v379_v23, %v378_v21  ;;  %v389_v23 = vld [vmem:[%s9311_s1 + $0x958] sm:$0xff] }
  0x71   :  { %4988 = vmatpush3.bf16.msra.mxu0 %v4987_v32  ;;  %v5041_v32 = vpack.c.bf16 %v365_v25, %v364_v24  ;;  %v5073_v36 = vpack.c.bf16 %v397_v27, %v396_v26  ;;  %v388_v21 = vld [vmem:[%s9311_s1 + $0x950] sm:$0xff]  ;;  %v374_v24 = vld [vmem:[%s9311_s1 + $0x8e0] sm:$0xff]  ;;  %v375_v25 = vld [vmem:[%s9311_s1 + $0x8e8] sm:$0xff] }
  0x72   :  { %4990 = vmatprep.subr.bf16.mxu0 %v4989_v34  ;;  %v349_v34 = vld [vmem:[%s9311_s1 + $0x818] sm:$0xff]  ;;  %v406_v26 = vld [vmem:[%s9311_s1 + $0x9e0] sm:$0xff]  ;;  %v407_v27 = vld [vmem:[%s9311_s1 + $0x9e8] sm:$0xff] }
  0x73   :  { %5020 = vmatpush3.bf16.msra.mxu1 %v5019_v33  ;;  %v348_v33 = vld [vmem:[%s9311_s1 + $0x810] sm:$0xff] }
  0x74   :  { %5022 = vmatprep.subr.bf16.mxu1 %v5021_v38  ;;  %v366_v38 = vld [vmem:[%s9311_s1 + $0x8a0] sm:$0xff]  ;;  %v5043_v43 = vpack.c.bf16 %v349_v34, %v348_v33  ;;  %v5093_v34 = vpack.c.bf16 %v407_v27, %v406_v26  ;;  %v464_v26 = vld [vmem:[%s9311_s1 + $0xbb0] sm:$0xff]  ;;  %v465_v27 = vld [vmem:[%s9311_s1 + $0xbb8] sm:$0xff] }
  0x75   :  { %4992 = vmatpush3.bf16.msra.mxu0 %v4991_v44  ;;  %v45_v44 = vld [vmem:[%s9312_s0 + $0x98] sm:$0xff]  ;;  %v390_v33 = vld [vmem:[%s9311_s1 + $0x960] sm:$0xff] }
  0x76   :  { %4994 = vmatprep.subr.bf16.mxu0 %v4993_v46  ;;  %v5045_v46 = vpack.c.bf16 %v367_v39, %v366_v38  ;;  %v408_v38 = vld [vmem:[%s9311_s1 + $0x9f0] sm:$0xff]  ;;  %v409_v39 = vld [vmem:[%s9311_s1 + $0x9f8] sm:$0xff] }
  0x77   :  { %5024 = vmatpush3.bf16.msra.mxu1 %v5023_v45  ;;  %v5075_v45 = vpack.c.bf16 %v381_v37, %v380_v35  ;;  %v391_v35 = vld [vmem:[%s9311_s1 + $0x968] sm:$0xff]  ;;  %v377_v37 = vld [vmem:[%s9311_s1 + $0x8f8] sm:$0xff] }
  0x78   :  { %5026 = vmatprep.subr.bf16.mxu1 %v5025_v50  ;;  %v5077_v50 = vpack.c.bf16 %v399_v41, %v398_v40  ;;  %v5095_v41 = vpack.c.bf16 %v391_v35, %v390_v33  ;;  %v448_v33 = vld [vmem:[%s9311_s1 + $0xb30] sm:$0xff]  ;;  %v449_v35 = vld [vmem:[%s9311_s1 + $0xb38] sm:$0xff] }
  0x79   :  { %4996 = vmatpush3.bf16.msra.mxu0 %v4995_v56  ;;  %v5047_v56 = vpack.c.bf16 %v351_v48, %v350_v47  ;;  %v393_v47 = vld [vmem:[%s9311_s1 + $0x978] sm:$0xff]  ;;  %v426_v48 = vld [vmem:[%s9311_s1 + $0xa80] sm:$0xff] }
  0x7a   :  { %4998 = vmatprep.subr.bf16.mxu0 %v4997_v58  ;;  %v5049_v58 = vpack.c.bf16 %v369_v53, %v368_v52 }
  0x7b   :  { %5028 = vmatpush3.bf16.msra.mxu1 %v5027_v57  ;;  %v5079_v57 = vpack.c.bf16 %v383_v51, %v382_v49  ;;  %v427_v49 = vld [vmem:[%s9311_s1 + $0xa88] sm:$0xff] }
  0x7c   :  { %5030 = vmatprep.subr.bf16.mxu1 %v5029_v62  ;;  %v5081_v62 = vpack.c.bf16 %v401_v55, %v400_v54  ;;  %v459_v51 = vld [vmem:[%s9311_s1 + $0xb88] sm:$0xff]  ;;  %v5101_v54 = vpack.c.bf16 %v427_v49, %v426_v48  ;;  %v410_v55 = vld [vmem:[%s9311_s1 + $0xa00] sm:$0xff]  ;;  %v436_v48 = vld [vmem:[%s9311_s1 + $0xad0] sm:$0xff] }
  0x7d   :  { %5000 = vmatpush3.bf16.msra.mxu0 %v4999_v4  ;;  %v5051_v4 = vpack.c.bf16 %v353_v60, %v352_v59  ;;  %v443_v59 = vld [vmem:[%s9311_s1 + $0xb08] sm:$0xff]  ;;  %v428_v60 = vld [vmem:[%s9311_s1 + $0xa90] sm:$0xff]  ;;  %v437_v49 = vld [vmem:[%s9311_s1 + $0xad8] sm:$0xff] }
  0x7e   :  { %5002 = vmatprep.subr.bf16.mxu0 %v5001_v6  ;;  %v5053_v6 = vpack.c.bf16 %v371_v1, %v370_v0  ;;  %v42_v0 = vld [vmem:[%s9312_s0 + $0x80] sm:$0xff] }
  0x7f   :  { %5032 = vmatpush3.bf16.msra.mxu1 %v5031_v5  ;;  %v5083_v5 = vpack.c.bf16 %v385_v63, %v384_v61  ;;  %v429_v61 = vld [vmem:[%s9311_s1 + $0xa98] sm:$0xff] }
  0x80   :  { %5034 = vmatprep.subr.bf16.mxu1 %v5033_v10  ;;  %v5085_v10 = vpack.c.bf16 %v403_v3, %v402_v2  ;;  %v461_v63 = vld [vmem:[%s9311_s1 + $0xb98] sm:$0xff]  ;;  %v44_v2 = vld [vmem:[%s9312_s0 + $0x90] sm:$0xff] }
  0x81   :  { %5004 = vmatpush3.bf16.msra.mxu0 %v5003_v16  ;;  %v5055_v16 = vpack.c.bf16 %v355_v8, %v354_v7  ;;  %v444_v7 = vld [vmem:[%s9311_s1 + $0xb10] sm:$0xff] }
  0x82   :  { %5038 = vmatprep.subr.bf16.mxu0 %v5037_v18  ;;  %v5057_v18 = vpack.c.bf16 %v373_v13, %v372_v12  ;;  %v462_v12 = vld [vmem:[%s9311_s1 + $0xba0] sm:$0xff]  ;;  %v463_v13 = vld [vmem:[%s9311_s1 + $0xba8] sm:$0xff] }
  0x83   :  { %5036 = vmatpush3.bf16.msra.mxu1 %v5035_v17  ;;  %v5087_v17 = vpack.c.bf16 %v387_v11, %v386_v9  ;;  %v445_v9 = vld [vmem:[%s9311_s1 + $0xb18] sm:$0xff]  ;;  %v431_v11 = vld [vmem:[%s9311_s1 + $0xaa8] sm:$0xff] }
  0x84   :  { %5070 = vmatprep.subr.bf16.mxu1 %v5069_v22  ;;  %1606 = vmatmul.mubr.f32.vlgmr.msra.gmra.mrb[6].mxu0 %v38_v28  ;;  %v5089_v22 = vpack.c.bf16 %v405_v15, %v404_v14  ;;  %v5059_v28 = vpack.c.bf16 %v357_v20, %v356_v19  ;;  %v47_v14 = vld [vmem:[%s9312_s0 + $0xa8] sm:$0xff]  ;;  %v414_v19 = vld [vmem:[%s9311_s1 + $0xa20] sm:$0xff] }
  0x85   :  { %5040 = vmatpush3.bf16.msra.mxu0 %v5039_v29  ;;  %1745 = vmatprep.mubr.f32.mxu0 %v43_v42  ;;  %v5091_v29 = vpack.c.bf16 %v389_v23, %v388_v21  ;;  %v415_v20 = vld [vmem:[%s9311_s1 + $0xa28] sm:$0xff]  ;;  %v446_v21 = vld [vmem:[%s9311_s1 + $0xb20] sm:$0xff] }
  0x86   :  { %1676 = vmatmul.mubr.f32.vlgmr.msra.gmra.mrb[6].mxu1 %v40_v30  ;;  %5042 = vmatprep.subr.bf16.mxu0 %v5041_v32  ;;  %v5061_v30 = vpack.c.bf16 %v375_v25, %v374_v24  ;;  %v359_v32 = vld [vmem:[%s9311_s1 + $0x868] sm:$0xff]  ;;  %v432_v24 = vld [vmem:[%s9311_s1 + $0xab0] sm:$0xff]  ;;  %v433_v25 = vld [vmem:[%s9311_s1 + $0xab8] sm:$0xff] }
  0x87   :  { %5072 = vmatpush3.bf16.msra.mxu1 %v5071_v31  ;;  %1815 = vmatprep.mubr.f32.mxu1 %v45_v44  ;;  %v358_v31 = vld [vmem:[%s9311_s1 + $0x860] sm:$0xff]  ;;  %v361_v44 = vld [vmem:[%s9311_s1 + $0x878] sm:$0xff]  ;;  %v447_v23 = vld [vmem:[%s9311_s1 + $0xb28] sm:$0xff] }
  0x88   :  { %5074 = vmatprep.subr.bf16.mxu1 %v5073_v36  ;;  %v376_v36 = vld [vmem:[%s9311_s1 + $0x8f0] sm:$0xff]  ;;  %v5063_v40 = vpack.c.bf16 %v359_v32, %v358_v31  ;;  %v417_v32 = vld [vmem:[%s9311_s1 + $0xa38] sm:$0xff] }
  0x89   :  { %5044 = vmatpush3.bf16.msra.mxu0 %v5043_v43  ;;  %v5065_v42 = vpack.c.bf16 %v377_v37, %v376_v36  ;;  %v360_v43 = vld [vmem:[%s9311_s1 + $0x870] sm:$0xff]  ;;  %v434_v36 = vld [vmem:[%s9311_s1 + $0xac0] sm:$0xff]  ;;  %v435_v37 = vld [vmem:[%s9311_s1 + $0xac8] sm:$0xff] }
  0x8a   :  { %5046 = vmatprep.subr.bf16.mxu0 %v5045_v46  ;;  %v5097_v46 = vpack.c.bf16 %v409_v39, %v408_v38  ;;  %v5067_v52 = vpack.c.bf16 %v361_v44, %v360_v43  ;;  %v416_v31 = vld [vmem:[%s9311_s1 + $0xa30] sm:$0xff]  ;;  %v466_v38 = vld [vmem:[%s9311_s1 + $0xbc0] sm:$0xff]  ;;  %v467_v39 = vld [vmem:[%s9311_s1 + $0xbc8] sm:$0xff] }
  0x8b   :  { %5076 = vmatpush3.bf16.msra.mxu1 %v5075_v45  ;;  %v392_v45 = vld [vmem:[%s9311_s1 + $0x970] sm:$0xff]  ;;  %v418_v43 = vld [vmem:[%s9311_s1 + $0xa40] sm:$0xff]  ;;  %v419_v44 = vld [vmem:[%s9311_s1 + $0xa48] sm:$0xff] }
  0x8c   :  { %5078 = vmatprep.subr.bf16.mxu1 %v5077_v50  ;;  %v458_v50 = vld [vmem:[%s9311_s1 + $0xb80] sm:$0xff]  ;;  %v5099_v53 = vpack.c.bf16 %v393_v47, %v392_v45  ;;  %v451_v47 = vld [vmem:[%s9311_s1 + $0xb48] sm:$0xff] }
  0x8d   :  { %5048 = vmatpush3.bf16.msra.mxu0 %v5047_v56  ;;  %v411_v56 = vld [vmem:[%s9311_s1 + $0xa08] sm:$0xff]  ;;  %v450_v45 = vld [vmem:[%s9311_s1 + $0xb40] sm:$0xff] }
  0x8e   :  { %5050 = vmatprep.subr.bf16.mxu0 %v5049_v58  ;;  %v5133_v58 = vpack.c.bf16 %v459_v51, %v458_v50  ;;  %v5103_v1 = vpack.c.bf16 %v411_v56, %v410_v55  ;;  %v468_v50 = vld [vmem:[%s9311_s1 + $0xbd0] sm:$0xff]  ;;  %v469_v51 = vld [vmem:[%s9311_s1 + $0xbd8] sm:$0xff] }
  0x8f   :  { %5080 = vmatpush3.bf16.msra.mxu1 %v5079_v57  ;;  %v442_v57 = vld [vmem:[%s9311_s1 + $0xb00] sm:$0xff]  ;;  %v420_v55 = vld [vmem:[%s9311_s1 + $0xa50] sm:$0xff]  ;;  %v421_v56 = vld [vmem:[%s9311_s1 + $0xa58] sm:$0xff] }
  0x90   :  { %5082 = vmatprep.subr.bf16.mxu1 %v5081_v62  ;;  %v460_v62 = vld [vmem:[%s9311_s1 + $0xb90] sm:$0xff]  ;;  %v5135_v3 = vpack.c.bf16 %v443_v59, %v442_v57  ;;  %v453_v59 = vld [vmem:[%s9311_s1 + $0xb58] sm:$0xff] }
  0x91   :  { %5052 = vmatpush3.bf16.msra.mxu0 %v5051_v4  ;;  %v5105_v4 = vpack.c.bf16 %v429_v61, %v428_v60  ;;  %v5137_v8 = vpack.c.bf16 %v461_v63, %v460_v62  ;;  %v452_v57 = vld [vmem:[%s9311_s1 + $0xb50] sm:$0xff]  ;;  %v438_v60 = vld [vmem:[%s9311_s1 + $0xae0] sm:$0xff]  ;;  %v439_v61 = vld [vmem:[%s9311_s1 + $0xae8] sm:$0xff] }
  0x92   :  { %5054 = vmatprep.subr.bf16.mxu0 %v5053_v6  ;;  %v413_v6 = vld [vmem:[%s9311_s1 + $0xa18] sm:$0xff]  ;;  %v470_v62 = vld [vmem:[%s9311_s1 + $0xbe0] sm:$0xff]  ;;  %v471_v63 = vld [vmem:[%s9311_s1 + $0xbe8] sm:$0xff] }
  0x93   :  { %5084 = vmatpush3.bf16.msra.mxu1 %v5083_v5  ;;  %v412_v5 = vld [vmem:[%s9311_s1 + $0xa10] sm:$0xff] }
  0x94   :  { %5086 = vmatprep.subr.bf16.mxu1 %v5085_v10  ;;  %v430_v10 = vld [vmem:[%s9311_s1 + $0xaa0] sm:$0xff]  ;;  %v5107_v15 = vpack.c.bf16 %v413_v6, %v412_v5  ;;  %v5157_v6 = vpack.c.bf16 %v471_v63, %v470_v62  ;;  %v528_v62 = vld [vmem:[%s9311_s1 + $0xdb0] sm:$0xff]  ;;  %v529_v63 = vld [vmem:[%s9311_s1 + $0xdb8] sm:$0xff] }
  0x95   :  { %5056 = vmatpush3.bf16.msra.mxu0 %v5055_v16  ;;  %v49_v16 = vld [vmem:[%s9312_s0 + $0xb8] sm:$0xff]  ;;  %v454_v5 = vld [vmem:[%s9311_s1 + $0xb60] sm:$0xff] }
  0x96   :  { %5058 = vmatprep.subr.bf16.mxu0 %v5057_v18  ;;  %v5109_v18 = vpack.c.bf16 %v431_v11, %v430_v10  ;;  %v472_v10 = vld [vmem:[%s9311_s1 + $0xbf0] sm:$0xff]  ;;  %v473_v11 = vld [vmem:[%s9311_s1 + $0xbf8] sm:$0xff] }
  0x97   :  { %5088 = vmatpush3.bf16.msra.mxu1 %v5087_v17  ;;  %v5139_v17 = vpack.c.bf16 %v445_v9, %v444_v7  ;;  %v455_v7 = vld [vmem:[%s9311_s1 + $0xb68] sm:$0xff]  ;;  %v441_v9 = vld [vmem:[%s9311_s1 + $0xaf8] sm:$0xff] }
  0x98   :  { %5090 = vmatprep.subr.bf16.mxu1 %v5089_v22  ;;  %v5141_v22 = vpack.c.bf16 %v463_v13, %v462_v12  ;;  %v5159_v13 = vpack.c.bf16 %v455_v7, %v454_v5  ;;  %v512_v5 = vld [vmem:[%s9311_s1 + $0xd30] sm:$0xff]  ;;  %v513_v7 = vld [vmem:[%s9311_s1 + $0xd38] sm:$0xff] }
  0x99   :  { %5060 = vmatpush3.bf16.msra.mxu0 %v5059_v28  ;;  %v5111_v28 = vpack.c.bf16 %v415_v20, %v414_v19  ;;  %v457_v19 = vld [vmem:[%s9311_s1 + $0xb78] sm:$0xff]  ;;  %v490_v20 = vld [vmem:[%s9311_s1 + $0xc80] sm:$0xff] }
  0x9a   :  { %5062 = vmatprep.subr.bf16.mxu0 %v5061_v30  ;;  %v5113_v30 = vpack.c.bf16 %v433_v25, %v432_v24 }
  0x9b   :  { %5092 = vmatpush3.bf16.msra.mxu1 %v5091_v29  ;;  %v5143_v29 = vpack.c.bf16 %v447_v23, %v446_v21  ;;  %v491_v21 = vld [vmem:[%s9311_s1 + $0xc88] sm:$0xff] }
  0x9c   :  { %5094 = vmatprep.subr.bf16.mxu1 %v5093_v34  ;;  %v5145_v34 = vpack.c.bf16 %v465_v27, %v464_v26  ;;  %v523_v23 = vld [vmem:[%s9311_s1 + $0xd88] sm:$0xff]  ;;  %v5165_v26 = vpack.c.bf16 %v491_v21, %v490_v20  ;;  %v474_v27 = vld [vmem:[%s9311_s1 + $0xc00] sm:$0xff]  ;;  %v500_v20 = vld [vmem:[%s9311_s1 + $0xcd0] sm:$0xff] }
  0x9d   :  { %5064 = vmatpush3.bf16.msra.mxu0 %v5063_v40  ;;  %v5115_v40 = vpack.c.bf16 %v417_v32, %v416_v31  ;;  %v507_v31 = vld [vmem:[%s9311_s1 + $0xd08] sm:$0xff]  ;;  %v492_v32 = vld [vmem:[%s9311_s1 + $0xc90] sm:$0xff]  ;;  %v501_v21 = vld [vmem:[%s9311_s1 + $0xcd8] sm:$0xff] }
  0x9e   :  { %5066 = vmatprep.subr.bf16.mxu0 %v5065_v42  ;;  %v5117_v42 = vpack.c.bf16 %v435_v37, %v434_v36  ;;  %v46_v36 = vld [vmem:[%s9312_s0 + $0xa0] sm:$0xff] }
  0x9f   :  { %5096 = vmatpush3.bf16.msra.mxu1 %v5095_v41  ;;  %v5147_v41 = vpack.c.bf16 %v449_v35, %v448_v33  ;;  %v493_v33 = vld [vmem:[%s9311_s1 + $0xc98] sm:$0xff] }
  0xa0   :  { %5098 = vmatprep.subr.bf16.mxu1 %v5097_v46  ;;  %v5149_v46 = vpack.c.bf16 %v467_v39, %v466_v38  ;;  %v525_v35 = vld [vmem:[%s9311_s1 + $0xd98] sm:$0xff]  ;;  %v48_v38 = vld [vmem:[%s9312_s0 + $0xb0] sm:$0xff] }
  0xa1   :  { %5068 = vmatpush3.bf16.msra.mxu0 %v5067_v52  ;;  %v5119_v52 = vpack.c.bf16 %v419_v44, %v418_v43  ;;  %v508_v43 = vld [vmem:[%s9311_s1 + $0xd10] sm:$0xff] }
  0xa2   :  { %5102 = vmatprep.subr.bf16.mxu0 %v5101_v54  ;;  %v5121_v54 = vpack.c.bf16 %v437_v49, %v436_v48  ;;  %v526_v48 = vld [vmem:[%s9311_s1 + $0xda0] sm:$0xff]  ;;  %v527_v49 = vld [vmem:[%s9311_s1 + $0xda8] sm:$0xff] }
  0xa3   :  { %5100 = vmatpush3.bf16.msra.mxu1 %v5099_v53  ;;  %v5151_v53 = vpack.c.bf16 %v451_v47, %v450_v45  ;;  %v509_v45 = vld [vmem:[%s9311_s1 + $0xd18] sm:$0xff]  ;;  %v495_v47 = vld [vmem:[%s9311_s1 + $0xca8] sm:$0xff] }
  0xa4   :  { %5134 = vmatprep.subr.bf16.mxu1 %v5133_v58  ;;  %1746 = vmatmul.mubr.f32.vlgmr.msra.gmra.mrb[8].mxu0 %v42_v0  ;;  %v5153_v58 = vpack.c.bf16 %v469_v51, %v468_v50  ;;  %v5123_v0 = vpack.c.bf16 %v421_v56, %v420_v55  ;;  %v51_v50 = vld [vmem:[%s9312_s0 + $0xc8] sm:$0xff]  ;;  %v478_v55 = vld [vmem:[%s9311_s1 + $0xc20] sm:$0xff] }
  0xa5   :  { %5104 = vmatpush3.bf16.msra.mxu0 %v5103_v1  ;;  %1885 = vmatprep.mubr.f32.mxu0 %v47_v14  ;;  %v5155_v1 = vpack.c.bf16 %v453_v59, %v452_v57  ;;  %v479_v56 = vld [vmem:[%s9311_s1 + $0xc28] sm:$0xff]  ;;  %v510_v57 = vld [vmem:[%s9311_s1 + $0xd20] sm:$0xff] }
  0xa6   :  { %1816 = vmatmul.mubr.f32.vlgmr.msra.gmra.mrb[8].mxu1 %v44_v2  ;;  %5106 = vmatprep.subr.bf16.mxu0 %v5105_v4  ;;  %v5125_v2 = vpack.c.bf16 %v439_v61, %v438_v60  ;;  %v423_v4 = vld [vmem:[%s9311_s1 + $0xa68] sm:$0xff]  ;;  %v496_v60 = vld [vmem:[%s9311_s1 + $0xcb0] sm:$0xff]  ;;  %v497_v61 = vld [vmem:[%s9311_s1 + $0xcb8] sm:$0xff] }
  0xa7   :  { %5136 = vmatpush3.bf16.msra.mxu1 %v5135_v3  ;;  %1955 = vmatprep.mubr.f32.mxu1 %v49_v16  ;;  %v422_v3 = vld [vmem:[%s9311_s1 + $0xa60] sm:$0xff]  ;;  %v425_v16 = vld [vmem:[%s9311_s1 + $0xa78] sm:$0xff]  ;;  %v511_v59 = vld [vmem:[%s9311_s1 + $0xd28] sm:$0xff] }
  0xa8   :  { %5138 = vmatprep.subr.bf16.mxu1 %v5137_v8  ;;  %v440_v8 = vld [vmem:[%s9311_s1 + $0xaf0] sm:$0xff]  ;;  %v5127_v12 = vpack.c.bf16 %v423_v4, %v422_v3  ;;  %v481_v4 = vld [vmem:[%s9311_s1 + $0xc38] sm:$0xff] }
  0xa9   :  { %5108 = vmatpush3.bf16.msra.mxu0 %v5107_v15  ;;  %v5129_v14 = vpack.c.bf16 %v441_v9, %v440_v8  ;;  %v424_v15 = vld [vmem:[%s9311_s1 + $0xa70] sm:$0xff]  ;;  %v498_v8 = vld [vmem:[%s9311_s1 + $0xcc0] sm:$0xff]  ;;  %v499_v9 = vld [vmem:[%s9311_s1 + $0xcc8] sm:$0xff] }
  0xaa   :  { %5110 = vmatprep.subr.bf16.mxu0 %v5109_v18  ;;  %v5161_v18 = vpack.c.bf16 %v473_v11, %v472_v10  ;;  %v5131_v24 = vpack.c.bf16 %v425_v16, %v424_v15  ;;  %v480_v3 = vld [vmem:[%s9311_s1 + $0xc30] sm:$0xff]  ;;  %v530_v10 = vld [vmem:[%s9311_s1 + $0xdc0] sm:$0xff]  ;;  %v531_v11 = vld [vmem:[%s9311_s1 + $0xdc8] sm:$0xff] }
  0xab   :  { %5140 = vmatpush3.bf16.msra.mxu1 %v5139_v17  ;;  %v456_v17 = vld [vmem:[%s9311_s1 + $0xb70] sm:$0xff]  ;;  %v482_v15 = vld [vmem:[%s9311_s1 + $0xc40] sm:$0xff]  ;;  %v483_v16 = vld [vmem:[%s9311_s1 + $0xc48] sm:$0xff] }
  0xac   :  { %5142 = vmatprep.subr.bf16.mxu1 %v5141_v22  ;;  %v522_v22 = vld [vmem:[%s9311_s1 + $0xd80] sm:$0xff]  ;;  %v5163_v25 = vpack.c.bf16 %v457_v19, %v456_v17  ;;  %v515_v19 = vld [vmem:[%s9311_s1 + $0xd48] sm:$0xff] }
  0xad   :  { %5112 = vmatpush3.bf16.msra.mxu0 %v5111_v28  ;;  %v475_v28 = vld [vmem:[%s9311_s1 + $0xc08] sm:$0xff]  ;;  %v514_v17 = vld [vmem:[%s9311_s1 + $0xd40] sm:$0xff] }
  0xae   :  { %5114 = vmatprep.subr.bf16.mxu0 %v5113_v30  ;;  %v5197_v30 = vpack.c.bf16 %v523_v23, %v522_v22  ;;  %v5167_v37 = vpack.c.bf16 %v475_v28, %v474_v27  ;;  %v532_v22 = vld [vmem:[%s9311_s1 + $0xdd0] sm:$0xff]  ;;  %v533_v23 = vld [vmem:[%s9311_s1 + $0xdd8] sm:$0xff] }
  0xaf   :  { %5144 = vmatpush3.bf16.msra.mxu1 %v5143_v29  ;;  %v506_v29 = vld [vmem:[%s9311_s1 + $0xd00] sm:$0xff]  ;;  %v484_v27 = vld [vmem:[%s9311_s1 + $0xc50] sm:$0xff]  ;;  %v485_v28 = vld [vmem:[%s9311_s1 + $0xc58] sm:$0xff] }
  0xb0   :  { %5146 = vmatprep.subr.bf16.mxu1 %v5145_v34  ;;  %v524_v34 = vld [vmem:[%s9311_s1 + $0xd90] sm:$0xff]  ;;  %v5199_v39 = vpack.c.bf16 %v507_v31, %v506_v29  ;;  %v517_v31 = vld [vmem:[%s9311_s1 + $0xd58] sm:$0xff] }
  0xb1   :  { %5116 = vmatpush3.bf16.msra.mxu0 %v5115_v40  ;;  %v5169_v40 = vpack.c.bf16 %v493_v33, %v492_v32  ;;  %v5201_v44 = vpack.c.bf16 %v525_v35, %v524_v34  ;;  %v516_v29 = vld [vmem:[%s9311_s1 + $0xd50] sm:$0xff]  ;;  %v502_v32 = vld [vmem:[%s9311_s1 + $0xce0] sm:$0xff]  ;;  %v503_v33 = vld [vmem:[%s9311_s1 + $0xce8] sm:$0xff] }
  0xb2   :  { %5118 = vmatprep.subr.bf16.mxu0 %v5117_v42  ;;  %v477_v42 = vld [vmem:[%s9311_s1 + $0xc18] sm:$0xff]  ;;  %v534_v34 = vld [vmem:[%s9311_s1 + $0xde0] sm:$0xff]  ;;  %v535_v35 = vld [vmem:[%s9311_s1 + $0xde8] sm:$0xff] }
  0xb3   :  { %5148 = vmatpush3.bf16.msra.mxu1 %v5147_v41  ;;  %v476_v41 = vld [vmem:[%s9311_s1 + $0xc10] sm:$0xff] }
  0xb4   :  { %5150 = vmatprep.subr.bf16.mxu1 %v5149_v46  ;;  %v494_v46 = vld [vmem:[%s9311_s1 + $0xca0] sm:$0xff]  ;;  %v5171_v51 = vpack.c.bf16 %v477_v42, %v476_v41  ;;  %v5221_v42 = vpack.c.bf16 %v535_v35, %v534_v34  ;;  %v592_v34 = vld [vmem:[%s9311_s1 + $0xfb0] sm:$0xff]  ;;  %v593_v35 = vld [vmem:[%s9311_s1 + $0xfb8] sm:$0xff] }
  0xb5   :  { %5120 = vmatpush3.bf16.msra.mxu0 %v5119_v52  ;;  %v53_v52 = vld [vmem:[%s9312_s0 + $0xd8] sm:$0xff]  ;;  %v518_v41 = vld [vmem:[%s9311_s1 + $0xd60] sm:$0xff] }
  0xb6   :  { %5122 = vmatprep.subr.bf16.mxu0 %v5121_v54  ;;  %v5173_v54 = vpack.c.bf16 %v495_v47, %v494_v46  ;;  %v536_v46 = vld [vmem:[%s9311_s1 + $0xdf0] sm:$0xff]  ;;  %v537_v47 = vld [vmem:[%s9311_s1 + $0xdf8] sm:$0xff] }
  0xb7   :  { %5152 = vmatpush3.bf16.msra.mxu1 %v5151_v53  ;;  %v5203_v53 = vpack.c.bf16 %v509_v45, %v508_v43  ;;  %v519_v43 = vld [vmem:[%s9311_s1 + $0xd68] sm:$0xff]  ;;  %v505_v45 = vld [vmem:[%s9311_s1 + $0xcf8] sm:$0xff] }
  0xb8   :  { %5154 = vmatprep.subr.bf16.mxu1 %v5153_v58  ;;  %v5205_v58 = vpack.c.bf16 %v527_v49, %v526_v48  ;;  %v5223_v49 = vpack.c.bf16 %v519_v43, %v518_v41  ;;  %v576_v41 = vld [vmem:[%s9311_s1 + $0xf30] sm:$0xff]  ;;  %v577_v43 = vld [vmem:[%s9311_s1 + $0xf38] sm:$0xff] }
  0xb9   :  { %5124 = vmatpush3.bf16.msra.mxu0 %v5123_v0  ;;  %v5175_v0 = vpack.c.bf16 %v479_v56, %v478_v55  ;;  %v521_v55 = vld [vmem:[%s9311_s1 + $0xd78] sm:$0xff]  ;;  %v554_v56 = vld [vmem:[%s9311_s1 + $0xe80] sm:$0xff] }
  0xba   :  { %5126 = vmatprep.subr.bf16.mxu0 %v5125_v2  ;;  %v5177_v2 = vpack.c.bf16 %v497_v61, %v496_v60 }
  0xbb   :  { %5156 = vmatpush3.bf16.msra.mxu1 %v5155_v1  ;;  %v5207_v1 = vpack.c.bf16 %v511_v59, %v510_v57  ;;  %v555_v57 = vld [vmem:[%s9311_s1 + $0xe88] sm:$0xff] }
  0xbc   :  { %5158 = vmatprep.subr.bf16.mxu1 %v5157_v6  ;;  %v5209_v6 = vpack.c.bf16 %v529_v63, %v528_v62  ;;  %v587_v59 = vld [vmem:[%s9311_s1 + $0xf88] sm:$0xff]  ;;  %v5229_v62 = vpack.c.bf16 %v555_v57, %v554_v56  ;;  %v538_v63 = vld [vmem:[%s9311_s1 + $0xe00] sm:$0xff]  ;;  %v564_v56 = vld [vmem:[%s9311_s1 + $0xed0] sm:$0xff] }
  0xbd   :  { %5128 = vmatpush3.bf16.msra.mxu0 %v5127_v12  ;;  %v5179_v12 = vpack.c.bf16 %v481_v4, %v480_v3  ;;  %v571_v3 = vld [vmem:[%s9311_s1 + $0xf08] sm:$0xff]  ;;  %v556_v4 = vld [vmem:[%s9311_s1 + $0xe90] sm:$0xff]  ;;  %v565_v57 = vld [vmem:[%s9311_s1 + $0xed8] sm:$0xff] }
  0xbe   :  { %5130 = vmatprep.subr.bf16.mxu0 %v5129_v14  ;;  %v5181_v14 = vpack.c.bf16 %v499_v9, %v498_v8  ;;  %v50_v8 = vld [vmem:[%s9312_s0 + $0xc0] sm:$0xff] }
  0xbf   :  { %5160 = vmatpush3.bf16.msra.mxu1 %v5159_v13  ;;  %v5211_v13 = vpack.c.bf16 %v513_v7, %v512_v5  ;;  %v557_v5 = vld [vmem:[%s9311_s1 + $0xe98] sm:$0xff] }
  0xc0   :  { %5162 = vmatprep.subr.bf16.mxu1 %v5161_v18  ;;  %v5213_v18 = vpack.c.bf16 %v531_v11, %v530_v10  ;;  %v589_v7 = vld [vmem:[%s9311_s1 + $0xf98] sm:$0xff]  ;;  %v52_v10 = vld [vmem:[%s9312_s0 + $0xd0] sm:$0xff] }
  0xc1   :  { %5132 = vmatpush3.bf16.msra.mxu0 %v5131_v24  ;;  %v5183_v24 = vpack.c.bf16 %v483_v16, %v482_v15  ;;  %v572_v15 = vld [vmem:[%s9311_s1 + $0xf10] sm:$0xff] }
  0xc2   :  { %5166 = vmatprep.subr.bf16.mxu0 %v5165_v26  ;;  %v5185_v26 = vpack.c.bf16 %v501_v21, %v500_v20  ;;  %v590_v20 = vld [vmem:[%s9311_s1 + $0xfa0] sm:$0xff]  ;;  %v591_v21 = vld [vmem:[%s9311_s1 + $0xfa8] sm:$0xff] }
  0xc3   :  { %5164 = vmatpush3.bf16.msra.mxu1 %v5163_v25  ;;  %v5215_v25 = vpack.c.bf16 %v515_v19, %v514_v17  ;;  %v573_v17 = vld [vmem:[%s9311_s1 + $0xf18] sm:$0xff]  ;;  %v559_v19 = vld [vmem:[%s9311_s1 + $0xea8] sm:$0xff] }
  0xc4   :  { %5198 = vmatprep.subr.bf16.mxu1 %v5197_v30  ;;  %1886 = vmatmul.mubr.f32.vlgmr.msra.gmra.mrb[10].mxu0 %v46_v36  ;;  %v5217_v30 = vpack.c.bf16 %v533_v23, %v532_v22  ;;  %v5187_v36 = vpack.c.bf16 %v485_v28, %v484_v27  ;;  %v55_v22 = vld [vmem:[%s9312_s0 + $0xe8] sm:$0xff]  ;;  %v542_v27 = vld [vmem:[%s9311_s1 + $0xe20] sm:$0xff] }
  0xc5   :  { %5168 = vmatpush3.bf16.msra.mxu0 %v5167_v37  ;;  %2025 = vmatprep.mubr.f32.mxu0 %v51_v50  ;;  %v5219_v37 = vpack.c.bf16 %v517_v31, %v516_v29  ;;  %v543_v28 = vld [vmem:[%s9311_s1 + $0xe28] sm:$0xff]  ;;  %v574_v29 = vld [vmem:[%s9311_s1 + $0xf20] sm:$0xff] }
  0xc6   :  { %1956 = vmatmul.mubr.f32.vlgmr.msra.gmra.mrb[10].mxu1 %v48_v38  ;;  %5170 = vmatprep.subr.bf16.mxu0 %v5169_v40  ;;  %v5189_v38 = vpack.c.bf16 %v503_v33, %v502_v32  ;;  %v487_v40 = vld [vmem:[%s9311_s1 + $0xc68] sm:$0xff]  ;;  %v560_v32 = vld [vmem:[%s9311_s1 + $0xeb0] sm:$0xff]  ;;  %v561_v33 = vld [vmem:[%s9311_s1 + $0xeb8] sm:$0xff] }
  0xc7   :  { %5200 = vmatpush3.bf16.msra.mxu1 %v5199_v39  ;;  %2095 = vmatprep.mubr.f32.mxu1 %v53_v52  ;;  %v486_v39 = vld [vmem:[%s9311_s1 + $0xc60] sm:$0xff]  ;;  %v489_v52 = vld [vmem:[%s9311_s1 + $0xc78] sm:$0xff]  ;;  %v575_v31 = vld [vmem:[%s9311_s1 + $0xf28] sm:$0xff] }
  0xc8   :  { %5202 = vmatprep.subr.bf16.mxu1 %v5201_v44  ;;  %v504_v44 = vld [vmem:[%s9311_s1 + $0xcf0] sm:$0xff]  ;;  %v5191_v48 = vpack.c.bf16 %v487_v40, %v486_v39  ;;  %v545_v40 = vld [vmem:[%s9311_s1 + $0xe38] sm:$0xff] }
  0xc9   :  { %5172 = vmatpush3.bf16.msra.mxu0 %v5171_v51  ;;  %v5193_v50 = vpack.c.bf16 %v505_v45, %v504_v44  ;;  %v488_v51 = vld [vmem:[%s9311_s1 + $0xc70] sm:$0xff]  ;;  %v562_v44 = vld [vmem:[%s9311_s1 + $0xec0] sm:$0xff]  ;;  %v563_v45 = vld [vmem:[%s9311_s1 + $0xec8] sm:$0xff] }
  0xca   :  { %5174 = vmatprep.subr.bf16.mxu0 %v5173_v54  ;;  %v5225_v54 = vpack.c.bf16 %v537_v47, %v536_v46  ;;  %v5195_v60 = vpack.c.bf16 %v489_v52, %v488_v51  ;;  %v544_v39 = vld [vmem:[%s9311_s1 + $0xe30] sm:$0xff]  ;;  %v594_v46 = vld [vmem:[%s9311_s1 + $0xfc0] sm:$0xff]  ;;  %v595_v47 = vld [vmem:[%s9311_s1 + $0xfc8] sm:$0xff] }
  0xcb   :  { %5204 = vmatpush3.bf16.msra.mxu1 %v5203_v53  ;;  %v520_v53 = vld [vmem:[%s9311_s1 + $0xd70] sm:$0xff]  ;;  %v546_v51 = vld [vmem:[%s9311_s1 + $0xe40] sm:$0xff]  ;;  %v547_v52 = vld [vmem:[%s9311_s1 + $0xe48] sm:$0xff] }
  0xcc   :  { %5206 = vmatprep.subr.bf16.mxu1 %v5205_v58  ;;  %v586_v58 = vld [vmem:[%s9311_s1 + $0xf80] sm:$0xff]  ;;  %v5227_v61 = vpack.c.bf16 %v521_v55, %v520_v53  ;;  %v579_v55 = vld [vmem:[%s9311_s1 + $0xf48] sm:$0xff] }
  0xcd   :  { %5176 = vmatpush3.bf16.msra.mxu0 %v5175_v0  ;;  %v539_v0 = vld [vmem:[%s9311_s1 + $0xe08] sm:$0xff]  ;;  %v578_v53 = vld [vmem:[%s9311_s1 + $0xf40] sm:$0xff] }
  0xce   :  { %5178 = vmatprep.subr.bf16.mxu0 %v5177_v2  ;;  %v5261_v2 = vpack.c.bf16 %v587_v59, %v586_v58  ;;  %v5231_v9 = vpack.c.bf16 %v539_v0, %v538_v63  ;;  %v596_v58 = vld [vmem:[%s9311_s1 + $0xfd0] sm:$0xff]  ;;  %v597_v59 = vld [vmem:[%s9311_s1 + $0xfd8] sm:$0xff] }
  0xcf   :  { %5208 = vmatpush3.bf16.msra.mxu1 %v5207_v1  ;;  %v570_v1 = vld [vmem:[%s9311_s1 + $0xf00] sm:$0xff]  ;;  %v548_v63 = vld [vmem:[%s9311_s1 + $0xe50] sm:$0xff]  ;;  %v549_v0 = vld [vmem:[%s9311_s1 + $0xe58] sm:$0xff] }
  0xd0   :  { %5210 = vmatprep.subr.bf16.mxu1 %v5209_v6  ;;  %v588_v6 = vld [vmem:[%s9311_s1 + $0xf90] sm:$0xff]  ;;  %v5263_v11 = vpack.c.bf16 %v571_v3, %v570_v1  ;;  %v581_v3 = vld [vmem:[%s9311_s1 + $0xf58] sm:$0xff] }
  0xd1   :  { %5180 = vmatpush3.bf16.msra.mxu0 %v5179_v12  ;;  %v5233_v12 = vpack.c.bf16 %v557_v5, %v556_v4  ;;  %v5265_v16 = vpack.c.bf16 %v589_v7, %v588_v6  ;;  %v580_v1 = vld [vmem:[%s9311_s1 + $0xf50] sm:$0xff]  ;;  %v566_v4 = vld [vmem:[%s9311_s1 + $0xee0] sm:$0xff]  ;;  %v567_v5 = vld [vmem:[%s9311_s1 + $0xee8] sm:$0xff] }
  0xd2   :  { %5182 = vmatprep.subr.bf16.mxu0 %v5181_v14  ;;  %v541_v14 = vld [vmem:[%s9311_s1 + $0xe18] sm:$0xff]  ;;  %v598_v6 = vld [vmem:[%s9311_s1 + $0xfe0] sm:$0xff]  ;;  %v599_v7 = vld [vmem:[%s9311_s1 + $0xfe8] sm:$0xff] }
  0xd3   :  { %5212 = vmatpush3.bf16.msra.mxu1 %v5211_v13  ;;  %v540_v13 = vld [vmem:[%s9311_s1 + $0xe10] sm:$0xff] }
  0xd4   :  { %5214 = vmatprep.subr.bf16.mxu1 %v5213_v18  ;;  %v558_v18 = vld [vmem:[%s9311_s1 + $0xea0] sm:$0xff]  ;;  %v5235_v23 = vpack.c.bf16 %v541_v14, %v540_v13 }
  0xd5   :  { %5184 = vmatpush3.bf16.msra.mxu0 %v5183_v24  ;;  %v57_v24 = vld [vmem:[%s9312_s0 + $0xf8] sm:$0xff]  ;;  %v582_v13 = vld [vmem:[%s9311_s1 + $0xf60] sm:$0xff] }
  0xd6   :  { %5186 = vmatprep.subr.bf16.mxu0 %v5185_v26  ;;  %v5237_v26 = vpack.c.bf16 %v559_v19, %v558_v18  ;;  %v569_v18 = vld [vmem:[%s9311_s1 + $0xef8] sm:$0xff]  ;;  %v3554_v19 = vld [vmem:[%s9313_s2] ss:$0 sm:$0xff] }
  0xd7   :  { %5216 = vmatpush3.bf16.msra.mxu1 %v5215_v25  ;;  %v5267_v25 = vpack.c.bf16 %v573_v17, %v572_v15  ;;  %v5285_v15 = vpack.c.bf16 %v599_v7, %v598_v6  ;;  %v568_v17 = vld [vmem:[%s9311_s1 + $0xef0] sm:$0xff] }
  0xd8   :  { %5218 = vmatprep.subr.bf16.mxu1 %v5217_v30  ;;  %v5269_v30 = vpack.c.bf16 %v591_v21, %v590_v20 }
  0xd9   :  { %5188 = vmatpush3.bf16.msra.mxu0 %v5187_v36  ;;  %v5239_v36 = vpack.c.bf16 %v543_v28, %v542_v27 }
  0xda   :  { %5190 = vmatprep.subr.bf16.mxu0 %v5189_v38  ;;  %v5241_v38 = vpack.c.bf16 %v561_v33, %v560_v32  ;;  %v584_v32 = vld [vmem:[%s9311_s1 + $0xf70] sm:$0xff] }
  0xdb   :  { %5220 = vmatpush3.bf16.msra.mxu1 %v5219_v37  ;;  %v5271_v37 = vpack.c.bf16 %v575_v31, %v574_v29  ;;  %v5257_v29 = vpack.c.bf16 %v569_v18, %v568_v17  ;;  %v553_v31 = vld [vmem:[%s9311_s1 + $0xe78] sm:$0xff] }
  0xdc   :  { %5222 = vmatprep.subr.bf16.mxu1 %v5221_v42  ;;  %v5273_v42 = vpack.c.bf16 %v593_v35, %v592_v34  ;;  %v585_v35 = vld [vmem:[%s9311_s1 + $0xf78] sm:$0xff] }
  0xdd   :  { %5192 = vmatpush3.bf16.msra.mxu0 %v5191_v48  ;;  %v5243_v48 = vpack.c.bf16 %v545_v40, %v544_v39  ;;  %v651_v39 = vld [vmem:[%s9311_s1 + $0x1188] sm:$0xff] }
  0xde   :  { %5194 = vmatprep.subr.bf16.mxu0 %v5193_v50  ;;  %v5245_v50 = vpack.c.bf16 %v563_v45, %v562_v44  ;;  %v602_v44 = vld [vmem:[%s9311_s1 + $0x1000] sm:$0xff]  ;;  %v603_v45 = vld [vmem:[%s9311_s1 + $0x1008] sm:$0xff] }
  0xdf   :  { %5224 = vmatpush3.bf16.msra.mxu1 %v5223_v49  ;;  %v5275_v49 = vpack.c.bf16 %v577_v43, %v576_v41 }
  0xe0   :  { %5226 = vmatprep.subr.bf16.mxu1 %v5225_v54  ;;  %v5277_v54 = vpack.c.bf16 %v595_v47, %v594_v46  ;;  %v634_v46 = vld [vmem:[%s9311_s1 + $0x1100] sm:$0xff] }
  0xe1   :  { %5196 = vmatpush3.bf16.msra.mxu0 %v5195_v60  ;;  %v5247_v60 = vpack.c.bf16 %v547_v52, %v546_v51  ;;  %v652_v51 = vld [vmem:[%s9311_s1 + $0x1190] sm:$0xff]  ;;  %v653_v52 = vld [vmem:[%s9311_s1 + $0x1198] sm:$0xff] }
  0xe2   :  { %5230 = vmatprep.subr.bf16.mxu0 %v5229_v62  ;;  %v5249_v62 = vpack.c.bf16 %v565_v57, %v564_v56 }
  0xe3   :  { %5228 = vmatpush3.bf16.msra.mxu1 %v5227_v61  ;;  %v5279_v61 = vpack.c.bf16 %v579_v55, %v578_v53  ;;  %v54_v53 = vld [vmem:[%s9312_s0 + $0xe0] sm:$0xff]  ;;  %v56_v55 = vld [vmem:[%s9312_s0 + $0xf0] sm:$0xff] }
  0xe4   :  { %5262 = vmatprep.subr.bf16.mxu1 %v5261_v2  ;;  %2026 = vmatmul.mubr.f32.vlgmr.msra.gmra.mrb[12].mxu0 %v50_v8  ;;  %v5281_v2 = vpack.c.bf16 %v597_v59, %v596_v58  ;;  %v5251_v8 = vpack.c.bf16 %v549_v0, %v548_v63  ;;  %v604_v58 = vld [vmem:[%s9311_s1 + $0x1010] sm:$0xff]  ;;  %v605_v59 = vld [vmem:[%s9311_s1 + $0x1018] sm:$0xff]  ;;  %v622_v63 = vld [vmem:[%s9311_s1 + $0x10a0] sm:$0xff] }
  0xe5   :  { %5232 = vmatpush3.bf16.msra.mxu0 %v5231_v9  ;;  %2165 = vmatprep.mubr.f32.mxu0 %v55_v22  ;;  %v5283_v9 = vpack.c.bf16 %v581_v3, %v580_v1  ;;  %v600_v22 = vld [vmem:[%s9311_s1 + $0xff0] sm:$0xff]  ;;  %v623_v0 = vld [vmem:[%s9311_s1 + $0x10a8] sm:$0xff]  ;;  %v654_v1 = vld [vmem:[%s9311_s1 + $0x11a0] sm:$0xff] }
  0xe6   :  { %2096 = vmatmul.mubr.f32.vlgmr.msra.gmra.mrb[12].mxu1 %v52_v10  ;;  %5234 = vmatprep.subr.bf16.mxu0 %v5233_v12  ;;  %v5253_v10 = vpack.c.bf16 %v567_v5, %v566_v4  ;;  %v551_v12 = vld [vmem:[%s9311_s1 + $0xe68] sm:$0xff]  ;;  %v5299_v4 = vpack.c.bf16 %v605_v59, %v604_v58  ;;  %v61_v5 = vld [vmem:[%s9312_s0 + $0x118] sm:$0xff]  ;;  %v5301_v7 = vpack.c.bf16 %v623_v0, %v622_v63  ;;  %v646_v59 = vld [vmem:[%s9311_s1 + $0x1160] sm:$0xff] }
  0xe7   :  { %5264 = vmatpush3.bf16.msra.mxu1 %v5263_v11  ;;  %2235 = vmatprep.mubr.f32.mxu1 %v57_v24  ;;  %v550_v11 = vld [vmem:[%s9311_s1 + $0xe60] sm:$0xff]  ;;  %v59_v3 = vld [vmem:[%s9312_s0 + $0x108] sm:$0xff]  ;;  %v632_v63 = vld [vmem:[%s9311_s1 + $0x10f0] sm:$0xff] }
  0xe8   :  { %5266 = vmatprep.subr.bf16.mxu1 %v5265_v16  ;;  %v583_v16 = vld [vmem:[%s9311_s1 + $0xf68] sm:$0xff]  ;;  %v633_v0 = vld [vmem:[%s9311_s1 + $0x10f8] sm:$0xff] }
  0xe9   :  { %5236 = vmatpush3.bf16.msra.mxu0 %v5235_v23  ;;  %v601_v23 = vld [vmem:[%s9311_s1 + $0xff8] sm:$0xff]  ;;  %v5287_v28 = vpack.c.bf16 %v583_v16, %v582_v13  ;;  %v624_v13 = vld [vmem:[%s9311_s1 + $0x10b0] sm:$0xff]  ;;  %v615_v58 = vld [vmem:[%s9311_s1 + $0x1068] sm:$0xff] }
  0xea   :  { %5238 = vmatprep.subr.bf16.mxu0 %v5237_v26  ;;  %v5255_v26 = vpack.c.bf16 %v551_v12, %v550_v11  ;;  %v5289_v34 = vpack.c.bf16 %v601_v23, %v600_v22  ;;  %v639_v12 = vld [vmem:[%s9311_s1 + $0x1128] sm:$0xff]  ;;  %v657_v16 = vld [vmem:[%s9311_s1 + $0x11b8] sm:$0xff]  ;;  %v640_v22 = vld [vmem:[%s9311_s1 + $0x1130] sm:$0xff] }
  0xeb   :  { %5268 = vmatpush3.bf16.msra.mxu1 %v5267_v25 }
  0xec   :  { %5270 = vmatprep.subr.bf16.mxu1 %v5269_v30  ;;  %v552_v30 = vld [vmem:[%s9311_s1 + $0xe70] sm:$0xff] }
  0xed   :  { %5240 = vmatpush3.bf16.msra.mxu0 %v5239_v36  ;;  %v618_v36 = vld [vmem:[%s9311_s1 + $0x1080] sm:$0xff]  ;;  %v5259_v41 = vpack.c.bf16 %v553_v31, %v552_v30 }
  0xee   :  { %5242 = vmatprep.subr.bf16.mxu0 %v5241_v38  ;;  %v650_v38 = vld [vmem:[%s9311_s1 + $0x1180] sm:$0xff] }
  0xef   :  { %5272 = vmatpush3.bf16.msra.mxu1 %v5271_v37  ;;  %v619_v37 = vld [vmem:[%s9311_s1 + $0x1088] sm:$0xff]  ;;  %v5325_v47 = vpack.c.bf16 %v651_v39, %v650_v38  ;;  %v629_v38 = vld [vmem:[%s9311_s1 + $0x10d8] sm:$0xff]  ;;  %v660_v39 = vld [vmem:[%s9311_s1 + $0x11d0] sm:$0xff] }
  0xf0   :  { %5274 = vmatprep.subr.bf16.mxu1 %v5273_v42  ;;  %v5291_v42 = vpack.c.bf16 %v585_v35, %v584_v32  ;;  %v5293_v43 = vpack.c.bf16 %v619_v37, %v618_v36  ;;  %v610_v32 = vld [vmem:[%s9311_s1 + $0x1040] sm:$0xff]  ;;  %v643_v36 = vld [vmem:[%s9311_s1 + $0x1148] sm:$0xff]  ;;  %v628_v37 = vld [vmem:[%s9311_s1 + $0x10d0] sm:$0xff] }
  0xf1   :  { %5244 = vmatpush3.bf16.msra.mxu0 %v5243_v48  ;;  %v635_v48 = vld [vmem:[%s9311_s1 + $0x1108] sm:$0xff] }
  0xf2   :  { %5246 = vmatprep.subr.bf16.mxu0 %v5245_v50  ;;  %v621_v50 = vld [vmem:[%s9311_s1 + $0x1098] sm:$0xff]  ;;  %v5327_v56 = vpack.c.bf16 %v635_v48, %v634_v46 }
  0xf3   :  { %5276 = vmatpush3.bf16.msra.mxu1 %v5275_v49  ;;  %v620_v49 = vld [vmem:[%s9311_s1 + $0x1090] sm:$0xff]  ;;  %v613_v46 = vld [vmem:[%s9311_s1 + $0x1058] sm:$0xff] }
  0xf4   :  { %5278 = vmatprep.subr.bf16.mxu1 %v5277_v54  ;;  %v5295_v54 = vpack.c.bf16 %v603_v45, %v602_v44  ;;  %v5297_v57 = vpack.c.bf16 %v621_v50, %v620_v49  ;;  %v5313_v44 = vpack.c.bf16 %v629_v38, %v628_v37  ;;  %v612_v45 = vld [vmem:[%s9311_s1 + $0x1050] sm:$0xff]  ;;  %v645_v49 = vld [vmem:[%s9311_s1 + $0x1158] sm:$0xff]  ;;  %v630_v50 = vld [vmem:[%s9311_s1 + $0x10e0] sm:$0xff] }
  0xf5   :  { %5248 = vmatpush3.bf16.msra.mxu0 %v5247_v60  ;;  %v636_v60 = vld [vmem:[%s9311_s1 + $0x1110] sm:$0xff] }
  0xf6   :  { %5250 = vmatprep.subr.bf16.mxu0 %v5249_v62  ;;  %v637_v62 = vld [vmem:[%s9311_s1 + $0x1118] sm:$0xff]  ;;  %v668_v38 = vld [vmem:[%s9311_s1 + $0x1210] sm:$0xff] }
  0xf7   :  { %5280 = vmatpush3.bf16.msra.mxu1 %v5279_v61  ;;  %v3589_v14 = vpop.f32.mrb[0].mxu0  ;;  %v5329_v61 = vpack.c.bf16 %v653_v52, %v652_v51  ;;  %v5331_v6 = vpack.c.bf16 %v637_v62, %v636_v60  ;;  %v631_v51 = vld [vmem:[%s9311_s1 + $0x10e8] sm:$0xff]  ;;  %v662_v52 = vld [vmem:[%s9311_s1 + $0x11e0] sm:$0xff] }
  0xf8   :  { %5282 = vmatprep.subr.bf16.mxu1 %v5281_v2  ;;  %v3590_v20 = vpop.f32.mrb[1].mxu0  ;;  %v655_v2 = vld [vmem:[%s9311_s1 + $0x11a8] sm:$0xff] }
  0xf9   :  { %v3624_v21 = vpop.f32.mrb[0].mxu1  ;;  %v3591_v24 = vadd.f32 %v3590_v20, %v3589_v14  ;;  %5252 = vmatpush3.bf16.msra.mxu0 %v5251_v8  ;;  %v606_v8 = vld [vmem:[%s9311_s1 + $0x1020] sm:$0xff]  ;;  %v5333_v11 = vpack.c.bf16 %v655_v2, %v654_v1  ;;  %v625_v14 = vld [vmem:[%s9311_s1 + $0x10b8] sm:$0xff]  ;;  %v608_v20 = vld [vmem:[%s9311_s1 + $0x1030] sm:$0xff] }
  0xfa   :  { %v3625_v25 = vpop.f32.mrb[1].mxu1  ;;  %5254 = vmatprep.subr.bf16.mxu0 %v5253_v10  ;;  %v638_v10 = vld [vmem:[%s9311_s1 + $0x1120] sm:$0xff]  ;;  %v647_v62 = vld [vmem:[%s9311_s1 + $0x1168] sm:$0xff] }
  0xfb   :  { %v3626_v27 = vadd.f32 %v3625_v25, %v3624_v21  ;;  %5284 = vmatpush3.bf16.msra.mxu1 %v5283_v9  ;;  %v1188_v33 = vadd.f32 %v3591_v24, %v3554_v19  ;;  %v607_v9 = vld [vmem:[%s9311_s1 + $0x1028] sm:$0xff]  ;;  %v5335_v18 = vpack.c.bf16 %v639_v12, %v638_v10  ;;  %v5305_v19 = vpack.c.bf16 %v625_v14, %v624_v13  ;;  %v609_v21 = vld [vmem:[%s9311_s1 + $0x1038] sm:$0xff]  ;;  %v626_v25 = vld [vmem:[%s9311_s1 + $0x10c0] sm:$0xff] }
  0xfc   :  { %5286 = vmatprep.subr.bf16.mxu1 %v5285_v15  ;;  %v656_v15 = vld [vmem:[%s9311_s1 + $0x11b0] sm:$0xff]  ;;  %v5303_v17 = vpack.c.bf16 %v607_v9, %v606_v8  ;;  %v641_v24 = vld [vmem:[%s9311_s1 + $0x1138] sm:$0xff]  ;;  %v5351_v9 = vpack.c.bf16 %v647_v62, %v646_v59  ;;  %v5321_v10 = vpack.c.bf16 %v633_v0, %v632_v63 }
  0xfd   :  { %v7540_v40 = vadd.f32 %v3626_v27, %v1188_v33  ;;  %5256 = vmatpush3.bf16.msra.mxu0 %v5255_v26  ;;  %v5337_v23 = vpack.c.bf16 %v657_v16, %v656_v15  ;;  %v627_v26 = vld [vmem:[%s9311_s1 + $0x10c8] sm:$0xff]  ;;  %v658_v27 = vld [vmem:[%s9311_s1 + $0x11c0] sm:$0xff]  ;;  %v5339_v30 = vpack.c.bf16 %v641_v24, %v640_v22  ;;  %v617_v12 = vld [vmem:[%s9311_s1 + $0x1078] sm:$0xff] }
  0xfe   :  { %5258 = vmatprep.subr.bf16.mxu0 %v5257_v29  ;;  %v5307_v29 = vpack.c.bf16 %v609_v21, %v608_v20  ;;  %v5309_v31 = vpack.c.bf16 %v627_v26, %v626_v25  ;;  %v611_v33 = vld [vmem:[%s9311_s1 + $0x1048] sm:$0xff]  ;;  %v648_v13 = vld [vmem:[%s9311_s1 + $0x1170] sm:$0xff]  ;;  %v649_v16 = vld [vmem:[%s9311_s1 + $0x1178] sm:$0xff] }
  0xff   :  { %5288 = vmatpush3.bf16.msra.mxu1 %v5287_v28  ;;  %v659_v28 = vld [vmem:[%s9311_s1 + $0x11c8] sm:$0xff]  ;;  %v5355_v22 = vpack.c.bf16 %v649_v16, %v648_v13  ;;  %v666_v24 = vld [vmem:[%s9311_s1 + $0x1200] sm:$0xff]  ;;  %v689_v59 = vld [vmem:[%s9311_s1 + $0x12b8] sm:$0xff] }
 0x100   :  { %5290 = vmatprep.subr.bf16.mxu1 %v5289_v34  ;;  %v642_v34 = vld [vmem:[%s9311_s1 + $0x1140] sm:$0xff]  ;;  %v5341_v35 = vpack.c.bf16 %v659_v28, %v658_v27  ;;  %v667_v25 = vld [vmem:[%s9311_s1 + $0x1208] sm:$0xff] }
 0x101   :  { %5260 = vmatpush3.bf16.msra.mxu0 %v5259_v41  ;;  %v661_v41 = vld [vmem:[%s9311_s1 + $0x11d8] sm:$0xff]  ;;  %v698_v26 = vld [vmem:[%s9311_s1 + $0x1300] sm:$0xff]  ;;  %v699_v28 = vld [vmem:[%s9311_s1 + $0x1308] sm:$0xff] }
 0x102   :  { %5294 = vmatprep.subr.bf16.mxu0 %v5293_v43  ;;  %v5343_v43 = vpack.c.bf16 %v643_v36, %v642_v34  ;;  %v5345_v48 = vpack.c.bf16 %v661_v41, %v660_v39  ;;  %v5359_v34 = vpack.c.bf16 %v667_v25, %v666_v24  ;;  %v5391_v36 = vpack.c.bf16 %v699_v28, %v698_v26  ;;  %v669_v39 = vld [vmem:[%s9311_s1 + $0x1218] sm:$0xff]  ;;  %v700_v41 = vld [vmem:[%s9311_s1 + $0x1310] sm:$0xff]  ;;  %v674_v13 = vld [vmem:[%s9311_s1 + $0x1240] sm:$0xff] }
 0x103   :  { %5292 = vmatpush3.bf16.msra.mxu1 %v5291_v42  ;;  %v5311_v42 = vpack.c.bf16 %v611_v33, %v610_v32  ;;  %v717_v32 = vld [vmem:[%s9311_s1 + $0x1398] sm:$0xff]  ;;  %v58_v33 = vld [vmem:[%s9312_s0 + $0x100] sm:$0xff]  ;;  %v676_v25 = vld [vmem:[%s9311_s1 + $0x1250] sm:$0xff] }
 0x104   :  { %5326 = vmatprep.subr.bf16.mxu1 %v5325_v47  ;;  %2166 = vmatmul.mubr.f32.vlgmr.msra.gmra.mrb[14].mxu0 %v54_v53  ;;  %v644_v47 = vld [vmem:[%s9311_s1 + $0x1150] sm:$0xff]  ;;  %v663_v53 = vld [vmem:[%s9311_s1 + $0x11e8] sm:$0xff]  ;;  %v677_v26 = vld [vmem:[%s9311_s1 + $0x1258] sm:$0xff] }
 0x105   :  { %5296 = vmatpush3.bf16.msra.mxu0 %v5295_v54  ;;  %2305 = vmatprep.mubr.f32.mxu0 %v59_v3  ;;  %v5315_v54 = vpack.c.bf16 %v613_v46, %v612_v45  ;;  %v664_v3 = vld [vmem:[%s9311_s1 + $0x11f0] sm:$0xff]  ;;  %v687_v45 = vld [vmem:[%s9311_s1 + $0x12a8] sm:$0xff]  ;;  %v718_v46 = vld [vmem:[%s9311_s1 + $0x13a0] sm:$0xff] }
 0x106   :  { %2236 = vmatmul.mubr.f32.vlgmr.msra.gmra.mrb[14].mxu1 %v56_v55  ;;  %5298 = vmatprep.subr.bf16.mxu0 %v5297_v57  ;;  %v5347_v55 = vpack.c.bf16 %v645_v49, %v644_v47  ;;  %v614_v57 = vld [vmem:[%s9311_s1 + $0x1060] sm:$0xff]  ;;  %v719_v47 = vld [vmem:[%s9311_s1 + $0x13a8] sm:$0xff]  ;;  %v5363_v49 = vpack.c.bf16 %v669_v39, %v668_v38 }
 0x107   :  { %5328 = vmatpush3.bf16.msra.mxu1 %v5327_v56  ;;  %2375 = vmatprep.mubr.f32.mxu1 %v61_v5  ;;  %v5317_v56 = vpack.c.bf16 %v631_v51, %v630_v50  ;;  %v65_v50 = vld [vmem:[%s9312_s0 + $0x138] sm:$0xff]  ;;  %v679_v38 = vld [vmem:[%s9311_s1 + $0x1268] sm:$0xff]  ;;  %v710_v39 = vld [vmem:[%s9311_s1 + $0x1360] sm:$0xff] }
 0x108   :  { %5330 = vmatprep.subr.bf16.mxu1 %v5329_v61  ;;  %v5349_v61 = vpack.c.bf16 %v663_v53, %v662_v52  ;;  %v670_v53 = vld [vmem:[%s9311_s1 + $0x1220] sm:$0xff] }
 0x109   :  { %5300 = vmatpush3.bf16.msra.mxu0 %v5299_v4  ;;  %v665_v4 = vld [vmem:[%s9311_s1 + $0x11f8] sm:$0xff] }
 0x10a   :  { %5302 = vmatprep.subr.bf16.mxu0 %v5301_v7  ;;  %v5319_v7 = vpack.c.bf16 %v615_v58, %v614_v57  ;;  %v5353_v15 = vpack.c.bf16 %v665_v4, %v664_v3  ;;  %v703_v57 = vld [vmem:[%s9311_s1 + $0x1328] sm:$0xff]  ;;  %v688_v58 = vld [vmem:[%s9311_s1 + $0x12b0] sm:$0xff] }
 0x10b   :  { %5332 = vmatpush3.bf16.msra.mxu1 %v5331_v6  ;;  %v5369_v0 = vpack.c.bf16 %v689_v59, %v688_v58  ;;  %v704_v3 = vld [vmem:[%s9311_s1 + $0x1330] sm:$0xff] }
 0x10c   :  { %5334 = vmatprep.subr.bf16.mxu1 %v5333_v11  ;;  %v616_v11 = vld [vmem:[%s9311_s1 + $0x1070] sm:$0xff] }
 0x10d   :  { %5304 = vmatpush3.bf16.msra.mxu0 %v5303_v17  ;;  %v682_v17 = vld [vmem:[%s9311_s1 + $0x1280] sm:$0xff]  ;;  %v5323_v21 = vpack.c.bf16 %v617_v12, %v616_v11  ;;  %v712_v58 = vld [vmem:[%s9311_s1 + $0x1370] sm:$0xff] }
 0x10e   :  { %5306 = vmatprep.subr.bf16.mxu0 %v5305_v19  ;;  %v714_v19 = vld [vmem:[%s9311_s1 + $0x1380] sm:$0xff] }
 0x10f   :  { %5336 = vmatpush3.bf16.msra.mxu1 %v5335_v18  ;;  %v683_v18 = vld [vmem:[%s9311_s1 + $0x1288] sm:$0xff] }
 0x110   :  { %5338 = vmatprep.subr.bf16.mxu1 %v5337_v23  ;;  %v5357_v23 = vpack.c.bf16 %v683_v18, %v682_v17  ;;  %v707_v17 = vld [vmem:[%s9311_s1 + $0x1348] sm:$0xff]  ;;  %v692_v18 = vld [vmem:[%s9311_s1 + $0x12d0] sm:$0xff] }
 0x111   :  { %5308 = vmatpush3.bf16.msra.mxu0 %v5307_v29  ;;  %v684_v29 = vld [vmem:[%s9311_s1 + $0x1290] sm:$0xff] }
 0x112   :  { %5310 = vmatprep.subr.bf16.mxu0 %v5309_v31  ;;  %v716_v31 = vld [vmem:[%s9311_s1 + $0x1390] sm:$0xff] }
 0x113   :  { %5340 = vmatpush3.bf16.msra.mxu1 %v5339_v30  ;;  %v685_v30 = vld [vmem:[%s9311_s1 + $0x1298] sm:$0xff] }
 0x114   :  { %5342 = vmatprep.subr.bf16.mxu1 %v5341_v35  ;;  %v60_v35 = vld [vmem:[%s9312_s0 + $0x110] sm:$0xff]  ;;  %v5361_v37 = vpack.c.bf16 %v685_v30, %v684_v29  ;;  %v709_v29 = vld [vmem:[%s9311_s1 + $0x1358] sm:$0xff]  ;;  %v694_v30 = vld [vmem:[%s9311_s1 + $0x12e0] sm:$0xff] }
 0x115   :  { %5312 = vmatpush3.bf16.msra.mxu0 %v5311_v42  ;;  %v5393_v42 = vpack.c.bf16 %v717_v32, %v716_v31  ;;  %v695_v31 = vld [vmem:[%s9311_s1 + $0x12e8] sm:$0xff]  ;;  %v726_v32 = vld [vmem:[%s9311_s1 + $0x13e0] sm:$0xff] }
 0x116   :  { %5314 = vmatprep.subr.bf16.mxu0 %v5313_v44  ;;  %v686_v44 = vld [vmem:[%s9311_s1 + $0x12a0] sm:$0xff] }
 0x117   :  { %5344 = vmatpush3.bf16.msra.mxu1 %v5343_v43  ;;  %v3659_v60 = vpop.f32.mrb[2].mxu0  ;;  %v701_v43 = vld [vmem:[%s9311_s1 + $0x1318] sm:$0xff]  ;;  %v5365_v52 = vpack.c.bf16 %v687_v45, %v686_v44  ;;  %v696_v44 = vld [vmem:[%s9311_s1 + $0x12f0] sm:$0xff] }
 0x118   :  { %5346 = vmatprep.subr.bf16.mxu1 %v5345_v48  ;;  %v3660_v1 = vpop.f32.mrb[3].mxu0  ;;  %v63_v48 = vld [vmem:[%s9312_s0 + $0x128] sm:$0xff]  ;;  %v5395_v51 = vpack.c.bf16 %v701_v43, %v700_v41  ;;  %v697_v45 = vld [vmem:[%s9311_s1 + $0x12f8] sm:$0xff] }
 0x119   :  { %v3694_v2 = vpop.f32.mrb[2].mxu1  ;;  %v3661_v5 = vadd.f32 %v3660_v1, %v3659_v60  ;;  %5316 = vmatpush3.bf16.msra.mxu0 %v5315_v54  ;;  %v671_v54 = vld [vmem:[%s9311_s1 + $0x1228] sm:$0xff]  ;;  %v720_v60 = vld [vmem:[%s9311_s1 + $0x13b0] sm:$0xff] }
 0x11a   :  { %v3695_v6 = vpop.f32.mrb[3].mxu1  ;;  %5318 = vmatprep.subr.bf16.mxu0 %v5317_v56  ;;  %v5397_v56 = vpack.c.bf16 %v719_v47, %v718_v46  ;;  %v5367_v62 = vpack.c.bf16 %v671_v54, %v670_v53  ;;  %v672_v1 = vld [vmem:[%s9311_s1 + $0x1230] sm:$0xff]  ;;  %v711_v43 = vld [vmem:[%s9311_s1 + $0x1368] sm:$0xff] }
 0x11b   :  { %v3696_v8 = vadd.f32 %v3695_v6, %v3694_v2  ;;  %5348 = vmatpush3.bf16.msra.mxu1 %v5347_v55  ;;  %v1328_v14 = vadd.f32 %v3661_v5, %v7540_v40  ;;  %v715_v40 = vld [vmem:[%s9311_s1 + $0x1388] sm:$0xff]  ;;  %v702_v55 = vld [vmem:[%s9311_s1 + $0x1320] sm:$0xff]  ;;  %v673_v2 = vld [vmem:[%s9311_s1 + $0x1238] sm:$0xff]  ;;  %v5415_v54 = vpack.c.bf16 %v711_v43, %v710_v39 }
 0x11c   :  { %5350 = vmatprep.subr.bf16.mxu1 %v5349_v61  ;;  %v5389_v27 = vpack.c.bf16 %v715_v40, %v714_v19  ;;  %v721_v61 = vld [vmem:[%s9311_s1 + $0x13b8] sm:$0xff]  ;;  %v5399_v63 = vpack.c.bf16 %v703_v57, %v702_v55  ;;  %v690_v6 = vld [vmem:[%s9311_s1 + $0x12c0] sm:$0xff]  ;;  %v724_v40 = vld [vmem:[%s9311_s1 + $0x13d0] sm:$0xff]  ;;  %v5385_v55 = vpack.c.bf16 %v697_v45, %v696_v44 }
 0x11d   :  { %v7747_v20 = vadd.f32 %v3696_v8, %v1328_v14  ;;  %5320 = vmatpush3.bf16.msra.mxu0 %v5319_v7  ;;  %v5401_v4 = vpack.c.bf16 %v721_v61, %v720_v60  ;;  %v705_v5 = vld [vmem:[%s9311_s1 + $0x1338] sm:$0xff]  ;;  %v691_v7 = vld [vmem:[%s9311_s1 + $0x12c8] sm:$0xff]  ;;  %v722_v8 = vld [vmem:[%s9311_s1 + $0x13c0] sm:$0xff] }
 0x11e   :  { %5322 = vmatprep.subr.bf16.mxu0 %v5321_v10  ;;  %v5371_v10 = vpack.c.bf16 %v673_v2, %v672_v1  ;;  %v5403_v11 = vpack.c.bf16 %v705_v5, %v704_v3  ;;  %v5373_v12 = vpack.c.bf16 %v691_v7, %v690_v6  ;;  %v675_v14 = vld [vmem:[%s9311_s1 + $0x1248] sm:$0xff]  ;;  %v693_v19 = vld [vmem:[%s9311_s1 + $0x12d8] sm:$0xff]  ;;  %v730_v5 = vld [vmem:[%s9311_s1 + $0x1400] sm:$0xff] }
 0x11f   :  { %5352 = vmatpush3.bf16.msra.mxu1 %v5351_v9  ;;  %v723_v9 = vld [vmem:[%s9311_s1 + $0x13c8] sm:$0xff]  ;;  %v5377_v24 = vpack.c.bf16 %v693_v19, %v692_v18  ;;  %v681_v57 = vld [vmem:[%s9311_s1 + $0x1278] sm:$0xff]  ;;  %v762_v7 = vld [vmem:[%s9311_s1 + $0x1500] sm:$0xff] }
 0x120   :  { %5354 = vmatprep.subr.bf16.mxu1 %v5353_v15  ;;  %v706_v15 = vld [vmem:[%s9311_s1 + $0x1340] sm:$0xff]  ;;  %v5405_v16 = vpack.c.bf16 %v723_v9, %v722_v8  ;;  %v713_v61 = vld [vmem:[%s9311_s1 + $0x1378] sm:$0xff]  ;;  %v731_v6 = vld [vmem:[%s9311_s1 + $0x1408] sm:$0xff] }
 0x121   :  { %5324 = vmatpush3.bf16.msra.mxu0 %v5323_v21  ;;  %v725_v21 = vld [vmem:[%s9311_s1 + $0x13d8] sm:$0xff]  ;;  %v5419_v3 = vpack.c.bf16 %v713_v61, %v712_v58  ;;  %v763_v9 = vld [vmem:[%s9311_s1 + $0x1508] sm:$0xff]  ;;  %v732_v19 = vld [vmem:[%s9311_s1 + $0x1410] sm:$0xff] }
 0x122   :  { %5358 = vmatprep.subr.bf16.mxu0 %v5357_v23  ;;  %v5407_v23 = vpack.c.bf16 %v707_v17, %v706_v15  ;;  %v5409_v28 = vpack.c.bf16 %v725_v21, %v724_v40  ;;  %v5423_v15 = vpack.c.bf16 %v731_v6, %v730_v5  ;;  %v5455_v17 = vpack.c.bf16 %v763_v9, %v762_v7  ;;  %v733_v40 = vld [vmem:[%s9311_s1 + $0x1418] sm:$0xff]  ;;  %v764_v21 = vld [vmem:[%s9311_s1 + $0x1510] sm:$0xff]  ;;  %v738_v58 = vld [vmem:[%s9311_s1 + $0x1440] sm:$0xff] }
 0x123   :  { %5356 = vmatpush3.bf16.msra.mxu1 %v5355_v22  ;;  %v5375_v22 = vpack.c.bf16 %v675_v14, %v674_v13  ;;  %v781_v13 = vld [vmem:[%s9311_s1 + $0x1598] sm:$0xff]  ;;  %v62_v14 = vld [vmem:[%s9312_s0 + $0x120] sm:$0xff]  ;;  %v740_v6 = vld [vmem:[%s9311_s1 + $0x1450] sm:$0xff] }
 0x124   :  { %5390 = vmatprep.subr.bf16.mxu1 %v5389_v27  ;;  %2306 = vmatmul.mubr.f32.vlgmr.msra.gmra.mrb[16].mxu0 %v58_v33  ;;  %v708_v27 = vld [vmem:[%s9311_s1 + $0x1350] sm:$0xff]  ;;  %v727_v33 = vld [vmem:[%s9311_s1 + $0x13e8] sm:$0xff]  ;;  %v753_v39 = vld [vmem:[%s9311_s1 + $0x14b8] sm:$0xff] }
 0x125   :  { %5360 = vmatpush3.bf16.msra.mxu0 %v5359_v34  ;;  %2445 = vmatprep.mubr.f32.mxu0 %v63_v48  ;;  %v5379_v34 = vpack.c.bf16 %v677_v26, %v676_v25  ;;  %v728_v48 = vld [vmem:[%s9311_s1 + $0x13f0] sm:$0xff]  ;;  %v751_v25 = vld [vmem:[%s9311_s1 + $0x14a8] sm:$0xff]  ;;  %v782_v26 = vld [vmem:[%s9311_s1 + $0x15a0] sm:$0xff] }
 0x126   :  { %2376 = vmatmul.mubr.f32.vlgmr.msra.gmra.mrb[16].mxu1 %v60_v35  ;;  %5362 = vmatprep.subr.bf16.mxu0 %v5361_v37  ;;  %v5411_v35 = vpack.c.bf16 %v709_v29, %v708_v27  ;;  %v678_v37 = vld [vmem:[%s9311_s1 + $0x1260] sm:$0xff]  ;;  %v783_v27 = vld [vmem:[%s9311_s1 + $0x15a8] sm:$0xff]  ;;  %v5427_v29 = vpack.c.bf16 %v733_v40, %v732_v19  ;;  %v741_v7 = vld [vmem:[%s9311_s1 + $0x1458] sm:$0xff] }
 0x127   :  { %5392 = vmatpush3.bf16.msra.mxu1 %v5391_v36  ;;  %2515 = vmatprep.mubr.f32.mxu1 %v65_v50  ;;  %v5381_v36 = vpack.c.bf16 %v695_v31, %v694_v30  ;;  %v69_v30 = vld [vmem:[%s9312_s0 + $0x158] sm:$0xff]  ;;  %v743_v19 = vld [vmem:[%s9311_s1 + $0x1468] sm:$0xff]  ;;  %v774_v40 = vld [vmem:[%s9311_s1 + $0x1560] sm:$0xff] }
 0x128   :  { %5394 = vmatprep.subr.bf16.mxu1 %v5393_v42  ;;  %v5413_v42 = vpack.c.bf16 %v727_v33, %v726_v32  ;;  %v734_v33 = vld [vmem:[%s9311_s1 + $0x1420] sm:$0xff] }
 0x129   :  { %5364 = vmatpush3.bf16.msra.mxu0 %v5363_v49  ;;  %v729_v49 = vld [vmem:[%s9311_s1 + $0x13f8] sm:$0xff] }
 0x12a   :  { %5366 = vmatprep.subr.bf16.mxu0 %v5365_v52  ;;  %v5383_v52 = vpack.c.bf16 %v679_v38, %v678_v37  ;;  %v5417_v60 = vpack.c.bf16 %v729_v49, %v728_v48  ;;  %v767_v37 = vld [vmem:[%s9311_s1 + $0x1528] sm:$0xff]  ;;  %v752_v38 = vld [vmem:[%s9311_s1 + $0x14b0] sm:$0xff] }
 0x12b   :  { %5396 = vmatpush3.bf16.msra.mxu1 %v5395_v51  ;;  %v5433_v45 = vpack.c.bf16 %v753_v39, %v752_v38  ;;  %v768_v48 = vld [vmem:[%s9311_s1 + $0x1530] sm:$0xff] }
 0x12c   :  { %5398 = vmatprep.subr.bf16.mxu1 %v5397_v56  ;;  %v680_v56 = vld [vmem:[%s9311_s1 + $0x1270] sm:$0xff] }
 0x12d   :  { %5368 = vmatpush3.bf16.msra.mxu0 %v5367_v62  ;;  %v746_v62 = vld [vmem:[%s9311_s1 + $0x1480] sm:$0xff]  ;;  %v5387_v2 = vpack.c.bf16 %v681_v57, %v680_v56  ;;  %v776_v38 = vld [vmem:[%s9311_s1 + $0x1570] sm:$0xff] }
 0x12e   :  { %5370 = vmatprep.subr.bf16.mxu0 %v5369_v0  ;;  %v778_v0 = vld [vmem:[%s9311_s1 + $0x1580] sm:$0xff] }
 0x12f   :  { %5400 = vmatpush3.bf16.msra.mxu1 %v5399_v63  ;;  %v747_v63 = vld [vmem:[%s9311_s1 + $0x1488] sm:$0xff] }
 0x130   :  { %5402 = vmatprep.subr.bf16.mxu1 %v5401_v4  ;;  %v5421_v4 = vpack.c.bf16 %v747_v63, %v746_v62  ;;  %v771_v62 = vld [vmem:[%s9311_s1 + $0x1548] sm:$0xff]  ;;  %v756_v63 = vld [vmem:[%s9311_s1 + $0x14d0] sm:$0xff] }
 0x131   :  { %5372 = vmatpush3.bf16.msra.mxu0 %v5371_v10  ;;  %v748_v10 = vld [vmem:[%s9311_s1 + $0x1490] sm:$0xff] }
 0x132   :  { %5374 = vmatprep.subr.bf16.mxu0 %v5373_v12  ;;  %v780_v12 = vld [vmem:[%s9311_s1 + $0x1590] sm:$0xff] }
 0x133   :  { %5404 = vmatpush3.bf16.msra.mxu1 %v5403_v11  ;;  %v749_v11 = vld [vmem:[%s9311_s1 + $0x1498] sm:$0xff] }
 0x134   :  { %5406 = vmatprep.subr.bf16.mxu1 %v5405_v16  ;;  %v64_v16 = vld [vmem:[%s9312_s0 + $0x130] sm:$0xff]  ;;  %v5425_v18 = vpack.c.bf16 %v749_v11, %v748_v10  ;;  %v773_v10 = vld [vmem:[%s9311_s1 + $0x1558] sm:$0xff]  ;;  %v758_v11 = vld [vmem:[%s9311_s1 + $0x14e0] sm:$0xff] }
 0x135   :  { %5376 = vmatpush3.bf16.msra.mxu0 %v5375_v22  ;;  %v5457_v22 = vpack.c.bf16 %v781_v13, %v780_v12  ;;  %v759_v12 = vld [vmem:[%s9311_s1 + $0x14e8] sm:$0xff]  ;;  %v790_v13 = vld [vmem:[%s9311_s1 + $0x15e0] sm:$0xff] }
 0x136   :  { %5378 = vmatprep.subr.bf16.mxu0 %v5377_v24  ;;  %v750_v24 = vld [vmem:[%s9311_s1 + $0x14a0] sm:$0xff] }
 0x137   :  { %5408 = vmatpush3.bf16.msra.mxu1 %v5407_v23  ;;  %v3729_v41 = vpop.f32.mrb[4].mxu0  ;;  %v765_v23 = vld [vmem:[%s9311_s1 + $0x1518] sm:$0xff]  ;;  %v5429_v32 = vpack.c.bf16 %v751_v25, %v750_v24  ;;  %v760_v24 = vld [vmem:[%s9311_s1 + $0x14f0] sm:$0xff] }
 0x138   :  { %5410 = vmatprep.subr.bf16.mxu1 %v5409_v28  ;;  %v3730_v46 = vpop.f32.mrb[5].mxu0  ;;  %v67_v28 = vld [vmem:[%s9312_s0 + $0x148] sm:$0xff]  ;;  %v5459_v31 = vpack.c.bf16 %v765_v23, %v764_v21  ;;  %v761_v25 = vld [vmem:[%s9311_s1 + $0x14f8] sm:$0xff] }
 0x139   :  { %v3764_v47 = vpop.f32.mrb[4].mxu1  ;;  %v3731_v50 = vadd.f32 %v3730_v46, %v3729_v41  ;;  %5380 = vmatpush3.bf16.msra.mxu0 %v5379_v34  ;;  %v735_v34 = vld [vmem:[%s9311_s1 + $0x1428] sm:$0xff]  ;;  %v784_v41 = vld [vmem:[%s9311_s1 + $0x15b0] sm:$0xff] }
 0x13a   :  { %v3765_v51 = vpop.f32.mrb[5].mxu1  ;;  %5382 = vmatprep.subr.bf16.mxu0 %v5381_v36  ;;  %v5461_v36 = vpack.c.bf16 %v783_v27, %v782_v26  ;;  %v5431_v43 = vpack.c.bf16 %v735_v34, %v734_v33  ;;  %v736_v46 = vld [vmem:[%s9311_s1 + $0x1430] sm:$0xff]  ;;  %v775_v23 = vld [vmem:[%s9311_s1 + $0x1568] sm:$0xff] }
 0x13b   :  { %v3766_v53 = vadd.f32 %v3765_v51, %v3764_v47  ;;  %5412 = vmatpush3.bf16.msra.mxu1 %v5411_v35  ;;  %v1468_v59 = vadd.f32 %v3731_v50, %v7747_v20  ;;  %v779_v20 = vld [vmem:[%s9311_s1 + $0x1588] sm:$0xff]  ;;  %v766_v35 = vld [vmem:[%s9311_s1 + $0x1520] sm:$0xff]  ;;  %v737_v47 = vld [vmem:[%s9311_s1 + $0x1438] sm:$0xff]  ;;  %v5479_v34 = vpack.c.bf16 %v775_v23, %v774_v40 }
 0x13c   :  { %5414 = vmatprep.subr.bf16.mxu1 %v5413_v42  ;;  %v5453_v8 = vpack.c.bf16 %v779_v20, %v778_v0  ;;  %v785_v42 = vld [vmem:[%s9311_s1 + $0x15b8] sm:$0xff]  ;;  %v5463_v44 = vpack.c.bf16 %v767_v37, %v766_v35  ;;  %v754_v51 = vld [vmem:[%s9311_s1 + $0x14c0] sm:$0xff]  ;;  %v788_v20 = vld [vmem:[%s9311_s1 + $0x15d0] sm:$0xff]  ;;  %v5449_v35 = vpack.c.bf16 %v761_v25, %v760_v24 }
 0x13d   :  { %v7954_v1 = vadd.f32 %v3766_v53, %v1468_v59  ;;  %5384 = vmatpush3.bf16.msra.mxu0 %v5383_v52  ;;  %v5465_v49 = vpack.c.bf16 %v785_v42, %v784_v41  ;;  %v769_v50 = vld [vmem:[%s9311_s1 + $0x1538] sm:$0xff]  ;;  %v755_v52 = vld [vmem:[%s9311_s1 + $0x14c8] sm:$0xff]  ;;  %v786_v53 = vld [vmem:[%s9311_s1 + $0x15c0] sm:$0xff] }
 0x13e   :  { %5386 = vmatprep.subr.bf16.mxu0 %v5385_v55  ;;  %v5435_v55 = vpack.c.bf16 %v737_v47, %v736_v46  ;;  %v5467_v56 = vpack.c.bf16 %v769_v50, %v768_v48  ;;  %v5437_v57 = vpack.c.bf16 %v755_v52, %v754_v51  ;;  %v739_v59 = vld [vmem:[%s9311_s1 + $0x1448] sm:$0xff]  ;;  %v757_v0 = vld [vmem:[%s9311_s1 + $0x14d8] sm:$0xff]  ;;  %v794_v50 = vld [vmem:[%s9311_s1 + $0x1600] sm:$0xff] }
 0x13f   :  { %5416 = vmatpush3.bf16.msra.mxu1 %v5415_v54  ;;  %v787_v54 = vld [vmem:[%s9311_s1 + $0x15c8] sm:$0xff]  ;;  %v5441_v5 = vpack.c.bf16 %v757_v0, %v756_v63  ;;  %v745_v37 = vld [vmem:[%s9311_s1 + $0x1478] sm:$0xff]  ;;  %v826_v52 = vld [vmem:[%s9311_s1 + $0x1700] sm:$0xff] }
 0x140   :  { %5418 = vmatprep.subr.bf16.mxu1 %v5417_v60  ;;  %v770_v60 = vld [vmem:[%s9311_s1 + $0x1540] sm:$0xff]  ;;  %v5469_v61 = vpack.c.bf16 %v787_v54, %v786_v53  ;;  %v777_v42 = vld [vmem:[%s9311_s1 + $0x1578] sm:$0xff]  ;;  %v795_v51 = vld [vmem:[%s9311_s1 + $0x1608] sm:$0xff] }
 0x141   :  { %5388 = vmatpush3.bf16.msra.mxu0 %v5387_v2  ;;  %v789_v2 = vld [vmem:[%s9311_s1 + $0x15d8] sm:$0xff]  ;;  %v5483_v48 = vpack.c.bf16 %v777_v42, %v776_v38  ;;  %v827_v54 = vld [vmem:[%s9311_s1 + $0x1708] sm:$0xff]  ;;  %v796_v0 = vld [vmem:[%s9311_s1 + $0x1610] sm:$0xff] }
 0x142   :  { %5422 = vmatprep.subr.bf16.mxu0 %v5421_v4  ;;  %v5471_v4 = vpack.c.bf16 %v771_v62, %v770_v60  ;;  %v5473_v9 = vpack.c.bf16 %v789_v2, %v788_v20  ;;  %v5487_v60 = vpack.c.bf16 %v795_v51, %v794_v50  ;;  %v5519_v62 = vpack.c.bf16 %v827_v54, %v826_v52  ;;  %v797_v20 = vld [vmem:[%s9311_s1 + $0x1618] sm:$0xff]  ;;  %v828_v2 = vld [vmem:[%s9311_s1 + $0x1710] sm:$0xff]  ;;  %v802_v38 = vld [vmem:[%s9311_s1 + $0x1640] sm:$0xff] }
 0x143   :  { %5420 = vmatpush3.bf16.msra.mxu1 %v5419_v3  ;;  %v5439_v3 = vpack.c.bf16 %v739_v59, %v738_v58  ;;  %v845_v58 = vld [vmem:[%s9311_s1 + $0x1798] sm:$0xff]  ;;  %v66_v59 = vld [vmem:[%s9312_s0 + $0x140] sm:$0xff]  ;;  %v804_v51 = vld [vmem:[%s9311_s1 + $0x1650] sm:$0xff] }
 0x144   :  { %5454 = vmatprep.subr.bf16.mxu1 %v5453_v8  ;;  %2446 = vmatmul.mubr.f32.vlgmr.msra.gmra.mrb[18].mxu0 %v62_v14  ;;  %v772_v8 = vld [vmem:[%s9311_s1 + $0x1550] sm:$0xff]  ;;  %v791_v14 = vld [vmem:[%s9311_s1 + $0x15e8] sm:$0xff]  ;;  %v817_v40 = vld [vmem:[%s9311_s1 + $0x16b8] sm:$0xff] }
 0x145   :  { %5424 = vmatpush3.bf16.msra.mxu0 %v5423_v15  ;;  %2585 = vmatprep.mubr.f32.mxu0 %v67_v28  ;;  %v5443_v15 = vpack.c.bf16 %v741_v7, %v740_v6  ;;  %v792_v28 = vld [vmem:[%s9311_s1 + $0x15f0] sm:$0xff]  ;;  %v815_v6 = vld [vmem:[%s9311_s1 + $0x16a8] sm:$0xff]  ;;  %v846_v7 = vld [vmem:[%s9311_s1 + $0x17a0] sm:$0xff] }
 0x146   :  { %2516 = vmatmul.mubr.f32.vlgmr.msra.gmra.mrb[18].mxu1 %v64_v16  ;;  %5426 = vmatprep.subr.bf16.mxu0 %v5425_v18  ;;  %v5475_v16 = vpack.c.bf16 %v773_v10, %v772_v8  ;;  %v742_v18 = vld [vmem:[%s9311_s1 + $0x1460] sm:$0xff]  ;;  %v847_v8 = vld [vmem:[%s9311_s1 + $0x17a8] sm:$0xff]  ;;  %v5491_v10 = vpack.c.bf16 %v797_v20, %v796_v0  ;;  %v805_v52 = vld [vmem:[%s9311_s1 + $0x1658] sm:$0xff] }
 0x147   :  { %5456 = vmatpush3.bf16.msra.mxu1 %v5455_v17  ;;  %2655 = vmatprep.mubr.f32.mxu1 %v69_v30  ;;  %v5445_v17 = vpack.c.bf16 %v759_v12, %v758_v11  ;;  %v73_v11 = vld [vmem:[%s9312_s0 + $0x178] sm:$0xff]  ;;  %v807_v0 = vld [vmem:[%s9311_s1 + $0x1668] sm:$0xff]  ;;  %v838_v20 = vld [vmem:[%s9311_s1 + $0x1760] sm:$0xff] }
 0x148   :  { %5458 = vmatprep.subr.bf16.mxu1 %v5457_v22  ;;  %v5477_v22 = vpack.c.bf16 %v791_v14, %v790_v13  ;;  %v798_v14 = vld [vmem:[%s9311_s1 + $0x1620] sm:$0xff] }
 0x149   :  { %5428 = vmatpush3.bf16.msra.mxu0 %v5427_v29  ;;  %v793_v29 = vld [vmem:[%s9311_s1 + $0x15f8] sm:$0xff] }
 0x14a   :  { %5430 = vmatprep.subr.bf16.mxu0 %v5429_v32  ;;  %v5447_v32 = vpack.c.bf16 %v743_v19, %v742_v18  ;;  %v5481_v41 = vpack.c.bf16 %v793_v29, %v792_v28  ;;  %v831_v18 = vld [vmem:[%s9311_s1 + $0x1728] sm:$0xff]  ;;  %v816_v19 = vld [vmem:[%s9311_s1 + $0x16b0] sm:$0xff] }
 0x14b   :  { %5460 = vmatpush3.bf16.msra.mxu1 %v5459_v31  ;;  %v5497_v25 = vpack.c.bf16 %v817_v40, %v816_v19  ;;  %v832_v28 = vld [vmem:[%s9311_s1 + $0x1730] sm:$0xff] }
 0x14c   :  { %5462 = vmatprep.subr.bf16.mxu1 %v5461_v36  ;;  %v744_v36 = vld [vmem:[%s9311_s1 + $0x1470] sm:$0xff] }
 0x14d   :  { %5432 = vmatpush3.bf16.msra.mxu0 %v5431_v43  ;;  %v810_v43 = vld [vmem:[%s9311_s1 + $0x1680] sm:$0xff]  ;;  %v5451_v47 = vpack.c.bf16 %v745_v37, %v744_v36  ;;  %v840_v19 = vld [vmem:[%s9311_s1 + $0x1770] sm:$0xff] }
 0x14e   :  { %5434 = vmatprep.subr.bf16.mxu0 %v5433_v45  ;;  %v842_v45 = vld [vmem:[%s9311_s1 + $0x1780] sm:$0xff] }
 0x14f   :  { %5464 = vmatpush3.bf16.msra.mxu1 %v5463_v44  ;;  %v811_v44 = vld [vmem:[%s9311_s1 + $0x1688] sm:$0xff] }
 0x150   :  { %5466 = vmatprep.subr.bf16.mxu1 %v5465_v49  ;;  %v5485_v49 = vpack.c.bf16 %v811_v44, %v810_v43  ;;  %v835_v43 = vld [vmem:[%s9311_s1 + $0x1748] sm:$0xff]  ;;  %v820_v44 = vld [vmem:[%s9311_s1 + $0x16d0] sm:$0xff] }
 0x151   :  { %5436 = vmatpush3.bf16.msra.mxu0 %v5435_v55  ;;  %v812_v55 = vld [vmem:[%s9311_s1 + $0x1690] sm:$0xff] }
 0x152   :  { %5438 = vmatprep.subr.bf16.mxu0 %v5437_v57  ;;  %v844_v57 = vld [vmem:[%s9311_s1 + $0x1790] sm:$0xff] }
 0x153   :  { %5468 = vmatpush3.bf16.msra.mxu1 %v5467_v56  ;;  %v813_v56 = vld [vmem:[%s9311_s1 + $0x1698] sm:$0xff] }
 0x154   :  { %5470 = vmatprep.subr.bf16.mxu1 %v5469_v61  ;;  %v68_v61 = vld [vmem:[%s9312_s0 + $0x150] sm:$0xff]  ;;  %v5489_v63 = vpack.c.bf16 %v813_v56, %v812_v55  ;;  %v837_v55 = vld [vmem:[%s9311_s1 + $0x1758] sm:$0xff]  ;;  %v822_v56 = vld [vmem:[%s9311_s1 + $0x16e0] sm:$0xff] }
 0x155   :  { %5440 = vmatpush3.bf16.msra.mxu0 %v5439_v3  ;;  %v5521_v3 = vpack.c.bf16 %v845_v58, %v844_v57  ;;  %v823_v57 = vld [vmem:[%s9311_s1 + $0x16e8] sm:$0xff]  ;;  %v854_v58 = vld [vmem:[%s9311_s1 + $0x17e0] sm:$0xff] }
 0x156   :  { %5442 = vmatprep.subr.bf16.mxu0 %v5441_v5  ;;  %v814_v5 = vld [vmem:[%s9311_s1 + $0x16a0] sm:$0xff] }
 0x157   :  { %5472 = vmatpush3.bf16.msra.mxu1 %v5471_v4  ;;  %v3799_v21 = vpop.f32.mrb[6].mxu0  ;;  %v829_v4 = vld [vmem:[%s9311_s1 + $0x1718] sm:$0xff]  ;;  %v5493_v13 = vpack.c.bf16 %v815_v6, %v814_v5  ;;  %v824_v5 = vld [vmem:[%s9311_s1 + $0x16f0] sm:$0xff] }
 0x158   :  { %5474 = vmatprep.subr.bf16.mxu1 %v5473_v9  ;;  %v3800_v26 = vpop.f32.mrb[7].mxu0  ;;  %v71_v9 = vld [vmem:[%s9312_s0 + $0x168] sm:$0xff]  ;;  %v5523_v12 = vpack.c.bf16 %v829_v4, %v828_v2  ;;  %v825_v6 = vld [vmem:[%s9311_s1 + $0x16f8] sm:$0xff] }
 0x159   :  { %v3834_v27 = vpop.f32.mrb[6].mxu1  ;;  %v3801_v30 = vadd.f32 %v3800_v26, %v3799_v21  ;;  %5444 = vmatpush3.bf16.msra.mxu0 %v5443_v15  ;;  %v799_v15 = vld [vmem:[%s9311_s1 + $0x1628] sm:$0xff]  ;;  %v848_v21 = vld [vmem:[%s9311_s1 + $0x17b0] sm:$0xff] }
 0x15a   :  { %v3835_v31 = vpop.f32.mrb[7].mxu1  ;;  %5446 = vmatprep.subr.bf16.mxu0 %v5445_v17  ;;  %v5525_v17 = vpack.c.bf16 %v847_v8, %v846_v7  ;;  %v5495_v23 = vpack.c.bf16 %v799_v15, %v798_v14  ;;  %v800_v26 = vld [vmem:[%s9311_s1 + $0x1630] sm:$0xff]  ;;  %v839_v4 = vld [vmem:[%s9311_s1 + $0x1768] sm:$0xff] }
 0x15b   :  { %v3836_v33 = vadd.f32 %v3835_v31, %v3834_v27  ;;  %5476 = vmatpush3.bf16.msra.mxu1 %v5475_v16  ;;  %v1608_v39 = vadd.f32 %v3801_v30, %v7954_v1  ;;  %v843_v1 = vld [vmem:[%s9311_s1 + $0x1788] sm:$0xff]  ;;  %v830_v16 = vld [vmem:[%s9311_s1 + $0x1720] sm:$0xff]  ;;  %v801_v27 = vld [vmem:[%s9311_s1 + $0x1638] sm:$0xff]  ;;  %v5543_v15 = vpack.c.bf16 %v839_v4, %v838_v20 }
 0x15c   :  { %5478 = vmatprep.subr.bf16.mxu1 %v5477_v22  ;;  %v5517_v53 = vpack.c.bf16 %v843_v1, %v842_v45  ;;  %v849_v22 = vld [vmem:[%s9311_s1 + $0x17b8] sm:$0xff]  ;;  %v5527_v24 = vpack.c.bf16 %v831_v18, %v830_v16  ;;  %v818_v31 = vld [vmem:[%s9311_s1 + $0x16c0] sm:$0xff]  ;;  %v852_v1 = vld [vmem:[%s9311_s1 + $0x17d0] sm:$0xff]  ;;  %v5513_v16 = vpack.c.bf16 %v825_v6, %v824_v5 }
 0x15d   :  { %v8161_v46 = vadd.f32 %v3836_v33, %v1608_v39  ;;  %5448 = vmatpush3.bf16.msra.mxu0 %v5447_v32  ;;  %v5529_v29 = vpack.c.bf16 %v849_v22, %v848_v21  ;;  %v833_v30 = vld [vmem:[%s9311_s1 + $0x1738] sm:$0xff]  ;;  %v819_v32 = vld [vmem:[%s9311_s1 + $0x16c8] sm:$0xff]  ;;  %v850_v33 = vld [vmem:[%s9311_s1 + $0x17c0] sm:$0xff] }
 0x15e   :  { %5450 = vmatprep.subr.bf16.mxu0 %v5449_v35  ;;  %v5499_v35 = vpack.c.bf16 %v801_v27, %v800_v26  ;;  %v5531_v36 = vpack.c.bf16 %v833_v30, %v832_v28  ;;  %v5501_v37 = vpack.c.bf16 %v819_v32, %v818_v31  ;;  %v803_v39 = vld [vmem:[%s9311_s1 + $0x1648] sm:$0xff]  ;;  %v821_v45 = vld [vmem:[%s9311_s1 + $0x16d8] sm:$0xff]  ;;  %v858_v30 = vld [vmem:[%s9311_s1 + $0x1800] sm:$0xff] }
 0x15f   :  { %5480 = vmatpush3.bf16.msra.mxu1 %v5479_v34  ;;  %v851_v34 = vld [vmem:[%s9311_s1 + $0x17c8] sm:$0xff]  ;;  %v5505_v50 = vpack.c.bf16 %v821_v45, %v820_v44  ;;  %v809_v18 = vld [vmem:[%s9311_s1 + $0x1678] sm:$0xff]  ;;  %v890_v32 = vld [vmem:[%s9311_s1 + $0x1900] sm:$0xff] }
 0x160   :  { %5482 = vmatprep.subr.bf16.mxu1 %v5481_v41  ;;  %v834_v41 = vld [vmem:[%s9311_s1 + $0x1740] sm:$0xff]  ;;  %v5533_v42 = vpack.c.bf16 %v851_v34, %v850_v33  ;;  %v841_v22 = vld [vmem:[%s9311_s1 + $0x1778] sm:$0xff]  ;;  %v859_v31 = vld [vmem:[%s9311_s1 + $0x1808] sm:$0xff] }
 0x161   :  { %5452 = vmatpush3.bf16.msra.mxu0 %v5451_v47  ;;  %v853_v47 = vld [vmem:[%s9311_s1 + $0x17d8] sm:$0xff]  ;;  %v5547_v28 = vpack.c.bf16 %v841_v22, %v840_v19  ;;  %v891_v34 = vld [vmem:[%s9311_s1 + $0x1908] sm:$0xff]  ;;  %v860_v45 = vld [vmem:[%s9311_s1 + $0x1810] sm:$0xff] }
 0x162   :  { %5486 = vmatprep.subr.bf16.mxu0 %v5485_v49  ;;  %v5535_v49 = vpack.c.bf16 %v835_v43, %v834_v41  ;;  %v5537_v54 = vpack.c.bf16 %v853_v47, %v852_v1  ;;  %v5551_v41 = vpack.c.bf16 %v859_v31, %v858_v30  ;;  %v5583_v43 = vpack.c.bf16 %v891_v34, %v890_v32  ;;  %v861_v1 = vld [vmem:[%s9311_s1 + $0x1818] sm:$0xff]  ;;  %v892_v47 = vld [vmem:[%s9311_s1 + $0x1910] sm:$0xff]  ;;  %v866_v19 = vld [vmem:[%s9311_s1 + $0x1840] sm:$0xff] }
 0x163   :  { %5484 = vmatpush3.bf16.msra.mxu1 %v5483_v48  ;;  %v5503_v48 = vpack.c.bf16 %v803_v39, %v802_v38  ;;  %v909_v38 = vld [vmem:[%s9311_s1 + $0x1998] sm:$0xff]  ;;  %v70_v39 = vld [vmem:[%s9312_s0 + $0x160] sm:$0xff]  ;;  %v868_v31 = vld [vmem:[%s9311_s1 + $0x1850] sm:$0xff] }
 0x164   :  { %5518 = vmatprep.subr.bf16.mxu1 %v5517_v53  ;;  %2586 = vmatmul.mubr.f32.vlgmr.msra.gmra.mrb[20].mxu0 %v66_v59  ;;  %v836_v53 = vld [vmem:[%s9311_s1 + $0x1750] sm:$0xff]  ;;  %v855_v59 = vld [vmem:[%s9311_s1 + $0x17e8] sm:$0xff]  ;;  %v881_v20 = vld [vmem:[%s9311_s1 + $0x18b8] sm:$0xff] }
 0x165   :  { %5488 = vmatpush3.bf16.msra.mxu0 %v5487_v60  ;;  %2725 = vmatprep.mubr.f32.mxu0 %v71_v9  ;;  %v5507_v60 = vpack.c.bf16 %v805_v52, %v804_v51  ;;  %v856_v9 = vld [vmem:[%s9311_s1 + $0x17f0] sm:$0xff]  ;;  %v879_v51 = vld [vmem:[%s9311_s1 + $0x18a8] sm:$0xff]  ;;  %v910_v52 = vld [vmem:[%s9311_s1 + $0x19a0] sm:$0xff] }
 0x166   :  { %2656 = vmatmul.mubr.f32.vlgmr.msra.gmra.mrb[20].mxu1 %v68_v61  ;;  %5490 = vmatprep.subr.bf16.mxu0 %v5489_v63  ;;  %v5539_v61 = vpack.c.bf16 %v837_v55, %v836_v53  ;;  %v806_v63 = vld [vmem:[%s9311_s1 + $0x1660] sm:$0xff]  ;;  %v911_v53 = vld [vmem:[%s9311_s1 + $0x19a8] sm:$0xff]  ;;  %v5555_v55 = vpack.c.bf16 %v861_v1, %v860_v45  ;;  %v869_v32 = vld [vmem:[%s9311_s1 + $0x1858] sm:$0xff] }
 0x167   :  { %5520 = vmatpush3.bf16.msra.mxu1 %v5519_v62  ;;  %2795 = vmatprep.mubr.f32.mxu1 %v73_v11  ;;  %v5509_v62 = vpack.c.bf16 %v823_v57, %v822_v56  ;;  %v77_v56 = vld [vmem:[%s9312_s0 + $0x198] sm:$0xff]  ;;  %v871_v45 = vld [vmem:[%s9311_s1 + $0x1868] sm:$0xff]  ;;  %v902_v1 = vld [vmem:[%s9311_s1 + $0x1960] sm:$0xff] }
 0x168   :  { %5522 = vmatprep.subr.bf16.mxu1 %v5521_v3  ;;  %v5541_v3 = vpack.c.bf16 %v855_v59, %v854_v58  ;;  %v862_v59 = vld [vmem:[%s9311_s1 + $0x1820] sm:$0xff] }
 0x169   :  { %5492 = vmatpush3.bf16.msra.mxu0 %v5491_v10  ;;  %v857_v10 = vld [vmem:[%s9311_s1 + $0x17f8] sm:$0xff] }
 0x16a   :  { %5494 = vmatprep.subr.bf16.mxu0 %v5493_v13  ;;  %v5511_v13 = vpack.c.bf16 %v807_v0, %v806_v63  ;;  %v5545_v21 = vpack.c.bf16 %v857_v10, %v856_v9  ;;  %v895_v63 = vld [vmem:[%s9311_s1 + $0x1928] sm:$0xff]  ;;  %v880_v0 = vld [vmem:[%s9311_s1 + $0x18b0] sm:$0xff] }
 0x16b   :  { %5524 = vmatpush3.bf16.msra.mxu1 %v5523_v12  ;;  %v5561_v6 = vpack.c.bf16 %v881_v20, %v880_v0  ;;  %v896_v9 = vld [vmem:[%s9311_s1 + $0x1930] sm:$0xff] }
 0x16c   :  { %5526 = vmatprep.subr.bf16.mxu1 %v5525_v17  ;;  %v808_v17 = vld [vmem:[%s9311_s1 + $0x1670] sm:$0xff] }
 0x16d   :  { %5496 = vmatpush3.bf16.msra.mxu0 %v5495_v23  ;;  %v874_v23 = vld [vmem:[%s9311_s1 + $0x1880] sm:$0xff]  ;;  %v5515_v27 = vpack.c.bf16 %v809_v18, %v808_v17  ;;  %v904_v0 = vld [vmem:[%s9311_s1 + $0x1970] sm:$0xff] }
 0x16e   :  { %5498 = vmatprep.subr.bf16.mxu0 %v5497_v25  ;;  %v906_v25 = vld [vmem:[%s9311_s1 + $0x1980] sm:$0xff] }
 0x16f   :  { %5528 = vmatpush3.bf16.msra.mxu1 %v5527_v24  ;;  %v875_v24 = vld [vmem:[%s9311_s1 + $0x1888] sm:$0xff] }
 0x170   :  { %5530 = vmatprep.subr.bf16.mxu1 %v5529_v29  ;;  %v5549_v29 = vpack.c.bf16 %v875_v24, %v874_v23  ;;  %v899_v23 = vld [vmem:[%s9311_s1 + $0x1948] sm:$0xff]  ;;  %v884_v24 = vld [vmem:[%s9311_s1 + $0x18d0] sm:$0xff] }
 0x171   :  { %5500 = vmatpush3.bf16.msra.mxu0 %v5499_v35  ;;  %v876_v35 = vld [vmem:[%s9311_s1 + $0x1890] sm:$0xff] }
 0x172   :  { %5502 = vmatprep.subr.bf16.mxu0 %v5501_v37  ;;  %v908_v37 = vld [vmem:[%s9311_s1 + $0x1990] sm:$0xff] }
 0x173   :  { %5532 = vmatpush3.bf16.msra.mxu1 %v5531_v36  ;;  %v877_v36 = vld [vmem:[%s9311_s1 + $0x1898] sm:$0xff] }
 0x174   :  { %5534 = vmatprep.subr.bf16.mxu1 %v5533_v42  ;;  %v72_v42 = vld [vmem:[%s9312_s0 + $0x170] sm:$0xff]  ;;  %v5553_v44 = vpack.c.bf16 %v877_v36, %v876_v35  ;;  %v901_v35 = vld [vmem:[%s9311_s1 + $0x1958] sm:$0xff]  ;;  %v886_v36 = vld [vmem:[%s9311_s1 + $0x18e0] sm:$0xff] }
 0x175   :  { %5504 = vmatpush3.bf16.msra.mxu0 %v5503_v48  ;;  %v5585_v48 = vpack.c.bf16 %v909_v38, %v908_v37  ;;  %v887_v37 = vld [vmem:[%s9311_s1 + $0x18e8] sm:$0xff]  ;;  %v918_v38 = vld [vmem:[%s9311_s1 + $0x19e0] sm:$0xff] }
 0x176   :  { %5506 = vmatprep.subr.bf16.mxu0 %v5505_v50  ;;  %v878_v50 = vld [vmem:[%s9311_s1 + $0x18a0] sm:$0xff] }
 0x177   :  { %5536 = vmatpush3.bf16.msra.mxu1 %v5535_v49  ;;  %v3869_v2 = vpop.f32.mrb[8].mxu0  ;;  %v893_v49 = vld [vmem:[%s9311_s1 + $0x1918] sm:$0xff]  ;;  %v5557_v58 = vpack.c.bf16 %v879_v51, %v878_v50  ;;  %v888_v50 = vld [vmem:[%s9311_s1 + $0x18f0] sm:$0xff] }
 0x178   :  { %5538 = vmatprep.subr.bf16.mxu1 %v5537_v54  ;;  %v3870_v7 = vpop.f32.mrb[9].mxu0  ;;  %v75_v54 = vld [vmem:[%s9312_s0 + $0x188] sm:$0xff]  ;;  %v5587_v57 = vpack.c.bf16 %v893_v49, %v892_v47  ;;  %v889_v51 = vld [vmem:[%s9311_s1 + $0x18f8] sm:$0xff] }
 0x179   :  { %v3904_v8 = vpop.f32.mrb[8].mxu1  ;;  %v3871_v11 = vadd.f32 %v3870_v7, %v3869_v2  ;;  %5508 = vmatpush3.bf16.msra.mxu0 %v5507_v60  ;;  %v863_v60 = vld [vmem:[%s9311_s1 + $0x1828] sm:$0xff]  ;;  %v912_v2 = vld [vmem:[%s9311_s1 + $0x19b0] sm:$0xff] }
 0x17a   :  { %v3905_v12 = vpop.f32.mrb[9].mxu1  ;;  %5510 = vmatprep.subr.bf16.mxu0 %v5509_v62  ;;  %v5589_v62 = vpack.c.bf16 %v911_v53, %v910_v52  ;;  %v5559_v4 = vpack.c.bf16 %v863_v60, %v862_v59  ;;  %v864_v7 = vld [vmem:[%s9311_s1 + $0x1830] sm:$0xff]  ;;  %v903_v49 = vld [vmem:[%s9311_s1 + $0x1968] sm:$0xff] }
 0x17b   :  { %v3906_v14 = vadd.f32 %v3905_v12, %v3904_v8  ;;  %5540 = vmatpush3.bf16.msra.mxu1 %v5539_v61  ;;  %v1748_v40 = vadd.f32 %v3871_v11, %v8161_v46  ;;  %v907_v46 = vld [vmem:[%s9311_s1 + $0x1988] sm:$0xff]  ;;  %v894_v61 = vld [vmem:[%s9311_s1 + $0x1920] sm:$0xff]  ;;  %v865_v8 = vld [vmem:[%s9311_s1 + $0x1838] sm:$0xff]  ;;  %v5607_v60 = vpack.c.bf16 %v903_v49, %v902_v1 }
 0x17c   :  { %5542 = vmatprep.subr.bf16.mxu1 %v5541_v3  ;;  %v5581_v33 = vpack.c.bf16 %v907_v46, %v906_v25  ;;  %v913_v3 = vld [vmem:[%s9311_s1 + $0x19b8] sm:$0xff]  ;;  %v5591_v5 = vpack.c.bf16 %v895_v63, %v894_v61  ;;  %v882_v12 = vld [vmem:[%s9311_s1 + $0x18c0] sm:$0xff]  ;;  %v916_v46 = vld [vmem:[%s9311_s1 + $0x19d0] sm:$0xff]  ;;  %v5577_v61 = vpack.c.bf16 %v889_v51, %v888_v50 }
 0x17d   :  { %v8368_v26 = vadd.f32 %v3906_v14, %v1748_v40  ;;  %5512 = vmatpush3.bf16.msra.mxu0 %v5511_v13  ;;  %v5593_v10 = vpack.c.bf16 %v913_v3, %v912_v2  ;;  %v897_v11 = vld [vmem:[%s9311_s1 + $0x1938] sm:$0xff]  ;;  %v883_v13 = vld [vmem:[%s9311_s1 + $0x18c8] sm:$0xff]  ;;  %v914_v14 = vld [vmem:[%s9311_s1 + $0x19c0] sm:$0xff] }
 0x17e   :  { %5514 = vmatprep.subr.bf16.mxu0 %v5513_v16  ;;  %v5563_v16 = vpack.c.bf16 %v865_v8, %v864_v7  ;;  %v5595_v17 = vpack.c.bf16 %v897_v11, %v896_v9  ;;  %v5565_v18 = vpack.c.bf16 %v883_v13, %v882_v12  ;;  %v867_v40 = vld [vmem:[%s9311_s1 + $0x1848] sm:$0xff]  ;;  %v885_v25 = vld [vmem:[%s9311_s1 + $0x18d8] sm:$0xff]  ;;  %v922_v11 = vld [vmem:[%s9311_s1 + $0x1a00] sm:$0xff] }
 0x17f   :  { %5544 = vmatpush3.bf16.msra.mxu1 %v5543_v15  ;;  %v915_v15 = vld [vmem:[%s9311_s1 + $0x19c8] sm:$0xff]  ;;  %v5569_v30 = vpack.c.bf16 %v885_v25, %v884_v24  ;;  %v873_v63 = vld [vmem:[%s9311_s1 + $0x1878] sm:$0xff]  ;;  %v954_v13 = vld [vmem:[%s9311_s1 + $0x1b00] sm:$0xff] }
 0x180   :  { %5546 = vmatprep.subr.bf16.mxu1 %v5545_v21  ;;  %v898_v21 = vld [vmem:[%s9311_s1 + $0x1940] sm:$0xff]  ;;  %v5597_v22 = vpack.c.bf16 %v915_v15, %v914_v14  ;;  %v905_v3 = vld [vmem:[%s9311_s1 + $0x1978] sm:$0xff]  ;;  %v923_v12 = vld [vmem:[%s9311_s1 + $0x1a08] sm:$0xff] }
 0x181   :  { %5516 = vmatpush3.bf16.msra.mxu0 %v5515_v27  ;;  %v917_v27 = vld [vmem:[%s9311_s1 + $0x19d8] sm:$0xff]  ;;  %v5611_v9 = vpack.c.bf16 %v905_v3, %v904_v0  ;;  %v955_v15 = vld [vmem:[%s9311_s1 + $0x1b08] sm:$0xff]  ;;  %v924_v25 = vld [vmem:[%s9311_s1 + $0x1a10] sm:$0xff] }
 0x182   :  { %5550 = vmatprep.subr.bf16.mxu0 %v5549_v29  ;;  %v5599_v29 = vpack.c.bf16 %v899_v23, %v898_v21  ;;  %v5601_v34 = vpack.c.bf16 %v917_v27, %v916_v46  ;;  %v5615_v21 = vpack.c.bf16 %v923_v12, %v922_v11  ;;  %v5647_v23 = vpack.c.bf16 %v955_v15, %v954_v13  ;;  %v925_v46 = vld [vmem:[%s9311_s1 + $0x1a18] sm:$0xff]  ;;  %v956_v27 = vld [vmem:[%s9311_s1 + $0x1b10] sm:$0xff]  ;;  %v930_v0 = vld [vmem:[%s9311_s1 + $0x1a40] sm:$0xff] }
 0x183   :  { %5548 = vmatpush3.bf16.msra.mxu1 %v5547_v28  ;;  %v5567_v28 = vpack.c.bf16 %v867_v40, %v866_v19  ;;  %v973_v19 = vld [vmem:[%s9311_s1 + $0x1b98] sm:$0xff]  ;;  %v74_v40 = vld [vmem:[%s9312_s0 + $0x180] sm:$0xff]  ;;  %v932_v12 = vld [vmem:[%s9311_s1 + $0x1a50] sm:$0xff] }
 0x184   :  { %5582 = vmatprep.subr.bf16.mxu1 %v5581_v33  ;;  %2726 = vmatmul.mubr.f32.vlgmr.msra.gmra.mrb[22].mxu0 %v70_v39  ;;  %v900_v33 = vld [vmem:[%s9311_s1 + $0x1950] sm:$0xff]  ;;  %v919_v39 = vld [vmem:[%s9311_s1 + $0x19e8] sm:$0xff]  ;;  %v945_v1 = vld [vmem:[%s9311_s1 + $0x1ab8] sm:$0xff] }
 0x185   :  { %5552 = vmatpush3.bf16.msra.mxu0 %v5551_v41  ;;  %2865 = vmatprep.mubr.f32.mxu0 %v75_v54  ;;  %v5571_v41 = vpack.c.bf16 %v869_v32, %v868_v31  ;;  %v920_v54 = vld [vmem:[%s9311_s1 + $0x19f0] sm:$0xff]  ;;  %v943_v31 = vld [vmem:[%s9311_s1 + $0x1aa8] sm:$0xff]  ;;  %v974_v32 = vld [vmem:[%s9311_s1 + $0x1ba0] sm:$0xff] }
 0x186   :  { %2796 = vmatmul.mubr.f32.vlgmr.msra.gmra.mrb[22].mxu1 %v72_v42  ;;  %5554 = vmatprep.subr.bf16.mxu0 %v5553_v44  ;;  %v5603_v42 = vpack.c.bf16 %v901_v35, %v900_v33  ;;  %v870_v44 = vld [vmem:[%s9311_s1 + $0x1860] sm:$0xff]  ;;  %v975_v33 = vld [vmem:[%s9311_s1 + $0x1ba8] sm:$0xff]  ;;  %v5619_v35 = vpack.c.bf16 %v925_v46, %v924_v25  ;;  %v933_v13 = vld [vmem:[%s9311_s1 + $0x1a58] sm:$0xff] }
 0x187   :  { %5584 = vmatpush3.bf16.msra.mxu1 %v5583_v43  ;;  %2935 = vmatprep.mubr.f32.mxu1 %v77_v56  ;;  %v5573_v43 = vpack.c.bf16 %v887_v37, %v886_v36  ;;  %v81_v36 = vld [vmem:[%s9312_s0 + $0x1b8] sm:$0xff]  ;;  %v935_v25 = vld [vmem:[%s9311_s1 + $0x1a68] sm:$0xff]  ;;  %v966_v46 = vld [vmem:[%s9311_s1 + $0x1b60] sm:$0xff] }
 0x188   :  { %5586 = vmatprep.subr.bf16.mxu1 %v5585_v48  ;;  %v5605_v48 = vpack.c.bf16 %v919_v39, %v918_v38  ;;  %v926_v39 = vld [vmem:[%s9311_s1 + $0x1a20] sm:$0xff] }
 0x189   :  { %5556 = vmatpush3.bf16.msra.mxu0 %v5555_v55  ;;  %v921_v55 = vld [vmem:[%s9311_s1 + $0x19f8] sm:$0xff] }
 0x18a   :  { %5558 = vmatprep.subr.bf16.mxu0 %v5557_v58  ;;  %v5575_v58 = vpack.c.bf16 %v871_v45, %v870_v44  ;;  %v5609_v2 = vpack.c.bf16 %v921_v55, %v920_v54  ;;  %v959_v44 = vld [vmem:[%s9311_s1 + $0x1b28] sm:$0xff]  ;;  %v944_v45 = vld [vmem:[%s9311_s1 + $0x1ab0] sm:$0xff] }
 0x18b   :  { %5588 = vmatpush3.bf16.msra.mxu1 %v5587_v57  ;;  %v5625_v51 = vpack.c.bf16 %v945_v1, %v944_v45  ;;  %v960_v54 = vld [vmem:[%s9311_s1 + $0x1b30] sm:$0xff] }
 0x18c   :  { %5590 = vmatprep.subr.bf16.mxu1 %v5589_v62  ;;  %v872_v62 = vld [vmem:[%s9311_s1 + $0x1870] sm:$0xff] }
 0x18d   :  { %5560 = vmatpush3.bf16.msra.mxu0 %v5559_v4  ;;  %v938_v4 = vld [vmem:[%s9311_s1 + $0x1a80] sm:$0xff]  ;;  %v5579_v8 = vpack.c.bf16 %v873_v63, %v872_v62  ;;  %v968_v45 = vld [vmem:[%s9311_s1 + $0x1b70] sm:$0xff] }
 0x18e   :  { %5562 = vmatprep.subr.bf16.mxu0 %v5561_v6  ;;  %v970_v6 = vld [vmem:[%s9311_s1 + $0x1b80] sm:$0xff] }
 0x18f   :  { %5592 = vmatpush3.bf16.msra.mxu1 %v5591_v5  ;;  %v939_v5 = vld [vmem:[%s9311_s1 + $0x1a88] sm:$0xff] }
 0x190   :  { %5594 = vmatprep.subr.bf16.mxu1 %v5593_v10  ;;  %v5613_v10 = vpack.c.bf16 %v939_v5, %v938_v4  ;;  %v963_v4 = vld [vmem:[%s9311_s1 + $0x1b48] sm:$0xff]  ;;  %v948_v5 = vld [vmem:[%s9311_s1 + $0x1ad0] sm:$0xff] }
 0x191   :  { %5564 = vmatpush3.bf16.msra.mxu0 %v5563_v16  ;;  %v940_v16 = vld [vmem:[%s9311_s1 + $0x1a90] sm:$0xff] }
 0x192   :  { %5566 = vmatprep.subr.bf16.mxu0 %v5565_v18  ;;  %v972_v18 = vld [vmem:[%s9311_s1 + $0x1b90] sm:$0xff] }
 0x193   :  { %5596 = vmatpush3.bf16.msra.mxu1 %v5595_v17  ;;  %v941_v17 = vld [vmem:[%s9311_s1 + $0x1a98] sm:$0xff] }
 0x194   :  { %5598 = vmatprep.subr.bf16.mxu1 %v5597_v22  ;;  %v76_v22 = vld [vmem:[%s9312_s0 + $0x190] sm:$0xff]  ;;  %v5617_v24 = vpack.c.bf16 %v941_v17, %v940_v16  ;;  %v965_v16 = vld [vmem:[%s9311_s1 + $0x1b58] sm:$0xff]  ;;  %v950_v17 = vld [vmem:[%s9311_s1 + $0x1ae0] sm:$0xff] }
 0x195   :  { %5568 = vmatpush3.bf16.msra.mxu0 %v5567_v28  ;;  %v5649_v28 = vpack.c.bf16 %v973_v19, %v972_v18  ;;  %v951_v18 = vld [vmem:[%s9311_s1 + $0x1ae8] sm:$0xff]  ;;  %v982_v19 = vld [vmem:[%s9311_s1 + $0x1be0] sm:$0xff] }
 0x196   :  { %5570 = vmatprep.subr.bf16.mxu0 %v5569_v30  ;;  %v942_v30 = vld [vmem:[%s9311_s1 + $0x1aa0] sm:$0xff] }
 0x197   :  { %5600 = vmatpush3.bf16.msra.mxu1 %v5599_v29  ;;  %v3939_v47 = vpop.f32.mrb[10].mxu0  ;;  %v957_v29 = vld [vmem:[%s9311_s1 + $0x1b18] sm:$0xff]  ;;  %v5621_v38 = vpack.c.bf16 %v943_v31, %v942_v30  ;;  %v952_v30 = vld [vmem:[%s9311_s1 + $0x1af0] sm:$0xff] }
 0x198   :  { %5602 = vmatprep.subr.bf16.mxu1 %v5601_v34  ;;  %v3940_v52 = vpop.f32.mrb[11].mxu0  ;;  %v79_v34 = vld [vmem:[%s9312_s0 + $0x1a8] sm:$0xff]  ;;  %v5651_v37 = vpack.c.bf16 %v957_v29, %v956_v27  ;;  %v953_v31 = vld [vmem:[%s9311_s1 + $0x1af8] sm:$0xff] }
 0x199   :  { %v3974_v53 = vpop.f32.mrb[10].mxu1  ;;  %v3941_v56 = vadd.f32 %v3940_v52, %v3939_v47  ;;  %5572 = vmatpush3.bf16.msra.mxu0 %v5571_v41  ;;  %v927_v41 = vld [vmem:[%s9311_s1 + $0x1a28] sm:$0xff]  ;;  %v976_v47 = vld [vmem:[%s9311_s1 + $0x1bb0] sm:$0xff] }
 0x19a   :  { %v3975_v57 = vpop.f32.mrb[11].mxu1  ;;  %5574 = vmatprep.subr.bf16.mxu0 %v5573_v43  ;;  %v5653_v43 = vpack.c.bf16 %v975_v33, %v974_v32  ;;  %v5623_v49 = vpack.c.bf16 %v927_v41, %v926_v39  ;;  %v928_v52 = vld [vmem:[%s9311_s1 + $0x1a30] sm:$0xff]  ;;  %v967_v29 = vld [vmem:[%s9311_s1 + $0x1b68] sm:$0xff] }
 0x19b   :  { %v3976_v59 = vadd.f32 %v3975_v57, %v3974_v53  ;;  %5604 = vmatpush3.bf16.msra.mxu1 %v5603_v42  ;;  %v1888_v20 = vadd.f32 %v3941_v56, %v8368_v26  ;;  %v971_v26 = vld [vmem:[%s9311_s1 + $0x1b88] sm:$0xff]  ;;  %v958_v42 = vld [vmem:[%s9311_s1 + $0x1b20] sm:$0xff]  ;;  %v929_v53 = vld [vmem:[%s9311_s1 + $0x1a38] sm:$0xff]  ;;  %v5671_v41 = vpack.c.bf16 %v967_v29, %v966_v46 }
 0x19c   :  { %5606 = vmatprep.subr.bf16.mxu1 %v5605_v48  ;;  %v5645_v14 = vpack.c.bf16 %v971_v26, %v970_v6  ;;  %v977_v48 = vld [vmem:[%s9311_s1 + $0x1bb8] sm:$0xff]  ;;  %v5655_v50 = vpack.c.bf16 %v959_v44, %v958_v42  ;;  %v946_v57 = vld [vmem:[%s9311_s1 + $0x1ac0] sm:$0xff]  ;;  %v980_v26 = vld [vmem:[%s9311_s1 + $0x1bd0] sm:$0xff]  ;;  %v5641_v42 = vpack.c.bf16 %v953_v31, %v952_v30 }
 0x19d   :  { %v8575_v7 = vadd.f32 %v3976_v59, %v1888_v20  ;;  %5576 = vmatpush3.bf16.msra.mxu0 %v5575_v58  ;;  %v5657_v55 = vpack.c.bf16 %v977_v48, %v976_v47  ;;  %v961_v56 = vld [vmem:[%s9311_s1 + $0x1b38] sm:$0xff]  ;;  %v947_v58 = vld [vmem:[%s9311_s1 + $0x1ac8] sm:$0xff]  ;;  %v978_v59 = vld [vmem:[%s9311_s1 + $0x1bc0] sm:$0xff] }
 0x19e   :  { %5578 = vmatprep.subr.bf16.mxu0 %v5577_v61  ;;  %v5627_v61 = vpack.c.bf16 %v929_v53, %v928_v52  ;;  %v5659_v62 = vpack.c.bf16 %v961_v56, %v960_v54  ;;  %v5629_v63 = vpack.c.bf16 %v947_v58, %v946_v57  ;;  %v931_v20 = vld [vmem:[%s9311_s1 + $0x1a48] sm:$0xff]  ;;  %v949_v6 = vld [vmem:[%s9311_s1 + $0x1ad8] sm:$0xff]  ;;  %v986_v56 = vld [vmem:[%s9311_s1 + $0x1c00] sm:$0xff] }
 0x19f   :  { %5608 = vmatpush3.bf16.msra.mxu1 %v5607_v60  ;;  %v979_v60 = vld [vmem:[%s9311_s1 + $0x1bc8] sm:$0xff]  ;;  %v5633_v11 = vpack.c.bf16 %v949_v6, %v948_v5  ;;  %v937_v44 = vld [vmem:[%s9311_s1 + $0x1a78] sm:$0xff]  ;;  %v1018_v58 = vld [vmem:[%s9311_s1 + $0x1d00] sm:$0xff] }
 0x1a0   :  { %5610 = vmatprep.subr.bf16.mxu1 %v5609_v2  ;;  %v962_v2 = vld [vmem:[%s9311_s1 + $0x1b40] sm:$0xff]  ;;  %v5661_v3 = vpack.c.bf16 %v979_v60, %v978_v59  ;;  %v969_v48 = vld [vmem:[%s9311_s1 + $0x1b78] sm:$0xff]  ;;  %v987_v57 = vld [vmem:[%s9311_s1 + $0x1c08] sm:$0xff] }
 0x1a1   :  { %5580 = vmatpush3.bf16.msra.mxu0 %v5579_v8  ;;  %v981_v8 = vld [vmem:[%s9311_s1 + $0x1bd8] sm:$0xff]  ;;  %v5675_v54 = vpack.c.bf16 %v969_v48, %v968_v45  ;;  %v1019_v60 = vld [vmem:[%s9311_s1 + $0x1d08] sm:$0xff]  ;;  %v988_v6 = vld [vmem:[%s9311_s1 + $0x1c10] sm:$0xff] }
 0x1a2   :  { %5614 = vmatprep.subr.bf16.mxu0 %v5613_v10  ;;  %v5663_v10 = vpack.c.bf16 %v963_v4, %v962_v2  ;;  %v5665_v15 = vpack.c.bf16 %v981_v8, %v980_v26  ;;  %v5679_v2 = vpack.c.bf16 %v987_v57, %v986_v56  ;;  %v5711_v4 = vpack.c.bf16 %v1019_v60, %v1018_v58  ;;  %v989_v26 = vld [vmem:[%s9311_s1 + $0x1c18] sm:$0xff]  ;;  %v1020_v8 = vld [vmem:[%s9311_s1 + $0x1d10] sm:$0xff]  ;;  %v994_v45 = vld [vmem:[%s9311_s1 + $0x1c40] sm:$0xff] }
 0x1a3   :  { %5612 = vmatpush3.bf16.msra.mxu1 %v5611_v9  ;;  %v5631_v9 = vpack.c.bf16 %v931_v20, %v930_v0  ;;  %v1037_v0 = vld [vmem:[%s9311_s1 + $0x1d98] sm:$0xff]  ;;  %v78_v20 = vld [vmem:[%s9312_s0 + $0x1a0] sm:$0xff]  ;;  %v996_v57 = vld [vmem:[%s9311_s1 + $0x1c50] sm:$0xff] }
 0x1a4   :  { %5646 = vmatprep.subr.bf16.mxu1 %v5645_v14  ;;  %2866 = vmatmul.mubr.f32.vlgmr.msra.gmra.mrb[24].mxu0 %v74_v40  ;;  %v964_v14 = vld [vmem:[%s9311_s1 + $0x1b50] sm:$0xff]  ;;  %v983_v40 = vld [vmem:[%s9311_s1 + $0x1be8] sm:$0xff]  ;;  %v1009_v46 = vld [vmem:[%s9311_s1 + $0x1cb8] sm:$0xff] }
 0x1a5   :  { %5616 = vmatpush3.bf16.msra.mxu0 %v5615_v21  ;;  %3005 = vmatprep.mubr.f32.mxu0 %v79_v34  ;;  %v5635_v21 = vpack.c.bf16 %v933_v13, %v932_v12  ;;  %v984_v34 = vld [vmem:[%s9311_s1 + $0x1bf0] sm:$0xff]  ;;  %v1007_v12 = vld [vmem:[%s9311_s1 + $0x1ca8] sm:$0xff]  ;;  %v1038_v13 = vld [vmem:[%s9311_s1 + $0x1da0] sm:$0xff] }
 0x1a6   :  { %2936 = vmatmul.mubr.f32.vlgmr.msra.gmra.mrb[24].mxu1 %v76_v22  ;;  %5618 = vmatprep.subr.bf16.mxu0 %v5617_v24  ;;  %v5667_v22 = vpack.c.bf16 %v965_v16, %v964_v14  ;;  %v934_v24 = vld [vmem:[%s9311_s1 + $0x1a60] sm:$0xff]  ;;  %v1039_v14 = vld [vmem:[%s9311_s1 + $0x1da8] sm:$0xff]  ;;  %v5683_v16 = vpack.c.bf16 %v989_v26, %v988_v6  ;;  %v997_v58 = vld [vmem:[%s9311_s1 + $0x1c58] sm:$0xff] }
 0x1a7   :  { %5648 = vmatpush3.bf16.msra.mxu1 %v5647_v23  ;;  %3075 = vmatprep.mubr.f32.mxu1 %v81_v36  ;;  %v5637_v23 = vpack.c.bf16 %v951_v18, %v950_v17  ;;  %v85_v17 = vld [vmem:[%s9312_s0 + $0x1d8] sm:$0xff]  ;;  %v999_v6 = vld [vmem:[%s9311_s1 + $0x1c68] sm:$0xff]  ;;  %v1030_v26 = vld [vmem:[%s9311_s1 + $0x1d60] sm:$0xff] }
 0x1a8   :  { %5650 = vmatprep.subr.bf16.mxu1 %v5649_v28  ;;  %v5669_v28 = vpack.c.bf16 %v983_v40, %v982_v19  ;;  %v990_v40 = vld [vmem:[%s9311_s1 + $0x1c20] sm:$0xff] }
 0x1a9   :  { %5620 = vmatpush3.bf16.msra.mxu0 %v5619_v35  ;;  %v985_v35 = vld [vmem:[%s9311_s1 + $0x1bf8] sm:$0xff] }
 0x1aa   :  { %5622 = vmatprep.subr.bf16.mxu0 %v5621_v38  ;;  %v5639_v38 = vpack.c.bf16 %v935_v25, %v934_v24  ;;  %v5673_v47 = vpack.c.bf16 %v985_v35, %v984_v34  ;;  %v1023_v24 = vld [vmem:[%s9311_s1 + $0x1d28] sm:$0xff]  ;;  %v1008_v25 = vld [vmem:[%s9311_s1 + $0x1cb0] sm:$0xff] }
 0x1ab   :  { %5652 = vmatpush3.bf16.msra.mxu1 %v5651_v37  ;;  %v5689_v31 = vpack.c.bf16 %v1009_v46, %v1008_v25  ;;  %v1024_v34 = vld [vmem:[%s9311_s1 + $0x1d30] sm:$0xff] }
 0x1ac   :  { %5654 = vmatprep.subr.bf16.mxu1 %v5653_v43  ;;  %v936_v43 = vld [vmem:[%s9311_s1 + $0x1a70] sm:$0xff] }
 0x1ad   :  { %5624 = vmatpush3.bf16.msra.mxu0 %v5623_v49  ;;  %v1002_v49 = vld [vmem:[%s9311_s1 + $0x1c80] sm:$0xff]  ;;  %v5643_v53 = vpack.c.bf16 %v937_v44, %v936_v43  ;;  %v1032_v25 = vld [vmem:[%s9311_s1 + $0x1d70] sm:$0xff] }
 0x1ae   :  { %5626 = vmatprep.subr.bf16.mxu0 %v5625_v51  ;;  %v1034_v51 = vld [vmem:[%s9311_s1 + $0x1d80] sm:$0xff] }
 0x1af   :  { %5656 = vmatpush3.bf16.msra.mxu1 %v5655_v50  ;;  %v1003_v50 = vld [vmem:[%s9311_s1 + $0x1c88] sm:$0xff] }
 0x1b0   :  { %5658 = vmatprep.subr.bf16.mxu1 %v5657_v55  ;;  %v5677_v55 = vpack.c.bf16 %v1003_v50, %v1002_v49  ;;  %v1027_v49 = vld [vmem:[%s9311_s1 + $0x1d48] sm:$0xff]  ;;  %v1012_v50 = vld [vmem:[%s9311_s1 + $0x1cd0] sm:$0xff] }
 0x1b1   :  { %5628 = vmatpush3.bf16.msra.mxu0 %v5627_v61  ;;  %v1004_v61 = vld [vmem:[%s9311_s1 + $0x1c90] sm:$0xff] }
 0x1b2   :  { %5630 = vmatprep.subr.bf16.mxu0 %v5629_v63  ;;  %v1036_v63 = vld [vmem:[%s9311_s1 + $0x1d90] sm:$0xff] }
 0x1b3   :  { %5660 = vmatpush3.bf16.msra.mxu1 %v5659_v62  ;;  %v1005_v62 = vld [vmem:[%s9311_s1 + $0x1c98] sm:$0xff] }
 0x1b4   :  { %5662 = vmatprep.subr.bf16.mxu1 %v5661_v3  ;;  %v80_v3 = vld [vmem:[%s9312_s0 + $0x1b0] sm:$0xff]  ;;  %v5681_v5 = vpack.c.bf16 %v1005_v62, %v1004_v61  ;;  %v1029_v61 = vld [vmem:[%s9311_s1 + $0x1d58] sm:$0xff]  ;;  %v1014_v62 = vld [vmem:[%s9311_s1 + $0x1ce0] sm:$0xff] }
 0x1b5   :  { %5632 = vmatpush3.bf16.msra.mxu0 %v5631_v9  ;;  %v5713_v9 = vpack.c.bf16 %v1037_v0, %v1036_v63  ;;  %v1015_v63 = vld [vmem:[%s9311_s1 + $0x1ce8] sm:$0xff]  ;;  %v1046_v0 = vld [vmem:[%s9311_s1 + $0x1de0] sm:$0xff] }
 0x1b6   :  { %5634 = vmatprep.subr.bf16.mxu0 %v5633_v11  ;;  %v1006_v11 = vld [vmem:[%s9311_s1 + $0x1ca0] sm:$0xff] }
 0x1b7   :  { %5664 = vmatpush3.bf16.msra.mxu1 %v5663_v10  ;;  %v4009_v27 = vpop.f32.mrb[12].mxu0  ;;  %v1021_v10 = vld [vmem:[%s9311_s1 + $0x1d18] sm:$0xff]  ;;  %v5685_v19 = vpack.c.bf16 %v1007_v12, %v1006_v11  ;;  %v1016_v11 = vld [vmem:[%s9311_s1 + $0x1cf0] sm:$0xff] }
 0x1b8   :  { %5666 = vmatprep.subr.bf16.mxu1 %v5665_v15  ;;  %v4010_v32 = vpop.f32.mrb[13].mxu0  ;;  %v83_v15 = vld [vmem:[%s9312_s0 + $0x1c8] sm:$0xff]  ;;  %v5715_v18 = vpack.c.bf16 %v1021_v10, %v1020_v8  ;;  %v1017_v12 = vld [vmem:[%s9311_s1 + $0x1cf8] sm:$0xff] }
 0x1b9   :  { %v4044_v33 = vpop.f32.mrb[12].mxu1  ;;  %v4011_v36 = vadd.f32 %v4010_v32, %v4009_v27  ;;  %5636 = vmatpush3.bf16.msra.mxu0 %v5635_v21  ;;  %v991_v21 = vld [vmem:[%s9311_s1 + $0x1c28] sm:$0xff]  ;;  %v1040_v27 = vld [vmem:[%s9311_s1 + $0x1db0] sm:$0xff] }
 0x1ba   :  { %v4045_v37 = vpop.f32.mrb[13].mxu1  ;;  %5638 = vmatprep.subr.bf16.mxu0 %v5637_v23  ;;  %v5717_v23 = vpack.c.bf16 %v1039_v14, %v1038_v13  ;;  %v5687_v29 = vpack.c.bf16 %v991_v21, %v990_v40  ;;  %v992_v32 = vld [vmem:[%s9311_s1 + $0x1c30] sm:$0xff]  ;;  %v1031_v10 = vld [vmem:[%s9311_s1 + $0x1d68] sm:$0xff] }
 0x1bb   :  { %v4046_v39 = vadd.f32 %v4045_v37, %v4044_v33  ;;  %5668 = vmatpush3.bf16.msra.mxu1 %v5667_v22  ;;  %v2028_v1 = vadd.f32 %v4011_v36, %v8575_v7  ;;  %v1035_v7 = vld [vmem:[%s9311_s1 + $0x1d88] sm:$0xff]  ;;  %v1022_v22 = vld [vmem:[%s9311_s1 + $0x1d20] sm:$0xff]  ;;  %v993_v33 = vld [vmem:[%s9311_s1 + $0x1c38] sm:$0xff]  ;;  %v5735_v21 = vpack.c.bf16 %v1031_v10, %v1030_v26 }
 0x1bc   :  { %5670 = vmatprep.subr.bf16.mxu1 %v5669_v28  ;;  %v5709_v59 = vpack.c.bf16 %v1035_v7, %v1034_v51  ;;  %v1041_v28 = vld [vmem:[%s9311_s1 + $0x1db8] sm:$0xff]  ;;  %v5719_v30 = vpack.c.bf16 %v1023_v24, %v1022_v22  ;;  %v1010_v37 = vld [vmem:[%s9311_s1 + $0x1cc0] sm:$0xff]  ;;  %v1044_v7 = vld [vmem:[%s9311_s1 + $0x1dd0] sm:$0xff]  ;;  %v5705_v22 = vpack.c.bf16 %v1017_v12, %v1016_v11 }
 0x1bd   :  { %v8782_v52 = vadd.f32 %v4046_v39, %v2028_v1  ;;  %5640 = vmatpush3.bf16.msra.mxu0 %v5639_v38  ;;  %v5721_v35 = vpack.c.bf16 %v1041_v28, %v1040_v27  ;;  %v1025_v36 = vld [vmem:[%s9311_s1 + $0x1d38] sm:$0xff]  ;;  %v1011_v38 = vld [vmem:[%s9311_s1 + $0x1cc8] sm:$0xff]  ;;  %v1042_v39 = vld [vmem:[%s9311_s1 + $0x1dc0] sm:$0xff] }
 0x1be   :  { %5642 = vmatprep.subr.bf16.mxu0 %v5641_v42  ;;  %v5691_v42 = vpack.c.bf16 %v993_v33, %v992_v32  ;;  %v5723_v43 = vpack.c.bf16 %v1025_v36, %v1024_v34  ;;  %v5693_v44 = vpack.c.bf16 %v1011_v38, %v1010_v37  ;;  %v995_v1 = vld [vmem:[%s9311_s1 + $0x1c48] sm:$0xff]  ;;  %v1013_v51 = vld [vmem:[%s9311_s1 + $0x1cd8] sm:$0xff]  ;;  %v1050_v36 = vld [vmem:[%s9311_s1 + $0x1e00] sm:$0xff] }
 0x1bf   :  { %5672 = vmatpush3.bf16.msra.mxu1 %v5671_v41  ;;  %v1043_v41 = vld [vmem:[%s9311_s1 + $0x1dc8] sm:$0xff]  ;;  %v5697_v56 = vpack.c.bf16 %v1013_v51, %v1012_v50  ;;  %v1001_v24 = vld [vmem:[%s9311_s1 + $0x1c78] sm:$0xff]  ;;  %v1082_v38 = vld [vmem:[%s9311_s1 + $0x1f00] sm:$0xff] }
 0x1c0   :  { %5674 = vmatprep.subr.bf16.mxu1 %v5673_v47  ;;  %v1026_v47 = vld [vmem:[%s9311_s1 + $0x1d40] sm:$0xff]  ;;  %v5725_v48 = vpack.c.bf16 %v1043_v41, %v1042_v39  ;;  %v1033_v28 = vld [vmem:[%s9311_s1 + $0x1d78] sm:$0xff]  ;;  %v1051_v37 = vld [vmem:[%s9311_s1 + $0x1e08] sm:$0xff] }
 0x1c1   :  { %5644 = vmatpush3.bf16.msra.mxu0 %v5643_v53  ;;  %v1045_v53 = vld [vmem:[%s9311_s1 + $0x1dd8] sm:$0xff]  ;;  %v5739_v34 = vpack.c.bf16 %v1033_v28, %v1032_v25  ;;  %v1083_v41 = vld [vmem:[%s9311_s1 + $0x1f08] sm:$0xff]  ;;  %v1052_v51 = vld [vmem:[%s9311_s1 + $0x1e10] sm:$0xff] }
 0x1c2   :  { %5678 = vmatprep.subr.bf16.mxu0 %v5677_v55  ;;  %v5727_v55 = vpack.c.bf16 %v1027_v49, %v1026_v47  ;;  %v5729_v60 = vpack.c.bf16 %v1045_v53, %v1044_v7  ;;  %v5743_v47 = vpack.c.bf16 %v1051_v37, %v1050_v36  ;;  %v5775_v49 = vpack.c.bf16 %v1083_v41, %v1082_v38  ;;  %v1053_v7 = vld [vmem:[%s9311_s1 + $0x1e18] sm:$0xff]  ;;  %v1084_v53 = vld [vmem:[%s9311_s1 + $0x1f10] sm:$0xff]  ;;  %v1058_v25 = vld [vmem:[%s9311_s1 + $0x1e40] sm:$0xff] }
 0x1c3   :  { %5676 = vmatpush3.bf16.msra.mxu1 %v5675_v54  ;;  %v5695_v54 = vpack.c.bf16 %v995_v1, %v994_v45  ;;  %v1101_v45 = vld [vmem:[%s9311_s1 + $0x1f98] sm:$0xff]  ;;  %v82_v1 = vld [vmem:[%s9312_s0 + $0x1c0] sm:$0xff]  ;;  %v1060_v37 = vld [vmem:[%s9311_s1 + $0x1e50] sm:$0xff] }
 0x1c4   :  { %5710 = vmatprep.subr.bf16.mxu1 %v5709_v59  ;;  %3006 = vmatmul.mubr.f32.vlgmr.msra.gmra.mrb[26].mxu0 %v78_v20  ;;  %v1028_v59 = vld [vmem:[%s9311_s1 + $0x1d50] sm:$0xff]  ;;  %v1047_v20 = vld [vmem:[%s9311_s1 + $0x1de8] sm:$0xff]  ;;  %v1073_v26 = vld [vmem:[%s9311_s1 + $0x1eb8] sm:$0xff] }
 0x1c5   :  { %5680 = vmatpush3.bf16.msra.mxu0 %v5679_v2  ;;  %3145 = vmatprep.mubr.f32.mxu0 %v83_v15  ;;  %v5699_v2 = vpack.c.bf16 %v997_v58, %v996_v57  ;;  %v1048_v15 = vld [vmem:[%s9311_s1 + $0x1df0] sm:$0xff]  ;;  %v1071_v57 = vld [vmem:[%s9311_s1 + $0x1ea8] sm:$0xff]  ;;  %v1102_v58 = vld [vmem:[%s9311_s1 + $0x1fa0] sm:$0xff] }
 0x1c6   :  { %3076 = vmatmul.mubr.f32.vlgmr.msra.gmra.mrb[26].mxu1 %v80_v3  ;;  %5682 = vmatprep.subr.bf16.mxu0 %v5681_v5  ;;  %v5731_v3 = vpack.c.bf16 %v1029_v61, %v1028_v59  ;;  %v998_v5 = vld [vmem:[%s9311_s1 + $0x1c60] sm:$0xff]  ;;  %v1103_v59 = vld [vmem:[%s9311_s1 + $0x1fa8] sm:$0xff]  ;;  %v5747_v61 = vpack.c.bf16 %v1053_v7, %v1052_v51  ;;  %v1061_v38 = vld [vmem:[%s9311_s1 + $0x1e58] sm:$0xff] }
 0x1c7   :  { %5712 = vmatpush3.bf16.msra.mxu1 %v5711_v4  ;;  %3215 = vmatprep.mubr.f32.mxu1 %v85_v17  ;;  %v5701_v4 = vpack.c.bf16 %v1015_v63, %v1014_v62  ;;  %v89_v62 = vld [vmem:[%s9312_s0 + $0x1f8] sm:$0xff]  ;;  %v1063_v51 = vld [vmem:[%s9311_s1 + $0x1e68] sm:$0xff]  ;;  %v1094_v7 = vld [vmem:[%s9311_s1 + $0x1f60] sm:$0xff] }
 0x1c8   :  { %5714 = vmatprep.subr.bf16.mxu1 %v5713_v9  ;;  %v5733_v9 = vpack.c.bf16 %v1047_v20, %v1046_v0  ;;  %v1054_v20 = vld [vmem:[%s9311_s1 + $0x1e20] sm:$0xff] }
 0x1c9   :  { %5684 = vmatpush3.bf16.msra.mxu0 %v5683_v16  ;;  %v1049_v16 = vld [vmem:[%s9311_s1 + $0x1df8] sm:$0xff] }
 0x1ca   :  { %5686 = vmatprep.subr.bf16.mxu0 %v5685_v19  ;;  %v5703_v19 = vpack.c.bf16 %v999_v6, %v998_v5  ;;  %v5737_v27 = vpack.c.bf16 %v1049_v16, %v1048_v15  ;;  %v1087_v5 = vld [vmem:[%s9311_s1 + $0x1f28] sm:$0xff]  ;;  %v1072_v6 = vld [vmem:[%s9311_s1 + $0x1eb0] sm:$0xff] }
 0x1cb   :  { %5716 = vmatpush3.bf16.msra.mxu1 %v5715_v18  ;;  %v5753_v12 = vpack.c.bf16 %v1073_v26, %v1072_v6  ;;  %v1088_v15 = vld [vmem:[%s9311_s1 + $0x1f30] sm:$0xff] }
 0x1cc   :  { %5718 = vmatprep.subr.bf16.mxu1 %v5717_v23  ;;  %v1000_v23 = vld [vmem:[%s9311_s1 + $0x1c70] sm:$0xff] }
 0x1cd   :  { %5688 = vmatpush3.bf16.msra.mxu0 %v5687_v29  ;;  %v1066_v29 = vld [vmem:[%s9311_s1 + $0x1e80] sm:$0xff]  ;;  %v5707_v33 = vpack.c.bf16 %v1001_v24, %v1000_v23 }
 0x1ce   :  { %5690 = vmatprep.subr.bf16.mxu0 %v5689_v31  ;;  %v1098_v31 = vld [vmem:[%s9311_s1 + $0x1f80] sm:$0xff] }
 0x1cf   :  { %5720 = vmatpush3.bf16.msra.mxu1 %v5719_v30  ;;  %v1067_v30 = vld [vmem:[%s9311_s1 + $0x1e88] sm:$0xff] }
 0x1d0   :  { %5722 = vmatprep.subr.bf16.mxu1 %v5721_v35  ;;  %v5741_v35 = vpack.c.bf16 %v1067_v30, %v1066_v29  ;;  %v1091_v29 = vld [vmem:[%s9311_s1 + $0x1f48] sm:$0xff]  ;;  %v1076_v30 = vld [vmem:[%s9311_s1 + $0x1ed0] sm:$0xff] }
 0x1d1   :  { %5692 = vmatpush3.bf16.msra.mxu0 %v5691_v42  ;;  %v1068_v42 = vld [vmem:[%s9311_s1 + $0x1e90] sm:$0xff] }
 0x1d2   :  { %5694 = vmatprep.subr.bf16.mxu0 %v5693_v44  ;;  %v1100_v44 = vld [vmem:[%s9311_s1 + $0x1f90] sm:$0xff] }
 0x1d3   :  { %5724 = vmatpush3.bf16.msra.mxu1 %v5723_v43  ;;  %v1069_v43 = vld [vmem:[%s9311_s1 + $0x1e98] sm:$0xff] }
 0x1d4   :  { %5726 = vmatprep.subr.bf16.mxu1 %v5725_v48  ;;  %v84_v48 = vld [vmem:[%s9312_s0 + $0x1d0] sm:$0xff]  ;;  %v5745_v50 = vpack.c.bf16 %v1069_v43, %v1068_v42  ;;  %v1093_v42 = vld [vmem:[%s9311_s1 + $0x1f58] sm:$0xff]  ;;  %v1078_v43 = vld [vmem:[%s9311_s1 + $0x1ee0] sm:$0xff] }
 0x1d5   :  { %5696 = vmatpush3.bf16.msra.mxu0 %v5695_v54  ;;  %v5777_v54 = vpack.c.bf16 %v1101_v45, %v1100_v44  ;;  %v1079_v44 = vld [vmem:[%s9311_s1 + $0x1ee8] sm:$0xff]  ;;  %v1110_v45 = vld [vmem:[%s9311_s1 + $0x1fe0] sm:$0xff] }
 0x1d6   :  { %5698 = vmatprep.subr.bf16.mxu0 %v5697_v56  ;;  %v1070_v56 = vld [vmem:[%s9311_s1 + $0x1ea0] sm:$0xff] }
 0x1d7   :  { %5728 = vmatpush3.bf16.msra.mxu1 %v5727_v55  ;;  %v4079_v8 = vpop.f32.mrb[14].mxu0  ;;  %v1085_v55 = vld [vmem:[%s9311_s1 + $0x1f18] sm:$0xff]  ;;  %v5749_v0 = vpack.c.bf16 %v1071_v57, %v1070_v56  ;;  %v1080_v56 = vld [vmem:[%s9311_s1 + $0x1ef0] sm:$0xff] }
 0x1d8   :  { %5730 = vmatprep.subr.bf16.mxu1 %v5729_v60  ;;  %v4080_v13 = vpop.f32.mrb[15].mxu0  ;;  %v87_v60 = vld [vmem:[%s9312_s0 + $0x1e8] sm:$0xff]  ;;  %v5779_v63 = vpack.c.bf16 %v1085_v55, %v1084_v53  ;;  %v1081_v57 = vld [vmem:[%s9311_s1 + $0x1ef8] sm:$0xff] }
 0x1d9   :  { %v4114_v14 = vpop.f32.mrb[14].mxu1  ;;  %v4081_v17 = vadd.f32 %v4080_v13, %v4079_v8  ;;  %5700 = vmatpush3.bf16.msra.mxu0 %v5699_v2  ;;  %v1055_v2 = vld [vmem:[%s9311_s1 + $0x1e28] sm:$0xff]  ;;  %v1104_v8 = vld [vmem:[%s9311_s1 + $0x1fb0] sm:$0xff] }
 0x1da   :  { %v4115_v18 = vpop.f32.mrb[15].mxu1  ;;  %5702 = vmatprep.subr.bf16.mxu0 %v5701_v4  ;;  %v5781_v4 = vpack.c.bf16 %v1103_v59, %v1102_v58  ;;  %v5751_v10 = vpack.c.bf16 %v1055_v2, %v1054_v20  ;;  %v1056_v13 = vld [vmem:[%s9311_s1 + $0x1e30] sm:$0xff]  ;;  %v1095_v55 = vld [vmem:[%s9311_s1 + $0x1f68] sm:$0xff] }
 0x1db   :  { %v4116_v40 = vadd.f32 %v4115_v18, %v4114_v14  ;;  %5732 = vmatpush3.bf16.msra.mxu1 %v5731_v3  ;;  %v2168_v46 = vadd.f32 %v4081_v17, %v8782_v52  ;;  %v1099_v52 = vld [vmem:[%s9311_s1 + $0x1f88] sm:$0xff]  ;;  %v1086_v3 = vld [vmem:[%s9311_s1 + $0x1f20] sm:$0xff]  ;;  %v1057_v14 = vld [vmem:[%s9311_s1 + $0x1e38] sm:$0xff]  ;;  %v5799_v2 = vpack.c.bf16 %v1095_v55, %v1094_v7 }
 0x1dc   :  { %5734 = vmatprep.subr.bf16.mxu1 %v5733_v9  ;;  %v5773_v39 = vpack.c.bf16 %v1099_v52, %v1098_v31  ;;  %v1105_v9 = vld [vmem:[%s9311_s1 + $0x1fb8] sm:$0xff]  ;;  %v5783_v11 = vpack.c.bf16 %v1087_v5, %v1086_v3  ;;  %v1074_v18 = vld [vmem:[%s9311_s1 + $0x1ec0] sm:$0xff]  ;;  %v1108_v52 = vld [vmem:[%s9311_s1 + $0x1fd0] sm:$0xff]  ;;  %v5769_v3 = vpack.c.bf16 %v1081_v57, %v1080_v56 }
 0x1dd   :  { %v8989_v32 = vadd.f32 %v4116_v40, %v2168_v46  ;;  %5704 = vmatpush3.bf16.msra.mxu0 %v5703_v19  ;;  %v5785_v16 = vpack.c.bf16 %v1105_v9, %v1104_v8  ;;  %v1089_v17 = vld [vmem:[%s9311_s1 + $0x1f38] sm:$0xff]  ;;  %v1075_v19 = vld [vmem:[%s9311_s1 + $0x1ec8] sm:$0xff]  ;;  %v1106_v40 = vld [vmem:[%s9311_s1 + $0x1fc0] sm:$0xff] }
 0x1de   :  { %5706 = vmatprep.subr.bf16.mxu0 %v5705_v22  ;;  %v5755_v22 = vpack.c.bf16 %v1057_v14, %v1056_v13  ;;  %v5787_v23 = vpack.c.bf16 %v1089_v17, %v1088_v15  ;;  %v5757_v24 = vpack.c.bf16 %v1075_v19, %v1074_v18  ;;  %v1059_v46 = vld [vmem:[%s9311_s1 + $0x1e48] sm:$0xff]  ;;  %v1077_v31 = vld [vmem:[%s9311_s1 + $0x1ed8] sm:$0xff]  ;;  %v1096_v8 = vld [vmem:[%s9311_s1 + $0x1f70] sm:$0xff] }
 0x1df   :  { %5736 = vmatpush3.bf16.msra.mxu1 %v5735_v21  ;;  %v1107_v21 = vld [vmem:[%s9311_s1 + $0x1fc8] sm:$0xff]  ;;  %v5761_v36 = vpack.c.bf16 %v1077_v31, %v1076_v30  ;;  %v1065_v5 = vld [vmem:[%s9311_s1 + $0x1e78] sm:$0xff]  ;;  %v88_v13 = vld [vmem:[%s9312_s0 + $0x1f0] sm:$0xff]  ;;  %v5856_v30 = vmov 0.0|0.0  }
 0x1e0   :  { %5738 = vmatprep.subr.bf16.mxu1 %v5737_v27  ;;  %v1090_v27 = vld [vmem:[%s9311_s1 + $0x1f40] sm:$0xff]  ;;  %v5789_v28 = vpack.c.bf16 %v1107_v21, %v1106_v40  ;;  %v1097_v9 = vld [vmem:[%s9311_s1 + $0x1f78] sm:$0xff]  ;;  %v3375_v7 = vld [vmem:[%s9314_s3 + $0x68] sm:$0xff] }
 0x1e1   :  { %5708 = vmatpush3.bf16.msra.mxu0 %v5707_v33  ;;  %v1109_v33 = vld [vmem:[%s9311_s1 + $0x1fd8] sm:$0xff]  ;;  %v3362_v31 = vld [vmem:[%s9314_s3] sm:$0xff] }
 0x1e2   :  { %5742 = vmatprep.subr.bf16.mxu0 %v5741_v35  ;;  %v5791_v35 = vpack.c.bf16 %v1091_v29, %v1090_v27  ;;  %v5793_v41 = vpack.c.bf16 %v1109_v33, %v1108_v52  ;;  %v3363_v52 = vld [vmem:[%s9314_s3 + $0x8] sm:$0xff]  ;;  %v3364_v33 = vld [vmem:[%s9314_s3 + $0x10] sm:$0xff] }
 0x1e3   :  { %5740 = vmatpush3.bf16.msra.mxu1 %v5739_v34  ;;  %v5759_v34 = vpack.c.bf16 %v1059_v46, %v1058_v25 }
 0x1e4   :  { %5774 = vmatprep.subr.bf16.mxu1 %v5773_v39  ;;  %3146 = vmatmul.mubr.f32.vlgmr.msra.gmra.mrb[28].mxu0 %v82_v1  ;;  %v1092_v39 = vld [vmem:[%s9311_s1 + $0x1f50] sm:$0xff]  ;;  %v1111_v1 = vld [vmem:[%s9311_s1 + $0x1fe8] sm:$0xff] }
 0x1e5   :  { %5744 = vmatpush3.bf16.msra.mxu0 %v5743_v47  ;;  %3285 = vmatprep.mubr.f32.mxu0 %v87_v60  ;;  %v5763_v47 = vpack.c.bf16 %v1061_v38, %v1060_v37  ;;  %v1112_v60 = vld [vmem:[%s9311_s1 + $0x1ff0] sm:$0xff]  ;;  %v3366_v37 = vld [vmem:[%s9314_s3 + $0x20] sm:$0xff]  ;;  %v3367_v38 = vld [vmem:[%s9314_s3 + $0x28] sm:$0xff] }
 0x1e6   :  { %3216 = vmatmul.mubr.f32.vlgmr.msra.gmra.mrb[28].mxu1 %v84_v48  ;;  %5746 = vmatprep.subr.bf16.mxu0 %v5745_v50  ;;  %v5795_v48 = vpack.c.bf16 %v1093_v42, %v1092_v39  ;;  %v1062_v50 = vld [vmem:[%s9311_s1 + $0x1e60] sm:$0xff]  ;;  %v5812_v39 = vpack.c.bf16 %v3367_v38, %v3366_v37  ;;  %v3369_v42 = vld [vmem:[%s9314_s3 + $0x38] sm:$0xff] }
 0x1e7   :  { %5776 = vmatpush3.bf16.msra.mxu1 %v5775_v49  ;;  %3355 = vmatprep.mubr.f32.mxu1 %v89_v62  ;;  %v5765_v49 = vpack.c.bf16 %v1079_v44, %v1078_v43  ;;  %v3370_v44 = vld [vmem:[%s9314_s3 + $0x40] sm:$0xff] }
 0x1e8   :  { %5778 = vmatprep.subr.bf16.mxu1 %v5777_v54  ;;  %v5797_v54 = vpack.c.bf16 %v1111_v1, %v1110_v45  ;;  %v3371_v45 = vld [vmem:[%s9314_s3 + $0x48] sm:$0xff] }
 0x1e9   :  { %5748 = vmatpush3.bf16.msra.mxu0 %v5747_v61  ;;  %v1113_v61 = vld [vmem:[%s9311_s1 + $0x1ff8] sm:$0xff]  ;;  %v5818_v1 = vpack.c.bf16 %v3371_v45, %v3370_v44 }
 0x1ea   :  { %5750 = vmatprep.subr.bf16.mxu0 %v5749_v0  ;;  %v5767_v0 = vpack.c.bf16 %v1063_v51, %v1062_v50  ;;  %v5801_v26 = vpack.c.bf16 %v1113_v61, %v1112_v60  ;;  %v3374_v51 = vld [vmem:[%s9314_s3 + $0x60] sm:$0xff]  ;;  %v3376_v60 = vld [vmem:[%s9314_s3 + $0x70] sm:$0xff]  ;;  %v3377_v61 = vld [vmem:[%s9314_s3 + $0x78] sm:$0xff] }
 0x1eb   :  { %5780 = vmatpush3.bf16.msra.mxu1 %v5779_v63  ;;  %v5824_v55 = vpack.c.bf16 %v3375_v7, %v3374_v51 }
 0x1ec   :  { %5782 = vmatprep.subr.bf16.mxu1 %v5781_v4  ;;  %v1064_v4 = vld [vmem:[%s9311_s1 + $0x1e70] sm:$0xff] }
 0x1ed   :  { %5752 = vmatpush3.bf16.msra.mxu0 %v5751_v10 }
 0x1ee   :  { %5754 = vmatprep.subr.bf16.mxu0 %v5753_v12  ;;  %v5803_v12 = vpack.c.bf16 %v1097_v9, %v1096_v8  ;;  %v3461_v8 = vld [vmem:[%s9315_s5 + $0x28] sm:$0xff] }
 0x1ef   :  { %5784 = vmatpush3.bf16.msra.mxu1 %v5783_v11  ;;  %v5771_v11 = vpack.c.bf16 %v1065_v5, %v1064_v4  ;;  %v3459_v5 = vld [vmem:[%s9315_s5 + $0x18] sm:$0xff] }
 0x1f0   :  { %5786 = vmatprep.subr.bf16.mxu1 %v5785_v16 }
 0x1f1   :  { %5756 = vmatpush3.bf16.msra.mxu0 %v5755_v22 }
 0x1f2   :  { %5758 = vmatprep.subr.bf16.mxu0 %v5757_v24 }
 0x1f3   :  { %5788 = vmatpush3.bf16.msra.mxu1 %v5787_v23 }
 0x1f4   :  { %5790 = vmatprep.subr.bf16.mxu1 %v5789_v28 }
 0x1f5   :  { %5760 = vmatpush3.bf16.msra.mxu0 %v5759_v34  ;;  %v5806_v34 = vpack.c.bf16 %v3363_v52, %v3362_v31 }
 0x1f6   :  { %5762 = vmatprep.subr.bf16.mxu0 %v5761_v36 }
 0x1f7   :  { %5792 = vmatpush3.bf16.msra.mxu1 %v5791_v35  ;;  %v4149_v53 = vpop.f32.mrb[16].mxu0  ;;  %v3365_v35 = vld [vmem:[%s9314_s3 + $0x18] sm:$0xff] }
 0x1f8   :  { %5794 = vmatprep.subr.bf16.mxu1 %v5793_v41  ;;  %v4150_v58 = vpop.f32.mrb[17].mxu0  ;;  %v5809_v36 = vpack.c.bf16 %v3365_v35, %v3364_v33  ;;  %v3368_v41 = vld [vmem:[%s9314_s3 + $0x30] sm:$0xff] }
 0x1f9   :  { %v4184_v59 = vpop.f32.mrb[16].mxu1  ;;  %v4151_v62 = vadd.f32 %v4150_v58, %v4149_v53  ;;  %5764 = vmatpush3.bf16.msra.mxu0 %v5763_v47  ;;  %v5815_v43 = vpack.c.bf16 %v3369_v42, %v3368_v41  ;;  %v3372_v47 = vld [vmem:[%s9314_s3 + $0x50] sm:$0xff] }
 0x1fa   :  { %v4185_v63 = vpop.f32.mrb[17].mxu1  ;;  %5766 = vmatprep.subr.bf16.mxu0 %v5765_v49 }
 0x1fb   :  { %v4186_v20 = vadd.f32 %v4185_v63, %v4184_v59  ;;  %5796 = vmatpush3.bf16.msra.mxu1 %v5795_v48  ;;  %v2308_v6 = vadd.f32 %v4151_v62, %v8989_v32  ;;  %v86_v32 = vld [vmem:[%s9312_s0 + $0x1e0] sm:$0xff]  ;;  %v3373_v48 = vld [vmem:[%s9314_s3 + $0x58] sm:$0xff]  ;;  %v5827_v62 = vpack.c.bf16 %v3377_v61, %v3376_v60 }
 0x1fc   :  { %5798 = vmatprep.subr.bf16.mxu1 %v5797_v54  ;;  %v5821_v49 = vpack.c.bf16 %v3373_v48, %v3372_v47 }
 0x1fd   :  { %v2378_v10 = vadd.f32 %v4186_v20, %v2308_v6  ;;  %5768 = vmatpush3.bf16.msra.mxu0 %v5767_v0  ;;  %v5858_v0 = vmov 0.0   ;;  %v3456_v20 = vld [vmem:[%s9315_s5] sm:$0xff] }
 0x1fe   :  { %5770 = vmatprep.subr.bf16.mxu0 %v5769_v3  ;;  %v3458_v3 = vld [vmem:[%s9315_s5 + $0x10] sm:$0xff] }
 0x1ff   :  { %5800 = vmatpush3.bf16.msra.mxu1 %v5799_v2  ;;  %v3457_v2 = vld [vmem:[%s9315_s5 + $0x8] sm:$0xff]  ;;  %v5833_v6 = vpack.c.bf16 %v3459_v5, %v3458_v3 }
 0x200   :  { %5802 = vmatprep.subr.bf16.mxu1 %v5801_v26  ;;  %v5830_v4 = vpack.c.bf16 %v3457_v2, %v3456_v20  ;;  %v3460_v26 = vld [vmem:[%s9315_s5 + $0x20] sm:$0xff] }
 0x201   :  { %5772 = vmatpush3.bf16.msra.mxu0 %v5771_v11  ;;  %v5836_v9 = vpack.c.bf16 %v3461_v8, %v3460_v26  ;;  %v3463_v11 = vld [vmem:[%s9315_s5 + $0x38] sm:$0xff] }
 0x202   :  { %5805 = vmatprep.subr.bf16.mxu0 %v5856_v30 }
 0x203   :  { %5804 = vmatpush3.bf16.msra.mxu1 %v5803_v12 }
 0x204   :  { %3286 = vmatmul.mubr.f32.vlgmr.msra.gmra.mrb[30].mxu0 %v86_v32  ;;  %5829 = vmatprep.subr.bf16.mxu1 %v5856_v30  ;;  %v3464_v32 = vld [vmem:[%s9315_s5 + $0x40] sm:$0xff] }
 0x205   :  { %5807 = vmatpush3.bf16.msra.mxu0 %v5806_v34  ;;  %4743 = vmatprep.mubr.msk.f32.mxu0 %vm5857_vm0, %v5858_v0 }
 0x206   :  { %3356 = vmatmul.mubr.f32.vlgmr.msra.gmra.mrb[30].mxu1 %v88_v13  ;;  %5808 = vmatprep.subr.bf16.mxu0 %v5856_v30  ;;  %v3465_v13 = vld [vmem:[%s9315_s5 + $0x48] sm:$0xff] }
 0x207   :  { %4778 = vmatprep.mubr.msk.f32.mxu1 %vm5857_vm0, %v5858_v0  ;;  %5831 = vmatpush3.bf16.msra.mxu1 %v5830_v4 }
 0x208   :  { %5832 = vmatprep.subr.bf16.mxu1 %v5856_v30 }
 0x209   :  { %5810 = vmatpush3.bf16.msra.mxu0 %v5809_v36 }
 0x20a   :  { %5811 = vmatprep.subr.bf16.mxu0 %v5856_v30 }
 0x20b   :  { %5834 = vmatpush3.bf16.msra.mxu1 %v5833_v6 }
 0x20c   :  { %5835 = vmatprep.subr.bf16.mxu1 %v5856_v30 }
 0x20d   :  { %5813 = vmatpush3.bf16.msra.mxu0 %v5812_v39 }
 0x20e   :  { %5814 = vmatprep.subr.bf16.mxu0 %v5856_v30 }
 0x20f   :  { %5837 = vmatpush3.bf16.msra.mxu1 %v5836_v9 }
 0x210   :  { %5838 = vmatprep.subr.bf16.mxu1 %v5856_v30 }
 0x211   :  { %5816 = vmatpush3.bf16.msra.mxu0 %v5815_v43 }
 0x212   :  { %5817 = vmatprep.subr.bf16.mxu0 %v5856_v30 }
 0x215   :  { %5819 = vmatpush3.bf16.msra.mxu0 %v5818_v1 }
 0x216   :  { %5820 = vmatprep.subr.bf16.mxu0 %v5856_v30 }
 0x217   :  { %v4219_v14 = vpop.f32.mrb[18].mxu0 }
 0x218   :  { %v4220_v15 = vpop.f32.mrb[19].mxu0 }
 0x219   :  { %v4254_v16 = vpop.f32.mrb[18].mxu1  ;;  %v4221_v17 = vadd.f32 %v4220_v15, %v4219_v14  ;;  %5822 = vmatpush3.bf16.msra.mxu0 %v5821_v49  ;;  %v5842_v14 = vpack.c.bf16 %v3465_v13, %v3464_v32  ;;  %v3466_v15 = vld [vmem:[%s9315_s5 + $0x50] sm:$0xff] }
 0x21a   :  { %v4255_v18 = vpop.f32.mrb[19].mxu1  ;;  %5823 = vmatprep.subr.bf16.mxu0 %v5856_v30 }
 0x21b   :  { %v4256_v19 = vadd.f32 %v4255_v18, %v4254_v16  ;;  %v2448_v40 = vadd.f32 %v4221_v17, %v2378_v10  ;;  %v3462_v10 = vld [vmem:[%s9315_s5 + $0x30] sm:$0xff]  ;;  %v3467_v16 = vld [vmem:[%s9315_s5 + $0x58] sm:$0xff]  ;;  %v3468_v18 = vld [vmem:[%s9315_s5 + $0x60] sm:$0xff] }
 0x21c   :  { %v5839_v12 = vpack.c.bf16 %v3463_v11, %v3462_v10  ;;  %v5845_v17 = vpack.c.bf16 %v3467_v16, %v3466_v15 }
 0x21d   :  { %v2518_v21 = vadd.f32 %v4256_v19, %v2448_v40  ;;  %5825 = vmatpush3.bf16.msra.mxu0 %v5824_v55  ;;  %v3469_v19 = vld [vmem:[%s9315_s5 + $0x68] sm:$0xff]  ;;  %v3470_v55 = vld [vmem:[%s9315_s5 + $0x70] sm:$0xff] }
 0x21e   :  { %5826 = vmatprep.subr.bf16.mxu0 %v5856_v30  ;;  %5840 = vmatpush3.bf16.msra.mxu1 %v5839_v12 }
 0x21f   :  { %5841 = vmatprep.subr.bf16.mxu1 %v5856_v30 }
 0x221   :  { %5828 = vmatpush3.bf16.msra.mxu0 %v5827_v62 }
 0x222   :  { %5843 = vmatpush3.bf16.msra.mxu1 %v5842_v14 }
 0x223   :  { %5844 = vmatprep.subr.bf16.mxu1 %v5856_v30 }
 0x226   :  { %5846 = vmatpush3.bf16.msra.mxu1 %v5845_v17 }
 0x227   :  { %5847 = vmatprep.subr.bf16.mxu1 %v5856_v30 }
 0x237   :  { %v4289_v22 = vpop.f32.mrb[20].mxu0 }
 0x238   :  { %v4290_v23 = vpop.f32.mrb[21].mxu0 }
 0x239   :  { %v4324_v24 = vpop.f32.mrb[20].mxu1  ;;  %v4291_v25 = vadd.f32 %v4290_v23, %v4289_v22 }
 0x23a   :  { %v4325_v46 = vpop.f32.mrb[21].mxu1 }
 0x23b   :  { %v4326_v27 = vadd.f32 %v4325_v46, %v4324_v24  ;;  %v2588_v28 = vadd.f32 %v4291_v25, %v2518_v21  ;;  %v5848_v25 = vpack.c.bf16 %v3469_v19, %v3468_v18 }
 0x23d   :  { %v2658_v29 = vadd.f32 %v4326_v27, %v2588_v28  ;;  %5849 = vmatpush3.bf16.msra.mxu1 %v5848_v25 }
 0x23e   :  { %5850 = vmatprep.subr.bf16.mxu1 %v5856_v30 }
 0x257   :  { %v4359_v50 = vpop.f32.mrb[22].mxu0 }
 0x258   :  { %v4360_v53 = vpop.f32.mrb[23].mxu0 }
 0x259   :  { %v4394_v54 = vpop.f32.mrb[22].mxu1  ;;  %v4361_v56 = vadd.f32 %v4360_v53, %v4359_v50 }
 0x25a   :  { %v4395_v57 = vpop.f32.mrb[23].mxu1 }
 0x25b   :  { %v4396_v58 = vadd.f32 %v4395_v57, %v4394_v54  ;;  %v2728_v59 = vadd.f32 %v4361_v56, %v2658_v29  ;;  %v3471_v56 = vld [vmem:[%s9315_s5 + $0x78] sm:$0xff] }
 0x25c   :  { %v5851_v57 = vpack.c.bf16 %v3471_v56, %v3470_v55 }
 0x25d   :  { %v2798_v63 = vadd.f32 %v4396_v58, %v2728_v59  ;;  %v3555_v58 = vld [vmem:[%s9316_s4] ss:$0 sm:$0xff] }
 0x25e   :  { %5852 = vmatpush3.bf16.msra.mxu1 %v5851_v57 }
 0x277   :  { %v4429_v40 = vpop.f32.mrb[24].mxu0 }
 0x278   :  { %v4430_v21 = vpop.f32.mrb[25].mxu0 }
 0x279   :  { %v4464_v22 = vpop.f32.mrb[24].mxu1  ;;  %v4431_v23 = vadd.f32 %v4430_v21, %v4429_v40 }
 0x27a   :  { %v4465_v24 = vpop.f32.mrb[25].mxu1 }
 0x27b   :  { %v4466_v46 = vadd.f32 %v4465_v24, %v4464_v22  ;;  %v2868_v27 = vadd.f32 %v4431_v23, %v2798_v63  ;;  %v3556_v63 = vld [vmem:[%s9317_s6] ss:$0 sm:$0xff] }
 0x27d   :  { %v2938_v28 = vadd.f32 %v4466_v46, %v2868_v27 }
 0x297   :  { %v4499_v29 = vpop.f32.mrb[26].mxu0 }
 0x298   :  { %v4500_v31 = vpop.f32.mrb[27].mxu0 }
 0x299   :  { %v4534_v52 = vpop.f32.mrb[26].mxu1  ;;  %v4501_v33 = vadd.f32 %v4500_v31, %v4499_v29 }
 0x29a   :  { %v4535_v34 = vpop.f32.mrb[27].mxu1 }
 0x29b   :  { %v4536_v35 = vadd.f32 %v4535_v34, %v4534_v52  ;;  %v3008_v36 = vadd.f32 %v4501_v33, %v2938_v28 }
 0x29d   :  { %v3078_v37 = vadd.f32 %v4536_v35, %v3008_v36 }
 0x2b7   :  { %v4569_v38 = vpop.f32.mrb[28].mxu0 }
 0x2b8   :  { %v4570_v39 = vpop.f32.mrb[29].mxu0 }
 0x2b9   :  { %v4604_v41 = vpop.f32.mrb[28].mxu1  ;;  %v4571_v42 = vadd.f32 %v4570_v39, %v4569_v38 }
 0x2ba   :  { %v4605_v43 = vpop.f32.mrb[29].mxu1 }
 0x2bb   :  { %v4606_v44 = vadd.f32 %v4605_v43, %v4604_v41  ;;  %v3148_v45 = vadd.f32 %v4571_v42, %v3078_v37 }
 0x2bd   :  { %v3218_v1 = vadd.f32 %v4606_v44, %v3148_v45 }
 0x2d7   :  { %v4639_v47 = vpop.f32.mrb[30].mxu0 }
 0x2d8   :  { %v4640_v48 = vpop.f32.mrb[31].mxu0 }
 0x2d9   :  { %v4674_v49 = vpop.f32.mrb[30].mxu1  ;;  %v4641_v30 = vadd.f32 %v4640_v48, %v4639_v47 }
 0x2da   :  { %v4675_v50 = vpop.f32.mrb[31].mxu1 }
 0x2db   :  { %v4676_v51 = vadd.f32 %v4675_v50, %v4674_v49  ;;  %v3288_v7 = vadd.f32 %v4641_v30, %v3218_v1 }
 0x2dd   :  { %v3358_v53 = vadd.f32 %v4676_v51, %v3288_v7 }
 0x2df   :  { %v3361_v54 = vmax.f32 %v3358_v53, 0.0 }
 0x2e1   :  { %4744 = vmatmul.mubr.f32.vlgmr.msra.gmra.mrb[32].mxu0 %v3361_v54 }
 0x3b4   :  { %v3451_v59 = vpop.f32.mrb[32].mxu0 }
 0x3b5   :  { %v3452_v60 = vadd.f32 %v3555_v58, %v3451_v59  ;;  %v4745_v61 = vpop.f32.mrb[33].mxu0 }
 0x3b7   :  { %v3455_v62 = vmax.f32 %v3452_v60, 0.0 }
 0x3b9   :  { %4779 = vmatmul.mubr.f32.vlgmr.msra.gmra.mrb[32].mxu1 %v3455_v62 }
 0x48c   :  { %v3545_v0 = vpop.f32.mrb[32].mxu1 }
 0x48d   :  { %v3546_v20 = vadd.f32 %v3556_v63, %v3545_v0  ;;  %v4780_v2 = vpop.f32.mrb[33].mxu1 }
 0x48f   :  { %3549 = vst [vmem:[%s9318_s7] sm:$0xff] %v3546_v20 }

</bundles_post_ra>
